<compile_context>
chip_gen: v7x
topology: tpu7x:2x2x1
jax: 0.10.0
libtpu: 0.0.40
codegen_flags: <defaults>
</compile_context>

<pallas_src>
import jax
import jax.numpy as jnp
from jax.experimental import pallas as pl
from jax.experimental.pallas import tpu as pltpu

BN_EPS = 1e-5
LANES = 128
RESIDENT_ACC_BUDGET = 8 * 1024 * 1024     # keep conv output in VMEM up to 8 MiB
VMEM_LIMIT_BYTES = 32 * 1024 * 1024


def _make_stage_kernel(H, W, Cp, count, has_residual, resident):
    """Conv3x3(pad=1) -> train-mode BatchNorm -> ReLU [-> + residual]."""
    inv_count = 1.0 / float(count)

    def kernel(*refs):
        if has_residual:
            (xpad_ref, w_ref, gamma_ref, beta_ref, res_ref, o_ref, *scratch) = refs
        else:
            (xpad_ref, w_ref, gamma_ref, beta_ref, o_ref, *scratch) = refs
            res_ref = None
        if resident:
            sum_ref, sq_ref, scale_ref, shift_ref, acc_ref = scratch
        else:
            sum_ref, sq_ref, scale_ref, shift_ref = scratch
            acc_ref = None

        p = pl.program_id(0)   # 0 = stats pass, 1 = normalize pass
        n = pl.program_id(1)   # image index

        @pl.when(jnp.logical_and(p == 0, n == 0))
        def _init():
            sum_ref[...] = jnp.zeros_like(sum_ref)
            sq_ref[...] = jnp.zeros_like(sq_ref)

        def conv():
            # 3x3 conv for this image: 9 shifted-window matmuls on the MXU,
            # bf16 operands with f32 accumulation.  Contraction dim is Cp=128.
            acc = jnp.zeros((H * W, Cp), jnp.float32)
            for kh in range(3):
                for kw in range(3):
                    win = xpad_ref[0, pl.ds(kh, H), pl.ds(kw, W), :]
                    win = win.reshape(H * W, Cp)
                    acc += jnp.dot(win, w_ref[kh * 3 + kw],
                                   preferred_element_type=jnp.float32)
            return acc

        def accumulate_stats(acc):
            # Per-channel batch statistics accumulated across all images.
            sum_ref[...] += jnp.sum(acc, axis=0, keepdims=True)
            sq_ref[...] += jnp.sum(acc * acc, axis=0, keepdims=True)

        def normalize(acc):
            y = jnp.maximum(acc * scale_ref[...] + shift_ref[...], 0.0)
            if has_residual:
                y = y + res_ref[0]                  # residual after ReLU
            o_ref[0] = y.astype(o_ref.dtype)        # lane-dense store

        @pl.when(jnp.logical_and(p == 1, n == 0))
        def _finalize_stats():
            mean = sum_ref[...] * inv_count
            var = jnp.maximum(sq_ref[...] * inv_count - mean * mean, 0.0)
            inv_std = jax.lax.rsqrt(var + BN_EPS)   # EUP
            scale = inv_std * gamma_ref[...]        # fold BN affine
            scale_ref[...] = scale
            shift_ref[...] = beta_ref[...] - mean * scale

        if resident:
            # Conv runs once per image; pass 1 just re-reads the VMEM scratch.
            @pl.when(p == 0)
            def _pass0():
                acc = conv()
                accumulate_stats(acc)
                acc_ref[n] = acc

            @pl.when(p == 1)
            def _pass1():
                normalize(acc_ref[n])
        else:
            # Fallback for large activations: recompute the conv in pass 1.
            acc = conv()

            @pl.when(p == 0)
            def _pass0():
                accumulate_stats(acc)

            @pl.when(p == 1)
            def _pass1():
                normalize(acc)

    return kernel


def _conv_bn_relu_stage(x_pad, w_taps, gamma, beta, residual, out_dtype):
    """One ConvWithBatchNorm stage as a single pallas_call.

    x_pad:   (N, H+2, W+2, Cp) bf16   spatially padded NHWC, channels padded to Cp
    w_taps:  (9, Cp, Cp)       bf16   per-tap (Cin, Cout) matrices, tap = kh*3+kw
    gamma/beta: (1, Cp)        f32
    residual: None or (N, H*W, Cp) f32
    returns  (N, H*W, Cp) out_dtype
    """
    N, Hp2, Wp2, Cp = x_pad.shape
    H, W = Hp2 - 2, Wp2 - 2
    has_res = residual is not None

    acc_bytes = N * H * W * Cp * 4
    resident = acc_bytes <= RESIDENT_ACC_BUDGET
    kernel = _make_stage_kernel(H, W, Cp, N * H * W, has_res, resident)

    if resident:
        # Pass 0: walk images; pass 1: hold the last block (no HBM re-read).
        xpad_map = lambda p, n: (n * (1 - p) + (N - 1) * p, 0, 0, 0)
    else:
        xpad_map = lambda p, n: (n, 0, 0, 0)

    in_specs = [
        pl.BlockSpec((1, Hp2, Wp2, Cp), xpad_map),
        pl.BlockSpec((9, Cp, Cp), lambda p, n: (0, 0, 0)),   # resident weights
        pl.BlockSpec((1, Cp), lambda p, n: (0, 0)),
        pl.BlockSpec((1, Cp), lambda p, n: (0, 0)),
    ]
    args = [x_pad, w_taps, gamma, beta]
    if has_res:
        # Only streamed during the normalize pass (index 0 held during pass 0).
        in_specs.append(pl.BlockSpec((1, H * W, Cp), lambda p, n: (p * n, 0, 0)))
        args.append(residual)

    scratch_shapes = [
        pltpu.VMEM((1, Cp), jnp.float32),   # per-channel sum
        pltpu.VMEM((1, Cp), jnp.float32),   # per-channel sum of squares
        pltpu.VMEM((1, Cp), jnp.float32),   # folded BN scale
        pltpu.VMEM((1, Cp), jnp.float32),   # folded BN shift
    ]
    if resident:
        scratch_shapes.append(pltpu.VMEM((N, H * W, Cp), jnp.float32))

    return pl.pallas_call(
        kernel,
        out_shape=jax.ShapeDtypeStruct((N, H * W, Cp), out_dtype),
        grid=(2, N),   # (pass, image); stats carried in scratch across the grid
        in_specs=in_specs,
        # Output window advances only in pass 1 -> each block written back once.
        out_specs=pl.BlockSpec((1, H * W, Cp), lambda p, n: (p * n, 0, 0)),
        scratch_shapes=scratch_shapes,
        compiler_params=pltpu.CompilerParams(
            dimension_semantics=("arbitrary", "arbitrary"),
            vmem_limit_bytes=VMEM_LIMIT_BYTES,
        ),
    )(*args)


@jax.jit
def residual_block(x_nchw, w1, g1, b1, w2, g2, b2):
    """x_nchw: (N, C, H, W); w*: (C, C, 3, 3) OIHW; g*/b*: (C,)."""
    N, C, H, W = x_nchw.shape
    Cp = max(LANES, ((C + LANES - 1) // LANES) * LANES)

    # --- glue: NCHW -> NHWC, pad channels to 128 lanes -------------------------
    x_nhwc = jnp.transpose(x_nchw, (0, 2, 3, 1)).astype(jnp.float32)
    x_c = jnp.pad(x_nhwc, ((0, 0), (0, 0), (0, 0), (0, Cp - C)))    # (N,H,W,Cp)
    x_res = x_c.reshape(N, H * W, Cp)                               # f32 residual

    def prep_w(w):
        # OIHW (Cout,Cin,3,3) -> (3,3,Cin,Cout) -> pad channels -> (9,Cp,Cp) bf16
        w_t = jnp.transpose(w, (2, 3, 1, 0))
        w_t = jnp.pad(w_t, ((0, 0), (0, 0), (0, Cp - C), (0, Cp - C)))
        return w_t.reshape(9, Cp, Cp).astype(jnp.bfloat16)

    def prep_gb(v):
        return jnp.pad(v.astype(jnp.float32), (0, Cp - C)).reshape(1, Cp)

    # --- stage 1: ConvWithBatchNorm(x) -----------------------------------------
    x_pad1 = jnp.pad(x_c.astype(jnp.bfloat16), ((0, 0), (1, 1), (1, 1), (0, 0)))
    y1_flat = _conv_bn_relu_stage(x_pad1, prep_w(w1), prep_gb(g1), prep_gb(b1),
                                  residual=None, out_dtype=jnp.bfloat16)

    # --- stage 2: ConvWithBatchNorm(y1) + x (residual fused in-kernel) ----------
    y1_pad = jnp.pad(y1_flat.reshape(N, H, W, Cp),
                     ((0, 0), (1, 1), (1, 1), (0, 0)))
    out_flat = _conv_bn_relu_stage(y1_pad, prep_w(w2), prep_gb(g2), prep_gb(b2),
                                   residual=x_res, out_dtype=jnp.float32)

    # --- glue: drop channel padding, back to NCHW -------------------------------
    out = out_flat.reshape(N, H, W, Cp)[..., :C]
    return jnp.transpose(out, (0, 3, 1, 2))


def reference(x, w1, g1, b1, w2, g2, b2):
    """Pure-JAX reference of the PyTorch ResidualBlock forward (training-mode BN)."""
    def cbr(x, w, g, b):
        y = jax.lax.conv_general_dilated(
            x, w, window_strides=(1, 1), padding=((1, 1), (1, 1)),
            dimension_numbers=("NCHW", "OIHW", "NCHW"),
            precision=jax.lax.Precision.HIGHEST)
        mean = jnp.mean(y, axis=(0, 2, 3), keepdims=True)
        var = jnp.mean(jnp.square(y - mean), axis=(0, 2, 3), keepdims=True)
        y = (y - mean) * jax.lax.rsqrt(var + BN_EPS)
        y = y * g.reshape(1, -1, 1, 1) + b.reshape(1, -1, 1, 1)
        return jnp.maximum(y, 0.0)

    return cbr(cbr(x, w1, g1, b1), w2, g2, b2) + x


if __name__ == "__main__":
    # Small deterministic problem: batch=2, n_ch=4, 16x16 spatial.
    N, C, H, W = 2, 4, 16, 16
    key = jax.random.PRNGKey(0)
    kx, kw1, kw2, kg1, kb1, kg2, kb2 = jax.random.split(key, 7)

    x = jax.random.normal(kx, (N, C, H, W), dtype=jnp.float32)
    fan_in = C * 9
    w1 = jax.random.normal(kw1, (C, C, 3, 3), jnp.float32) / jnp.sqrt(fan_in)
    w2 = jax.random.normal(kw2, (C, C, 3, 3), jnp.float32) / jnp.sqrt(fan_in)
    # BatchNorm affine params (PyTorch default init is ones/zeros; perturb so the
    # affine path is actually exercised, deterministically).
    g1 = 1.0 + 0.1 * jax.random.normal(kg1, (C,), jnp.float32)
    b1 = 0.1 * jax.random.normal(kb1, (C,), jnp.float32)
    g2 = 1.0 + 0.1 * jax.random.normal(kg2, (C,), jnp.float32)
    b2 = 0.1 * jax.random.normal(kb2, (C,), jnp.float32)

    out = jax.block_until_ready(residual_block(x, w1, g1, b1, w2, g2, b2))
    ref = jax.block_until_ready(reference(x, w1, g1, b1, w2, g2, b2))

    assert out.shape == (N, C, H, W)
    max_err = jnp.max(jnp.abs(out - ref))
    # bf16 MXU operands with f32 accumulation -> slightly looser tolerance.
    assert jnp.allclose(out, ref, atol=3e-2, rtol=2e-2), f"max abs err = {max_err}"

    print("KERNEL_OK")
</pallas_src>

<mosaic_0001>
module attributes {stable_mosaic.version = 11 : i64} {
  func.func @kernel(%arg0: i32, %arg1: i32, %arg2: memref<1x18x18x128xbf16, #tpu.memory_space<vmem>>, %arg3: memref<9x128x128xbf16, #tpu.memory_space<vmem>>, %arg4: memref<1x128xf32, #tpu.memory_space<vmem>>, %arg5: memref<1x128xf32, #tpu.memory_space<vmem>>, %arg6: memref<1x256x128xf32, #tpu.memory_space<vmem>>, %arg7: memref<1x256x128xf32, #tpu.memory_space<vmem>>, %arg8: memref<1x128xf32, #tpu.memory_space<vmem>>, %arg9: memref<1x128xf32, #tpu.memory_space<vmem>>, %arg10: memref<1x128xf32, #tpu.memory_space<vmem>>, %arg11: memref<1x128xf32, #tpu.memory_space<vmem>>, %arg12: memref<2x256x128xf32, #tpu.memory_space<vmem>>) attributes {dimension_semantics = [#tpu.dimension_semantics<arbitrary>, #tpu.dimension_semantics<arbitrary>], iteration_bounds = array<i64: 2, 2>, scalar_prefetch = 0 : i64, scratch_operands = 5 : i64, tpu.core_type = #tpu.core_type<tc>, window_params = [{transform_indices = @transform_0, window_bounds = array<i64: 1, 18, 18, 128>}, {pipeline_mode = #tpu.pipeline_mode<synchronous>, transform_indices = @transform_1, window_bounds = array<i64: 9, 128, 128>}, {pipeline_mode = #tpu.pipeline_mode<synchronous>, transform_indices = @transform_2, window_bounds = array<i64: 1, 128>}, {pipeline_mode = #tpu.pipeline_mode<synchronous>, transform_indices = @transform_3, window_bounds = array<i64: 1, 128>}, {transform_indices = @transform_4, window_bounds = array<i64: 1, 256, 128>}, {transform_indices = @transform_5, window_bounds = array<i64: 1, 256, 128>}]} {
    %c0_i32 = arith.constant 0 : i32
    %0 = arith.cmpi eq, %arg0, %c0_i32 : i32
    %c0_i32_0 = arith.constant 0 : i32
    %1 = arith.cmpi eq, %arg1, %c0_i32_0 : i32
    %2 = arith.andi %0, %1 : i1
    %3 = arith.extui %2 : i1 to i32
    %c0_i32_1 = arith.constant 0 : i32
    %4 = arith.cmpi ne, %3, %c0_i32_1 : i32
    scf.if %4 {
      %cst = arith.constant 0.000000e+00 : f32
      %16 = vector.broadcast %cst : f32 to vector<1x128xf32>
      %c0 = arith.constant 0 : index
      %c0_8 = arith.constant 0 : index
      %17 = vector.load %arg8[%c0, %c0_8] : memref<1x128xf32, #tpu.memory_space<vmem>>, vector<1x128xf32>
      tpu.vector_store %arg8[%c0, %c0_8], %16 {strides = array<i32>} : memref<1x128xf32, #tpu.memory_space<vmem>>, vector<1x128xf32>,
      %cst_9 = arith.constant 0.000000e+00 : f32
      %18 = vector.broadcast %cst_9 : f32 to vector<1x128xf32>
      %c0_10 = arith.constant 0 : index
      %c0_11 = arith.constant 0 : index
      %19 = vector.load %arg9[%c0_10, %c0_11] : memref<1x128xf32, #tpu.memory_space<vmem>>, vector<1x128xf32>
      tpu.vector_store %arg9[%c0_10, %c0_11], %18 {strides = array<i32>} : memref<1x128xf32, #tpu.memory_space<vmem>>, vector<1x128xf32>,
    } else {
    }
    %c1_i32 = arith.constant 1 : i32
    %5 = arith.cmpi eq, %arg0, %c1_i32 : i32
    %c0_i32_2 = arith.constant 0 : i32
    %6 = arith.cmpi eq, %arg1, %c0_i32_2 : i32
    %7 = arith.andi %5, %6 : i1
    %8 = arith.extui %7 : i1 to i32
    %c0_i32_3 = arith.constant 0 : i32
    %9 = arith.cmpi ne, %8, %c0_i32_3 : i32
    scf.if %9 {
      %c0 = arith.constant 0 : index
      %c0_8 = arith.constant 0 : index
      %16 = vector.load %arg8[%c0, %c0_8] : memref<1x128xf32, #tpu.memory_space<vmem>>, vector<1x128xf32>
      %cst = arith.constant 0.001953125 : f32
      %17 = vector.broadcast %cst : f32 to vector<1x128xf32>
      %18 = arith.mulf %16, %17 : vector<1x128xf32>
      %c0_9 = arith.constant 0 : index
      %c0_10 = arith.constant 0 : index
      %19 = vector.load %arg9[%c0_9, %c0_10] : memref<1x128xf32, #tpu.memory_space<vmem>>, vector<1x128xf32>
      %cst_11 = arith.constant 0.001953125 : f32
      %20 = vector.broadcast %cst_11 : f32 to vector<1x128xf32>
      %21 = arith.mulf %19, %20 : vector<1x128xf32>
      %22 = arith.mulf %18, %18 : vector<1x128xf32>
      %23 = arith.subf %21, %22 : vector<1x128xf32>
      %cst_12 = arith.constant 0.000000e+00 : f32
      %24 = vector.broadcast %cst_12 : f32 to vector<1x128xf32>
      %25 = arith.maximumf %23, %24 : vector<1x128xf32>
      %cst_13 = arith.constant 9.99999974E-6 : f32
      %26 = vector.broadcast %cst_13 : f32 to vector<1x128xf32>
      %27 = arith.addf %25, %26 : vector<1x128xf32>
      %28 = math.rsqrt %27 : vector<1x128xf32>
      %c0_14 = arith.constant 0 : index
      %c0_15 = arith.constant 0 : index
      %29 = vector.load %arg4[%c0_14, %c0_15] : memref<1x128xf32, #tpu.memory_space<vmem>>, vector<1x128xf32>
      %30 = arith.mulf %28, %29 : vector<1x128xf32>
      %c0_16 = arith.constant 0 : index
      %c0_17 = arith.constant 0 : index
      %31 = vector.load %arg10[%c0_16, %c0_17] : memref<1x128xf32, #tpu.memory_space<vmem>>, vector<1x128xf32>
      tpu.vector_store %arg10[%c0_16, %c0_17], %30 {strides = array<i32>} : memref<1x128xf32, #tpu.memory_space<vmem>>, vector<1x128xf32>,
      %c0_18 = arith.constant 0 : index
      %c0_19 = arith.constant 0 : index
      %32 = vector.load %arg5[%c0_18, %c0_19] : memref<1x128xf32, #tpu.memory_space<vmem>>, vector<1x128xf32>
      %33 = arith.mulf %18, %30 : vector<1x128xf32>
      %34 = arith.subf %32, %33 : vector<1x128xf32>
      %c0_20 = arith.constant 0 : index
      %c0_21 = arith.constant 0 : index
      %35 = vector.load %arg11[%c0_20, %c0_21] : memref<1x128xf32, #tpu.memory_space<vmem>>, vector<1x128xf32>
      tpu.vector_store %arg11[%c0_20, %c0_21], %34 {strides = array<i32>} : memref<1x128xf32, #tpu.memory_space<vmem>>, vector<1x128xf32>,
    } else {
    }
    %c0_i32_4 = arith.constant 0 : i32
    %10 = arith.cmpi eq, %arg0, %c0_i32_4 : i32
    %11 = arith.extui %10 : i1 to i32
    %c0_i32_5 = arith.constant 0 : i32
    %12 = arith.cmpi ne, %11, %c0_i32_5 : i32
    scf.if %12 {
      %cst = arith.constant 0.000000e+00 : f32
      %16 = vector.broadcast %cst : f32 to vector<256x128xf32>
      %c0 = arith.constant 0 : index
      %c0_8 = arith.constant 0 : index
      %c0_9 = arith.constant 0 : index
      %c0_10 = arith.constant 0 : index
      %17 = vector.load %arg2[%c0, %c0_8, %c0_9, %c0_10] : memref<1x18x18x128xbf16, #tpu.memory_space<vmem>>, vector<1x16x16x128xbf16>
      %18 = vector.shape_cast %17 : vector<1x16x16x128xbf16> to vector<16x16x128xbf16>
      %19 = vector.shape_cast %18 : vector<16x16x128xbf16> to vector<256x128xbf16>
      %c0_11 = arith.constant 0 : index
      %c0_12 = arith.constant 0 : index
      %c0_13 = arith.constant 0 : index
      %20 = vector.load %arg3[%c0_11, %c0_12, %c0_13] : memref<9x128x128xbf16, #tpu.memory_space<vmem>>, vector<1x128x128xbf16>
      %21 = vector.shape_cast %20 : vector<1x128x128xbf16> to vector<128x128xbf16>
      %cst_14 = arith.constant dense<0.000000e+00> : vector<256x128xf32>
      %22 = tpu.matmul %19, %21, %cst_14 {dimension_numbers = #tpu.dot_dimension_numbers<[1], [0], [0], [1], [0, 0, 1, 1], [], []>} : vector<256x128xbf16>, vector<128x128xbf16>, vector<256x128xf32> -> vector<256x128xf32>
      %23 = arith.addf %16, %22 : vector<256x128xf32>
      %c0_15 = arith.constant 0 : index
      %c0_16 = arith.constant 0 : index
      %c1 = arith.constant 1 : index
      %c0_17 = arith.constant 0 : index
      %24 = vector.load %arg2[%c0_15, %c0_16, %c1, %c0_17] : memref<1x18x18x128xbf16, #tpu.memory_space<vmem>>, vector<1x16x16x128xbf16>
      %25 = vector.shape_cast %24 : vector<1x16x16x128xbf16> to vector<16x16x128xbf16>
      %26 = vector.shape_cast %25 : vector<16x16x128xbf16> to vector<256x128xbf16>
      %c1_18 = arith.constant 1 : index
      %c0_19 = arith.constant 0 : index
      %c0_20 = arith.constant 0 : index
      %27 = vector.load %arg3[%c1_18, %c0_19, %c0_20] : memref<9x128x128xbf16, #tpu.memory_space<vmem>>, vector<1x128x128xbf16>
      %28 = vector.shape_cast %27 : vector<1x128x128xbf16> to vector<128x128xbf16>
      %cst_21 = arith.constant dense<0.000000e+00> : vector<256x128xf32>
      %29 = tpu.matmul %26, %28, %cst_21 {dimension_numbers = #tpu.dot_dimension_numbers<[1], [0], [0], [1], [0, 0, 1, 1], [], []>} : vector<256x128xbf16>, vector<128x128xbf16>, vector<256x128xf32> -> vector<256x128xf32>
      %30 = arith.addf %23, %29 : vector<256x128xf32>
      %c0_22 = arith.constant 0 : index
      %c0_23 = arith.constant 0 : index
      %c2 = arith.constant 2 : index
      %c0_24 = arith.constant 0 : index
      %31 = vector.load %arg2[%c0_22, %c0_23, %c2, %c0_24] : memref<1x18x18x128xbf16, #tpu.memory_space<vmem>>, vector<1x16x16x128xbf16>
      %32 = vector.shape_cast %31 : vector<1x16x16x128xbf16> to vector<16x16x128xbf16>
      %33 = vector.shape_cast %32 : vector<16x16x128xbf16> to vector<256x128xbf16>
      %c2_25 = arith.constant 2 : index
      %c0_26 = arith.constant 0 : index
      %c0_27 = arith.constant 0 : index
      %34 = vector.load %arg3[%c2_25, %c0_26, %c0_27] : memref<9x128x128xbf16, #tpu.memory_space<vmem>>, vector<1x128x128xbf16>
      %35 = vector.shape_cast %34 : vector<1x128x128xbf16> to vector<128x128xbf16>
      %cst_28 = arith.constant dense<0.000000e+00> : vector<256x128xf32>
      %36 = tpu.matmul %33, %35, %cst_28 {dimension_numbers = #tpu.dot_dimension_numbers<[1], [0], [0], [1], [0, 0, 1, 1], [], []>} : vector<256x128xbf16>, vector<128x128xbf16>, vector<256x128xf32> -> vector<256x128xf32>
      %37 = arith.addf %30, %36 : vector<256x128xf32>
      %c0_29 = arith.constant 0 : index
      %c1_30 = arith.constant 1 : index
      %c0_31 = arith.constant 0 : index
      %c0_32 = arith.constant 0 : index
      %38 = vector.load %arg2[%c0_29, %c1_30, %c0_31, %c0_32] : memref<1x18x18x128xbf16, #tpu.memory_space<vmem>>, vector<1x16x16x128xbf16>
      %39 = vector.shape_cast %38 : vector<1x16x16x128xbf16> to vector<16x16x128xbf16>
      %40 = vector.shape_cast %39 : vector<16x16x128xbf16> to vector<256x128xbf16>
      %c3 = arith.constant 3 : index
      %c0_33 = arith.constant 0 : index
      %c0_34 = arith.constant 0 : index
      %41 = vector.load %arg3[%c3, %c0_33, %c0_34] : memref<9x128x128xbf16, #tpu.memory_space<vmem>>, vector<1x128x128xbf16>
      %42 = vector.shape_cast %41 : vector<1x128x128xbf16> to vector<128x128xbf16>
      %cst_35 = arith.constant dense<0.000000e+00> : vector<256x128xf32>
      %43 = tpu.matmul %40, %42, %cst_35 {dimension_numbers = #tpu.dot_dimension_numbers<[1], [0], [0], [1], [0, 0, 1, 1], [], []>} : vector<256x128xbf16>, vector<128x128xbf16>, vector<256x128xf32> -> vector<256x128xf32>
      %44 = arith.addf %37, %43 : vector<256x128xf32>
      %c0_36 = arith.constant 0 : index
      %c1_37 = arith.constant 1 : index
      %c1_38 = arith.constant 1 : index
      %c0_39 = arith.constant 0 : index
      %45 = vector.load %arg2[%c0_36, %c1_37, %c1_38, %c0_39] : memref<1x18x18x128xbf16, #tpu.memory_space<vmem>>, vector<1x16x16x128xbf16>
      %46 = vector.shape_cast %45 : vector<1x16x16x128xbf16> to vector<16x16x128xbf16>
      %47 = vector.shape_cast %46 : vector<16x16x128xbf16> to vector<256x128xbf16>
      %c4 = arith.constant 4 : index
      %c0_40 = arith.constant 0 : index
      %c0_41 = arith.constant 0 : index
      %48 = vector.load %arg3[%c4, %c0_40, %c0_41] : memref<9x128x128xbf16, #tpu.memory_space<vmem>>, vector<1x128x128xbf16>
      %49 = vector.shape_cast %48 : vector<1x128x128xbf16> to vector<128x128xbf16>
      %cst_42 = arith.constant dense<0.000000e+00> : vector<256x128xf32>
      %50 = tpu.matmul %47, %49, %cst_42 {dimension_numbers = #tpu.dot_dimension_numbers<[1], [0], [0], [1], [0, 0, 1, 1], [], []>} : vector<256x128xbf16>, vector<128x128xbf16>, vector<256x128xf32> -> vector<256x128xf32>
      %51 = arith.addf %44, %50 : vector<256x128xf32>
      %c0_43 = arith.constant 0 : index
      %c1_44 = arith.constant 1 : index
      %c2_45 = arith.constant 2 : index
      %c0_46 = arith.constant 0 : index
      %52 = vector.load %arg2[%c0_43, %c1_44, %c2_45, %c0_46] : memref<1x18x18x128xbf16, #tpu.memory_space<vmem>>, vector<1x16x16x128xbf16>
      %53 = vector.shape_cast %52 : vector<1x16x16x128xbf16> to vector<16x16x128xbf16>
      %54 = vector.shape_cast %53 : vector<16x16x128xbf16> to vector<256x128xbf16>
      %c5 = arith.constant 5 : index
      %c0_47 = arith.constant 0 : index
      %c0_48 = arith.constant 0 : index
      %55 = vector.load %arg3[%c5, %c0_47, %c0_48] : memref<9x128x128xbf16, #tpu.memory_space<vmem>>, vector<1x128x128xbf16>
      %56 = vector.shape_cast %55 : vector<1x128x128xbf16> to vector<128x128xbf16>
      %cst_49 = arith.constant dense<0.000000e+00> : vector<256x128xf32>
      %57 = tpu.matmul %54, %56, %cst_49 {dimension_numbers = #tpu.dot_dimension_numbers<[1], [0], [0], [1], [0, 0, 1, 1], [], []>} : vector<256x128xbf16>, vector<128x128xbf16>, vector<256x128xf32> -> vector<256x128xf32>
      %58 = arith.addf %51, %57 : vector<256x128xf32>
      %c0_50 = arith.constant 0 : index
      %c2_51 = arith.constant 2 : index
      %c0_52 = arith.constant 0 : index
      %c0_53 = arith.constant 0 : index
      %59 = vector.load %arg2[%c0_50, %c2_51, %c0_52, %c0_53] : memref<1x18x18x128xbf16, #tpu.memory_space<vmem>>, vector<1x16x16x128xbf16>
      %60 = vector.shape_cast %59 : vector<1x16x16x128xbf16> to vector<16x16x128xbf16>
      %61 = vector.shape_cast %60 : vector<16x16x128xbf16> to vector<256x128xbf16>
      %c6 = arith.constant 6 : index
      %c0_54 = arith.constant 0 : index
      %c0_55 = arith.constant 0 : index
      %62 = vector.load %arg3[%c6, %c0_54, %c0_55] : memref<9x128x128xbf16, #tpu.memory_space<vmem>>, vector<1x128x128xbf16>
      %63 = vector.shape_cast %62 : vector<1x128x128xbf16> to vector<128x128xbf16>
      %cst_56 = arith.constant dense<0.000000e+00> : vector<256x128xf32>
      %64 = tpu.matmul %61, %63, %cst_56 {dimension_numbers = #tpu.dot_dimension_numbers<[1], [0], [0], [1], [0, 0, 1, 1], [], []>} : vector<256x128xbf16>, vector<128x128xbf16>, vector<256x128xf32> -> vector<256x128xf32>
      %65 = arith.addf %58, %64 : vector<256x128xf32>
      %c0_57 = arith.constant 0 : index
      %c2_58 = arith.constant 2 : index
      %c1_59 = arith.constant 1 : index
      %c0_60 = arith.constant 0 : index
      %66 = vector.load %arg2[%c0_57, %c2_58, %c1_59, %c0_60] : memref<1x18x18x128xbf16, #tpu.memory_space<vmem>>, vector<1x16x16x128xbf16>
      %67 = vector.shape_cast %66 : vector<1x16x16x128xbf16> to vector<16x16x128xbf16>
      %68 = vector.shape_cast %67 : vector<16x16x128xbf16> to vector<256x128xbf16>
      %c7 = arith.constant 7 : index
      %c0_61 = arith.constant 0 : index
      %c0_62 = arith.constant 0 : index
      %69 = vector.load %arg3[%c7, %c0_61, %c0_62] : memref<9x128x128xbf16, #tpu.memory_space<vmem>>, vector<1x128x128xbf16>
      %70 = vector.shape_cast %69 : vector<1x128x128xbf16> to vector<128x128xbf16>
      %cst_63 = arith.constant dense<0.000000e+00> : vector<256x128xf32>
      %71 = tpu.matmul %68, %70, %cst_63 {dimension_numbers = #tpu.dot_dimension_numbers<[1], [0], [0], [1], [0, 0, 1, 1], [], []>} : vector<256x128xbf16>, vector<128x128xbf16>, vector<256x128xf32> -> vector<256x128xf32>
      %72 = arith.addf %65, %71 : vector<256x128xf32>
      %c0_64 = arith.constant 0 : index
      %c2_65 = arith.constant 2 : index
      %c2_66 = arith.constant 2 : index
      %c0_67 = arith.constant 0 : index
      %73 = vector.load %arg2[%c0_64, %c2_65, %c2_66, %c0_67] : memref<1x18x18x128xbf16, #tpu.memory_space<vmem>>, vector<1x16x16x128xbf16>
      %74 = vector.shape_cast %73 : vector<1x16x16x128xbf16> to vector<16x16x128xbf16>
      %75 = vector.shape_cast %74 : vector<16x16x128xbf16> to vector<256x128xbf16>
      %c8 = arith.constant 8 : index
      %c0_68 = arith.constant 0 : index
      %c0_69 = arith.constant 0 : index
      %76 = vector.load %arg3[%c8, %c0_68, %c0_69] : memref<9x128x128xbf16, #tpu.memory_space<vmem>>, vector<1x128x128xbf16>
      %77 = vector.shape_cast %76 : vector<1x128x128xbf16> to vector<128x128xbf16>
      %cst_70 = arith.constant dense<0.000000e+00> : vector<256x128xf32>
      %78 = tpu.matmul %75, %77, %cst_70 {dimension_numbers = #tpu.dot_dimension_numbers<[1], [0], [0], [1], [0, 0, 1, 1], [], []>} : vector<256x128xbf16>, vector<128x128xbf16>, vector<256x128xf32> -> vector<256x128xf32>
      %79 = arith.addf %72, %78 : vector<256x128xf32>
      %c0_71 = arith.constant 0 : index
      %c0_72 = arith.constant 0 : index
      %80 = vector.load %arg8[%c0_71, %c0_72] : memref<1x128xf32, #tpu.memory_space<vmem>>, vector<1x128xf32>
      %cst_73 = arith.constant dense<0.000000e+00> : vector<128xf32>
      %81 = vector.multi_reduction <add>, %79, %cst_73 [0] : vector<256x128xf32> to vector<128xf32>
      %82 = vector.shape_cast %81 : vector<128xf32> to vector<1x128xf32>
      %83 = arith.addf %80, %82 : vector<1x128xf32>
      %c0_74 = arith.constant 0 : index
      %c0_75 = arith.constant 0 : index
      %84 = vector.load %arg8[%c0_74, %c0_75] : memref<1x128xf32, #tpu.memory_space<vmem>>, vector<1x128xf32>
      tpu.vector_store %arg8[%c0_74, %c0_75], %83 {strides = array<i32>} : memref<1x128xf32, #tpu.memory_space<vmem>>, vector<1x128xf32>,
      %c0_76 = arith.constant 0 : index
      %c0_77 = arith.constant 0 : index
      %85 = vector.load %arg9[%c0_76, %c0_77] : memref<1x128xf32, #tpu.memory_space<vmem>>, vector<1x128xf32>
      %86 = arith.mulf %79, %79 : vector<256x128xf32>
      %cst_78 = arith.constant dense<0.000000e+00> : vector<128xf32>
      %87 = vector.multi_reduction <add>, %86, %cst_78 [0] : vector<256x128xf32> to vector<128xf32>
      %88 = vector.shape_cast %87 : vector<128xf32> to vector<1x128xf32>
      %89 = arith.addf %85, %88 : vector<1x128xf32>
      %c0_79 = arith.constant 0 : index
      %c0_80 = arith.constant 0 : index
      %90 = vector.load %arg9[%c0_79, %c0_80] : memref<1x128xf32, #tpu.memory_space<vmem>>, vector<1x128xf32>
      tpu.vector_store %arg9[%c0_79, %c0_80], %89 {strides = array<i32>} : memref<1x128xf32, #tpu.memory_space<vmem>>, vector<1x128xf32>,
      %91 = arith.index_cast %arg1 : i32 to index
      %c0_81 = arith.constant 0 : index
      %c0_82 = arith.constant 0 : index
      %92 = vector.load %arg12[%91, %c0_81, %c0_82] : memref<2x256x128xf32, #tpu.memory_space<vmem>>, vector<1x256x128xf32>
      %93 = vector.shape_cast %92 : vector<1x256x128xf32> to vector<256x128xf32>
      %94 = vector.shape_cast %79 : vector<256x128xf32> to vector<1x256x128xf32>
      tpu.vector_store %arg12[%91, %c0_81, %c0_82], %94 {strides = array<i32>} : memref<2x256x128xf32, #tpu.memory_space<vmem>>, vector<1x256x128xf32>,
    } else {
    }
    %c1_i32_6 = arith.constant 1 : i32
    %13 = arith.cmpi eq, %arg0, %c1_i32_6 : i32
    %14 = arith.extui %13 : i1 to i32
    %c0_i32_7 = arith.constant 0 : i32
    %15 = arith.cmpi ne, %14, %c0_i32_7 : i32
    scf.if %15 {
      %16 = arith.index_cast %arg1 : i32 to index
      %c0 = arith.constant 0 : index
      %c0_8 = arith.constant 0 : index
      %17 = vector.load %arg12[%16, %c0, %c0_8] : memref<2x256x128xf32, #tpu.memory_space<vmem>>, vector<1x256x128xf32>
      %18 = vector.shape_cast %17 : vector<1x256x128xf32> to vector<256x128xf32>
      %c0_9 = arith.constant 0 : index
      %c0_10 = arith.constant 0 : index
      %19 = vector.load %arg10[%c0_9, %c0_10] : memref<1x128xf32, #tpu.memory_space<vmem>>, vector<1x128xf32>
      %20 = vector.broadcast %19 : vector<1x128xf32> to vector<256x128xf32>
      %21 = arith.mulf %18, %20 : vector<256x128xf32>
      %c0_11 = arith.constant 0 : index
      %c0_12 = arith.constant 0 : index
      %22 = vector.load %arg11[%c0_11, %c0_12] : memref<1x128xf32, #tpu.memory_space<vmem>>, vector<1x128xf32>
      %23 = vector.broadcast %22 : vector<1x128xf32> to vector<256x128xf32>
      %24 = arith.addf %21, %23 : vector<256x128xf32>
      %cst = arith.constant 0.000000e+00 : f32
      %25 = vector.broadcast %cst : f32 to vector<256x128xf32>
      %26 = arith.maximumf %24, %25 : vector<256x128xf32>
      %c0_13 = arith.constant 0 : index
      %c0_14 = arith.constant 0 : index
      %c0_15 = arith.constant 0 : index
      %27 = vector.load %arg6[%c0_13, %c0_14, %c0_15] : memref<1x256x128xf32, #tpu.memory_space<vmem>>, vector<1x256x128xf32>
      %28 = vector.shape_cast %27 : vector<1x256x128xf32> to vector<256x128xf32>
      %29 = arith.addf %26, %28 : vector<256x128xf32>
      %c0_16 = arith.constant 0 : index
      %c0_17 = arith.constant 0 : index
      %c0_18 = arith.constant 0 : index
      %30 = vector.load %arg7[%c0_16, %c0_17, %c0_18] : memref<1x256x128xf32, #tpu.memory_space<vmem>>, vector<1x256x128xf32>
      %31 = vector.shape_cast %30 : vector<1x256x128xf32> to vector<256x128xf32>
      %32 = vector.shape_cast %29 : vector<256x128xf32> to vector<1x256x128xf32>
      tpu.vector_store %arg7[%c0_16, %c0_17, %c0_18], %32 {strides = array<i32>} : memref<1x256x128xf32, #tpu.memory_space<vmem>>, vector<1x256x128xf32>,
    } else {
    }
    return
  }
  func.func @transform_0(%arg0: i32, %arg1: i32) -> (i32, i32, i32, i32) {
    %c1_i32 = arith.constant 1 : i32
    %0 = arith.subi %c1_i32, %arg0 : i32
    %1 = arith.muli %arg1, %0 : i32
    %c1_i32_0 = arith.constant 1 : i32
    %2 = arith.muli %c1_i32_0, %arg0 : i32
    %3 = arith.addi %1, %2 : i32
    %c0_i32 = arith.constant 0 : i32
    %c0_i32_1 = arith.constant 0 : i32
    %c0_i32_2 = arith.constant 0 : i32
    %c0_i32_3 = arith.constant 0 : i32
    return %3, %c0_i32, %c0_i32_1, %c0_i32_2 : i32, i32, i32, i32
  }
  func.func @transform_1(%arg0: i32, %arg1: i32) -> (i32, i32, i32) {
    %c0_i32 = arith.constant 0 : i32
    %c0_i32_0 = arith.constant 0 : i32
    %c0_i32_1 = arith.constant 0 : i32
    %c0_i32_2 = arith.constant 0 : i32
    return %c0_i32, %c0_i32_0, %c0_i32_1 : i32, i32, i32
  }
  func.func @transform_2(%arg0: i32, %arg1: i32) -> (i32, i32) {
    %c0_i32 = arith.constant 0 : i32
    %c0_i32_0 = arith.constant 0 : i32
    %c0_i32_1 = arith.constant 0 : i32
    return %c0_i32, %c0_i32_0 : i32, i32
  }
  func.func @transform_3(%arg0: i32, %arg1: i32) -> (i32, i32) {
    %c0_i32 = arith.constant 0 : i32
    %c0_i32_0 = arith.constant 0 : i32
    %c0_i32_1 = arith.constant 0 : i32
    return %c0_i32, %c0_i32_0 : i32, i32
  }
  func.func @transform_4(%arg0: i32, %arg1: i32) -> (i32, i32, i32) {
    %0 = arith.muli %arg0, %arg1 : i32
    %c0_i32 = arith.constant 0 : i32
    %c0_i32_0 = arith.constant 0 : i32
    %c0_i32_1 = arith.constant 0 : i32
    return %0, %c0_i32, %c0_i32_0 : i32, i32, i32
  }
  func.func @transform_5(%arg0: i32, %arg1: i32) -> (i32, i32, i32) {
    %0 = arith.muli %arg0, %arg1 : i32
    %c0_i32 = arith.constant 0 : i32
    %c0_i32_0 = arith.constant 0 : i32
    %c0_i32_1 = arith.constant 0 : i32
    return %0, %c0_i32, %c0_i32_0 : i32, i32, i32
  }
}

module attributes {stable_mosaic.version = 11 : i64} {
  func.func @kernel(%arg0: i32, %arg1: i32, %arg2: memref<1x18x18x128xbf16, #tpu.memory_space<vmem>>, %arg3: memref<9x128x128xbf16, #tpu.memory_space<vmem>>, %arg4: memref<1x128xf32, #tpu.memory_space<vmem>>, %arg5: memref<1x128xf32, #tpu.memory_space<vmem>>, %arg6: memref<1x256x128xbf16, #tpu.memory_space<vmem>>, %arg7: memref<1x128xf32, #tpu.memory_space<vmem>>, %arg8: memref<1x128xf32, #tpu.memory_space<vmem>>, %arg9: memref<1x128xf32, #tpu.memory_space<vmem>>, %arg10: memref<1x128xf32, #tpu.memory_space<vmem>>, %arg11: memref<2x256x128xf32, #tpu.memory_space<vmem>>) attributes {dimension_semantics = [#tpu.dimension_semantics<arbitrary>, #tpu.dimension_semantics<arbitrary>], iteration_bounds = array<i64: 2, 2>, scalar_prefetch = 0 : i64, scratch_operands = 5 : i64, tpu.core_type = #tpu.core_type<tc>, window_params = [{transform_indices = @transform_0, window_bounds = array<i64: 1, 18, 18, 128>}, {pipeline_mode = #tpu.pipeline_mode<synchronous>, transform_indices = @transform_1, window_bounds = array<i64: 9, 128, 128>}, {pipeline_mode = #tpu.pipeline_mode<synchronous>, transform_indices = @transform_2, window_bounds = array<i64: 1, 128>}, {pipeline_mode = #tpu.pipeline_mode<synchronous>, transform_indices = @transform_3, window_bounds = array<i64: 1, 128>}, {transform_indices = @transform_4, window_bounds = array<i64: 1, 256, 128>}]} {
    %c0_i32 = arith.constant 0 : i32
    %0 = arith.cmpi eq, %arg0, %c0_i32 : i32
    %c0_i32_0 = arith.constant 0 : i32
    %1 = arith.cmpi eq, %arg1, %c0_i32_0 : i32
    %2 = arith.andi %0, %1 : i1
    %3 = arith.extui %2 : i1 to i32
    %c0_i32_1 = arith.constant 0 : i32
    %4 = arith.cmpi ne, %3, %c0_i32_1 : i32
    scf.if %4 {
      %cst = arith.constant 0.000000e+00 : f32
      %16 = vector.broadcast %cst : f32 to vector<1x128xf32>
      %c0 = arith.constant 0 : index
      %c0_8 = arith.constant 0 : index
      %17 = vector.load %arg7[%c0, %c0_8] : memref<1x128xf32, #tpu.memory_space<vmem>>, vector<1x128xf32>
      tpu.vector_store %arg7[%c0, %c0_8], %16 {strides = array<i32>} : memref<1x128xf32, #tpu.memory_space<vmem>>, vector<1x128xf32>,
      %cst_9 = arith.constant 0.000000e+00 : f32
      %18 = vector.broadcast %cst_9 : f32 to vector<1x128xf32>
      %c0_10 = arith.constant 0 : index
      %c0_11 = arith.constant 0 : index
      %19 = vector.load %arg8[%c0_10, %c0_11] : memref<1x128xf32, #tpu.memory_space<vmem>>, vector<1x128xf32>
      tpu.vector_store %arg8[%c0_10, %c0_11], %18 {strides = array<i32>} : memref<1x128xf32, #tpu.memory_space<vmem>>, vector<1x128xf32>,
    } else {
    }
    %c1_i32 = arith.constant 1 : i32
    %5 = arith.cmpi eq, %arg0, %c1_i32 : i32
    %c0_i32_2 = arith.constant 0 : i32
    %6 = arith.cmpi eq, %arg1, %c0_i32_2 : i32
    %7 = arith.andi %5, %6 : i1
    %8 = arith.extui %7 : i1 to i32
    %c0_i32_3 = arith.constant 0 : i32
    %9 = arith.cmpi ne, %8, %c0_i32_3 : i32
    scf.if %9 {
      %c0 = arith.constant 0 : index
      %c0_8 = arith.constant 0 : index
      %16 = vector.load %arg7[%c0, %c0_8] : memref<1x128xf32, #tpu.memory_space<vmem>>, vector<1x128xf32>
      %cst = arith.constant 0.001953125 : f32
      %17 = vector.broadcast %cst : f32 to vector<1x128xf32>
      %18 = arith.mulf %16, %17 : vector<1x128xf32>
      %c0_9 = arith.constant 0 : index
      %c0_10 = arith.constant 0 : index
      %19 = vector.load %arg8[%c0_9, %c0_10] : memref<1x128xf32, #tpu.memory_space<vmem>>, vector<1x128xf32>
      %cst_11 = arith.constant 0.001953125 : f32
      %20 = vector.broadcast %cst_11 : f32 to vector<1x128xf32>
      %21 = arith.mulf %19, %20 : vector<1x128xf32>
      %22 = arith.mulf %18, %18 : vector<1x128xf32>
      %23 = arith.subf %21, %22 : vector<1x128xf32>
      %cst_12 = arith.constant 0.000000e+00 : f32
      %24 = vector.broadcast %cst_12 : f32 to vector<1x128xf32>
      %25 = arith.maximumf %23, %24 : vector<1x128xf32>
      %cst_13 = arith.constant 9.99999974E-6 : f32
      %26 = vector.broadcast %cst_13 : f32 to vector<1x128xf32>
      %27 = arith.addf %25, %26 : vector<1x128xf32>
      %28 = math.rsqrt %27 : vector<1x128xf32>
      %c0_14 = arith.constant 0 : index
      %c0_15 = arith.constant 0 : index
      %29 = vector.load %arg4[%c0_14, %c0_15] : memref<1x128xf32, #tpu.memory_space<vmem>>, vector<1x128xf32>
      %30 = arith.mulf %28, %29 : vector<1x128xf32>
      %c0_16 = arith.constant 0 : index
      %c0_17 = arith.constant 0 : index
      %31 = vector.load %arg9[%c0_16, %c0_17] : memref<1x128xf32, #tpu.memory_space<vmem>>, vector<1x128xf32>
      tpu.vector_store %arg9[%c0_16, %c0_17], %30 {strides = array<i32>} : memref<1x128xf32, #tpu.memory_space<vmem>>, vector<1x128xf32>,
      %c0_18 = arith.constant 0 : index
      %c0_19 = arith.constant 0 : index
      %32 = vector.load %arg5[%c0_18, %c0_19] : memref<1x128xf32, #tpu.memory_space<vmem>>, vector<1x128xf32>
      %33 = arith.mulf %18, %30 : vector<1x128xf32>
      %34 = arith.subf %32, %33 : vector<1x128xf32>
      %c0_20 = arith.constant 0 : index
      %c0_21 = arith.constant 0 : index
      %35 = vector.load %arg10[%c0_20, %c0_21] : memref<1x128xf32, #tpu.memory_space<vmem>>, vector<1x128xf32>
      tpu.vector_store %arg10[%c0_20, %c0_21], %34 {strides = array<i32>} : memref<1x128xf32, #tpu.memory_space<vmem>>, vector<1x128xf32>,
    } else {
    }
    %c0_i32_4 = arith.constant 0 : i32
    %10 = arith.cmpi eq, %arg0, %c0_i32_4 : i32
    %11 = arith.extui %10 : i1 to i32
    %c0_i32_5 = arith.constant 0 : i32
    %12 = arith.cmpi ne, %11, %c0_i32_5 : i32
    scf.if %12 {
      %cst = arith.constant 0.000000e+00 : f32
      %16 = vector.broadcast %cst : f32 to vector<256x128xf32>
      %c0 = arith.constant 0 : index
      %c0_8 = arith.constant 0 : index
      %c0_9 = arith.constant 0 : index
      %c0_10 = arith.constant 0 : index
      %17 = vector.load %arg2[%c0, %c0_8, %c0_9, %c0_10] : memref<1x18x18x128xbf16, #tpu.memory_space<vmem>>, vector<1x16x16x128xbf16>
      %18 = vector.shape_cast %17 : vector<1x16x16x128xbf16> to vector<16x16x128xbf16>
      %19 = vector.shape_cast %18 : vector<16x16x128xbf16> to vector<256x128xbf16>
      %c0_11 = arith.constant 0 : index
      %c0_12 = arith.constant 0 : index
      %c0_13 = arith.constant 0 : index
      %20 = vector.load %arg3[%c0_11, %c0_12, %c0_13] : memref<9x128x128xbf16, #tpu.memory_space<vmem>>, vector<1x128x128xbf16>
      %21 = vector.shape_cast %20 : vector<1x128x128xbf16> to vector<128x128xbf16>
      %cst_14 = arith.constant dense<0.000000e+00> : vector<256x128xf32>
      %22 = tpu.matmul %19, %21, %cst_14 {dimension_numbers = #tpu.dot_dimension_numbers<[1], [0], [0], [1], [0, 0, 1, 1], [], []>} : vector<256x128xbf16>, vector<128x128xbf16>, vector<256x128xf32> -> vector<256x128xf32>
      %23 = arith.addf %16, %22 : vector<256x128xf32>
      %c0_15 = arith.constant 0 : index
      %c0_16 = arith.constant 0 : index
      %c1 = arith.constant 1 : index
      %c0_17 = arith.constant 0 : index
      %24 = vector.load %arg2[%c0_15, %c0_16, %c1, %c0_17] : memref<1x18x18x128xbf16, #tpu.memory_space<vmem>>, vector<1x16x16x128xbf16>
      %25 = vector.shape_cast %24 : vector<1x16x16x128xbf16> to vector<16x16x128xbf16>
      %26 = vector.shape_cast %25 : vector<16x16x128xbf16> to vector<256x128xbf16>
      %c1_18 = arith.constant 1 : index
      %c0_19 = arith.constant 0 : index
      %c0_20 = arith.constant 0 : index
      %27 = vector.load %arg3[%c1_18, %c0_19, %c0_20] : memref<9x128x128xbf16, #tpu.memory_space<vmem>>, vector<1x128x128xbf16>
      %28 = vector.shape_cast %27 : vector<1x128x128xbf16> to vector<128x128xbf16>
      %cst_21 = arith.constant dense<0.000000e+00> : vector<256x128xf32>
      %29 = tpu.matmul %26, %28, %cst_21 {dimension_numbers = #tpu.dot_dimension_numbers<[1], [0], [0], [1], [0, 0, 1, 1], [], []>} : vector<256x128xbf16>, vector<128x128xbf16>, vector<256x128xf32> -> vector<256x128xf32>
      %30 = arith.addf %23, %29 : vector<256x128xf32>
      %c0_22 = arith.constant 0 : index
      %c0_23 = arith.constant 0 : index
      %c2 = arith.constant 2 : index
      %c0_24 = arith.constant 0 : index
      %31 = vector.load %arg2[%c0_22, %c0_23, %c2, %c0_24] : memref<1x18x18x128xbf16, #tpu.memory_space<vmem>>, vector<1x16x16x128xbf16>
      %32 = vector.shape_cast %31 : vector<1x16x16x128xbf16> to vector<16x16x128xbf16>
      %33 = vector.shape_cast %32 : vector<16x16x128xbf16> to vector<256x128xbf16>
      %c2_25 = arith.constant 2 : index
      %c0_26 = arith.constant 0 : index
      %c0_27 = arith.constant 0 : index
      %34 = vector.load %arg3[%c2_25, %c0_26, %c0_27] : memref<9x128x128xbf16, #tpu.memory_space<vmem>>, vector<1x128x128xbf16>
      %35 = vector.shape_cast %34 : vector<1x128x128xbf16> to vector<128x128xbf16>
      %cst_28 = arith.constant dense<0.000000e+00> : vector<256x128xf32>
      %36 = tpu.matmul %33, %35, %cst_28 {dimension_numbers = #tpu.dot_dimension_numbers<[1], [0], [0], [1], [0, 0, 1, 1], [], []>} : vector<256x128xbf16>, vector<128x128xbf16>, vector<256x128xf32> -> vector<256x128xf32>
      %37 = arith.addf %30, %36 : vector<256x128xf32>
      %c0_29 = arith.constant 0 : index
      %c1_30 = arith.constant 1 : index
      %c0_31 = arith.constant 0 : index
      %c0_32 = arith.constant 0 : index
      %38 = vector.load %arg2[%c0_29, %c1_30, %c0_31, %c0_32] : memref<1x18x18x128xbf16, #tpu.memory_space<vmem>>, vector<1x16x16x128xbf16>
      %39 = vector.shape_cast %38 : vector<1x16x16x128xbf16> to vector<16x16x128xbf16>
      %40 = vector.shape_cast %39 : vector<16x16x128xbf16> to vector<256x128xbf16>
      %c3 = arith.constant 3 : index
      %c0_33 = arith.constant 0 : index
      %c0_34 = arith.constant 0 : index
      %41 = vector.load %arg3[%c3, %c0_33, %c0_34] : memref<9x128x128xbf16, #tpu.memory_space<vmem>>, vector<1x128x128xbf16>
      %42 = vector.shape_cast %41 : vector<1x128x128xbf16> to vector<128x128xbf16>
      %cst_35 = arith.constant dense<0.000000e+00> : vector<256x128xf32>
      %43 = tpu.matmul %40, %42, %cst_35 {dimension_numbers = #tpu.dot_dimension_numbers<[1], [0], [0], [1], [0, 0, 1, 1], [], []>} : vector<256x128xbf16>, vector<128x128xbf16>, vector<256x128xf32> -> vector<256x128xf32>
      %44 = arith.addf %37, %43 : vector<256x128xf32>
      %c0_36 = arith.constant 0 : index
      %c1_37 = arith.constant 1 : index
      %c1_38 = arith.constant 1 : index
      %c0_39 = arith.constant 0 : index
      %45 = vector.load %arg2[%c0_36, %c1_37, %c1_38, %c0_39] : memref<1x18x18x128xbf16, #tpu.memory_space<vmem>>, vector<1x16x16x128xbf16>
      %46 = vector.shape_cast %45 : vector<1x16x16x128xbf16> to vector<16x16x128xbf16>
      %47 = vector.shape_cast %46 : vector<16x16x128xbf16> to vector<256x128xbf16>
      %c4 = arith.constant 4 : index
      %c0_40 = arith.constant 0 : index
      %c0_41 = arith.constant 0 : index
      %48 = vector.load %arg3[%c4, %c0_40, %c0_41] : memref<9x128x128xbf16, #tpu.memory_space<vmem>>, vector<1x128x128xbf16>
      %49 = vector.shape_cast %48 : vector<1x128x128xbf16> to vector<128x128xbf16>
      %cst_42 = arith.constant dense<0.000000e+00> : vector<256x128xf32>
      %50 = tpu.matmul %47, %49, %cst_42 {dimension_numbers = #tpu.dot_dimension_numbers<[1], [0], [0], [1], [0, 0, 1, 1], [], []>} : vector<256x128xbf16>, vector<128x128xbf16>, vector<256x128xf32> -> vector<256x128xf32>
      %51 = arith.addf %44, %50 : vector<256x128xf32>
      %c0_43 = arith.constant 0 : index
      %c1_44 = arith.constant 1 : index
      %c2_45 = arith.constant 2 : index
      %c0_46 = arith.constant 0 : index
      %52 = vector.load %arg2[%c0_43, %c1_44, %c2_45, %c0_46] : memref<1x18x18x128xbf16, #tpu.memory_space<vmem>>, vector<1x16x16x128xbf16>
      %53 = vector.shape_cast %52 : vector<1x16x16x128xbf16> to vector<16x16x128xbf16>
      %54 = vector.shape_cast %53 : vector<16x16x128xbf16> to vector<256x128xbf16>
      %c5 = arith.constant 5 : index
      %c0_47 = arith.constant 0 : index
      %c0_48 = arith.constant 0 : index
      %55 = vector.load %arg3[%c5, %c0_47, %c0_48] : memref<9x128x128xbf16, #tpu.memory_space<vmem>>, vector<1x128x128xbf16>
      %56 = vector.shape_cast %55 : vector<1x128x128xbf16> to vector<128x128xbf16>
      %cst_49 = arith.constant dense<0.000000e+00> : vector<256x128xf32>
      %57 = tpu.matmul %54, %56, %cst_49 {dimension_numbers = #tpu.dot_dimension_numbers<[1], [0], [0], [1], [0, 0, 1, 1], [], []>} : vector<256x128xbf16>, vector<128x128xbf16>, vector<256x128xf32> -> vector<256x128xf32>
      %58 = arith.addf %51, %57 : vector<256x128xf32>
      %c0_50 = arith.constant 0 : index
      %c2_51 = arith.constant 2 : index
      %c0_52 = arith.constant 0 : index
      %c0_53 = arith.constant 0 : index
      %59 = vector.load %arg2[%c0_50, %c2_51, %c0_52, %c0_53] : memref<1x18x18x128xbf16, #tpu.memory_space<vmem>>, vector<1x16x16x128xbf16>
      %60 = vector.shape_cast %59 : vector<1x16x16x128xbf16> to vector<16x16x128xbf16>
      %61 = vector.shape_cast %60 : vector<16x16x128xbf16> to vector<256x128xbf16>
      %c6 = arith.constant 6 : index
      %c0_54 = arith.constant 0 : index
      %c0_55 = arith.constant 0 : index
      %62 = vector.load %arg3[%c6, %c0_54, %c0_55] : memref<9x128x128xbf16, #tpu.memory_space<vmem>>, vector<1x128x128xbf16>
      %63 = vector.shape_cast %62 : vector<1x128x128xbf16> to vector<128x128xbf16>
      %cst_56 = arith.constant dense<0.000000e+00> : vector<256x128xf32>
      %64 = tpu.matmul %61, %63, %cst_56 {dimension_numbers = #tpu.dot_dimension_numbers<[1], [0], [0], [1], [0, 0, 1, 1], [], []>} : vector<256x128xbf16>, vector<128x128xbf16>, vector<256x128xf32> -> vector<256x128xf32>
      %65 = arith.addf %58, %64 : vector<256x128xf32>
      %c0_57 = arith.constant 0 : index
      %c2_58 = arith.constant 2 : index
      %c1_59 = arith.constant 1 : index
      %c0_60 = arith.constant 0 : index
      %66 = vector.load %arg2[%c0_57, %c2_58, %c1_59, %c0_60] : memref<1x18x18x128xbf16, #tpu.memory_space<vmem>>, vector<1x16x16x128xbf16>
      %67 = vector.shape_cast %66 : vector<1x16x16x128xbf16> to vector<16x16x128xbf16>
      %68 = vector.shape_cast %67 : vector<16x16x128xbf16> to vector<256x128xbf16>
      %c7 = arith.constant 7 : index
      %c0_61 = arith.constant 0 : index
      %c0_62 = arith.constant 0 : index
      %69 = vector.load %arg3[%c7, %c0_61, %c0_62] : memref<9x128x128xbf16, #tpu.memory_space<vmem>>, vector<1x128x128xbf16>
      %70 = vector.shape_cast %69 : vector<1x128x128xbf16> to vector<128x128xbf16>
      %cst_63 = arith.constant dense<0.000000e+00> : vector<256x128xf32>
      %71 = tpu.matmul %68, %70, %cst_63 {dimension_numbers = #tpu.dot_dimension_numbers<[1], [0], [0], [1], [0, 0, 1, 1], [], []>} : vector<256x128xbf16>, vector<128x128xbf16>, vector<256x128xf32> -> vector<256x128xf32>
      %72 = arith.addf %65, %71 : vector<256x128xf32>
      %c0_64 = arith.constant 0 : index
      %c2_65 = arith.constant 2 : index
      %c2_66 = arith.constant 2 : index
      %c0_67 = arith.constant 0 : index
      %73 = vector.load %arg2[%c0_64, %c2_65, %c2_66, %c0_67] : memref<1x18x18x128xbf16, #tpu.memory_space<vmem>>, vector<1x16x16x128xbf16>
      %74 = vector.shape_cast %73 : vector<1x16x16x128xbf16> to vector<16x16x128xbf16>
      %75 = vector.shape_cast %74 : vector<16x16x128xbf16> to vector<256x128xbf16>
      %c8 = arith.constant 8 : index
      %c0_68 = arith.constant 0 : index
      %c0_69 = arith.constant 0 : index
      %76 = vector.load %arg3[%c8, %c0_68, %c0_69] : memref<9x128x128xbf16, #tpu.memory_space<vmem>>, vector<1x128x128xbf16>
      %77 = vector.shape_cast %76 : vector<1x128x128xbf16> to vector<128x128xbf16>
      %cst_70 = arith.constant dense<0.000000e+00> : vector<256x128xf32>
      %78 = tpu.matmul %75, %77, %cst_70 {dimension_numbers = #tpu.dot_dimension_numbers<[1], [0], [0], [1], [0, 0, 1, 1], [], []>} : vector<256x128xbf16>, vector<128x128xbf16>, vector<256x128xf32> -> vector<256x128xf32>
      %79 = arith.addf %72, %78 : vector<256x128xf32>
      %c0_71 = arith.constant 0 : index
      %c0_72 = arith.constant 0 : index
      %80 = vector.load %arg7[%c0_71, %c0_72] : memref<1x128xf32, #tpu.memory_space<vmem>>, vector<1x128xf32>
      %cst_73 = arith.constant dense<0.000000e+00> : vector<128xf32>
      %81 = vector.multi_reduction <add>, %79, %cst_73 [0] : vector<256x128xf32> to vector<128xf32>
      %82 = vector.shape_cast %81 : vector<128xf32> to vector<1x128xf32>
      %83 = arith.addf %80, %82 : vector<1x128xf32>
      %c0_74 = arith.constant 0 : index
      %c0_75 = arith.constant 0 : index
      %84 = vector.load %arg7[%c0_74, %c0_75] : memref<1x128xf32, #tpu.memory_space<vmem>>, vector<1x128xf32>
      tpu.vector_store %arg7[%c0_74, %c0_75], %83 {strides = array<i32>} : memref<1x128xf32, #tpu.memory_space<vmem>>, vector<1x128xf32>,
      %c0_76 = arith.constant 0 : index
      %c0_77 = arith.constant 0 : index
      %85 = vector.load %arg8[%c0_76, %c0_77] : memref<1x128xf32, #tpu.memory_space<vmem>>, vector<1x128xf32>
      %86 = arith.mulf %79, %79 : vector<256x128xf32>
      %cst_78 = arith.constant dense<0.000000e+00> : vector<128xf32>
      %87 = vector.multi_reduction <add>, %86, %cst_78 [0] : vector<256x128xf32> to vector<128xf32>
      %88 = vector.shape_cast %87 : vector<128xf32> to vector<1x128xf32>
      %89 = arith.addf %85, %88 : vector<1x128xf32>
      %c0_79 = arith.constant 0 : index
      %c0_80 = arith.constant 0 : index
      %90 = vector.load %arg8[%c0_79, %c0_80] : memref<1x128xf32, #tpu.memory_space<vmem>>, vector<1x128xf32>
      tpu.vector_store %arg8[%c0_79, %c0_80], %89 {strides = array<i32>} : memref<1x128xf32, #tpu.memory_space<vmem>>, vector<1x128xf32>,
      %91 = arith.index_cast %arg1 : i32 to index
      %c0_81 = arith.constant 0 : index
      %c0_82 = arith.constant 0 : index
      %92 = vector.load %arg11[%91, %c0_81, %c0_82] : memref<2x256x128xf32, #tpu.memory_space<vmem>>, vector<1x256x128xf32>
      %93 = vector.shape_cast %92 : vector<1x256x128xf32> to vector<256x128xf32>
      %94 = vector.shape_cast %79 : vector<256x128xf32> to vector<1x256x128xf32>
      tpu.vector_store %arg11[%91, %c0_81, %c0_82], %94 {strides = array<i32>} : memref<2x256x128xf32, #tpu.memory_space<vmem>>, vector<1x256x128xf32>,
    } else {
    }
    %c1_i32_6 = arith.constant 1 : i32
    %13 = arith.cmpi eq, %arg0, %c1_i32_6 : i32
    %14 = arith.extui %13 : i1 to i32
    %c0_i32_7 = arith.constant 0 : i32
    %15 = arith.cmpi ne, %14, %c0_i32_7 : i32
    scf.if %15 {
      %16 = arith.index_cast %arg1 : i32 to index
      %c0 = arith.constant 0 : index
      %c0_8 = arith.constant 0 : index
      %17 = vector.load %arg11[%16, %c0, %c0_8] : memref<2x256x128xf32, #tpu.memory_space<vmem>>, vector<1x256x128xf32>
      %18 = vector.shape_cast %17 : vector<1x256x128xf32> to vector<256x128xf32>
      %c0_9 = arith.constant 0 : index
      %c0_10 = arith.constant 0 : index
      %19 = vector.load %arg9[%c0_9, %c0_10] : memref<1x128xf32, #tpu.memory_space<vmem>>, vector<1x128xf32>
      %20 = vector.broadcast %19 : vector<1x128xf32> to vector<256x128xf32>
      %21 = arith.mulf %18, %20 : vector<256x128xf32>
      %c0_11 = arith.constant 0 : index
      %c0_12 = arith.constant 0 : index
      %22 = vector.load %arg10[%c0_11, %c0_12] : memref<1x128xf32, #tpu.memory_space<vmem>>, vector<1x128xf32>
      %23 = vector.broadcast %22 : vector<1x128xf32> to vector<256x128xf32>
      %24 = arith.addf %21, %23 : vector<256x128xf32>
      %cst = arith.constant 0.000000e+00 : f32
      %25 = vector.broadcast %cst : f32 to vector<256x128xf32>
      %26 = arith.maximumf %24, %25 : vector<256x128xf32>
      %27 = arith.truncf %26 : vector<256x128xf32> to vector<256x128xbf16>
      %c0_13 = arith.constant 0 : index
      %c0_14 = arith.constant 0 : index
      %c0_15 = arith.constant 0 : index
      %28 = vector.load %arg6[%c0_13, %c0_14, %c0_15] : memref<1x256x128xbf16, #tpu.memory_space<vmem>>, vector<1x256x128xbf16>
      %29 = vector.shape_cast %28 : vector<1x256x128xbf16> to vector<256x128xbf16>
      %30 = vector.shape_cast %27 : vector<256x128xbf16> to vector<1x256x128xbf16>
      tpu.vector_store %arg6[%c0_13, %c0_14, %c0_15], %30 {strides = array<i32>} : memref<1x256x128xbf16, #tpu.memory_space<vmem>>, vector<1x256x128xbf16>,
    } else {
    }
    return
  }
  func.func @transform_0(%arg0: i32, %arg1: i32) -> (i32, i32, i32, i32) {
    %c1_i32 = arith.constant 1 : i32
    %0 = arith.subi %c1_i32, %arg0 : i32
    %1 = arith.muli %arg1, %0 : i32
    %c1_i32_0 = arith.constant 1 : i32
    %2 = arith.muli %c1_i32_0, %arg0 : i32
    %3 = arith.addi %1, %2 : i32
    %c0_i32 = arith.constant 0 : i32
    %c0_i32_1 = arith.constant 0 : i32
    %c0_i32_2 = arith.constant 0 : i32
    %c0_i32_3 = arith.constant 0 : i32
    return %3, %c0_i32, %c0_i32_1, %c0_i32_2 : i32, i32, i32, i32
  }
  func.func @transform_1(%arg0: i32, %arg1: i32) -> (i32, i32, i32) {
    %c0_i32 = arith.constant 0 : i32
    %c0_i32_0 = arith.constant 0 : i32
    %c0_i32_1 = arith.constant 0 : i32
    %c0_i32_2 = arith.constant 0 : i32
    return %c0_i32, %c0_i32_0, %c0_i32_1 : i32, i32, i32
  }
  func.func @transform_2(%arg0: i32, %arg1: i32) -> (i32, i32) {
    %c0_i32 = arith.constant 0 : i32
    %c0_i32_0 = arith.constant 0 : i32
    %c0_i32_1 = arith.constant 0 : i32
    return %c0_i32, %c0_i32_0 : i32, i32
  }
  func.func @transform_3(%arg0: i32, %arg1: i32) -> (i32, i32) {
    %c0_i32 = arith.constant 0 : i32
    %c0_i32_0 = arith.constant 0 : i32
    %c0_i32_1 = arith.constant 0 : i32
    return %c0_i32, %c0_i32_0 : i32, i32
  }
  func.func @transform_4(%arg0: i32, %arg1: i32) -> (i32, i32, i32) {
    %0 = arith.muli %arg0, %arg1 : i32
    %c0_i32 = arith.constant 0 : i32
    %c0_i32_0 = arith.constant 0 : i32
    %c0_i32_1 = arith.constant 0 : i32
    return %0, %c0_i32, %c0_i32_0 : i32, i32, i32
  }
}

</mosaic_0001>

<bundles_post_ra>
// kernel: residual_block.3
= control target key start
LH: loop header
LB: loop body
LE: loop exit
PB: predicated region body
PF: predicated region fallthrough
CT: control target
= control target key end

     0   :  { %s7436_s18 = smov 0   ;;  %s7438_s19 = smov 0   ;;  %s9493_s0 = inlined_call_operand.vmem [shape: bf16[2,18,18,128], index: 0, kind: input, shape index: {}]   ;;  %s9494_s1 = inlined_call_operand.vmem [shape: bf16[9,128,128], index: 1, kind: input, shape index: {}]   ;;  %s9495_s2 = inlined_call_operand.vmem [shape: f32[1,128], index: 2, kind: input, shape index: {}]   ;;  %s9496_s3 = inlined_call_operand.vmem [shape: f32[1,128], index: 3, kind: input, shape index: {}]   ;;  %s9497_s4 = inlined_call_operand.vmem [shape: f32[2,256,128], index: 4, kind: input, shape index: {}]   ;;  %s9498_s5 = inlined_call_operand.vmem [shape: f32[2,256,128], index: 5, kind: output, shape index: {}]  }
   0x1   :  { %s7440_s20 = smov 0   ;;  %s7442_s21 = smov 0  }
   0x2   :  { %s7444_s22 = smov 0  }
   0x3 LB: > { %s24_s23 = sadd.s32 1, %s7395_s20  ;;  %s27_s24 = sadd.s32 1, %s7399_s21  ;;  %s7403_s22 = sphi %s7444_s22, %s15_s22   ;;  %s7399_s21 = sphi %s7442_s21, %s9568_s21   ;;  %s7395_s20 = sphi %s7440_s20, %s9567_s20   ;;  %s7391_s19 = sphi %s7438_s19, %s9566_s19   ;;  %s7387_s18 = sphi %s7436_s18, %s9565_s18  }
   0x4   : > { %p25_p0 = scmp.ge.s32.totalorder %s24_s23, 2  ;;  %p5611_p1 = scmp.ge.s32.totalorder %s7403_s22, 1 }
   0x5   : > { %p227_p2 = scmp.lt.s32.totalorder %s7403_s22, 5 }
   0x6   : > { %s9570_s23 = smov (%p25_p0, %s24_s23), 0  ;;  %s9572_s24 = smov (!%p25_p0, %s27_s24), %s7399_s21 }
   0x7   : > { %p228_p3 = pnand %p5611_p1, %p227_p2  ;;  %p29_p4 = scmp.ge.s32.totalorder %s9572_s24, 2 }
   0x8   : > { %s265_s25 = ssub.s32 (!%p228_p3), 1, %s7391_s19  ;;  %s276_s26 = smul.u32 (!%p228_p3), %s7387_s18, %s7391_s19 }
   0x9   : > { %s9574_s24 = smov (%p29_p4, %s9572_s24), 0  ;;  %231 = sbr.rel (%p228_p3) target bundleno = 700 (0x2bc), region = 40 }
   0xa   : > { %s266_s27 = smul.u32 (!%p228_p3), %s7387_s18, %s265_s25  ;;  %p291_p5 = scmp.eq.s32.totalorder (!%p228_p3), %s7391_s19, 0 }
   0xb   : > { %p277_p6 = scmp.lt.s32.totalorder (!%p228_p3), %s276_s26, 1  ;;  %p292_p7 = scmp.eq.s32.totalorder (!%p228_p3), %s7387_s18, 0 }
   0xc   : > { %s267_s28 = sadd.s32 (!%p228_p3), %s7391_s19, %s266_s27 }
   0xd   : > { %p268_p8 = scmp.lt.s32.totalorder (!%p228_p3), %s267_s28, 1  ;;  %p293_p9 = pnand (!%p228_p3), %p292_p7, %p291_p5 }
  0x10   : > { %s9576_s26 = smov (!%p277_p6, %s276_s26), 1  ;;  %s9578_s28 = smov (!%p268_p8, %s267_s28), 1 }
  0x11   : > { %s6209_s29 = sshll.u32 %s9576_s26, 8  ;;  %s7131_s30 = smul.u32 216, %s9578_s28  ;;  %v7405_v0 = vmov (!%p293_p9), 0.0  }
  0x12   : > { %s7482_s8 = scalar_lea.vmem %s9497_s4, %s6209_s29  ;;  %s7487_s11 = scalar_lea.vmem %s9498_s5, %s6209_s29  ;;  %297 = vst [vmem:[#allocation2] sm:$0x1] (!%p293_p9), %v7405_v0  ;;  %298 = vst [vmem:[#allocation3] sm:$0x1] (!%p293_p9), %v7405_v0 }
  0x13   : > { %s7492_s14 = scalar_lea.vmem %s9493_s0, %s7131_s30  ;;  %296 = sbr.rel (%p293_p9) target bundleno = 26 (0x1a), region = 44 }
  0x1a PF: > { %p299_p10 = scmp.eq.s32.totalorder %s7391_s19, 1 }
  0x1c   : > { %p300_p11 = pnand %p299_p10, %p292_p7 }
  0x1d   : > { %v304_v1 = vld [vmem:[#allocation2] sm:$0x1] (!%p300_p11)  ;;  %v306_v2 = vld [vmem:[#allocation3] sm:$0x1] (!%p300_p11) }
  0x1e   : > { %303 = sbr.rel (%p300_p11) target bundleno = 58 (0x3a), region = 48  ;;  %v305_v3 = vmul.f32 (!%p300_p11), 0.001953125, %v304_v1  ;;  %v307_v4 = vmul.f32 (!%p300_p11), 0.001953125, %v306_v2  ;;  %v313_v9 = vld [vmem:[%s9495_s2] sm:$0x1] (!%p300_p11) }
  0x1f   : > { %v316_v12 = vld [vmem:[%s9496_s3] sm:$0x1] (!%p300_p11) }
  0x20   : > { %v308_v5 = vmul.f32 (!%p300_p11), %v305_v3, %v305_v3 }
  0x22   : > { %v309_v6 = vsub.f32 (!%p300_p11), %v307_v4, %v308_v5 }
  0x24   : > { %v310_v7 = vmax.f32 (!%p300_p11), %v309_v6, 0.0 }
  0x26   : > { %v311_v8 = vadd.f32 1e-05, %v310_v7 }
  0x28   : > { %7173 = vrsqrt.f32 %v311_v8 }
  0x32   : > { %v7174_v10 = vpop.eup %7173 }
  0x33   : > { %v314_v11 = vmul.f32 %v7174_v10, %v313_v9 }
  0x35   : > { %315 = vst [vmem:[#allocation4] sm:$0x1] %v314_v11  ;;  %v317_v13 = vmul.f32 %v314_v11, %v305_v3 }
  0x37   : > { %v318_v14 = vsub.f32 %v316_v12, %v317_v13 }
  0x39   : > { %319 = vst [vmem:[#allocation5] sm:$0x1] %v318_v14 }
  0x3a PF: > { %p5617_p12 = scmp.ne.s32.totalorder %s7391_s19, 0 }
  0x3c   : > { %322 = sbr.rel (%p5617_p12) target bundleno = 658 (0x292), region = 52 }
  0x43   : > { %v7175_v15 = vld [vmem:[%s9494_s1 + $0x40] sm:$0xff]   ;;  %v7177_v17 = vld [vmem:[%s9494_s1 + $0x48] sm:$0xff]   ;;  %v7179_v19 = vld [vmem:[%s9494_s1 + $0x50] sm:$0xff]   ;;  %vm387_vm0 = vsmask.f32 3328  ;;  %vm1417_vm3 = vcmask 1042432  }
  0x44   : > { %v7176_v16 = vld [vmem:[%s9494_s1 + $0x100] sm:$0xff]   ;;  %6427 = vmatprep.subr.bf16.mxu1 %v7175_v15  ;;  %v7178_v18 = vld [vmem:[%s9494_s1 + $0x108] sm:$0xff]   ;;  %v7180_v20 = vld [vmem:[%s9494_s1 + $0x110] sm:$0xff]   ;;  %vm388_vm1 = vsmask.f32 7440  ;;  %vm1418_vm4 = vcmask 1046532  }
  0x45   : > { %6619 = vmatprep.subr.bf16.mxu0 %v7176_v16  ;;  %6428 = vmatpush3.bf16.msra.mxu1 %v7175_v15  ;;  %v7181_v21 = vld [vmem:[%s9494_s1 + $0x58] sm:$0xff]   ;;  %v7183_v23 = vld [vmem:[%s9494_s1 + $0x60] sm:$0xff]   ;;  %v7185_v25 = vld [vmem:[%s9494_s1 + $0x68] sm:$0xff]  }
  0x46   : > { %6620 = vmatpush3.bf16.msra.mxu0 %v7176_v16  ;;  %6429 = vmatprep.subr.bf16.mxu1 %v7177_v17  ;;  %v7182_v22 = vld [vmem:[%s9494_s1 + $0x118] sm:$0xff]   ;;  %v7184_v24 = vld [vmem:[%s9494_s1 + $0x120] sm:$0xff]   ;;  %v7186_v26 = vld [vmem:[%s9494_s1 + $0x128] sm:$0xff]  }
  0x47   : > { %6621 = vmatprep.subr.bf16.mxu0 %v7178_v18  ;;  %v323_v27 = vld [vmem:[%s7492_s14] sm:$0xf]  ;;  %v324_v28 = vld [vmem:[%s7492_s14 + $0x4] sm:$0xf]  ;;  %v371_v29 = vld [vmem:[%s7492_s14 + $0x8] sm:$0x1] }
  0x48   : > { %v391_v30 = vshrl.u32 %v323_v27, 16  ;;  %v394_v31 = vshll.u32 %v323_v27, 16  ;;  %v400_v32 = vshll.u32 %v324_v28, 16  ;;  %v404_v33 = vshrl.u32 %v324_v28, 16  ;;  %v5810_v35 = vld [vmem:[%s7492_s14 + $0xc] sm:$0xf]  ;;  %vm7564_vm2 = vmor %vm387_vm0, %vm388_vm1 }
  0x49   : > { %6430 = vmatpush3.bf16.msra.mxu1 %v7177_v17  ;;  %v410_v34 = vshll.u32 %v371_v29, 16  ;;  %v7545_v38 = vld [vmem:[%s7492_s14 + $0x10] sm:$0xf]  ;;  %v7548_v39 = vld [vmem:[%s7492_s14 + $0x14] sm:$0x1]  ;;  %v2290_v44 = vshrl.u32 %v5810_v35, 16  ;;  %vm7810_vm5 = vmor %vm1417_vm3, %vm1418_vm4 }
  0x4a   : > { %6622 = vmatpush3.bf16.msra.mxu0 %v7178_v18  ;;  %6431 = vmatprep.subr.bf16.mxu1 %v7179_v19  ;;  %v393_v36 = vrot.slane %v391_v30, 4  ;;  %v396_v37 = vrot.slane %v394_v31, 5  ;;  %v7187_v40 = vld [vmem:[%s9494_s1 + $0x70] sm:$0xff]   ;;  %v402_v41 = vrot.slane %v400_v32, 5  ;;  %v406_v42 = vrot.slane %v404_v33, 4  ;;  %v7189_v51 = vld [vmem:[%s9494_s1 + $0x78] sm:$0xff]  }
  0x4b   : > { %6623 = vmatprep.subr.bf16.mxu0 %v7180_v20  ;;  %v412_v43 = vrot.slane %v410_v34, 5  ;;  %v7188_v45 = vld [vmem:[%s9494_s1 + $0x130] sm:$0xff]   ;;  %v2293_v47 = vshll.u32 %v5810_v35, 16  ;;  %v2299_v48 = vshll.u32 %v7545_v38, 16  ;;  %v2303_v49 = vshrl.u32 %v7545_v38, 16  ;;  %v7190_v2 = vld [vmem:[%s9494_s1 + $0x138] sm:$0xff]  }
  0x4c   : > { %v397_v46 = vor.u32 %v396_v37, %v393_v36  ;;  %v325_v50 = vld [vmem:[%s7492_s14 + $0xc] sm:$0xf]  ;;  %v407_v53 = vor.u32 %v406_v42, %v402_v41  ;;  %v2292_v54 = vrot.slane %v2290_v44, 4  ;;  %v2309_v55 = vshll.u32 %v7548_v39, 16  ;;  %v326_v57 = vld [vmem:[%s7492_s14 + $0x10] sm:$0xf] }
  0x4d   : > { %6432 = vmatpush3.bf16.msra.mxu1 %v7179_v19  ;;  %v3064_v56 = vrot.slane %v7548_v39, 5  ;;  %v2295_v59 = vrot.slane %v2293_v47, 5  ;;  %v2301_v60 = vrot.slane %v2299_v48, 5  ;;  %v2305_v61 = vrot.slane %v2303_v49, 4  ;;  %v372_v6 = vld [vmem:[%s7492_s14 + $0x14] sm:$0x1] }
  0x4e   : > { %6624 = vmatpush3.bf16.msra.mxu0 %v7180_v20  ;;  %6433 = vmatprep.subr.bf16.mxu1 %v7181_v21  ;;  %v398_v58 = vrot.slane %v397_v46, 4  ;;  %v408_v62 = vrot.slane %v407_v53, 4  ;;  %v2311_v63 = vrot.slane %v2309_v55, 5  ;;  %v415_v0 = vshrl.u32 %v325_v50, 16  ;;  %v5813_v8 = vld [vmem:[%s7492_s14 + $0x18] sm:$0xf] }
  0x4f   : > { %6625 = vmatprep.subr.bf16.mxu0 %v7182_v22  ;;  %v418_v1 = vshll.u32 %v325_v50, 16  ;;  %v2296_v4 = vor.u32 %v2295_v59, %v2292_v54  ;;  %v2306_v5 = vor.u32 %v2305_v61, %v2301_v60  ;;  %v424_v7 = vshll.u32 %v326_v57, 16  ;;  %v7581_v13 = vld [vmem:[%s7492_s14 + $0x1c] sm:$0xf]  ;;  %v7191_v18 = vld [vmem:[%s9494_s1] sm:$0xff]   ;;  %v7194_v61 = vld [vmem:[%s9494_s1 + $0x8] sm:$0xff]  }
  0x50   : > { %v403_v3 = vsel %vm7564_vm2, %v398_v58, %v402_v41  ;;  %v413_v9 = vsel %vm7564_vm2, %v408_v62, %v412_v43  ;;  %v417_v10 = vrot.slane %v415_v0, 4  ;;  %v428_v12 = vshrl.u32 %v326_v57, 16  ;;  %v7589_v19 = vld [vmem:[%s9494_s1 + $0x140] sm:$0xff]   ;;  %v327_v36 = vld [vmem:[%s7492_s14 + $0x18] sm:$0xf] }
  0x51   : > { %6434 = vmatpush3.bf16.msra.mxu1 %v7181_v21  ;;  %v420_v11 = vrot.slane %v418_v1, 5  ;;  %v5634_v14 = vcombine.low %v403_v3, %v413_v9  ;;  %v2297_v15 = vrot.slane %v2296_v4, 4  ;;  %v2307_v16 = vrot.slane %v2306_v5, 4  ;;  %v328_v43 = vld [vmem:[%s7492_s14 + $0x1c] sm:$0xf] }
  0x52   : > { %6626 = vmatpush3.bf16.msra.mxu0 %v7182_v22  ;;  %6435 = vmatprep.subr.bf16.mxu1 %v7183_v23  ;;  %v426_v17 = vrot.slane %v424_v7, 5  ;;  %v430_v21 = vrot.slane %v428_v12, 4  ;;  %v434_v22 = vshll.u32 %v372_v6, 16  ;;  %v2317_v27 = vshll.u32 %v5813_v8, 16  ;;  %v373_v48 = vld [vmem:[%s7492_s14 + $0x20] sm:$0x1] }
  0x53   : > { %6627 = vmatprep.subr.bf16.mxu0 %v7184_v24  ;;  %v421_v20 = vor.u32 %v420_v11, %v417_v10  ;;  %6443 = vmatprep.mubr.bf16.mxu1 %v5634_v14  ;;  %v2323_v34 = vshll.u32 %v7581_v13, 16  ;;  %v2327_v35 = vshrl.u32 %v7581_v13, 16  ;;  %v3068_v42 = vrot.slane %v7581_v13, 5  ;;  %v5816_v54 = vld [vmem:[%s7492_s14 + $0x24] sm:$0xf]  ;;  %v7193_v14 = vld [vmem:[%s9494_s1 + $0x148] sm:$0xff]  }
  0x54   : > { %v431_v30 = vor.u32 %v430_v21, %v426_v17  ;;  %v436_v31 = vrot.slane %v434_v22, 5  ;;  %v2319_v33 = vrot.slane %v2317_v27, 5  ;;  %v439_v53 = vshrl.u32 %v327_v36, 16  ;;  %v329_v3 = vld [vmem:[%s7492_s14 + $0x24] sm:$0xf] }
  0x55   : > { %6436 = vmatpush3.bf16.msra.mxu1 %v7183_v23  ;;  %v7592_v23 = vld [vmem:[%s7492_s14 + $0x20] sm:$0x1]  ;;  %v422_v29 = vrot.slane %v421_v20, 4  ;;  %v2329_v46 = vrot.slane %v2327_v35, 4  ;;  %v442_v59 = vshll.u32 %v327_v36, 16  ;;  %v452_v0 = vshrl.u32 %v328_v43, 16 }
  0x56   : > { %6628 = vmatpush3.bf16.msra.mxu0 %v7184_v24  ;;  %6437 = vmatprep.subr.bf16.mxu1 %v7185_v25  ;;  %v2302_v24 = vsel %vm7564_vm2, %v2297_v15, %v2301_v60  ;;  %v2333_v41 = vshll.u32 %v7592_v23, 16  ;;  %v3071_v47 = vrot.slane %v7592_v23, 5  ;;  %v7617_v60 = vld [vmem:[%s7492_s14 + $0x28] sm:$0xf]  ;;  %v441_v62 = vrot.slane %v439_v53, 4 }
  0x57   : > { %6629 = vmatprep.subr.bf16.mxu0 %v7186_v26  ;;  %v427_v37 = vsel %vm7564_vm2, %v422_v29, %v426_v17  ;;  %v458_v1 = vshll.u32 %v373_v48, 16  ;;  %v444_v6 = vrot.slane %v442_v59, 5  ;;  %v2338_v7 = vshrl.u32 %v5816_v54, 16  ;;  %v330_v20 = vld [vmem:[%s7492_s14 + $0x28] sm:$0xf] }
  0x58   : > { %v2335_v50 = vrot.slane %v2333_v41, 5  ;;  %v454_v9 = vrot.slane %v452_v0, 4  ;;  %v2341_v11 = vshll.u32 %v5816_v54, 16  ;;  %v2347_v17 = vshll.u32 %v7617_v60, 16  ;;  %v7648_v48 = vld [vmem:[%s7492_s14 + $0x34] sm:$0xf] }
  0x59   : > { %6438 = vmatpush3.bf16.msra.mxu1 %v7185_v25  ;;  %v2312_v25 = vsel %vm7564_vm2, %v2307_v16, %v2311_v63  ;;  %v448_v63 = vshll.u32 %v328_v43, 16  ;;  %v460_v10 = vrot.slane %v458_v1, 5  ;;  %v445_v15 = vor.u32 %v444_v6, %v441_v62 }
  0x5a   : > { %6630 = vmatpush3.bf16.msra.mxu0 %v7186_v26  ;;  %6439 = vmatprep.subr.bf16.mxu1 %v7187_v40  ;;  %v2314_v26 = vshrl.u32 %v5813_v8, 16  ;;  %v5874_v28 = vcombine.low %v2302_v24, %v2312_v25  ;;  %v2340_v16 = vrot.slane %v2338_v7, 4  ;;  %v2343_v24 = vrot.slane %v2341_v11, 5  ;;  %v7203_v11 = vld [vmem:[%s9494_s1 + $0x20] sm:$0xff]  }
  0x5b   : > { %6631 = vmatprep.subr.bf16.mxu0 %v7188_v45  ;;  %v450_v8 = vrot.slane %v448_v63, 5  ;;  %v2351_v25 = vshrl.u32 %v7617_v60, 16  ;;  %v446_v27 = vrot.slane %v445_v15, 4  ;;  %v466_v35 = vshll.u32 %v329_v3, 16  ;;  %v7196_v63 = vld [vmem:[%s9494_s1 + $0x158] sm:$0xff]  }
  0x5c   : > { %v2316_v32 = vrot.slane %v2314_v26, 4  ;;  %6635 = vmatprep.mubr.bf16.mxu0 %v5874_v28  ;;  %v374_v26 = vld [vmem:[%s7492_s14 + $0x2c] sm:$0x1]  ;;  %v2349_v28 = vrot.slane %v2347_v17, 5  ;;  %v472_v41 = vshll.u32 %v330_v20, 16  ;;  %v476_v54 = vshrl.u32 %v330_v20, 16 }
  0x5d   : > { %6440 = vmatpush3.bf16.msra.mxu1 %v7187_v40  ;;  %v432_v40 = vrot.slane %v431_v30, 4  ;;  %v455_v22 = vor.u32 %v454_v9, %v450_v8  ;;  %v463_v30 = vshrl.u32 %v329_v3, 16  ;;  %v451_v36 = vsel %vm7564_vm2, %v446_v27, %v450_v8  ;;  %v375_v17 = vld [vmem:[%s7492_s14 + $0x38] sm:$0x1] }
  0x5e   : > { %6632 = vmatpush3.bf16.msra.mxu0 %v7188_v45  ;;  %6441 = vmatprep.subr.bf16.mxu1 %v7189_v51  ;;  %v2320_v44 = vor.u32 %v2319_v33, %v2316_v32  ;;  %v2325_v45 = vrot.slane %v2323_v34, 5  ;;  %v2344_v33 = vor.u32 %v2343_v24, %v2340_v16  ;;  %v2353_v34 = vrot.slane %v2351_v25, 4  ;;  %v5822_v24 = vld [vmem:[%s7492_s14 + $0x3c] sm:$0xf] }
  0x5f   : > { %6633 = vmatprep.subr.bf16.mxu0 %v7190_v2  ;;  %v437_v49 = vsel %vm7564_vm2, %v432_v40, %v436_v31  ;;  %v5819_v31 = vld [vmem:[%s7492_s14 + $0x30] sm:$0xf]  ;;  %v456_v32 = vrot.slane %v455_v22, 4  ;;  %v465_v40 = vrot.slane %v463_v30, 4  ;;  %v474_v53 = vrot.slane %v472_v41, 5 }
  0x60   : > { %v5635_v55 = vcombine.low %v427_v37, %v437_v49  ;;  %v2321_v57 = vrot.slane %v2320_v44, 4  ;;  %v2330_v58 = vor.u32 %v2329_v46, %v2325_v45  ;;  %v2345_v44 = vrot.slane %v2344_v33, 4  ;;  %v7200_v49 = vld [vmem:[%s9494_s1 + $0x18] sm:$0xff]  }
  0x61   : > { %6442 = vmatpush3.bf16.msra.mxu1 %v7189_v51  ;;  %v7613_v51 = vrot.slane %v3068_v42, 4  ;;  %v461_v43 = vsel %vm7564_vm2, %v456_v32, %v460_v10  ;;  %v468_v46 = vrot.slane %v466_v35, 5  ;;  %v2362_v62 = vshrl.u32 %v5819_v31, 16  ;;  %v332_v10 = vld [vmem:[%s7492_s14 + $0x34] sm:$0xf]  ;;  %v7198_v35 = vld [vmem:[%s9494_s1 + $0x160] sm:$0xff]  }
  0x62   : > { %6634 = vmatpush3.bf16.msra.mxu0 %v7190_v2  ;;  %6475 = vmatprep.subr.bf16.mxu1 %v7191_v18  ;;  %v7623_v2 = vld [vmem:[%s7492_s14 + $0x2c] sm:$0x1]  ;;  %v2326_v4 = vsel %vm7564_vm2, %v2321_v57, %v2325_v45  ;;  %v2331_v5 = vrot.slane %v2330_v58, 4  ;;  %v2354_v45 = vor.u32 %v2353_v34, %v2349_v28  ;;  %v2350_v57 = vsel %vm7564_vm2, %v2345_v44, %v2349_v28  ;;  %v7682_v34 = vld [vmem:[%s7492_s14 + $0x40] sm:$0xf] }
  0x63   : > { %6667 = vmatprep.subr.bf16.mxu0 %v7589_v19  ;;  %v2357_v29 = vshll.u32 %v7623_v2, 16  ;;  %v469_v59 = vor.u32 %v468_v46, %v465_v40  ;;  %v478_v0 = vrot.slane %v476_v54, 4  ;;  %v2365_v3 = vshll.u32 %v5819_v31, 16 }
  0x64   : > { %6444 = vmatmul.mubr.bf16.vlgmr.msra.gmra.mrb[0].mxu1 %v5635_v55  ;;  %v2336_v12 = vsel %vm7564_vm2, %v2331_v5, %v2335_v50  ;;  %v5636_v50 = vcombine.low %v451_v36, %v461_v43  ;;  %v482_v55 = vshll.u32 %v374_v26, 16  ;;  %v2355_v58 = vrot.slane %v2354_v45, 4  ;;  %v331_v5 = vld [vmem:[%s7492_s14 + $0x30] sm:$0xf]  ;;  %v7690_v43 = vld [vmem:[%s7492_s14 + $0x44] sm:$0x1] }
  0x65   : > { %6476 = vmatpush3.bf16.msra.mxu1 %v7191_v18  ;;  %v7197_v18 = vld [vmem:[%s9494_s1 + $0x10] sm:$0xff]   ;;  %v5875_v21 = vcombine.low %v2326_v4, %v2336_v12  ;;  %v2359_v37 = vrot.slane %v2357_v29, 5  ;;  %v2371_v4 = vshll.u32 %v7648_v48, 16  ;;  %v470_v7 = vrot.slane %v469_v59, 4  ;;  %v7205_v29 = vld [vmem:[%s9494_s1 + $0x28] sm:$0xff]  }
  0x66   : > { %6477 = vmatprep.subr.bf16.mxu1 %v7194_v61  ;;  %6447 = vmatprep.mubr.bf16.mxu1 %v5636_v50  ;;  %v484_v1 = vrot.slane %v482_v55, 5  ;;  %v2364_v8 = vrot.slane %v2362_v62, 4  ;;  %v2375_v9 = vshrl.u32 %v7648_v48, 16  ;;  %v2367_v15 = vrot.slane %v2365_v3, 5  ;;  %v7207_v50 = vld [vmem:[%s9494_s1 + $0x30] sm:$0xff]  }
  0x67   : > { %6636 = vmatmul.mubr.bf16.vlgmr.msra.gmra.mrb[0].mxu0 %v5875_v21  ;;  %v2360_v6 = vsel %vm7564_vm2, %v2355_v58, %v2359_v37  ;;  %v2373_v16 = vrot.slane %v2371_v4, 5  ;;  %v475_v20 = vsel %vm7564_vm2, %v470_v7, %v474_v53  ;;  %v487_v22 = vshrl.u32 %v331_v5, 16 }
  0x68   : > { %6668 = vmatpush3.bf16.msra.mxu0 %v7589_v19  ;;  %v7195_v19 = vld [vmem:[%s9494_s1 + $0x150] sm:$0xff]   ;;  %v5876_v12 = vcombine.low %v2350_v57, %v2360_v6  ;;  %v2368_v26 = vor.u32 %v2367_v15, %v2364_v8  ;;  %v490_v27 = vshll.u32 %v331_v5, 16  ;;  %v496_v28 = vshll.u32 %v332_v10, 16  ;;  %v334_v6 = vld [vmem:[%s7492_s14 + $0x40] sm:$0xf] }
  0x69   : > { %6478 = vmatpush3.bf16.msra.mxu1 %v7194_v61  ;;  %6669 = vmatprep.subr.bf16.mxu0 %v7193_v14  ;;  %v7659_v61 = vld [vmem:[%s7492_s14 + $0x38] sm:$0x1]  ;;  %v489_v32 = vrot.slane %v487_v22, 4  ;;  %v500_v33 = vshrl.u32 %v332_v10, 16  ;;  %v2386_v55 = vshrl.u32 %v5822_v24, 16  ;;  %v2389_v57 = vshll.u32 %v5822_v24, 16 }
  0x6a   : > { %6479 = vmatprep.subr.bf16.mxu1 %v7197_v18  ;;  %v2381_v21 = vshll.u32 %v7659_v61, 16  ;;  %6639 = vmatprep.mubr.bf16.mxu0 %v5876_v12  ;;  %v2369_v37 = vrot.slane %v2368_v26, 4  ;;  %v492_v40 = vrot.slane %v490_v27, 5  ;;  %v498_v41 = vrot.slane %v496_v28, 5  ;;  %v5825_v24 = vld [vmem:[%s7492_s14 + $0x48] sm:$0xf] }
  0x6b   : > { %v502_v46 = vrot.slane %v500_v33, 4  ;;  %v2388_v4 = vrot.slane %v2386_v55, 4  ;;  %v2391_v5 = vrot.slane %v2389_v57, 5  ;;  %v2405_v10 = vshll.u32 %v7690_v43, 16 }
  0x6c   : > { %6670 = vmatpush3.bf16.msra.mxu0 %v7193_v14  ;;  %v479_v14 = vor.u32 %v478_v0, %v474_v53  ;;  %v2383_v31 = vrot.slane %v2381_v21, 5  ;;  %v2374_v53 = vsel %vm7564_vm2, %v2369_v37, %v2373_v16  ;;  %v493_v54 = vor.u32 %v492_v40, %v489_v32  ;;  %v7723_v37 = vld [vmem:[%s7492_s14 + $0x50] sm:$0x1] }
  0x6d   : > { %6480 = vmatpush3.bf16.msra.mxu1 %v7197_v18  ;;  %6671 = vmatprep.subr.bf16.mxu0 %v7195_v19  ;;  %v2377_v18 = vrot.slane %v2375_v9, 4  ;;  %v503_v59 = vor.u32 %v502_v46, %v498_v41  ;;  %v2395_v0 = vshll.u32 %v7682_v34, 16  ;;  %v2399_v9 = vshrl.u32 %v7682_v34, 16  ;;  %v7202_v46 = vld [vmem:[%s9494_s1 + $0x178] sm:$0xff]  }
  0x6e   : > { %6481 = vmatprep.subr.bf16.mxu1 %v7200_v49  ;;  %v480_v25 = vrot.slane %v479_v14, 4  ;;  %v494_v3 = vrot.slane %v493_v54, 4  ;;  %v2392_v12 = vor.u32 %v2391_v5, %v2388_v4  ;;  %v376_v14 = vld [vmem:[%s7492_s14 + $0x44] sm:$0x1]  ;;  %v2407_v21 = vrot.slane %v2405_v10, 5 }
  0x6f   : > { %v2378_v30 = vor.u32 %v2377_v18, %v2373_v16  ;;  %v504_v7 = vrot.slane %v503_v59, 4  ;;  %v2397_v8 = vrot.slane %v2395_v0, 5  ;;  %v2401_v18 = vrot.slane %v2399_v9, 4  ;;  %v336_v4 = vld [vmem:[%s7492_s14 + $0x4c] sm:$0xf] }
  0x70   : > { %6672 = vmatpush3.bf16.msra.mxu0 %v7195_v19  ;;  %v485_v36 = vsel %vm7564_vm2, %v480_v25, %v484_v1  ;;  %v506_v19 = vshll.u32 %v375_v17, 16  ;;  %v7209_v17 = vld [vmem:[%s9494_s1 + $0x38] sm:$0xff]   ;;  %v520_v22 = vshll.u32 %v334_v6, 16  ;;  %v2393_v26 = vrot.slane %v2392_v12, 4  ;;  %v377_v5 = vld [vmem:[%s7492_s14 + $0x50] sm:$0x1] }
  0x71   : > { %6482 = vmatpush3.bf16.msra.mxu1 %v7200_v49  ;;  %6673 = vmatprep.subr.bf16.mxu0 %v7196_v63  ;;  %v5637_v44 = vcombine.low %v475_v20, %v485_v36  ;;  %v2379_v45 = vrot.slane %v2378_v30, 4  ;;  %v333_v49 = vld [vmem:[%s7492_s14 + $0x3c] sm:$0xf]  ;;  %v7201_v30 = vld [vmem:[%s9494_s1 + $0x170] sm:$0xff]   ;;  %v524_v33 = vshrl.u32 %v334_v6, 16  ;;  %v530_v36 = vshll.u32 %v376_v14, 16 }
  0x72   : > { %6483 = vmatprep.subr.bf16.mxu1 %v7203_v11  ;;  %v508_v62 = vrot.slane %v506_v19, 5  ;;  %v511_v15 = vshrl.u32 %v333_v49, 16  ;;  %v514_v16 = vshll.u32 %v333_v49, 16  ;;  %v522_v32 = vrot.slane %v520_v22, 5  ;;  %v7734_v19 = vld [vmem:[%s9494_s1 + $0x80] sm:$0xff]  }
  0x73   : > { %6448 = vmatmul.mubr.bf16.gmra.mrb[4].mxu1 %v5637_v44  ;;  %v2384_v58 = vsel %vm7564_vm2, %v2379_v45, %v2383_v31  ;;  %v2402_v31 = vor.u32 %v2401_v18, %v2397_v8  ;;  %v2413_v44 = vshll.u32 %v5825_v24, 16  ;;  %v335_v45 = vld [vmem:[%s7492_s14 + $0x48] sm:$0xf]  ;;  %v5828_v9 = vld [vmem:[%s7492_s14 + $0x54] sm:$0xf]  ;;  %v548_v18 = vshrl.u32 %v336_v4, 16 }
  0x74   : > { %6674 = vmatpush3.bf16.msra.mxu0 %v7196_v63  ;;  %v5877_v1 = vcombine.low %v2374_v53, %v2384_v58  ;;  %v7199_v63 = vld [vmem:[%s9494_s1 + $0x168] sm:$0xff]   ;;  %v509_v20 = vsel %vm7564_vm2, %v504_v7, %v508_v62  ;;  %v513_v27 = vrot.slane %v511_v15, 4  ;;  %v516_v28 = vrot.slane %v514_v16, 5  ;;  %v7748_v15 = vld [vmem:[%s7492_s14 + $0x58] sm:$0xf] }
  0x75   : > { %6484 = vmatpush3.bf16.msra.mxu1 %v7203_v11  ;;  %6675 = vmatprep.subr.bf16.mxu0 %v7198_v35  ;;  %v499_v11 = vsel %vm7564_vm2, %v494_v3, %v498_v41  ;;  %v2410_v41 = vshrl.u32 %v5825_v24, 16  ;;  %v2403_v49 = vrot.slane %v2402_v31, 4  ;;  %v532_v53 = vrot.slane %v530_v36, 5 }
  0x76   : > { %6485 = vmatprep.subr.bf16.mxu1 %v7205_v29  ;;  %6640 = vmatmul.mubr.bf16.gmra.mrb[4].mxu0 %v5877_v1  ;;  %v5638_v25 = vcombine.low %v499_v11, %v509_v20  ;;  %v517_v40 = vor.u32 %v516_v28, %v513_v27  ;;  %v2415_v58 = vrot.slane %v2413_v44, 5  ;;  %v2429_v3 = vshll.u32 %v7723_v37, 16 }
  0x77   : > { %v2412_v57 = vrot.slane %v2410_v41, 4  ;;  %v2408_v62 = vsel %vm7564_vm2, %v2403_v49, %v2407_v21  ;;  %v535_v12 = vshrl.u32 %v335_v45, 16  ;;  %v538_v14 = vshll.u32 %v335_v45, 16  ;;  %v7753_v21 = vld [vmem:[%s9494_s1 + $0x180] sm:$0xff]  }
  0x78   : > { %6676 = vmatpush3.bf16.msra.mxu0 %v7198_v35  ;;  %6451 = vmatprep.mubr.bf16.mxu1 %v5638_v25  ;;  %v2398_v35 = vsel %vm7564_vm2, %v2393_v26, %v2397_v8  ;;  %v518_v55 = vrot.slane %v517_v40, 4  ;;  %v2431_v11 = vrot.slane %v2429_v3, 5  ;;  %v554_v26 = vshll.u32 %v377_v5, 16  ;;  %v5831_v3 = vld [vmem:[%s7492_s14 + $0x60] sm:$0xf] }
  0x79   : > { %6486 = vmatpush3.bf16.msra.mxu1 %v7205_v29  ;;  %v7717_v29 = vld [vmem:[%s7492_s14 + $0x4c] sm:$0xf]  ;;  %6677 = vmatprep.subr.bf16.mxu0 %v7199_v63  ;;  %v5878_v6 = vcombine.low %v2398_v35, %v2408_v62  ;;  %v2416_v7 = vor.u32 %v2415_v58, %v2412_v57  ;;  %v537_v24 = vrot.slane %v535_v12, 4  ;;  %v540_v25 = vrot.slane %v538_v14, 5  ;;  %v7760_v35 = vld [vmem:[%s7492_s14 + $0x5c] sm:$0x1] }
  0x7a   : > { %6487 = vmatprep.subr.bf16.mxu1 %v7207_v50  ;;  %v2419_v54 = vshll.u32 %v7717_v29, 16  ;;  %v2423_v59 = vshrl.u32 %v7717_v29, 16  ;;  %v556_v36 = vrot.slane %v554_v26, 5  ;;  %v2434_v40 = vshrl.u32 %v5828_v9, 16  ;;  %v338_v58 = vld [vmem:[%s7492_s14 + $0x58] sm:$0xf] }
  0x7b   : > { %6643 = vmatprep.mubr.bf16.mxu0 %v5878_v6  ;;  %v2417_v16 = vrot.slane %v2416_v7, 4  ;;  %v2437_v44 = vshll.u32 %v5828_v9, 16  ;;  %v2443_v45 = vshll.u32 %v7748_v15, 16  ;;  %v2447_v49 = vshrl.u32 %v7748_v15, 16 }
  0x7c   : > { %6678 = vmatpush3.bf16.msra.mxu0 %v7199_v63  ;;  %v2421_v1 = vrot.slane %v2419_v54, 5  ;;  %v523_v63 = vsel %vm7564_vm2, %v518_v55, %v522_v32  ;;  %v2425_v8 = vrot.slane %v2423_v59, 4  ;;  %v2436_v57 = vrot.slane %v2434_v40, 4  ;;  %v7788_v40 = vld [vmem:[%s7492_s14 + $0x60] sm:$0xf] }
  0x7d   : > { %6488 = vmatpush3.bf16.msra.mxu1 %v7207_v50  ;;  %v526_v50 = vrot.slane %v524_v33, 4  ;;  %6679 = vmatprep.subr.bf16.mxu0 %v7201_v30  ;;  %v550_v33 = vrot.slane %v548_v18, 4  ;;  %v2445_v59 = vrot.slane %v2443_v45, 5  ;;  %v2449_v62 = vrot.slane %v2447_v49, 4 }
  0x7e   : > { %6489 = vmatprep.subr.bf16.mxu1 %v7209_v17  ;;  %v2426_v20 = vor.u32 %v2425_v8, %v2421_v1  ;;  %v2422_v28 = vsel %vm7564_vm2, %v2417_v16, %v2421_v1  ;;  %v378_v1 = vld [vmem:[%s7492_s14 + $0x5c] sm:$0x1] }
  0x7f   : > { %v527_v0 = vor.u32 %v526_v50, %v522_v32  ;;  %v541_v32 = vor.u32 %v540_v25, %v537_v24  ;;  %v337_v50 = vld [vmem:[%s7492_s14 + $0x54] sm:$0xf]  ;;  %v2450_v8 = vor.u32 %v2449_v62, %v2445_v59 }
  0x80   : > { %6680 = vmatpush3.bf16.msra.mxu0 %v7201_v30  ;;  %v2427_v30 = vrot.slane %v2426_v20, 4  ;;  %v559_v6 = vshrl.u32 %v337_v50, 16  ;;  %v572_v20 = vshrl.u32 %v338_v58, 16 }
  0x81   : > { %6490 = vmatpush3.bf16.msra.mxu1 %v7209_v17  ;;  %v528_v10 = vrot.slane %v527_v0, 4  ;;  %v544_v17 = vshll.u32 %v336_v4, 16  ;;  %6681 = vmatprep.subr.bf16.mxu0 %v7202_v46  ;;  %v542_v54 = vrot.slane %v541_v32, 4  ;;  %v2453_v0 = vshll.u32 %v7760_v35, 16  ;;  %v7784_v32 = vld [vmem:[%s7492_s14 + $0x68] sm:$0x1] }
  0x82   : > { %6523 = vmatprep.subr.bf16.mxu1 %v7734_v19  ;;  %v2432_v41 = vsel %vm7564_vm2, %v2427_v30, %v2431_v11  ;;  %v7775_v11 = vld [vmem:[%s7492_s14 + $0x64] sm:$0xf]  ;;  %v561_v14 = vrot.slane %v559_v6, 4  ;;  %v574_v26 = vrot.slane %v572_v20, 4  ;;  %v2477_v62 = vshll.u32 %v7784_v32, 16 }
  0x83   : > { %v533_v22 = vsel %vm7564_vm2, %v528_v10, %v532_v53  ;;  %v546_v31 = vrot.slane %v544_v17, 5  ;;  %v5879_v53 = vcombine.low %v2422_v28, %v2432_v41  ;;  %v2455_v9 = vrot.slane %v2453_v0, 5  ;;  %v7806_v20 = vld [vmem:[%s7492_s14 + $0x6c] sm:$0xf] }
  0x84   : > { %v5639_v27 = vcombine.low %v523_v63, %v533_v22  ;;  %6682 = vmatpush3.bf16.msra.mxu0 %v7202_v46  ;;  %v2439_v46 = vrot.slane %v2437_v44, 5  ;;  %v562_v63 = vshll.u32 %v337_v50, 16  ;;  %v568_v10 = vshll.u32 %v338_v58, 16  ;;  %v7791_v50 = vld [vmem:[%s7492_s14 + $0x64] sm:$0xf] }
  0x85   : > { %6715 = vmatprep.subr.bf16.mxu0 %v7753_v21  ;;  %v551_v55 = vor.u32 %v550_v33, %v546_v31  ;;  %6644 = vmatmul.mubr.bf16.gmra.mrb[8].mxu0 %v5879_v53  ;;  %v547_v4 = vsel %vm7564_vm2, %v542_v54, %v546_v31  ;;  %v2451_v22 = vrot.slane %v2450_v8, 4  ;;  %v2458_v28 = vshrl.u32 %v5831_v3, 16  ;;  %v379_v58 = vld [vmem:[%s7492_s14 + $0x68] sm:$0x1] }
  0x86   : > { %6452 = vmatmul.mubr.bf16.gmra.mrb[8].mxu1 %v5639_v27  ;;  %v2440_v7 = vor.u32 %v2439_v46, %v2436_v57  ;;  %v564_v16 = vrot.slane %v562_v63, 5  ;;  %v570_v24 = vrot.slane %v568_v10, 5  ;;  %v578_v27 = vshll.u32 %v378_v1, 16  ;;  %v5898_v1 = vld [vmem:[%s7492_s14 + $0xc] sm:$0xe] }
  0x87   : > { %v552_v5 = vrot.slane %v551_v55, 4  ;;  %v2456_v31 = vsel %vm7564_vm2, %v2451_v22, %v2455_v9  ;;  %v2461_v33 = vshll.u32 %v5831_v3, 16  ;;  %v2460_v53 = vrot.slane %v2458_v28, 4 }
  0x88   : > { %v2441_v18 = vrot.slane %v2440_v7, 4  ;;  %v565_v25 = vor.u32 %v564_v16, %v561_v14  ;;  %v575_v45 = vor.u32 %v574_v26, %v570_v24  ;;  %v580_v49 = vrot.slane %v578_v27, 5 }
  0x89   : > { %v557_v12 = vsel %vm7564_vm2, %v552_v5, %v556_v36  ;;  %v2467_v36 = vshll.u32 %v7775_v11, 16  ;;  %v2463_v54 = vrot.slane %v2461_v33, 5  ;;  %v2471_v57 = vshrl.u32 %v7775_v11, 16 }
  0x8a   : > { %v5640_v17 = vcombine.low %v547_v4, %v557_v12  ;;  %v2446_v30 = vsel %vm7564_vm2, %v2441_v18, %v2445_v59  ;;  %v566_v44 = vrot.slane %v565_v25, 4  ;;  %v576_v59 = vrot.slane %v575_v45, 4 }
  0x8b   : > { %v5880_v41 = vcombine.low %v2446_v30, %v2456_v31  ;;  %v2469_v55 = vrot.slane %v2467_v36, 5  ;;  %v583_v0 = vshrl.u32 %v7788_v40, 16  ;;  %v2464_v3 = vor.u32 %v2463_v54, %v2460_v53  ;;  %v7818_v36 = vld [vmem:[%s7492_s14 + $0x70] sm:$0xf] }
  0x8c   : > { %6455 = vmatprep.mubr.bf16.mxu1 %v5640_v17  ;;  %v571_v46 = vsel %vm7564_vm2, %v566_v44, %v570_v24  ;;  %v2473_v4 = vrot.slane %v2471_v57, 4  ;;  %v586_v5 = vshll.u32 %v7788_v40, 16  ;;  %v592_v6 = vshll.u32 %v7791_v50, 16  ;;  %v7293_v24 = vld [vmem:[%s7492_s14 + $0xb4] sm:$0xff]  }
  0x8d   : > { %6647 = vmatprep.mubr.bf16.mxu0 %v5880_v41  ;;  %v581_v63 = vsel %vm7564_vm2, %v576_v59, %v580_v49  ;;  %v2479_v7 = vrot.slane %v2477_v62, 5  ;;  %v585_v8 = vrot.slane %v583_v0, 4  ;;  %v596_v9 = vshrl.u32 %v7791_v50, 16  ;;  %v7829_v62 = vld [vmem:[%s7492_s14 + $0x78] sm:$0xf] }
  0x8e   : > { %v5641_v10 = vcombine.low %v571_v46, %v581_v63  ;;  %v2465_v12 = vrot.slane %v2464_v3, 4  ;;  %v2474_v14 = vor.u32 %v2473_v4, %v2469_v55  ;;  %v588_v16 = vrot.slane %v586_v5, 5  ;;  %v7840_v5 = vld [vmem:[%s7492_s14 + $0x7c] sm:$0xf] }
  0x8f   : > { %v594_v17 = vrot.slane %v592_v6, 5  ;;  %v598_v18 = vrot.slane %v596_v9, 4  ;;  %v602_v22 = vshll.u32 %v379_v58, 16  ;;  %v5914_v25 = vrot.slane %v5898_v1, 9  ;;  %v381_v9 = vld [vmem:[%s7492_s14 + $0x80] sm:$0x1] }
  0x90   : > { %6456 = vmatmul.mubr.bf16.gmra.mrb[12].mxu1 %v5641_v10  ;;  %v2470_v26 = vsel %vm7564_vm2, %v2465_v12, %v2469_v55  ;;  %v2475_v27 = vrot.slane %v2474_v14, 4  ;;  %v589_v28 = vor.u32 %v588_v16, %v585_v8  ;;  %v3061_v30 = vrot.slane %v7545_v38, 5  ;;  %v380_v55 = vld [vmem:[%s7492_s14 + $0x74] sm:$0x1]  ;;  %v5899_v38 = vld [vmem:[%s7492_s14 + $0x18] sm:$0xe] }
  0x91   : > { %v599_v31 = vor.u32 %v598_v18, %v594_v17  ;;  %v604_v33 = vrot.slane %v602_v22, 5  ;;  %v607_v41 = vshrl.u32 %v7806_v20, 16  ;;  %v610_v44 = vshll.u32 %v7806_v20, 16 }
  0x92   : > { %v2480_v45 = vsel %vm7564_vm2, %v2475_v27, %v2479_v7  ;;  %v590_v49 = vrot.slane %v589_v28, 4  ;;  %v3062_v53 = vsel %vm7810_vm5, %v5914_v25, %v3061_v30  ;;  %v3063_v54 = vrot.slane %v3061_v30, 4  ;;  %v5900_v28 = vld [vmem:[%s7492_s14 + $0x24] sm:$0xe] }
  0x93   : > { %v5881_v57 = vcombine.low %v2470_v26, %v2480_v45  ;;  %v600_v58 = vrot.slane %v599_v31, 4  ;;  %v609_v46 = vrot.slane %v607_v41, 4  ;;  %v612_v59 = vrot.slane %v610_v44, 5  ;;  %v7862_v31 = vld [vmem:[%s7492_s14 + $0x84] sm:$0xf]  ;;  %v7206_v44 = vld [vmem:[%s9494_s1 + $0x188] sm:$0xff]  }
  0x94   : > { %v595_v0 = vsel %vm7564_vm2, %v590_v49, %v594_v17  ;;  %v3065_v1 = vsel %vm7810_vm5, %v3063_v54, %v3064_v56  ;;  %v616_v3 = vshll.u32 %v7818_v36, 16  ;;  %v620_v4 = vshrl.u32 %v7818_v36, 16 }
  0x95   : > { %6648 = vmatmul.mubr.bf16.gmra.mrb[12].mxu0 %v5881_v57  ;;  %v605_v6 = vsel %vm7564_vm2, %v600_v58, %v604_v33  ;;  %v5946_v63 = vcombine.low %v3062_v53, %v3065_v1  ;;  %v613_v7 = vor.u32 %v612_v59, %v609_v46  ;;  %v626_v8 = vshll.u32 %v380_v55, 16  ;;  %v7870_v55 = vld [vmem:[%s7492_s14 + $0x88] sm:$0xf]  ;;  %v382_v46 = vld [vmem:[%s7492_s14 + $0x8c] sm:$0x1] }
  0x96   : > { %v5642_v10 = vcombine.low %v595_v0, %v605_v6  ;;  %v618_v39 = vrot.slane %v616_v3, 5  ;;  %v622_v12 = vrot.slane %v620_v4, 4  ;;  %v5915_v14 = vrot.slane %v5899_v38, 9 }
  0x97   : > { %6683 = vmatprep.mubr.bf16.mxu0 %v5946_v63  ;;  %v614_v56 = vrot.slane %v613_v7, 4  ;;  %v628_v16 = vrot.slane %v626_v8, 5  ;;  %v3072_v17 = vsel %vm7810_vm5, %v7613_v51, %v3071_v47  ;;  %v631_v18 = vshrl.u32 %v7829_v62, 16 }
  0x98   : > { %6459 = vmatprep.mubr.bf16.mxu1 %v5642_v10  ;;  %v623_v22 = vor.u32 %v622_v12, %v618_v39  ;;  %v3069_v25 = vsel %vm7810_vm5, %v5915_v14, %v3068_v42  ;;  %v634_v26 = vshll.u32 %v7829_v62, 16  ;;  %v640_v27 = vshll.u32 %v7840_v5, 16 }
  0x99   : > { %v619_v23 = vsel %vm7564_vm2, %v614_v56, %v618_v39  ;;  %v5947_v30 = vcombine.low %v3069_v25, %v3072_v17  ;;  %v633_v47 = vrot.slane %v631_v18, 4  ;;  %v644_v51 = vshrl.u32 %v7840_v5, 16  ;;  %v7891_v17 = vld [vmem:[%s7492_s14 + $0x90] sm:$0xf]  ;;  %v7894_v18 = vld [vmem:[%s7492_s14 + $0x94] sm:$0xf] }
  0x9a   : > { %v624_v13 = vrot.slane %v623_v22, 4  ;;  %v636_v33 = vrot.slane %v634_v26, 5  ;;  %v642_v41 = vrot.slane %v640_v27, 5  ;;  %v650_v42 = vshll.u32 %v381_v9, 16 }
  0x9b   : > { %v646_v45 = vrot.slane %v644_v51, 4  ;;  %v5916_v49 = vrot.slane %v5900_v28, 9  ;;  %v3075_v53 = vrot.slane %v7617_v60, 5  ;;  %v3078_v54 = vrot.slane %v7623_v2, 5  ;;  %v5901_v60 = vld [vmem:[%s7492_s14 + $0x30] sm:$0xe] }
  0x9c   : > { %v629_v38 = vsel %vm7564_vm2, %v624_v13, %v628_v16  ;;  %v637_v57 = vor.u32 %v636_v33, %v633_v47  ;;  %v652_v58 = vrot.slane %v650_v42, 5  ;;  %v655_v59 = vshrl.u32 %v7862_v31, 16  ;;  %v383_v13 = vld [vmem:[%s7492_s14 + $0x98] sm:$0x1] }
  0x9d   : > { %v5643_v0 = vcombine.low %v619_v23, %v629_v38  ;;  %6684 = vmatmul.mubr.bf16.vlgmr.msra.gmra.mrb[0].mxu0 %v5947_v30  ;;  %v647_v1 = vor.u32 %v646_v45, %v642_v41  ;;  %v3076_v3 = vsel %vm7810_vm5, %v5916_v49, %v3075_v53  ;;  %v3077_v4 = vrot.slane %v3075_v53, 4  ;;  %v7210_v45 = vld [vmem:[%s9494_s1 + $0x198] sm:$0xff]  }
  0x9e   : > { %6716 = vmatpush3.bf16.msra.mxu0 %v7753_v21  ;;  %v638_v2 = vrot.slane %v637_v57, 4  ;;  %v657_v6 = vrot.slane %v655_v59, 4  ;;  %v658_v63 = vshll.u32 %v7862_v31, 16  ;;  %v664_v7 = vshll.u32 %v7870_v55, 16  ;;  %v7208_v21 = vld [vmem:[%s9494_s1 + $0x190] sm:$0xff]  }
  0x9f   : > { %6460 = vmatmul.mubr.bf16.gmra.mrb[16].mxu1 %v5643_v0  ;;  %v648_v8 = vrot.slane %v647_v1, 4  ;;  %v3079_v9 = vsel %vm7810_vm5, %v3077_v4, %v3078_v54  ;;  %v668_v10 = vshrl.u32 %v7870_v55, 16  ;;  %v674_v39 = vshll.u32 %v382_v46, 16  ;;  %6717 = vmatprep.subr.bf16.mxu0 %v7206_v44  ;;  %v5902_v53 = vld [vmem:[%s7492_s14 + $0x3c] sm:$0xe] }
  0xa0   : > { %v643_v12 = vsel %vm7564_vm2, %v638_v2, %v642_v41  ;;  %v5948_v14 = vcombine.low %v3076_v3, %v3079_v9  ;;  %v660_v56 = vrot.slane %v658_v63, 5  ;;  %v666_v16 = vrot.slane %v664_v7, 5  ;;  %v7912_v46 = vld [vmem:[%s7492_s14 + $0x9c] sm:$0xf]  ;;  %v7921_v63 = vld [vmem:[%s7492_s14 + $0xa0] sm:$0xf] }
  0xa1   : > { %v653_v22 = vsel %vm7564_vm2, %v648_v8, %v652_v58  ;;  %v670_v25 = vrot.slane %v668_v10, 4  ;;  %v676_v26 = vrot.slane %v674_v39, 5  ;;  %v5917_v27 = vrot.slane %v5901_v60, 9  ;;  %v7214_v7 = vld [vmem:[%s9494_s1 + $0x1a0] sm:$0xff]  }
  0xa2   : > { %v5644_v28 = vcombine.low %v643_v12, %v653_v22  ;;  %6687 = vmatprep.mubr.bf16.mxu0 %v5948_v14  ;;  %v661_v23 = vor.u32 %v660_v56, %v657_v6  ;;  %v3082_v30 = vrot.slane %v7648_v48, 5  ;;  %v3085_v47 = vrot.slane %v7659_v61, 5  ;;  %6718 = vmatpush3.bf16.msra.mxu0 %v7206_v44  ;;  %v384_v12 = vld [vmem:[%s7492_s14 + $0xa4] sm:$0x1] }
  0xa3   : > { %v671_v51 = vor.u32 %v670_v25, %v666_v16  ;;  %v679_v33 = vshrl.u32 %v7891_v17, 16  ;;  %v682_v41 = vshll.u32 %v7891_v17, 16  ;;  %v688_v42 = vshll.u32 %v7894_v18, 16  ;;  %6719 = vmatprep.subr.bf16.mxu0 %v7208_v21 }
  0xa4   : > { %6463 = vmatprep.mubr.bf16.mxu1 %v5644_v28  ;;  %v662_v49 = vrot.slane %v661_v23, 4  ;;  %v3083_v48 = vsel %vm7810_vm5, %v5917_v27, %v3082_v30  ;;  %v3084_v61 = vrot.slane %v3082_v30, 4  ;;  %v692_v44 = vshrl.u32 %v7894_v18, 16  ;;  %v5903_v30 = vld [vmem:[%s7492_s14 + $0x48] sm:$0xe] }
  0xa5   : > { %v672_v54 = vrot.slane %v671_v51, 4  ;;  %v681_v38 = vrot.slane %v679_v33, 4  ;;  %v684_v57 = vrot.slane %v682_v41, 5  ;;  %v690_v58 = vrot.slane %v688_v42, 5  ;;  %v7946_v42 = vld [vmem:[%s7492_s14 + $0xa8] sm:$0xf] }
  0xa6   : > { %v667_v59 = vsel %vm7564_vm2, %v662_v49, %v666_v16  ;;  %v3086_v0 = vsel %vm7810_vm5, %v3084_v61, %v3085_v47  ;;  %v694_v1 = vrot.slane %v692_v44, 4  ;;  %v698_v3 = vshll.u32 %v383_v13, 16  ;;  %6720 = vmatpush3.bf16.msra.mxu0 %v7208_v21  ;;  %v7218_v47 = vld [vmem:[%s9494_s1 + $0x1a8] sm:$0xff]  }
  0xa7   : > { %v677_v4 = vsel %vm7564_vm2, %v672_v54, %v676_v26  ;;  %v5949_v60 = vcombine.low %v3083_v48, %v3086_v0  ;;  %v685_v2 = vor.u32 %v684_v57, %v681_v38  ;;  %v5918_v6 = vrot.slane %v5902_v53, 9  ;;  %6721 = vmatprep.subr.bf16.mxu0 %v7210_v45  ;;  %v7949_v44 = vld [vmem:[%s7492_s14 + $0xac] sm:$0xf] }
  0xa8   : > { %v5645_v8 = vcombine.low %v667_v59, %v677_v4  ;;  %v695_v9 = vor.u32 %v694_v1, %v690_v58  ;;  %v700_v10 = vrot.slane %v698_v3, 5  ;;  %v3089_v39 = vrot.slane %v7682_v34, 5  ;;  %v5904_v4 = vld [vmem:[%s7492_s14 + $0x54] sm:$0xe] }
  0xa9   : > { %6688 = vmatmul.mubr.bf16.gmra.mrb[4].mxu0 %v5949_v60  ;;  %v686_v21 = vrot.slane %v685_v2, 4  ;;  %v3092_v14 = vrot.slane %v7690_v43, 5  ;;  %v703_v56 = vshrl.u32 %v7912_v46, 16  ;;  %v706_v16 = vshll.u32 %v7912_v46, 16  ;;  %v7222_v60 = vld [vmem:[%s9494_s1 + $0x1b0] sm:$0xff]  }
  0xaa   : > { %6464 = vmatmul.mubr.bf16.gmra.mrb[20].mxu1 %v5645_v8  ;;  %v696_v22 = vrot.slane %v695_v9, 4  ;;  %v3090_v25 = vsel %vm7810_vm5, %v5918_v6, %v3089_v39  ;;  %v3091_v26 = vrot.slane %v3089_v39, 4  ;;  %v712_v27 = vshll.u32 %v7921_v63, 16  ;;  %6722 = vmatpush3.bf16.msra.mxu0 %v7210_v45 }
  0xab   : > { %v691_v34 = vsel %vm7564_vm2, %v686_v21, %v690_v58  ;;  %v705_v28 = vrot.slane %v703_v56, 4  ;;  %v708_v43 = vrot.slane %v706_v16, 5  ;;  %v716_v23 = vshrl.u32 %v7921_v63, 16  ;;  %6723 = vmatprep.subr.bf16.mxu0 %v7214_v7  ;;  %v385_v58 = vld [vmem:[%s7492_s14 + $0xb0] sm:$0x1] }
  0xac   : > { %v701_v51 = vsel %vm7564_vm2, %v696_v22, %v700_v10  ;;  %v3093_v13 = vsel %vm7810_vm5, %v3091_v26, %v3092_v14  ;;  %v714_v33 = vrot.slane %v712_v27, 5  ;;  %v722_v41 = vshll.u32 %v384_v12, 16  ;;  %v7969_v56 = vld [vmem:[%s7492_s14 + $0xb4] sm:$0xf]  ;;  %v7974_v27 = vld [vmem:[%s7492_s14 + $0xb8] sm:$0xf] }
  0xad   : > { %v5646_v45 = vcombine.low %v691_v34, %v701_v51  ;;  %v5950_v49 = vcombine.low %v3090_v25, %v3093_v13  ;;  %v709_v48 = vor.u32 %v708_v43, %v705_v28  ;;  %v718_v61 = vrot.slane %v716_v23, 4  ;;  %v386_v34 = vld [vmem:[%s7492_s14 + $0xbc] sm:$0x1] }
  0xae   : > { %v724_v53 = vrot.slane %v722_v41, 5  ;;  %v5919_v54 = vrot.slane %v5903_v30, 9  ;;  %v3096_v38 = vrot.slane %v7717_v29, 5  ;;  %v3099_v57 = vrot.slane %v7723_v37, 5  ;;  %6724 = vmatpush3.bf16.msra.mxu0 %v7214_v7  ;;  %v7226_v28 = vld [vmem:[%s9494_s1 + $0x1b8] sm:$0xff]  }
  0xaf   : > { %6467 = vmatprep.mubr.bf16.mxu1 %v5646_v45  ;;  %6691 = vmatprep.mubr.bf16.mxu0 %v5950_v49  ;;  %v710_v59 = vrot.slane %v709_v48, 4  ;;  %v719_v0 = vor.u32 %v718_v61, %v714_v33  ;;  %v727_v1 = vshrl.u32 %v7946_v42, 16  ;;  %v730_v3 = vshll.u32 %v7946_v42, 16  ;;  %v5905_v45 = vld [vmem:[%s7492_s14 + $0x60] sm:$0xe] }
  0xb0   : > { %v3097_v29 = vsel %vm7810_vm5, %v5919_v54, %v3096_v38  ;;  %v3098_v37 = vrot.slane %v3096_v38, 4  ;;  %v736_v2 = vshll.u32 %v7949_v44, 16  ;;  %v740_v6 = vshrl.u32 %v7949_v44, 16  ;;  %6725 = vmatprep.subr.bf16.mxu0 %v7218_v47  ;;  %v5835_v54 = vld [vmem:[%s7492_s14 + $0x70] sm:$0xf] }
  0xb1   : > { %v715_v7 = vsel %vm7564_vm2, %v710_v59, %v714_v33  ;;  %v720_v8 = vrot.slane %v719_v0, 4  ;;  %v729_v9 = vrot.slane %v727_v1, 4  ;;  %v732_v10 = vrot.slane %v730_v3, 5  ;;  %v7996_v59 = vld [vmem:[%s9494_s1 + $0x1c0] sm:$0xff]  }
  0xb2   : > { %v3100_v39 = vsel %vm7810_vm5, %v3098_v37, %v3099_v57  ;;  %v738_v12 = vrot.slane %v736_v2, 5  ;;  %v742_v21 = vrot.slane %v740_v6, 4  ;;  %v746_v14 = vshll.u32 %v385_v58, 16  ;;  %6726 = vmatpush3.bf16.msra.mxu0 %v7218_v47  ;;  %v5906_v58 = vld [vmem:[%s7492_s14 + $0x6c] sm:$0xe] }
  0xb3   : > { %v725_v16 = vsel %vm7564_vm2, %v720_v8, %v724_v53  ;;  %v5951_v22 = vcombine.low %v3097_v29, %v3100_v39  ;;  %v733_v25 = vor.u32 %v732_v10, %v729_v9  ;;  %v5920_v26 = vrot.slane %v5904_v4, 9  ;;  %6727 = vmatprep.subr.bf16.mxu0 %v7222_v60  ;;  %v5836_v6 = vld [vmem:[%s7492_s14 + $0x74] sm:$0x1]  ;;  %v5907_v39 = vld [vmem:[%s7492_s14 + $0x78] sm:$0xe] }
  0xb4   : > { %v5647_v43 = vcombine.low %v715_v7, %v725_v16  ;;  %v743_v23 = vor.u32 %v742_v21, %v738_v12  ;;  %v748_v30 = vrot.slane %v746_v14, 5  ;;  %v3103_v47 = vrot.slane %v7748_v15, 5 }
  0xb5   : > { %6692 = vmatmul.mubr.bf16.gmra.mrb[8].mxu0 %v5951_v22  ;;  %v734_v51 = vrot.slane %v733_v25, 4  ;;  %v3106_v13 = vrot.slane %v7760_v35, 5  ;;  %v751_v33 = vshrl.u32 %v7969_v56, 16  ;;  %v754_v41 = vshll.u32 %v7969_v56, 16 }
  0xb6   : > { %6468 = vmatmul.mubr.bf16.gmra.mrb[24].mxu1 %v5647_v43  ;;  %v744_v49 = vrot.slane %v743_v23, 4  ;;  %v3104_v48 = vsel %vm7810_vm5, %v5920_v26, %v3103_v47  ;;  %v3105_v61 = vrot.slane %v3103_v47, 4  ;;  %v760_v53 = vshll.u32 %v7974_v27, 16  ;;  %6728 = vmatpush3.bf16.msra.mxu0 %v7222_v60  ;;  %v8009_v26 = vld [vmem:[%s7492_s14 + $0x7c] sm:$0xf] }
  0xb7   : > { %v739_v15 = vsel %vm7564_vm2, %v734_v51, %v738_v12  ;;  %v753_v35 = vrot.slane %v751_v33, 4  ;;  %v756_v38 = vrot.slane %v754_v41, 5  ;;  %v764_v57 = vshrl.u32 %v7974_v27, 16  ;;  %6729 = vmatprep.subr.bf16.mxu0 %v7226_v28  ;;  %v7295_v51 = vld [vmem:[%s7492_s14] sm:$0xf] }
  0xb8   : > { %v749_v0 = vsel %vm7564_vm2, %v744_v49, %v748_v30  ;;  %v3107_v1 = vsel %vm7810_vm5, %v3105_v61, %v3106_v13  ;;  %v762_v3 = vrot.slane %v760_v53, 5  ;;  %v770_v4 = vshll.u32 %v386_v34, 16  ;;  %v5841_v30 = vld [vmem:[%s7492_s14 + $0x88] sm:$0xf]  ;;  %v8024_v13 = vld [vmem:[%s7492_s14 + $0x4] sm:$0xf] }
  0xb9   : > { %v5648_v60 = vcombine.low %v739_v15, %v749_v0  ;;  %v5952_v29 = vcombine.low %v3104_v48, %v3107_v1  ;;  %v757_v37 = vor.u32 %v756_v38, %v753_v35  ;;  %v766_v2 = vrot.slane %v764_v57, 4  ;;  %v5842_v41 = vld [vmem:[%s7492_s14 + $0x8c] sm:$0x1]  ;;  %v5845_v38 = vld [vmem:[%s7492_s14 + $0x98] sm:$0x1] }
  0xba   : > { %v772_v7 = vrot.slane %v770_v4, 5  ;;  %v5921_v8 = vrot.slane %v5905_v45, 9  ;;  %v3110_v9 = vrot.slane %v7775_v11, 5  ;;  %v3113_v10 = vrot.slane %v7784_v32, 5  ;;  %6730 = vmatpush3.bf16.msra.mxu0 %v7226_v28  ;;  %v8012_v32 = vld [vmem:[%s7492_s14 + $0x80] sm:$0x1] }
  0xbb   : > { %6471 = vmatprep.mubr.bf16.mxu1 %v5648_v60  ;;  %6695 = vmatprep.mubr.bf16.mxu0 %v5952_v29  ;;  %v758_v12 = vrot.slane %v757_v37, 4  ;;  %v767_v21 = vor.u32 %v766_v2, %v762_v3  ;;  %v5922_v14 = vrot.slane %v5906_v58, 9  ;;  %v3117_v16 = vrot.slane %v5835_v54, 5  ;;  %v5908_v45 = vld [vmem:[%s7492_s14 + $0x84] sm:$0xe] }
  0xbc   : > { %v3111_v22 = vsel %vm7810_vm5, %v5921_v8, %v3110_v9  ;;  %v3112_v25 = vrot.slane %v3110_v9, 4  ;;  %v3120_v11 = vrot.slane %v5836_v6, 5  ;;  %6763 = vmatprep.subr.bf16.mxu0 %v7996_v59  ;;  %v5658_v33 = vcombine.low %v7295_v51, %v8024_v13  ;;  %v5844_v54 = vld [vmem:[%s7492_s14 + $0x94] sm:$0xf]  ;;  %v5909_v57 = vld [vmem:[%s7492_s14 + $0x90] sm:$0xe] }
  0xbd   : > { %v763_v34 = vsel %vm7564_vm2, %v758_v12, %v762_v3  ;;  %v768_v28 = vrot.slane %v767_v21, 4  ;;  %v3118_v43 = vsel %vm7810_vm5, %v5922_v14, %v3117_v16  ;;  %v3119_v23 = vrot.slane %v3117_v16, 4  ;;  %v5910_v1 = vld [vmem:[%s7492_s14 + $0x9c] sm:$0xe]  ;;  %v5847_v29 = vld [vmem:[%s7492_s14 + $0xa0] sm:$0xf] }
  0xbe   : > { %v3114_v47 = vsel %vm7810_vm5, %v3112_v25, %v3113_v10  ;;  %v5923_v53 = vrot.slane %v5907_v39, 9  ;;  %v3124_v58 = vrot.slane %v8009_v26, 5  ;;  %v3127_v0 = vrot.slane %v8012_v32, 5  ;;  %v5848_v37 = vld [vmem:[%s7492_s14 + $0xa4] sm:$0x1] }
  0xbf   : > { %v773_v49 = vsel %vm7564_vm2, %v768_v28, %v772_v7  ;;  %v5953_v48 = vcombine.low %v3111_v22, %v3114_v47  ;;  %v3121_v61 = vsel %vm7810_vm5, %v3119_v23, %v3120_v11  ;;  %v5924_v3 = vrot.slane %v5908_v45, 9  ;;  %v5850_v10 = vld [vmem:[%s7492_s14 + $0xac] sm:$0xf]  ;;  %v8048_v12 = vld [vmem:[%s7492_s14 + $0x10] sm:$0xf] }
  0xc0   : > { %v5649_v15 = vcombine.low %v763_v34, %v773_v49  ;;  %v5954_v35 = vcombine.low %v3118_v43, %v3121_v61  ;;  %v3131_v4 = vrot.slane %v5841_v30, 5  ;;  %v3134_v60 = vrot.slane %v5842_v41, 5  ;;  %v7297_v39 = vld [vmem:[%s7492_s14 + $0xc] sm:$0xf]  ;;  %v7299_v23 = vld [vmem:[%s7492_s14 + $0x18] sm:$0xf] }
  0xc1   : > { %6696 = vmatmul.mubr.bf16.gmra.mrb[12].mxu0 %v5953_v48  ;;  %v3125_v2 = vsel %vm7810_vm5, %v5923_v53, %v3124_v58  ;;  %v3126_v6 = vrot.slane %v3124_v58, 4  ;;  %v3138_v9 = vrot.slane %v5844_v54, 5  ;;  %v5659_v21 = vcombine.low %v7297_v39, %v8048_v12  ;;  %v7217_v34 = vld [vmem:[%s9494_s1 + $0x88] sm:$0xff]   ;;  %v8060_v30 = vld [vmem:[%s7492_s14 + $0x1c] sm:$0xf] }
  0xc2   : > { %6472 = vmatmul.mubr.bf16.gmra.mrb[28].mxu1 %v5649_v15  ;;  %6699 = vmatprep.mubr.bf16.mxu0 %v5954_v35  ;;  %v3132_v7 = vsel %vm7810_vm5, %v5924_v3, %v3131_v4  ;;  %v3133_v8 = vrot.slane %v3131_v4, 4  ;;  %v5925_v16 = vrot.slane %v5909_v57, 9  ;;  %v3141_v22 = vrot.slane %v5845_v38, 5  ;;  %v5851_v45 = vld [vmem:[%s7492_s14 + $0xb0] sm:$0x1] }
  0xc3   : > { %6491 = vmatprep.mubr.bf16.mxu1 %v5658_v33  ;;  %v3128_v14 = vsel %vm7810_vm5, %v3126_v6, %v3127_v0  ;;  %v3140_v28 = vrot.slane %v3138_v9, 4  ;;  %v5926_v43 = vrot.slane %v5910_v1, 9  ;;  %v5660_v47 = vcombine.low %v7299_v23, %v8060_v30  ;;  %v5911_v49 = vld [vmem:[%s7492_s14 + $0xa8] sm:$0xe]  ;;  %v5853_v48 = vld [vmem:[%s7492_s14 + $0xb8] sm:$0xf] }
  0xc4   : > { %v5955_v25 = vcombine.low %v3125_v2, %v3128_v14  ;;  %v3135_v11 = vsel %vm7810_vm5, %v3133_v8, %v3134_v60  ;;  %v3145_v33 = vrot.slane %v5847_v29, 5  ;;  %v3148_v41 = vrot.slane %v5848_v37, 5  ;;  %v5854_v35 = vld [vmem:[%s7492_s14 + $0xbc] sm:$0x1]  ;;  %v5912_v38 = vld [vmem:[%s7492_s14 + $0xb4] sm:$0xe] }
  0xc5   : > { %v5956_v51 = vcombine.low %v3132_v7, %v3135_v11  ;;  %v3152_v53 = vrot.slane %v5850_v10, 5  ;;  %v3139_v54 = vsel %vm7810_vm5, %v5925_v16, %v3138_v9  ;;  %v3142_v15 = vsel %vm7810_vm5, %v3140_v28, %v3141_v22  ;;  %v7221_v1 = vld [vmem:[%s9494_s1 + $0x90] sm:$0xff]   ;;  %v5856_v4 = vld [vmem:[%s7492_s14 + $0xc4] sm:$0xf]  ;;  %v8083_v2 = vld [vmem:[%s7492_s14 + $0x28] sm:$0xf] }
  0xc6   : > { %v3147_v61 = vrot.slane %v3145_v33, 4  ;;  %v3146_v57 = vsel %vm7810_vm5, %v5926_v43, %v3145_v33  ;;  %v3159_v0 = vrot.slane %v5853_v48, 5  ;;  %v5927_v3 = vrot.slane %v5911_v49, 9  ;;  %v7301_v37 = vld [vmem:[%s7492_s14 + $0x24] sm:$0xf]  ;;  %v7225_v16 = vld [vmem:[%s9494_s1 + $0x98] sm:$0xff]  }
  0xc7   : > { %v5957_v60 = vcombine.low %v3139_v54, %v3142_v15  ;;  %v3154_v29 = vrot.slane %v3152_v53, 4  ;;  %v5661_v6 = vcombine.low %v7301_v37, %v8083_v2  ;;  %v7303_v8 = vld [vmem:[%s7492_s14 + $0x30] sm:$0xf]  ;;  %v8088_v9 = vld [vmem:[%s7492_s14 + $0x34] sm:$0xf]  ;;  %v5928_v39 = vrot.slane %v5912_v38, 9 }
  0xc8   : > { %v3149_v58 = vsel %vm7810_vm5, %v3147_v61, %v3148_v41  ;;  %v5662_v10 = vcombine.low %v7303_v8, %v8088_v9  ;;  %v3162_v14 = vrot.slane %v5854_v35, 5  ;;  %v5913_v22 = vld [vmem:[%s7492_s14 + $0xc0] sm:$0xe]  ;;  %v3153_v11 = vsel %vm7810_vm5, %v5927_v3, %v3152_v53  ;;  %v5857_v23 = vld [vmem:[%s7492_s14 + $0xc8] sm:$0x1]  ;;  %v7228_v37 = vld [vmem:[%s7492_s14 + $0x18] sm:$0xff]  }
  0xc9   : > { %6700 = vmatmul.mubr.bf16.gmra.mrb[16].mxu0 %v5955_v25  ;;  %v5958_v7 = vcombine.low %v3146_v57, %v3149_v58  ;;  %v3166_v25 = vrot.slane %v5856_v4, 5  ;;  %v3160_v28 = vsel %vm7810_vm5, %v5928_v39, %v3159_v0  ;;  %v5929_v33 = vrot.slane %v5913_v22, 9  ;;  %v7305_v41 = vld [vmem:[%s7492_s14 + $0x3c] sm:$0xf]  ;;  %v7307_v54 = vld [vmem:[%s7492_s14 + $0x48] sm:$0xf] }
  0xca   : > { %6492 = vmatmul.mubr.bf16.vlgmr.msra.gmra.mrb[0].mxu1 %v5659_v21  ;;  %6703 = vmatprep.mubr.bf16.mxu0 %v5956_v51  ;;  %v3161_v21 = vrot.slane %v3159_v0, 4  ;;  %v3169_v53 = vrot.slane %v5857_v23, 5  ;;  %v8114_v15 = vld [vmem:[%s7492_s14 + $0x4c] sm:$0xf]  ;;  %v7242_v0 = vld [vmem:[%s9494_s1 + $0xb0] sm:$0xff]   ;;  %v2519_v3 = vshrl.u32 %v8009_v26, 16 }
  0xcb   : > { %6524 = vmatpush3.bf16.msra.mxu1 %v7734_v19  ;;  %6495 = vmatprep.mubr.bf16.mxu1 %v5660_v47  ;;  %v3155_v19 = vrot.slane %v5851_v45, 5  ;;  %v7230_v47 = vld [vmem:[%s9494_s1 + $0xa0] sm:$0xff]   ;;  %v3168_v61 = vrot.slane %v3166_v25, 4  ;;  %v5664_v35 = vcombine.low %v7307_v54, %v8114_v15  ;;  %v7236_v38 = vld [vmem:[%s9494_s1 + $0xa8] sm:$0xff]   ;;  %v3167_v57 = vsel %vm7810_vm5, %v5929_v33, %v3166_v25  ;;  %v7234_v33 = vld [vmem:[%s7492_s14 + $0x30] sm:$0xff]  }
  0xcc   : > { %6525 = vmatprep.subr.bf16.mxu1 %v7217_v34  ;;  %v3163_v43 = vsel %vm7810_vm5, %v3161_v21, %v3162_v14  ;;  %v8109_v45 = vld [vmem:[%s7492_s14 + $0x40] sm:$0xf]  ;;  %v8142_v8 = vrot.slane %v2519_v3, 4  ;;  %v7231_v21 = vld [vmem:[%s7492_s14 + $0x24] sm:$0xff]   ;;  %v1429_v22 = vrot.slane %v8048_v12, 5  ;;  %v2525_v23 = vshll.u32 %v8012_v32, 16 }
  0xcd   : > { %v5663_v49 = vcombine.low %v7305_v41, %v8109_v45  ;;  %v5960_v48 = vcombine.low %v3160_v28, %v3163_v43  ;;  %v3170_v58 = vsel %vm7810_vm5, %v3168_v61, %v3169_v53  ;;  %v1369_v14 = vld [vmem:[%s7492_s14] sm:$0xe]  ;;  %v1370_v25 = vld [vmem:[%s7492_s14 + $0xc] sm:$0xe]  ;;  %v1436_v28 = vrot.slane %v8060_v30, 5 }
  0xce   : > { %v5961_v4 = vcombine.low %v3167_v57, %v3170_v58  ;;  %v1372_v12 = vld [vmem:[%s7492_s14 + $0x24] sm:$0xe]  ;;  %v5669_v30 = vcombine.low %v7862_v31, %v7870_v55  ;;  %v5670_v41 = vcombine.low %v7891_v17, %v7894_v18  ;;  %v5682_v32 = vrot.slane %v1369_v14, 9  ;;  %v7313_v53 = vld [vmem:[%s7492_s14 + $0x20] sm:$0x1]  ;;  %v7243_v17 = vld [vmem:[%s7492_s14 + $0x54] sm:$0xff]  }
  0xcf   : > { %6526 = vmatpush3.bf16.msra.mxu1 %v7217_v34  ;;  %v3156_v34 = vsel %vm7810_vm5, %v3154_v29, %v3155_v19  ;;  %v8131_v29 = vld [vmem:[%s7492_s14 + $0x58] sm:$0xf]  ;;  %v1438_v61 = vrot.slane %v1436_v28, 4  ;;  %v1439_v54 = vrot.slane %v7313_v53, 5  ;;  %v7314_v58 = vld [vmem:[%s7492_s14 + $0x2c] sm:$0x1] }
  0xd0   : > { %6527 = vmatprep.subr.bf16.mxu1 %v7221_v1  ;;  %v5959_v51 = vcombine.low %v3153_v11, %v3156_v34  ;;  %v8157_v11 = vld [vmem:[%s9494_s1 + $0xc0] sm:$0xff]   ;;  %v1371_v34 = vld [vmem:[%s7492_s14 + $0x18] sm:$0xe]  ;;  %v7317_v53 = vld [vmem:[%s7492_s14 + $0x50] sm:$0x1]  ;;  %v1471_v31 = vrot.slane %v8131_v29, 5 }
  0xd1   : > { %6704 = vmatmul.mubr.bf16.gmra.mrb[20].mxu0 %v5957_v60  ;;  %v7309_v60 = vld [vmem:[%s7492_s14 + $0x54] sm:$0xf]  ;;  %v8280_v55 = vld [vmem:[%s7492_s14 + $0x64] sm:$0xf] }
  0xd2   : > { %6496 = vmatmul.mubr.bf16.gmra.mrb[4].mxu1 %v5661_v6  ;;  %6707 = vmatprep.mubr.bf16.mxu0 %v5958_v7  ;;  %v5665_v19 = vcombine.low %v7309_v60, %v8131_v29  ;;  %v5666_v6 = vcombine.low %v7788_v40, %v7791_v50  ;;  %v7248_v7 = vld [vmem:[%s9494_s1 + $0xb8] sm:$0xff]   ;;  %v7312_v40 = vld [vmem:[%s7492_s14 + $0x14] sm:$0x1]  ;;  %v7246_v18 = vld [vmem:[%s7492_s14 + $0x60] sm:$0xff]  }
  0xd3   : > { %6499 = vmatprep.mubr.bf16.mxu1 %v5662_v10  ;;  %6528 = vmatpush3.bf16.msra.mxu1 %v7221_v1  ;;  %v2515_v1 = vshll.u32 %v8009_v26, 16  ;;  %v8145_v10 = vld [vmem:[%s7492_s14 + $0x8] sm:$0x1]  ;;  %v1432_v50 = vrot.slane %v7312_v40, 5 }
  0xd4   : > { %6529 = vmatprep.subr.bf16.mxu1 %v7225_v16  ;;  %v1425_v39 = vrot.slane %v8145_v10, 5 }
  0xd5   : > { %v8140_v26 = vrot.slane %v2515_v1, 5 }
  0xd7   : > { %6530 = vmatpush3.bf16.msra.mxu1 %v7225_v16  ;;  %v1422_v16 = vrot.slane %v8024_v13, 5  ;;  %v5667_v13 = vcombine.low %v7806_v20, %v7818_v36  ;;  %v5683_v36 = vrot.slane %v1370_v25, 9  ;;  %v6042_v25 = vld [vmem:[%s7492_s14 + $0x18] sm:$0xf] }
  0xd8   : > { %6531 = vmatprep.subr.bf16.mxu1 %v7230_v47 }
  0xd9   : > { %6708 = vmatmul.mubr.bf16.gmra.mrb[24].mxu0 %v5959_v51  ;;  %v5668_v51 = vcombine.low %v7829_v62, %v7840_v5  ;;  %v1424_v20 = vrot.slane %v1422_v16, 4  ;;  %v7238_v62 = vld [vmem:[%s9494_s1 + $0x1c8] sm:$0xff]   ;;  %v5684_v5 = vrot.slane %v1371_v34, 9  ;;  %v8200_v10 = vsel %vm7810_vm5, %v5682_v32, %v1422_v16  ;;  %v6043_v34 = vld [vmem:[%s7492_s14 + $0x1c] sm:$0xf] }
  0xda   : > { %6500 = vmatmul.mubr.bf16.gmra.mrb[8].mxu1 %v5663_v49  ;;  %6711 = vmatprep.mubr.bf16.mxu0 %v5960_v48  ;;  %v1450_v49 = vrot.slane %v8088_v9, 5  ;;  %v1431_v48 = vrot.slane %v1429_v22, 4  ;;  %v5685_v9 = vrot.slane %v1372_v12, 9  ;;  %v1464_v16 = vrot.slane %v8114_v15, 5  ;;  %v7240_v15 = vld [vmem:[%s7492_s14 + $0x48] sm:$0xff]  }
  0xdb   : > { %6503 = vmatprep.mubr.bf16.mxu1 %v5664_v35  ;;  %6532 = vmatpush3.bf16.msra.mxu1 %v7230_v47  ;;  %v1443_v47 = vrot.slane %v8083_v2, 5  ;;  %v1373_v2 = vld [vmem:[%s7492_s14 + $0x30] sm:$0xe]  ;;  %v5671_v35 = vcombine.low %v7912_v46, %v7921_v63  ;;  %v8208_v40 = vsel %vm7810_vm5, %v1424_v20, %v1425_v39  ;;  %v8216_v14 = vsel %vm7810_vm5, %v5684_v5, %v1436_v28  ;;  %v1375_v28 = vld [vmem:[%s7492_s14 + $0x48] sm:$0xe] }
  0xdc   : > { %6533 = vmatprep.subr.bf16.mxu1 %v7236_v38  ;;  %v5686_v1 = vrot.slane %v1373_v2, 9  ;;  %v1452_v3 = vrot.slane %v1450_v49, 4  ;;  %v3929_v20 = vshrl.u32 %v6042_v25, 16  ;;  %v3942_v2 = vshrl.u32 %v6043_v34, 16  ;;  %v7249_v63 = vld [vmem:[%s7492_s14 + $0x6c] sm:$0xff]  }
  0xdd   : > { %v1445_v57 = vrot.slane %v1443_v47, 4  ;;  %v8228_v39 = vsel %vm7810_vm5, %v5685_v9, %v1443_v47  ;;  %v7316_v47 = vld [vmem:[%s7492_s14 + $0x44] sm:$0x1]  ;;  %v5688_v5 = vrot.slane %v1375_v28, 9  ;;  %v6046_v28 = vld [vmem:[%s7492_s14 + $0x28] sm:$0xf] }
  0xde   : > { %v8238_v12 = vsel %vm7810_vm5, %v5686_v1, %v1450_v49  ;;  %v1460_v32 = vrot.slane %v7316_v47, 5  ;;  %v6044_v1 = vld [vmem:[%s7492_s14 + $0x20] sm:$0x1]  ;;  %v1377_v47 = vld [vmem:[%s7492_s14 + $0x60] sm:$0xe] }
  0xdf   : > { %6534 = vmatpush3.bf16.msra.mxu1 %v7236_v38  ;;  %v5672_v38 = vcombine.low %v7946_v42, %v7949_v44 }
  0xe0   : > { %6535 = vmatprep.subr.bf16.mxu1 %v7242_v0 }
  0xe1   : > { %6712 = vmatmul.mubr.bf16.gmra.mrb[28].mxu0 %v5961_v4  ;;  %v7315_v4 = vld [vmem:[%s7492_s14 + $0x38] sm:$0x1] }
  0xe2   : > { %6504 = vmatmul.mubr.bf16.gmra.mrb[12].mxu1 %v5665_v19  ;;  %6731 = vmatprep.mubr.bf16.mxu0 %v7228_v37  ;;  %v1453_v60 = vrot.slane %v7315_v4, 5  ;;  %v1374_v19 = vld [vmem:[%s7492_s14 + $0x3c] sm:$0xe]  ;;  %v1457_v37 = vrot.slane %v8109_v45, 5  ;;  %v8204_v45 = vsel %vm7810_vm5, %v5683_v36, %v1429_v22  ;;  %v3932_v36 = vshll.u32 %v6042_v25, 16  ;;  %v7254_v4 = vld [vmem:[%s9494_s1 + $0x1e0] sm:$0xff]  }
  0xe3   : > { %6507 = vmatprep.mubr.bf16.mxu1 %v5666_v6  ;;  %6536 = vmatpush3.bf16.msra.mxu1 %v7242_v0  ;;  %v1446_v0 = vrot.slane %v7314_v58, 5  ;;  %v8191_v6 = vrot.slane %v2525_v23, 5  ;;  %v7237_v22 = vld [vmem:[%s7492_s14 + $0x3c] sm:$0xff]   ;;  %v8224_v23 = vsel %vm7810_vm5, %v1438_v61, %v1439_v54  ;;  %v1466_v61 = vrot.slane %v1464_v16, 4  ;;  %v6048_v58 = vld [vmem:[%s7492_s14 + $0x30] sm:$0xf] }
  0xe4   : > { %6537 = vmatprep.subr.bf16.mxu1 %v7248_v7  ;;  %v1467_v54 = vrot.slane %v7317_v53, 5  ;;  %v3931_v25 = vrot.slane %v3929_v20, 4 }
  0xe5   : > { %9517 = vst [vmem:[#allocation7_spill] sm:$0xff] %v8191_v6 }
  0xe7   : > { %6538 = vmatpush3.bf16.msra.mxu1 %v7248_v7  ;;  %v7244_v7 = vld [vmem:[%s9494_s1 + $0x1d0] sm:$0xff]  }
  0xe8   : > { %6571 = vmatprep.subr.bf16.mxu1 %v8157_v11 }
  0xe9   : > { %6732 = vmatmul.mubr.bf16.vlgmr.msra.gmra.mrb[0].mxu0 %v7231_v21  ;;  %v8212_v21 = vsel %vm7810_vm5, %v1431_v48, %v1432_v50  ;;  %v8232_v50 = vsel %vm7810_vm5, %v1445_v57, %v1446_v0  ;;  %v3938_v48 = vshll.u32 %v6043_v34, 16  ;;  %v3934_v34 = vrot.slane %v3932_v36, 5  ;;  %v1378_v36 = vld [vmem:[%s7492_s14 + $0x6c] sm:$0xe] }
  0xea   : > { %6508 = vmatmul.mubr.bf16.gmra.mrb[16].mxu1 %v5667_v13  ;;  %6764 = vmatpush3.bf16.msra.mxu0 %v7996_v59  ;;  %v5687_v13 = vrot.slane %v1374_v19, 9  ;;  %v5691_v9 = vrot.slane %v1378_v36, 9 }
  0xeb   : > { %6511 = vmatprep.mubr.bf16.mxu1 %v5668_v51  ;;  %6735 = vmatprep.mubr.bf16.mxu0 %v7234_v33  ;;  %v8242_v51 = vsel %vm7810_vm5, %v1452_v3, %v1453_v60  ;;  %v1459_v33 = vrot.slane %v1457_v37, 4  ;;  %v6045_v3 = vld [vmem:[%s7492_s14 + $0x24] sm:$0xf]  ;;  %v3966_v60 = vshrl.u32 %v6046_v28, 16 }
  0xec   : > { %6765 = vmatprep.subr.bf16.mxu0 %v7238_v62  ;;  %v8259_v0 = vsel %vm7810_vm5, %v5687_v13, %v1457_v37  ;;  %v8276_v37 = vld [vmem:[%s7492_s14 + $0x54] sm:$0xe]  ;;  %v3944_v13 = vrot.slane %v3942_v2, 4  ;;  %v3953_v53 = vshrl.u32 %v6045_v3, 16  ;;  %v3956_v43 = vshll.u32 %v6045_v3, 16 }
  0xed   : > { %v8273_v19 = vsel %vm7810_vm5, %v1459_v33, %v1460_v32  ;;  %v3948_v32 = vshll.u32 %v6044_v1, 16  ;;  %v5689_v20 = vrot.slane %v8276_v37, 9  ;;  %v7258_v1 = vld [vmem:[%s9494_s1 + $0x1e8] sm:$0xff]   ;;  %v1473_v3 = vrot.slane %v1471_v31, 4 }
  0xee   : > { %6766 = vmatpush3.bf16.msra.mxu0 %v7238_v62  ;;  %v7250_v62 = vld [vmem:[%s9494_s1 + $0x1d8] sm:$0xff]   ;;  %v3935_v37 = vor.u32 %v3934_v34, %v3931_v25  ;;  %v3955_v49 = vrot.slane %v3953_v53, 4  ;;  %v3958_v59 = vrot.slane %v3956_v43, 5  ;;  %v7322_v25 = vld [vmem:[%s7492_s14 + $0x74] sm:$0x1]  ;;  %v3968_v43 = vrot.slane %v3966_v60, 4 }
  0xef   : > { %6767 = vmatprep.subr.bf16.mxu0 %v7244_v7  ;;  %v8314_v57 = vrot.slane %v3948_v32, 5  ;;  %v1488_v34 = vrot.slane %v7322_v25, 5  ;;  %v3977_v53 = vshrl.u32 %v6048_v58, 16  ;;  %v8339_v42 = vsel %vm7810_vm5, %v5689_v20, %v1471_v31 }
  0xf0   : > { %v3936_v36 = vrot.slane %v3935_v37, 4 }
  0xf1   : > { %6736 = vmatmul.mubr.bf16.gmra.mrb[4].mxu0 %v7237_v22  ;;  %v8286_v22 = vrot.slane %v3938_v48, 5  ;;  %v7320_v48 = vld [vmem:[%s7492_s14 + $0x70] sm:$0xf] }
  0xf2   : > { %6512 = vmatmul.mubr.bf16.gmra.mrb[20].mxu1 %v5669_v30  ;;  %6739 = vmatprep.mubr.bf16.mxu0 %v7240_v15  ;;  %v1478_v30 = vrot.slane %v8280_v55, 5  ;;  %v7319_v15 = vld [vmem:[%s7492_s14 + $0x5c] sm:$0x1]  ;;  %v1485_v2 = vrot.slane %v7320_v48, 5 }
  0xf3   : > { %6515 = vmatprep.mubr.bf16.mxu1 %v5670_v41  ;;  %6768 = vmatpush3.bf16.msra.mxu0 %v7244_v7  ;;  %v1474_v33 = vrot.slane %v7319_v15, 5  ;;  %v8295_v41 = vsel %vm7810_vm5, %v5688_v5, %v1464_v16  ;;  %v8299_v7 = vsel %vm7810_vm5, %v1466_v61, %v1467_v54  ;;  %v7321_v16 = vld [vmem:[%s7492_s14 + $0x68] sm:$0x1]  ;;  %v3962_v15 = vshll.u32 %v6046_v28, 16  ;;  %v7266_v55 = vld [vmem:[%s9494_s1 + $0x1f8] sm:$0xff]  }
  0xf4   : > { %6769 = vmatprep.subr.bf16.mxu0 %v7250_v62  ;;  %v1481_v5 = vrot.slane %v7321_v16, 5  ;;  %v5690_v61 = vrot.slane %v1377_v47, 9  ;;  %v1480_v54 = vrot.slane %v1478_v30, 4  ;;  %v3945_v48 = vor.u32 %v3944_v13, %v8286_v22  ;;  %v6049_v16 = vld [vmem:[%s7492_s14 + $0x34] sm:$0xf] }
  0xf5   : > { %v1487_v47 = vrot.slane %v1485_v2, 4  ;;  %v6047_v13 = vld [vmem:[%s7492_s14 + $0x2c] sm:$0x1]  ;;  %v8326_v32 = vrot.slane %v3962_v15, 5  ;;  %v3986_v28 = vshll.u32 %v6049_v16, 16  ;;  %v3990_v46 = vshrl.u32 %v6049_v16, 16 }
  0xf6   : > { %v3946_v25 = vrot.slane %v3945_v48, 4  ;;  %v8343_v44 = vsel %vm7810_vm5, %v1473_v3, %v1474_v33  ;;  %v8350_v60 = vsel %vm7810_vm5, %v5690_v61, %v1478_v30  ;;  %v8354_v29 = vsel %vm7810_vm5, %v1480_v54, %v1481_v5  ;;  %v1379_v33 = vld [vmem:[%s7492_s14 + $0x78] sm:$0xe] }
  0xf7   : > { %6770 = vmatpush3.bf16.msra.mxu0 %v7250_v62  ;;  %v8358_v31 = vsel %vm7810_vm5, %v5691_v9, %v1485_v2  ;;  %v8368_v30 = vsel %vm7810_vm5, %v1487_v47, %v1488_v34  ;;  %v3969_v20 = vor.u32 %v3968_v43, %v8326_v32  ;;  %v3979_v3 = vrot.slane %v3977_v53, 4  ;;  %v6051_v9 = vld [vmem:[%s7492_s14 + $0x3c] sm:$0xf]  ;;  %v6052_v2 = vld [vmem:[%s7492_s14 + $0x40] sm:$0xf] }
  0xf8   : > { %6771 = vmatprep.subr.bf16.mxu0 %v7254_v4  ;;  %v3941_v15 = vsel %vm7564_vm2, %v3936_v36, %v8286_v22  ;;  %v3951_v61 = vsel %vm7564_vm2, %v3946_v25, %v8314_v57  ;;  %v8379_v54 = vrot.slane %v3986_v28, 5  ;;  %v3992_v37 = vrot.slane %v3990_v46, 4  ;;  %v7324_v34 = vld [vmem:[%s7492_s14 + $0x80] sm:$0x1]  ;;  %v8538_v62 = vld [vmem:[%s7492_s14 + $0x68] sm:$0x1] }
  0xf9   : > { %6740 = vmatmul.mubr.bf16.gmra.mrb[8].mxu0 %v7243_v17  ;;  %v3980_v17 = vshll.u32 %v6048_v58, 16  ;;  %v3972_v58 = vshll.u32 %v6047_v13, 16  ;;  %v5692_v47 = vrot.slane %v1379_v33, 9  ;;  %v1380_v13 = vld [vmem:[%s7492_s14 + $0x84] sm:$0xe]  ;;  %v4001_v43 = vshrl.u32 %v6051_v9, 16 }
  0xfa   : > { %6516 = vmatmul.mubr.bf16.gmra.mrb[24].mxu1 %v5671_v35  ;;  %6743 = vmatprep.mubr.bf16.mxu0 %v7246_v18  ;;  %v7262_v35 = vld [vmem:[%s9494_s1 + $0x1f0] sm:$0xff]   ;;  %v7323_v18 = vld [vmem:[%s7492_s14 + $0x7c] sm:$0xf]  ;;  %v4004_v22 = vshll.u32 %v6051_v9, 16  ;;  %v4010_v53 = vshll.u32 %v6052_v2, 16  ;;  %v9518_v57 = vcombine.low %v7969_v56, %v7974_v27  ;;  %v8390_v28 = vrot.slane %v3969_v20, 4 }
  0xfb   : > { %6519 = vmatprep.mubr.bf16.mxu1 %v5672_v38  ;;  %6772 = vmatpush3.bf16.msra.mxu0 %v7254_v4  ;;  %v3959_v38 = vor.u32 %v3958_v59, %v3955_v49  ;;  %v7251_v4 = vld [vmem:[%s7492_s14 + $0x78] sm:$0xff]   ;;  %v1492_v59 = vrot.slane %v7323_v18, 5  ;;  %v3982_v5 = vrot.slane %v3980_v17, 5  ;;  %v8383_v16 = vrot.slane %v3972_v58, 5  ;;  %v8395_v36 = vld [vmem:[%s9494_s1 + $0x200] sm:$0xff]   ;;  %9526 = vst [vmem:[#allocation10_spill] sm:$0xff] %v8538_v62 }
  0xfc   : > { %6773 = vmatprep.subr.bf16.mxu0 %v7258_v1  ;;  %v6050_v49 = vld [vmem:[%s7492_s14 + $0x38] sm:$0x1]  ;;  %v4014_v17 = vshrl.u32 %v6052_v2, 16  ;;  %v7253_v58 = vld [vmem:[%s7492_s14 + $0x84] sm:$0xff]   ;;  %v3993_v27 = vor.u32 %v3992_v37, %v8379_v54  ;;  %v4006_v9 = vrot.slane %v4004_v22, 5  ;;  %v8417_v2 = vrot.slane %v4010_v53, 5 }
  0xfd   : > { %v8381_v48 = vrot.slane %v3959_v38, 4  ;;  %v1494_v25 = vrot.slane %v1492_v59, 4  ;;  %v3983_v46 = vor.u32 %v3982_v5, %v3979_v3  ;;  %v9519_v38 = vcombine.low %v8200_v10, %v8208_v40  ;;  %v7325_v33 = vld [vmem:[%s7492_s14 + $0x88] sm:$0xf]  ;;  %v6053_v20 = vld [vmem:[%s7492_s14 + $0x44] sm:$0x1] }
  0xfe   : > { %v1499_v18 = vrot.slane %v7325_v33, 5  ;;  %v8408_v10 = vcombine.low %v3941_v15, %v3951_v61  ;;  %v6054_v3 = vld [vmem:[%s7492_s14 + $0x48] sm:$0xf]  ;;  %v4003_v5 = vrot.slane %v4001_v43, 4  ;;  %v4016_v37 = vrot.slane %v4014_v17, 4 }
  0xff   : > { %6774 = vmatpush3.bf16.msra.mxu0 %v7258_v1  ;;  %v1495_v1 = vrot.slane %v7324_v34, 5  ;;  %v7255_v34 = vld [vmem:[%s7492_s14 + $0x90] sm:$0xff]   ;;  %v3965_v15 = vsel %vm7564_vm2, %v8381_v48, %v8326_v32  ;;  %v3984_v61 = vrot.slane %v3983_v46, 4  ;;  %v3975_v43 = vsel %vm7564_vm2, %v8390_v28, %v8383_v16  ;;  %v8439_v48 = vld [vmem:[%s7492_s14 + $0x58] sm:$0xf]  ;;  %v7256_v46 = vld [vmem:[%s9494_s1 + $0xc8] sm:$0xff]  }
 0x100   : > { %6775 = vmatprep.subr.bf16.mxu0 %v7262_v35  ;;  %v3994_v53 = vrot.slane %v3993_v27, 4  ;;  %v1501_v17 = vrot.slane %v1499_v18, 4  ;;  %v6057_v32 = vld [vmem:[%s7492_s14 + $0x54] sm:$0xf]  ;;  %v4020_v16 = vshll.u32 %v6053_v20, 16  ;;  %v4025_v28 = vshrl.u32 %v6054_v3, 16 }
 0x101   : > { %6744 = vmatmul.mubr.bf16.gmra.mrb[12].mxu0 %v7249_v63  ;;  %v3996_v63 = vshll.u32 %v6050_v49, 16  ;;  %v8435_v22 = vsel %vm7810_vm5, %v1494_v25, %v1495_v1  ;;  %v4028_v1 = vshll.u32 %v6054_v3, 16  ;;  %v4007_v25 = vor.u32 %v4006_v9, %v4003_v5  ;;  %v7257_v5 = vld [vmem:[%s7492_s14 + $0x9c] sm:$0xff]   ;;  %v7331_v56 = vld [vmem:[%s7492_s14 + $0xac] sm:$0xf] }
 0x102   : > { %6520 = vmatmul.mubr.bf16.gmra.mrb[28].mxu1 %v9518_v57  ;;  %6747 = vmatprep.mubr.bf16.mxu0 %v7251_v4  ;;  %v5693_v4 = vrot.slane %v1380_v13, 9  ;;  %v7326_v57 = vld [vmem:[%s7492_s14 + $0x8c] sm:$0x1]  ;;  %v4058_v20 = vshll.u32 %v8439_v48, 16  ;;  %v9521_v3 = vcombine.low %v8216_v14, %v8224_v23  ;;  %v8475_v14 = vld [vmem:[%s7492_s14 + $0x50] sm:$0x1] }
 0x103   : > { %6539 = vmatprep.mubr.bf16.mxu1 %v9519_v38  ;;  %6776 = vmatpush3.bf16.msra.mxu0 %v7262_v35  ;;  %v8414_v35 = vsel %vm7810_vm5, %v5692_v47, %v1492_v59  ;;  %v3998_v13 = vrot.slane %v3996_v63, 5  ;;  %v1502_v38 = vrot.slane %v7326_v57, 5  ;;  %v1381_v59 = vld [vmem:[%s7492_s14 + $0x90] sm:$0xe]  ;;  %v8427_v47 = vld [vmem:[%s7492_s14 + $0x4c] sm:$0xf]  ;;  %v4017_v63 = vor.u32 %v4016_v37, %v8417_v2 }
 0x104   : > { %6777 = vmatprep.subr.bf16.mxu0 %v7266_v55  ;;  %v4034_v27 = vshll.u32 %v8427_v47, 16  ;;  %v4038_v33 = vshrl.u32 %v8427_v47, 16  ;;  %v9520_v57 = vcombine.low %v8204_v45, %v8212_v21  ;;  %v7260_v45 = vld [vmem:[%s9494_s1 + $0xd0] sm:$0xff]   ;;  %v3989_v21 = vsel %vm7564_vm2, %v3984_v61, %v8379_v54  ;;  %v7259_v23 = vld [vmem:[%s7492_s14 + $0xa8] sm:$0xff]   ;;  %v8482_v54 = vld [vmem:[%s7492_s14 + $0x5c] sm:$0x1] }
 0x105   : > { %v3999_v9 = vsel %vm7564_vm2, %v3994_v53, %v3998_v13  ;;  %v5694_v37 = vrot.slane %v1381_v59, 9  ;;  %v4030_v40 = vrot.slane %v4028_v1, 5  ;;  %9522 = vst [vmem:[#allocation8_spill] sm:$0xff] %v8482_v54  ;;  %v4008_v61 = vrot.slane %v4007_v25, 4 }
 0x106   : > { %v4018_v13 = vrot.slane %v4017_v63, 4  ;;  %v8484_v53 = vrot.slane %v4034_v27, 5  ;;  %v8486_v49 = vrot.slane %v4058_v20, 5  ;;  %v8491_v1 = vcombine.low %v3965_v15, %v3975_v43  ;;  %v6060_v43 = vld [vmem:[%s7492_s14 + $0x60] sm:$0xf] }
 0x107   : > { %6778 = vmatpush3.bf16.msra.mxu0 %v7266_v55  ;;  %v8447_v55 = vsel %vm7810_vm5, %v5693_v4, %v1499_v18  ;;  %v4049_v4 = vshrl.u32 %v6057_v32, 16  ;;  %v4052_v18 = vshll.u32 %v6057_v32, 16  ;;  %v7327_v32 = vld [vmem:[%s7492_s14 + $0x94] sm:$0xf]  ;;  %v8495_v63 = vcombine.low %v3989_v21, %v3999_v9 }
 0x108   : > { %6811 = vmatprep.subr.bf16.mxu0 %v8395_v36  ;;  %v4044_v15 = vshll.u32 %v8475_v14, 16  ;;  %v4013_v21 = vsel %vm7564_vm2, %v4008_v61, %v8417_v2  ;;  %v9525_v61 = vcombine.low %v8238_v12, %v8242_v51 }
 0x109   : > { %6748 = vmatmul.mubr.bf16.gmra.mrb[16].mxu0 %v7253_v58  ;;  %v4062_v58 = vshrl.u32 %v8439_v48, 16  ;;  %v4051_v59 = vrot.slane %v4049_v4, 4  ;;  %v7328_v4 = vld [vmem:[%s7492_s14 + $0x98] sm:$0x1] }
 0x10a   : > { %6540 = vmatmul.mubr.bf16.vlgmr.msra.gmra.mrb[0].mxu1 %v9520_v57  ;;  %6751 = vmatprep.mubr.bf16.mxu0 %v7255_v34  ;;  %v8478_v34 = vrot.slane %v4020_v16, 5  ;;  %v1506_v57 = vrot.slane %v7327_v32, 5  ;;  %v7329_v32 = vld [vmem:[%s7492_s14 + $0xa0] sm:$0xf]  ;;  %v4046_v51 = vrot.slane %v4044_v15, 5 }
 0x10b   : > { %6572 = vmatpush3.bf16.msra.mxu1 %v8157_v11  ;;  %6543 = vmatprep.mubr.bf16.mxu1 %v9521_v3  ;;  %v8472_v11 = vsel %vm7810_vm5, %v1501_v17, %v1502_v38  ;;  %v4027_v3 = vrot.slane %v4025_v28, 4  ;;  %v4040_v38 = vrot.slane %v4038_v33, 4  ;;  %v4054_v17 = vrot.slane %v4052_v18, 5  ;;  %v7264_v28 = vld [vmem:[%s9494_s1 + $0xd8] sm:$0xff]  }
 0x10c   : > { %6573 = vmatprep.subr.bf16.mxu1 %v7256_v46  ;;  %v4064_v16 = vrot.slane %v4062_v58, 4  ;;  %v1382_v33 = vld [vmem:[%s7492_s14 + $0x9c] sm:$0xe]  ;;  %v1509_v18 = vrot.slane %v7328_v4, 5  ;;  %v8508_v58 = vld [vmem:[%s7492_s14 + $0x64] sm:$0xf] }
 0x10d   : > { %v4031_v20 = vor.u32 %v4030_v40, %v4027_v3  ;;  %9523 = vst [vmem:[#allocation9_spill] sm:$0xff] %v8508_v58  ;;  %v4041_v9 = vor.u32 %v4040_v38, %v8484_v53  ;;  %v1513_v27 = vrot.slane %v7329_v32, 5  ;;  %v9524_v40 = vcombine.low %v8228_v39, %v8232_v50  ;;  %v7261_v38 = vld [vmem:[%s7492_s14 + $0xb4] sm:$0xff]   ;;  %v7267_v39 = vld [vmem:[%s9494_s1 + $0xe0] sm:$0xff]   ;;  %v6063_v32 = vld [vmem:[%s7492_s14 + $0x6c] sm:$0xf] }
 0x10e   : > { %v1508_v3 = vrot.slane %v1506_v57, 4  ;;  %v4055_v4 = vor.u32 %v4054_v17, %v4051_v59  ;;  %v4065_v2 = vor.u32 %v4064_v16, %v8486_v49  ;;  %v4073_v50 = vshrl.u32 %v6060_v43, 16  ;;  %v7330_v17 = vld [vmem:[%s7492_s14 + $0xa4] sm:$0x1] }
 0x10f   : > { %6574 = vmatpush3.bf16.msra.mxu1 %v7256_v46  ;;  %v8502_v46 = vsel %vm7810_vm5, %v5694_v37, %v1506_v57  ;;  %v4068_v37 = vshll.u32 %v8482_v54, 16  ;;  %v4086_v57 = vshrl.u32 %v8508_v58, 16  ;;  %v4032_v12 = vrot.slane %v4031_v20, 4  ;;  %v8677_v54 = vld [vmem:[%s7492_s14 + $0x98] sm:$0x1] }
 0x110   : > { %6575 = vmatprep.subr.bf16.mxu1 %v7260_v45  ;;  %v5695_v59 = vrot.slane %v1382_v33, 9  ;;  %v1516_v16 = vrot.slane %v7330_v17, 5  ;;  %v4056_v20 = vrot.slane %v4055_v4, 4  ;;  %v4066_v33 = vrot.slane %v4065_v2, 4  ;;  %9539 = vst [vmem:[#allocation19_spill] sm:$0xff] %v8677_v54 }
 0x111   : > { %6752 = vmatmul.mubr.bf16.gmra.mrb[20].mxu0 %v7257_v5  ;;  %v4023_v5 = vsel %vm7564_vm2, %v4018_v13, %v8478_v34  ;;  %v4082_v34 = vshll.u32 %v8508_v58, 16  ;;  %v7263_v13 = vld [vmem:[%s7492_s14 + $0xc0] sm:$0xff]   ;;  %v4070_v25 = vrot.slane %v4068_v37, 5  ;;  %v8544_v58 = vsel %vm7810_vm5, %v1508_v3, %v1509_v18 }
 0x112   : > { %6544 = vmatmul.mubr.bf16.gmra.mrb[4].mxu1 %v9524_v40  ;;  %6755 = vmatprep.mubr.bf16.mxu0 %v7259_v23  ;;  %v4076_v23 = vshll.u32 %v6060_v43, 16  ;;  %v4042_v40 = vrot.slane %v4041_v9, 4  ;;  %v1520_v43 = vrot.slane %v7331_v56, 5  ;;  %v8540_v6 = vcombine.low %v4013_v21, %v4023_v5  ;;  %v7269_v56 = vld [vmem:[%s9494_s1 + $0xe8] sm:$0xff]  }
 0x113   : > { %6547 = vmatprep.mubr.bf16.mxu1 %v9525_v61  ;;  %6576 = vmatpush3.bf16.msra.mxu1 %v7260_v45  ;;  %v1383_v45 = vld [vmem:[%s7492_s14 + $0xa8] sm:$0xe]  ;;  %v1515_v61 = vrot.slane %v1513_v27, 4  ;;  %v4075_v15 = vrot.slane %v4073_v50, 4  ;;  %v8546_v9 = vrot.slane %v4082_v34, 5  ;;  %v4088_v37 = vrot.slane %v4086_v57, 4 }
 0x114   : > { %6577 = vmatprep.subr.bf16.mxu1 %v7264_v28  ;;  %v4078_v17 = vrot.slane %v4076_v23, 5  ;;  %v4037_v18 = vsel %vm7564_vm2, %v4032_v12, %v8484_v53  ;;  %v8556_v21 = vsel %vm7810_vm5, %v5695_v59, %v1513_v27  ;;  %v4097_v5 = vshrl.u32 %v6063_v32, 16  ;;  %v7332_v53 = vld [vmem:[%s7492_s14 + $0xb0] sm:$0x1]  ;;  %v1384_v34 = vld [vmem:[%s7492_s14 + $0xb4] sm:$0xe] }
 0x115   : > { %v4100_v3 = vshll.u32 %v6063_v32, 16  ;;  %v4047_v4 = vsel %vm7564_vm2, %v4042_v40, %v4046_v51  ;;  %v8565_v2 = vsel %vm7810_vm5, %v1515_v61, %v1516_v16  ;;  %v5696_v50 = vrot.slane %v1383_v45, 9  ;;  %v8587_v45 = vld [vmem:[%s7492_s14 + $0x74] sm:$0x1]  ;;  %v7333_v40 = vld [vmem:[%s7492_s14 + $0xb8] sm:$0xf] }
 0x116   : > { %v1523_v23 = vrot.slane %v7332_v53, 5  ;;  %v9528_v27 = vcombine.low %v8259_v0, %v8273_v19  ;;  %v4061_v57 = vsel %vm7564_vm2, %v4056_v20, %v8486_v49  ;;  %v4071_v12 = vsel %vm7564_vm2, %v4066_v33, %v4070_v25  ;;  %v7265_v19 = vld [vmem:[%s7492_s14 + $0xcc] sm:$0xff]   ;;  %9530 = vst [vmem:[#allocation12_spill] sm:$0xff] %v8587_v45  ;;  %v6069_v53 = vld [vmem:[%s7492_s14 + $0x84] sm:$0xf] }
 0x117   : > { %6578 = vmatpush3.bf16.msra.mxu1 %v7264_v28  ;;  %v8559_v28 = vld [vmem:[%s7492_s14 + $0x70] sm:$0xf]  ;;  %v1522_v51 = vrot.slane %v1520_v43, 4  ;;  %v4092_v59 = vshll.u32 %v8538_v62, 16  ;;  %v9529_v0 = vcombine.low %v8295_v41, %v8299_v7  ;;  %v4089_v16 = vor.u32 %v4088_v37, %v8546_v9  ;;  %v8604_v37 = vld [vmem:[%s7492_s14 + $0x7c] sm:$0xf] }
 0x118   : > { %6579 = vmatprep.subr.bf16.mxu1 %v7267_v39  ;;  %9527 = vst [vmem:[#allocation11_spill] sm:$0xff] %v8559_v28  ;;  %v4106_v49 = vshll.u32 %v8559_v28, 16  ;;  %v4110_v25 = vshrl.u32 %v8559_v28, 16  ;;  %v5697_v32 = vrot.slane %v1384_v34, 9  ;;  %v1527_v61 = vrot.slane %v7333_v40, 5  ;;  %9531 = vst [vmem:[#allocation13_spill] sm:$0xff] %v8604_v37 }
 0x119   : > { %6756 = vmatmul.mubr.bf16.gmra.mrb[24].mxu0 %v7261_v38  ;;  %v7271_v38 = vld [vmem:[%s9494_s1 + $0xf0] sm:$0xff]   ;;  %v4099_v41 = vrot.slane %v4097_v5, 4  ;;  %v4102_v7 = vrot.slane %v4100_v3, 5  ;;  %v8595_v33 = vcombine.low %v4037_v18, %v4047_v4  ;;  %v8607_v34 = vcombine.low %v4061_v57, %v4071_v12  ;;  %v7334_v18 = vld [vmem:[%s7492_s14 + $0xbc] sm:$0x1] }
 0x11a   : > { %6548 = vmatmul.mubr.bf16.gmra.mrb[8].mxu1 %v9528_v27  ;;  %6759 = vmatprep.mubr.bf16.mxu0 %v7263_v13  ;;  %v4079_v13 = vor.u32 %v4078_v17, %v4075_v15  ;;  %v8601_v17 = vsel %vm7810_vm5, %v5696_v50, %v1520_v43  ;;  %v8611_v5 = vsel %vm7810_vm5, %v1522_v51, %v1523_v23  ;;  %v8613_v3 = vrot.slane %v4092_v59, 5  ;;  %v7273_v27 = vld [vmem:[%s9494_s1 + $0xf8] sm:$0xff]   ;;  %v8620_v43 = vld [vmem:[%s7492_s14 + $0x88] sm:$0xf] }
 0x11b   : > { %6551 = vmatprep.mubr.bf16.mxu1 %v9529_v0  ;;  %6580 = vmatpush3.bf16.msra.mxu1 %v7267_v39  ;;  %v6066_v39 = vld [vmem:[%s7492_s14 + $0x78] sm:$0xf]  ;;  %v1530_v4 = vrot.slane %v7334_v18, 5  ;;  %9532 = vst [vmem:[#allocation14_spill] sm:$0xff] %v8620_v43  ;;  %v8624_v57 = vrot.slane %v4089_v16, 4  ;;  %v8626_v12 = vrot.slane %v4106_v49, 5  ;;  %v8630_v51 = vsel %vm7810_vm5, %v5697_v32, %v1527_v61 }
 0x11c   : > { %6581 = vmatprep.subr.bf16.mxu1 %v7269_v56  ;;  %v8622_v50 = vrot.slane %v4079_v13, 4  ;;  %v4112_v23 = vrot.slane %v4110_v25, 4  ;;  %v1529_v59 = vrot.slane %v1527_v61, 4  ;;  %v4103_v0 = vor.u32 %v4102_v7, %v4099_v41  ;;  %v6072_v18 = vld [vmem:[%s7492_s14 + $0x90] sm:$0xf] }
 0x11d   : > { %v4116_v40 = vshll.u32 %v8587_v45, 16  ;;  %v4124_v15 = vshll.u32 %v6066_v39, 16  ;;  %v4130_v13 = vshll.u32 %v8604_v37, 16  ;;  %v4134_v16 = vshrl.u32 %v8604_v37, 16  ;;  %v8637_v49 = vld [vmem:[%s7492_s14 + $0x94] sm:$0xf] }
 0x11e   : > { %9533 = vst [vmem:[#allocation15_spill] sm:$0xff] %v8637_v49  ;;  %v9534_v25 = vcombine.low %v8339_v42, %v8343_v44  ;;  %v4145_v32 = vshrl.u32 %v6069_v53, 16  ;;  %v4148_v61 = vshll.u32 %v6069_v53, 16  ;;  %v4158_v41 = vshrl.u32 %v8620_v43, 16  ;;  %v6075_v53 = vld [vmem:[%s7492_s14 + $0x9c] sm:$0xf] }
 0x11f   : > { %6582 = vmatpush3.bf16.msra.mxu1 %v7269_v56  ;;  %v4121_v56 = vshrl.u32 %v6066_v39, 16  ;;  %v9535_v7 = vcombine.low %v8350_v60, %v8354_v29  ;;  %v4113_v44 = vor.u32 %v4112_v23, %v8626_v12  ;;  %v4172_v39 = vshll.u32 %v6072_v18, 16  ;;  %v8659_v60 = vld [vmem:[%s7492_s14 + $0x80] sm:$0x1] }
 0x120   : > { %6583 = vmatprep.subr.bf16.mxu1 %v7271_v38  ;;  %v8656_v20 = vrot.slane %v4116_v40, 5  ;;  %9536 = vst [vmem:[#allocation16_spill] sm:$0xff] %v8659_v60  ;;  %v4178_v29 = vshll.u32 %v8637_v49, 16  ;;  %v4126_v42 = vrot.slane %v4124_v15, 5  ;;  %v4136_v23 = vrot.slane %v4134_v16, 4 }
 0x121   : > { %6760 = vmatmul.mubr.bf16.gmra.mrb[28].mxu0 %v7265_v19  ;;  %v4154_v19 = vshll.u32 %v8620_v43, 16  ;;  %v8663_v43 = vrot.slane %v4130_v13, 5  ;;  %v8669_v37 = vld [vmem:[%s7492_s14 + $0xa0] sm:$0xf]  ;;  %v4147_v40 = vrot.slane %v4145_v32, 4  ;;  %v4150_v45 = vrot.slane %v4148_v61, 5 }
 0x122   : > { %6552 = vmatmul.mubr.bf16.gmra.mrb[12].mxu1 %v9534_v25  ;;  %6779 = vmatprep.mubr.bf16.mxu0 %v8408_v10  ;;  %v4169_v10 = vshrl.u32 %v6072_v18, 16  ;;  %v8654_v25 = vrot.slane %v4103_v0, 4  ;;  %v8666_v18 = vld [vmem:[%s7492_s14 + $0x8c] sm:$0x1]  ;;  %9538 = vst [vmem:[#allocation18_spill] sm:$0xff] %v8669_v37  ;;  %v4160_v62 = vrot.slane %v4158_v41, 4  ;;  %v8686_v13 = vsel %vm7810_vm5, %v1529_v59, %v1530_v4 }
 0x123   : > { %6555 = vmatprep.mubr.bf16.mxu1 %v9535_v7  ;;  %6584 = vmatpush3.bf16.msra.mxu1 %v7271_v38  ;;  %v4182_v38 = vshrl.u32 %v8637_v49, 16  ;;  %v4123_v7 = vrot.slane %v4121_v56, 4  ;;  %9537 = vst [vmem:[#allocation17_spill] sm:$0xff] %v8666_v18  ;;  %v7270_v0 = vld [vmem:[%s9494_s1 + $0x208] sm:$0xff]   ;;  %v8674_v28 = vrot.slane %v4154_v19, 5  ;;  %v4174_v49 = vrot.slane %v4172_v39, 5 }
 0x124   : > { %6585 = vmatprep.subr.bf16.mxu1 %v7273_v27  ;;  %v6078_v56 = vld [vmem:[%s7492_s14 + $0xa8] sm:$0xf]  ;;  %v4171_v16 = vrot.slane %v4169_v10, 4  ;;  %v8691_v32 = vld [vmem:[%s9494_s1 + $0x100] sm:$0xff]   ;;  %v8694_v61 = vrot.slane %v4178_v29, 5  ;;  %v4193_v41 = vshrl.u32 %v6075_v53, 16  ;;  %v9541_v39 = vcombine.low %v8358_v31, %v8368_v30 }
 0x125   : > { %9540 = vst [vmem:[#allocation20_spill] sm:$0xff] %v8691_v32  ;;  %v4184_v19 = vrot.slane %v4182_v38, 4  ;;  %v4196_v15 = vshll.u32 %v6075_v53, 16  ;;  %v8697_v4 = vrot.slane %v4113_v44, 4  ;;  %v4202_v59 = vshll.u32 %v8669_v37, 16  ;;  %v7272_v31 = vld [vmem:[%s9494_s1 + $0x210] sm:$0xff]  }
 0x126   : > { %v4206_v10 = vshrl.u32 %v8669_v37, 16  ;;  %v4127_v29 = vor.u32 %v4126_v42, %v4123_v7  ;;  %v4137_v53 = vor.u32 %v4136_v23, %v8663_v43  ;;  %v4151_v38 = vor.u32 %v4150_v45, %v4147_v40  ;;  %v8709_v44 = vld [vmem:[%s7492_s14 + $0xac] sm:$0xf]  ;;  %v8722_v40 = vld [vmem:[%s7492_s14 + $0xa4] sm:$0x1] }
 0x127   : > { %6586 = vmatpush3.bf16.msra.mxu1 %v7273_v27  ;;  %v4140_v27 = vshll.u32 %v8659_v60, 16  ;;  %9542 = vst [vmem:[#allocation21_spill] sm:$0xff] %v8709_v44  ;;  %v4161_v30 = vor.u32 %v4160_v62, %v8674_v28  ;;  %v4217_v42 = vshrl.u32 %v6078_v56, 16  ;;  %v4220_v45 = vshll.u32 %v6078_v56, 16 }
 0x128   : > { %6859 = vmatprep.subr.bf16.mxu1 %v8691_v32  ;;  %v9543_v32 = vcombine.low %v8414_v35, %v8435_v22  ;;  %v4175_v7 = vor.u32 %v4174_v49, %v4171_v16  ;;  %v4185_v23 = vor.u32 %v4184_v19, %v8694_v61  ;;  %v4195_v35 = vrot.slane %v4193_v41, 4 }
 0x129   : > { %6780 = vmatmul.mubr.bf16.vlgmr.msra.gmra.mrb[0].mxu0 %v8491_v1  ;;  %v4164_v1 = vshll.u32 %v8666_v18, 16  ;;  %v4198_v22 = vrot.slane %v4196_v15, 5  ;;  %v4230_v37 = vshrl.u32 %v8709_v44, 16  ;;  %v4128_v62 = vrot.slane %v4127_v29, 4  ;;  %v7274_v15 = vld [vmem:[%s9494_s1 + $0x218] sm:$0xff]  }
 0x12a   : > { %6556 = vmatmul.mubr.bf16.gmra.mrb[16].mxu1 %v9541_v39  ;;  %6812 = vmatpush3.bf16.msra.mxu0 %v8395_v36  ;;  %v4188_v36 = vshll.u32 %v8677_v54, 16  ;;  %v4226_v39 = vshll.u32 %v8709_v44, 16  ;;  %v4138_v54 = vrot.slane %v4137_v53, 4  ;;  %v4142_v18 = vrot.slane %v4140_v27, 5 }
 0x12b   : > { %6559 = vmatprep.mubr.bf16.mxu1 %v9543_v32  ;;  %6783 = vmatprep.mubr.bf16.mxu0 %v8495_v63  ;;  %v8724_v32 = vrot.slane %v4202_v59, 5  ;;  %v4208_v63 = vrot.slane %v4206_v10, 4  ;;  %v4166_v56 = vrot.slane %v4164_v1, 5  ;;  %v4152_v49 = vrot.slane %v4151_v38, 4 }
 0x12c   : > { %6813 = vmatprep.subr.bf16.mxu0 %v7270_v0  ;;  %v4162_v16 = vrot.slane %v4161_v30, 4  ;;  %v4219_v19 = vrot.slane %v4217_v42, 4  ;;  %v4222_v60 = vrot.slane %v4220_v45, 5  ;;  %v4176_v41 = vrot.slane %v4175_v7, 4  ;;  %v8790_v42 = vld [vmem:[%s7492_s14 + $0xbc] sm:$0x1] }
 0x12d   : > { %v4190_v59 = vrot.slane %v4188_v36, 5  ;;  %v4199_v10 = vor.u32 %v4198_v22, %v4195_v35  ;;  %v4212_v44 = vshll.u32 %v8722_v40, 16  ;;  %v4209_v27 = vor.u32 %v4208_v63, %v8724_v32  ;;  %v8757_v36 = vld [vmem:[%s7492_s14 + $0xb0] sm:$0x1] }
 0x12e   : > { %6814 = vmatpush3.bf16.msra.mxu0 %v7270_v0  ;;  %v4186_v0 = vrot.slane %v4185_v23, 4  ;;  %v8734_v29 = vrot.slane %v4226_v39, 5  ;;  %v4232_v53 = vrot.slane %v4230_v37, 4  ;;  %v9544_v38 = vor.u32 %v8142_v8, %v8140_v26 }
 0x12f   : > { %6815 = vmatprep.subr.bf16.mxu0 %v7272_v31  ;;  %v9545_v30 = vcombine.low %v8447_v55, %v8472_v11  ;;  %v4119_v37 = vsel %vm7564_vm2, %v8697_v4, %v8656_v20  ;;  %v4133_v8 = vsel %vm7564_vm2, %v4128_v62, %v8663_v43  ;;  %v9546_v55 = vcombine.low %v8502_v46, %v8544_v58  ;;  %v7277_v46 = vld [vmem:[%s9494_s1 + $0x220] sm:$0xff]  }
 0x130   : > { %v8739_v1 = vrot.slane %v9544_v38, 4  ;;  %v4143_v11 = vsel %vm7564_vm2, %v4138_v54, %v4142_v18  ;;  %v4223_v20 = vor.u32 %v4222_v60, %v4219_v19  ;;  %v4167_v43 = vsel %vm7564_vm2, %v4162_v16, %v4166_v56  ;;  %v6134_v56 = vld [vmem:[%s7492_s14 + $0x48] sm:$0xe] }
 0x131   : > { %6784 = vmatmul.mubr.bf16.gmra.mrb[4].mxu0 %v8540_v6  ;;  %v4109_v6 = vsel %vm7564_vm2, %v8654_v25, %v8626_v12  ;;  %v6081_v12 = vld [vmem:[%s7492_s14 + $0xb4] sm:$0xf]  ;;  %v8769_v25 = vld [vmem:[%s7492_s14 + $0xb8] sm:$0xf]  ;;  %v4181_v54 = vsel %vm7564_vm2, %v4176_v41, %v8694_v61  ;;  %v8779_v58 = vrot.slane %v4199_v10, 4  ;;  %v8781_v18 = vrot.slane %v4212_v44, 5 }
 0x132   : > { %6560 = vmatmul.mubr.bf16.gmra.mrb[20].mxu1 %v9545_v30  ;;  %6787 = vmatprep.mubr.bf16.mxu0 %v8595_v33  ;;  %v4157_v33 = vsel %vm7564_vm2, %v4152_v49, %v8674_v28  ;;  %v4191_v28 = vsel %vm7564_vm2, %v4186_v0, %v4190_v59  ;;  %v8785_v60 = vrot.slane %v4209_v27, 4  ;;  %v4233_v4 = vor.u32 %v4232_v53, %v8734_v29  ;;  %v6135_v41 = vld [vmem:[%s7492_s14 + $0x54] sm:$0xe] }
 0x133   : > { %6563 = vmatprep.mubr.bf16.mxu1 %v9546_v55  ;;  %6816 = vmatpush3.bf16.msra.mxu0 %v7272_v31  ;;  %v4236_v31 = vshll.u32 %v8757_v36, 16  ;;  %v9547_v61 = vsel %vm7564_vm2, %v8624_v57, %v8613_v3  ;;  %v9548_v44 = vsel %vm7564_vm2, %v8622_v50, %v8546_v9  ;;  %v4241_v7 = vshrl.u32 %v6081_v12, 16 }
 0x134   : > { %6817 = vmatprep.subr.bf16.mxu0 %v7274_v15  ;;  %v6112_v45 = vcombine.low %v9548_v44, %v9547_v61  ;;  %v4244_v23 = vshll.u32 %v6081_v12, 16  ;;  %v4250_v35 = vshll.u32 %v8769_v25, 16  ;;  %v5728_v22 = vcombine.low %v8601_v17, %v8611_v5  ;;  %v7280_v17 = vld [vmem:[%s9494_s1 + $0x228] sm:$0xff]   ;;  %v6084_v5 = vld [vmem:[%s7492_s14 + $0xc0] sm:$0xf] }
 0x135   : > { %v5729_v63 = vcombine.low %v8630_v51, %v8686_v13  ;;  %v6113_v39 = vcombine.low %v4109_v6, %v4119_v37  ;;  %v8807_v3 = vrot.slane %v4223_v20, 4  ;;  %v6114_v57 = vcombine.low %v4133_v8, %v4143_v11  ;;  %v9552_v44 = vld [vmem:[#allocation10_spill] sm:$0xff] }
 0x136   : > { %v8809_v9 = vcombine.low %v4157_v33, %v4167_v43  ;;  %v8811_v50 = vcombine.low %v4181_v54, %v4191_v28  ;;  %v4205_v62 = vsel %vm7564_vm2, %v8779_v58, %v8724_v32  ;;  %v4215_v49 = vsel %vm7564_vm2, %v8785_v60, %v8781_v18  ;;  %v6137_v43 = vld [vmem:[%s7492_s14 + $0x6c] sm:$0xe] }
 0x137   : > { %6818 = vmatpush3.bf16.msra.mxu0 %v7274_v15  ;;  %v8827_v16 = vrot.slane %v4233_v4, 4  ;;  %v8829_v19 = vrot.slane %v4236_v31, 5  ;;  %v4254_v15 = vshrl.u32 %v8769_v25, 16  ;;  %v9549_v59 = vcombine.low %v8556_v21, %v8565_v2  ;;  %v7283_v21 = vld [vmem:[%s9494_s1 + $0x230] sm:$0xff]   ;;  %v8851_v2 = vld [vmem:[%s7492_s14 + $0xc4] sm:$0xf] }
 0x138   : > { %6819 = vmatprep.subr.bf16.mxu0 %v7277_v46  ;;  %v8836_v10 = vrot.slane %v4241_v7, 4  ;;  %v8840_v0 = vrot.slane %v4250_v35, 5  ;;  %v4260_v27 = vshll.u32 %v8790_v42, 16  ;;  %v4229_v53 = vsel %vm7564_vm2, %v8807_v3, %v8734_v29  ;;  %v6136_v29 = vld [vmem:[%s7492_s14 + $0x60] sm:$0xe]  ;;  %v9550_v54 = vld [vmem:[#allocation8_spill] sm:$0xff] }
 0x139   : > { %6788 = vmatmul.mubr.bf16.gmra.mrb[8].mxu0 %v8607_v34  ;;  %v8838_v34 = vrot.slane %v4244_v23, 5  ;;  %v4265_v38 = vshrl.u32 %v6084_v5, 16  ;;  %v6150_v30 = vrot.slane %v6134_v56, 9  ;;  %v4728_v6 = vrot.slane %v8427_v47, 5  ;;  %v7275_v28 = vld [vmem:[%s7492_s14 + $0xc] sm:$0xff]   ;;  %v9551_v31 = vld [vmem:[#allocation9_spill] sm:$0xff] }
 0x13a   : > { %6564 = vmatmul.mubr.bf16.gmra.mrb[24].mxu1 %v9549_v59  ;;  %6791 = vmatprep.mubr.bf16.mxu0 %v6112_v45  ;;  %v4268_v37 = vshll.u32 %v6084_v5, 16  ;;  %v4731_v8 = vrot.slane %v8475_v14, 5  ;;  %v6151_v55 = vrot.slane %v6135_v41, 9  ;;  %v4735_v11 = vrot.slane %v8439_v48, 5  ;;  %v7286_v7 = vld [vmem:[%s9494_s1 + $0x238] sm:$0xff]   ;;  %v9553_v3 = vld [vmem:[#allocation11_spill] sm:$0xff] }
 0x13b   : > { %6567 = vmatprep.mubr.bf16.mxu1 %v5728_v22  ;;  %6820 = vmatpush3.bf16.msra.mxu0 %v7277_v46  ;;  %v4239_v33 = vsel %vm7564_vm2, %v8827_v16, %v8829_v19  ;;  %v8861_v20 = vrot.slane %v4254_v15, 4  ;;  %v8865_v12 = vsel %vm7810_vm5, %v6150_v30, %v4728_v6  ;;  %v4730_v47 = vrot.slane %v4728_v6, 4  ;;  %v9554_v19 = vld [vmem:[#allocation12_spill] sm:$0xff]  ;;  %v8902_v41 = vld [vmem:[%s7492_s14 + $0xc8] sm:$0x1] }
 0x13c   : > { %6821 = vmatprep.subr.bf16.mxu0 %v7280_v17  ;;  %v4274_v46 = vshll.u32 %v8851_v2, 16  ;;  %v8871_v14 = vsel %vm7810_vm5, %v6151_v55, %v4735_v11  ;;  %v4737_v48 = vrot.slane %v4735_v11, 4  ;;  %v4738_v18 = vrot.slane %v9550_v54, 5  ;;  %v7276_v55 = vld [vmem:[%s7492_s14 + $0x18] sm:$0xff]   ;;  %v7278_v54 = vld [vmem:[%s7492_s14 + $0x24] sm:$0xff]  }
 0x13d   : > { %v8877_v60 = vsel %vm7810_vm5, %v4730_v47, %v4731_v8  ;;  %v6152_v4 = vrot.slane %v6136_v29, 9  ;;  %v4742_v61 = vrot.slane %v9551_v31, 5  ;;  %v4745_v45 = vrot.slane %v9552_v44, 5 }
 0x13e   : > { %v6182_v23 = vcombine.low %v8865_v12, %v8877_v60  ;;  %v8888_v35 = vsel %vm7810_vm5, %v4737_v48, %v4738_v18  ;;  %v6153_v22 = vrot.slane %v6137_v43, 9  ;;  %v4752_v15 = vrot.slane %v9554_v19, 5  ;;  %v9556_v43 = vld [vmem:[#allocation16_spill] sm:$0xff] }
 0x13f   : > { %6822 = vmatpush3.bf16.msra.mxu0 %v7280_v17  ;;  %v4749_v17 = vrot.slane %v9553_v3, 5  ;;  %v6183_v5 = vcombine.low %v8871_v14, %v8888_v35  ;;  %v8895_v56 = vsel %vm7810_vm5, %v6152_v4, %v4742_v61  ;;  %v4744_v16 = vrot.slane %v4742_v61, 4  ;;  %v9557_v4 = vld [vmem:[#allocation7_spill] sm:$0xff]  ;;  %v5843_v12 = vld [vmem:[%s7492_s14 + $0x90] sm:$0xf] }
 0x140   : > { %6823 = vmatprep.subr.bf16.mxu0 %v7283_v21  ;;  %v8904_v59 = vrot.slane %v4265_v38, 4  ;;  %v8917_v51 = vcombine.low %v4205_v62, %v4215_v49  ;;  %v4247_v13 = vor.u32 %v8838_v34, %v8836_v10  ;;  %v6138_v38 = vld [vmem:[%s7492_s14 + $0x78] sm:$0xe]  ;;  %v8929_v8 = vrot.slane %v4260_v27, 5  ;;  %v6087_v27 = vld [vmem:[%s7492_s14 + $0xcc] sm:$0xf] }
 0x141   : > { %6792 = vmatmul.mubr.bf16.gmra.mrb[12].mxu0 %v6113_v39  ;;  %v8906_v39 = vrot.slane %v4268_v37, 5  ;;  %v8910_v30 = vsel %vm7810_vm5, %v6153_v22, %v4749_v17  ;;  %v4751_v6 = vrot.slane %v4749_v17, 4  ;;  %v8927_v37 = vcombine.low %v4229_v53, %v4239_v33  ;;  %v5837_v62 = vld [vmem:[%s7492_s14 + $0x78] sm:$0xf]  ;;  %v7292_v60 = vld [vmem:[%s7492_s14 + $0xa8] sm:$0xff]  }
 0x142   : > { %6568 = vmatmul.mubr.bf16.gmra.mrb[28].mxu1 %v5729_v63  ;;  %6795 = vmatprep.mubr.bf16.mxu0 %v6114_v57  ;;  %v4278_v63 = vshrl.u32 %v8851_v2, 16  ;;  %v8924_v57 = vsel %vm7810_vm5, %v4744_v16, %v4745_v45  ;;  %v4257_v49 = vor.u32 %v8861_v20, %v8840_v0  ;;  %v8940_v10 = vrot.slane %v4274_v46, 5  ;;  %v9555_v33 = vld [vmem:[#allocation13_spill] sm:$0xff]  ;;  %v8954_v46 = vld [vmem:[%s7492_s14 + $0xd0] sm:$0xf]  ;;  %v9558_v16 = vld [vmem:[#allocation14_spill] sm:$0xff] }
 0x143   : > { %6587 = vmatprep.mubr.bf16.mxu1 %v7275_v28  ;;  %6824 = vmatpush3.bf16.msra.mxu0 %v7283_v21  ;;  %v6184_v32 = vcombine.low %v8895_v56, %v8924_v57  ;;  %v8935_v58 = vsel %vm7810_vm5, %v4751_v6, %v4752_v15  ;;  %v4284_v34 = vshll.u32 %v8902_v41, 16  ;;  %v6139_v21 = vld [vmem:[%s7492_s14 + $0x84] sm:$0xe]  ;;  %v4271_v11 = vor.u32 %v8906_v39, %v8904_v59  ;;  %v9559_v39 = vld [vmem:[#allocation17_spill] sm:$0xff]  ;;  %v7356_v14 = vld [vmem:[%s7492_s14 + $0x8c] sm:$0x1] }
 0x144   : > { %6825 = vmatprep.subr.bf16.mxu0 %v7286_v7  ;;  %v6185_v53 = vcombine.low %v8910_v30, %v8935_v58  ;;  %v6154_v29 = vrot.slane %v6138_v38, 9  ;;  %v4756_v47 = vrot.slane %v9555_v33, 5  ;;  %v4759_v48 = vrot.slane %v9556_v43, 5 }
 0x145   : > { %v4280_v20 = vrot.slane %v4278_v63, 4  ;;  %v2506_v18 = vshrl.u32 %v5837_v62, 16  ;;  %v2509_v28 = vshll.u32 %v5837_v62, 16  ;;  %v2528_v31 = vsel %vm7564_vm2, %v8739_v1, %v9557_v4 }
 0x146   : > { %v4289_v61 = vshrl.u32 %v6087_v27, 16  ;;  %v8962_v44 = vsel %vm7810_vm5, %v6154_v29, %v4756_v47  ;;  %v4758_v45 = vrot.slane %v4756_v47, 4  ;;  %v6155_v22 = vrot.slane %v6139_v21, 9  ;;  %v7336_v21 = vld [vmem:[%s9494_s1 + $0x108] sm:$0xff]  }
 0x147   : > { %6826 = vmatpush3.bf16.msra.mxu0 %v7286_v7  ;;  %v4292_v3 = vshll.u32 %v6087_v27, 16  ;;  %v2508_v17 = vrot.slane %v2506_v18, 4  ;;  %v2511_v7 = vrot.slane %v2509_v28, 5  ;;  %v4763_v19 = vrot.slane %v9558_v16, 5  ;;  %v6140_v27 = vld [vmem:[%s7492_s14 + $0x90] sm:$0xe] }
 0x148   : > { %v4298_v1 = vshll.u32 %v8954_v46, 16  ;;  %v4302_v15 = vshrl.u32 %v8954_v46, 16  ;;  %v8971_v59 = vsel %vm7810_vm5, %v4758_v45, %v4759_v48  ;;  %v4766_v6 = vrot.slane %v9559_v39, 5  ;;  %v7279_v18 = vld [vmem:[%s7492_s14 + $0x30] sm:$0xff]  }
 0x149   : > { %6796 = vmatmul.mubr.bf16.gmra.mrb[16].mxu0 %v8809_v9  ;;  %v9560_v9 = vld [vmem:[#allocation20_spill] sm:$0xff]  ;;  %v4281_v63 = vor.u32 %v4280_v20, %v8940_v10  ;;  %v2512_v38 = vor.u32 %v2511_v7, %v2508_v17  ;;  %v4765_v62 = vrot.slane %v4763_v19, 4  ;;  %v4258_v29 = vrot.slane %v4257_v49, 4  ;;  %v8992_v28 = vld [vmem:[%s7492_s14 + $0xd4] sm:$0x1]  ;;  %v9561_v17 = vld [vmem:[#allocation15_spill] sm:$0xff] }
 0x14a   : > { %6588 = vmatmul.mubr.bf16.vlgmr.msra.gmra.mrb[0].mxu1 %v7276_v55  ;;  %6799 = vmatprep.mubr.bf16.mxu0 %v8811_v50  ;;  %v6186_v50 = vcombine.low %v8962_v44, %v8971_v59  ;;  %v4248_v55 = vrot.slane %v4247_v13, 4  ;;  %v4286_v33 = vrot.slane %v4284_v34, 5  ;;  %v8984_v47 = vsel %vm7810_vm5, %v6155_v22, %v4763_v19  ;;  %v7281_v34 = vld [vmem:[%s7492_s14 + $0x3c] sm:$0xff]   ;;  %v7337_v16 = vld [vmem:[%s9494_s1 + $0x110] sm:$0xff]  }
 0x14b   : > { %6867 = vmatpush3.bf16.msra.mxu1 %v9560_v9  ;;  %6591 = vmatprep.mubr.bf16.mxu1 %v7278_v54  ;;  %v4291_v43 = vrot.slane %v4289_v61, 4  ;;  %v4294_v48 = vrot.slane %v4292_v3, 5  ;;  %v2513_v54 = vrot.slane %v2512_v38, 4  ;;  %v8988_v20 = vsel %vm7810_vm5, %v4765_v62, %v4766_v6  ;;  %v7338_v62 = vld [vmem:[%s7492_s14 + $0x1c] sm:$0xf] }
 0x14c   : > { %6860 = vmatprep.subr.bf16.mxu1 %v7336_v21  ;;  %v8994_v4 = vrot.slane %v4298_v1, 5  ;;  %v4304_v45 = vrot.slane %v4302_v15, 4  ;;  %v6187_v13 = vcombine.low %v8984_v47, %v8988_v20  ;;  %v6156_v49 = vrot.slane %v6140_v27, 9 }
 0x14d   : > { %v4272_v22 = vrot.slane %v4271_v11, 4  ;;  %v4282_v61 = vrot.slane %v4281_v63, 4  ;;  %v2518_v3 = vsel %vm7564_vm2, %v2513_v54, %v8140_v26  ;;  %v4770_v7 = vrot.slane %v9561_v17, 5  ;;  %v9562_v26 = vld [vmem:[#allocation19_spill] sm:$0xff]  ;;  %v7340_v17 = vld [vmem:[%s7492_s14 + $0x20] sm:$0x1] }
 0x14e   : > { %v4253_v19 = vsel %vm7564_vm2, %v4248_v55, %v8840_v0  ;;  %v4263_v11 = vsel %vm7564_vm2, %v4258_v29, %v8929_v8  ;;  %v9012_v1 = vcombine.low %v2518_v3, %v2528_v31  ;;  %v4773_v15 = vrot.slane %v9562_v26, 5  ;;  %v6130_v8 = vld [vmem:[%s7492_s14 + $0x18] sm:$0xe]  ;;  %v6141_v31 = vld [vmem:[%s7492_s14 + $0x9c] sm:$0xe]  ;;  %v7282_v54 = vld [vmem:[%s7492_s14 + $0x48] sm:$0xff]  }
 0x14f   : > { %6868 = vmatpush3.bf16.msra.mxu1 %v7336_v21  ;;  %v4295_v39 = vor.u32 %v4294_v48, %v4291_v43  ;;  %v4308_v6 = vshll.u32 %v8992_v28, 16  ;;  %v9019_v9 = vsel %vm7810_vm5, %v6156_v49, %v4770_v7  ;;  %v4772_v63 = vrot.slane %v4770_v7, 4  ;;  %v7339_v55 = vld [vmem:[%s9494_s1 + $0x118] sm:$0xff]   ;;  %v6142_v26 = vld [vmem:[%s7492_s14 + $0xa8] sm:$0xe] }
 0x150   : > { %6861 = vmatprep.subr.bf16.mxu1 %v7337_v16  ;;  %v4305_v0 = vor.u32 %v4304_v45, %v8994_v4  ;;  %v4287_v38 = vsel %vm7564_vm2, %v4282_v61, %v4286_v33  ;;  %v4700_v27 = vrot.slane %v7338_v62, 5  ;;  %v6119_v21 = vcombine.low %v4253_v19, %v4263_v11  ;;  %v9563_v49 = vld [vmem:[#allocation18_spill] sm:$0xff]  ;;  %v7284_v61 = vld [vmem:[%s7492_s14 + $0x54] sm:$0xff]  }
 0x151   : > { %6800 = vmatmul.mubr.bf16.gmra.mrb[20].mxu0 %v8917_v51  ;;  %v4277_v51 = vsel %vm7564_vm2, %v4272_v22, %v8940_v10  ;;  %v4296_v29 = vrot.slane %v4295_v39, 4  ;;  %v4310_v43 = vrot.slane %v4308_v6, 5  ;;  %v6146_v33 = vrot.slane %v6130_v8, 9  ;;  %v6131_v6 = vld [vmem:[%s7492_s14 + $0x24] sm:$0xe] }
 0x152   : > { %6592 = vmatmul.mubr.bf16.gmra.mrb[4].mxu1 %v7279_v18  ;;  %6803 = vmatprep.mubr.bf16.mxu0 %v8927_v37  ;;  %v9033_v37 = vsel %vm7810_vm5, %v4772_v63, %v4773_v15  ;;  %v6157_v48 = vrot.slane %v6141_v31, 9  ;;  %v6120_v18 = vcombine.low %v4277_v51, %v4287_v38  ;;  %v4306_v45 = vrot.slane %v4305_v0, 4  ;;  %v7342_v63 = vld [vmem:[%s7492_s14 + $0x28] sm:$0xf]  ;;  %v7343_v51 = vld [vmem:[%s7492_s14 + $0x34] sm:$0xf] }
 0x153   : > { %6595 = vmatprep.mubr.bf16.mxu1 %v7281_v34  ;;  %6869 = vmatpush3.bf16.msra.mxu1 %v7337_v16  ;;  %v6188_v10 = vcombine.low %v9019_v9, %v9033_v37  ;;  %v4777_v34 = vrot.slane %v9563_v49, 5  ;;  %v4780_v22 = vrot.slane %v8722_v40, 5  ;;  %v4702_v3 = vrot.slane %v4700_v27, 4  ;;  %v7341_v16 = vld [vmem:[%s9494_s1 + $0x120] sm:$0xff]  }
 0x154   : > { %6862 = vmatprep.subr.bf16.mxu1 %v7339_v55  ;;  %v4703_v7 = vrot.slane %v7340_v17, 5  ;;  %v4701_v40 = vsel %vm7810_vm5, %v6146_v33, %v4700_v27  ;;  %v4301_v15 = vsel %vm7564_vm2, %v4296_v29, %v8994_v4  ;;  %v4311_v39 = vsel %vm7564_vm2, %v4306_v45, %v4310_v43  ;;  %v6132_v27 = vld [vmem:[%s7492_s14 + $0x30] sm:$0xe]  ;;  %v7285_v45 = vld [vmem:[%s7492_s14 + $0x60] sm:$0xff]  }
 0x155   : > { %v9050_v19 = vsel %vm7810_vm5, %v6157_v48, %v4777_v34  ;;  %v4779_v11 = vrot.slane %v4777_v34, 4  ;;  %v4707_v0 = vrot.slane %v7342_v63, 5  ;;  %v4714_v38 = vrot.slane %v7343_v51, 5  ;;  %v7345_v48 = vld [vmem:[%s7492_s14 + $0x2c] sm:$0x1] }
 0x156   : > { %v4704_v31 = vsel %vm7810_vm5, %v4702_v3, %v4703_v7  ;;  %v6158_v62 = vrot.slane %v6142_v26, 9  ;;  %v6121_v43 = vcombine.low %v4301_v15, %v4311_v39  ;;  %v6147_v33 = vrot.slane %v6131_v6, 9  ;;  %v7287_v3 = vld [vmem:[%s7492_s14 + $0x6c] sm:$0xff]   ;;  %v6143_v26 = vld [vmem:[%s7492_s14 + $0xb4] sm:$0xe] }
 0x157   : > { %6870 = vmatpush3.bf16.msra.mxu1 %v7339_v55  ;;  %v9064_v8 = vsel %vm7810_vm5, %v4779_v11, %v4780_v22  ;;  %v9564_v55 = vld [vmem:[#allocation21_spill] sm:$0xff]  ;;  %v6178_v49 = vcombine.low %v4701_v40, %v4704_v31  ;;  %v4709_v34 = vrot.slane %v4707_v0, 4  ;;  %v6148_v17 = vrot.slane %v6132_v27, 9  ;;  %v6133_v15 = vld [vmem:[%s7492_s14 + $0x3c] sm:$0xe] }
 0x158   : > { %6863 = vmatprep.subr.bf16.mxu1 %v7341_v16  ;;  %v6189_v4 = vcombine.low %v9050_v19, %v9064_v8  ;;  %v4784_v29 = vrot.slane %v9564_v55, 5  ;;  %v4716_v7 = vrot.slane %v4714_v38, 4  ;;  %v7347_v39 = vld [vmem:[%s7492_s14 + $0x40] sm:$0xf]  ;;  %v4708_v63 = vsel %vm7810_vm5, %v6147_v33, %v4707_v0  ;;  %v7349_v33 = vld [vmem:[%s7492_s14 + $0x44] sm:$0x1] }
 0x159   : > { %6804 = vmatmul.mubr.bf16.gmra.mrb[24].mxu0 %v6119_v21  ;;  %v7344_v21 = vld [vmem:[%s9494_s1 + $0x128] sm:$0xff]   ;;  %v4721_v6 = vrot.slane %v7347_v39, 5  ;;  %v4791_v27 = vrot.slane %v8769_v25, 5  ;;  %v4715_v0 = vsel %vm7810_vm5, %v6148_v17, %v4714_v38  ;;  %v7350_v25 = vld [vmem:[%s9494_s1 + $0x138] sm:$0xff]   ;;  %v6144_v38 = vld [vmem:[%s7492_s14 + $0xc0] sm:$0xe] }
 0x15a   : > { %6596 = vmatmul.mubr.bf16.gmra.mrb[8].mxu1 %v7282_v54  ;;  %6807 = vmatprep.mubr.bf16.mxu0 %v6120_v18  ;;  %v4710_v54 = vrot.slane %v7345_v48, 5  ;;  %v4787_v18 = vrot.slane %v8757_v36, 5  ;;  %v9081_v22 = vsel %vm7810_vm5, %v6158_v62, %v4784_v29  ;;  %v7348_v36 = vld [vmem:[%s9494_s1 + $0x130] sm:$0xff]   ;;  %v6159_v62 = vrot.slane %v6143_v26, 9 }
 0x15b   : > { %6599 = vmatprep.mubr.bf16.mxu1 %v7284_v61  ;;  %6871 = vmatpush3.bf16.msra.mxu1 %v7341_v16  ;;  %v4786_v61 = vrot.slane %v4784_v29, 4  ;;  %v7346_v16 = vld [vmem:[%s7492_s14 + $0x38] sm:$0x1]  ;;  %v6149_v29 = vrot.slane %v6133_v15, 9  ;;  %v4724_v48 = vrot.slane %v7349_v33, 5  ;;  %v4798_v26 = vrot.slane %v8851_v2, 5 }
 0x15c   : > { %6864 = vmatprep.subr.bf16.mxu1 %v7344_v21  ;;  %v4717_v11 = vrot.slane %v7346_v16, 5  ;;  %v4711_v51 = vsel %vm7810_vm5, %v4709_v34, %v4710_v54  ;;  %v4793_v54 = vrot.slane %v4791_v27, 4  ;;  %v5834_v34 = vld [vmem:[%s7492_s14 + $0x6c] sm:$0xf]  ;;  %v7290_v33 = vld [vmem:[%s7492_s14 + $0x90] sm:$0xff]   ;;  %v2549_v35 = vshll.u32 %v7356_v14, 16 }
 0x15d   : > { %v9093_v40 = vsel %vm7810_vm5, %v4786_v61, %v4787_v18  ;;  %v6179_v18 = vcombine.low %v4708_v63, %v4711_v51  ;;  %v4722_v16 = vsel %vm7810_vm5, %v6149_v29, %v4721_v6  ;;  %v2482_v15 = vshrl.u32 %v5834_v34, 16  ;;  %v6145_v2 = vld [vmem:[%s7492_s14 + $0xcc] sm:$0xe] }
 0x15e   : > { %v6190_v31 = vcombine.low %v9081_v22, %v9093_v40  ;;  %v4718_v55 = vsel %vm7810_vm5, %v4716_v7, %v4717_v11  ;;  %v6160_v7 = vrot.slane %v6144_v38, 9  ;;  %v2485_v39 = vshll.u32 %v5834_v34, 16 }
 0x15f   : > { %6872 = vmatpush3.bf16.msra.mxu1 %v7344_v21  ;;  %v4794_v21 = vrot.slane %v8790_v42, 5  ;;  %v9113_v42 = vsel %vm7810_vm5, %v6159_v62, %v4791_v27  ;;  %v4801_v51 = vrot.slane %v8902_v41, 5  ;;  %v4800_v27 = vrot.slane %v4798_v26, 4 }
 0x160   : > { %6865 = vmatprep.subr.bf16.mxu1 %v7348_v36  ;;  %v2487_v41 = vrot.slane %v2485_v39, 5  ;;  %v4808_v38 = vrot.slane %v8992_v28, 5 }
 0x161   : > { %6808 = vmatmul.mubr.bf16.gmra.mrb[28].mxu0 %v6121_v43  ;;  %v4723_v43 = vrot.slane %v4721_v6, 4  ;;  %v9120_v61 = vsel %vm7810_vm5, %v4793_v54, %v4794_v21  ;;  %v9134_v6 = vsel %vm7810_vm5, %v6160_v7, %v4798_v26  ;;  %v4805_v54 = vrot.slane %v8954_v46, 5  ;;  %v7352_v7 = vld [vmem:[%s7492_s14 + $0x74] sm:$0x1] }
 0x162   : > { %6600 = vmatmul.mubr.bf16.gmra.mrb[12].mxu1 %v7285_v45  ;;  %6827 = vmatprep.mubr.bf16.mxu0 %v6178_v49  ;;  %v7288_v45 = vld [vmem:[%s7492_s14 + $0x78] sm:$0xff]   ;;  %v6180_v49 = vcombine.low %v4715_v0, %v4718_v55  ;;  %v6191_v17 = vcombine.low %v9113_v42, %v9120_v61  ;;  %v9139_v0 = vsel %vm7810_vm5, %v4800_v27, %v4801_v51  ;;  %v2484_v55 = vrot.slane %v2482_v15, 4  ;;  %v7353_v15 = vld [vmem:[%s7492_s14 + $0x88] sm:$0xf] }
 0x163   : > { %6603 = vmatprep.mubr.bf16.mxu1 %v7287_v3  ;;  %6873 = vmatpush3.bf16.msra.mxu1 %v7348_v36  ;;  %v7289_v3 = vld [vmem:[%s7492_s14 + $0x84] sm:$0xff]   ;;  %v4725_v11 = vsel %vm7810_vm5, %v4723_v43, %v4724_v48  ;;  %v7351_v36 = vld [vmem:[%s7492_s14 + $0x70] sm:$0xf]  ;;  %v6192_v43 = vcombine.low %v9134_v6, %v9139_v0  ;;  %v4807_v34 = vrot.slane %v4805_v54, 4  ;;  %v2539_v39 = vshll.u32 %v7353_v15, 16 }
 0x164   : > { %6866 = vmatprep.subr.bf16.mxu1 %v7350_v25  ;;  %v2491_v63 = vshll.u32 %v7351_v36, 16  ;;  %v2495_v62 = vshrl.u32 %v7351_v36, 16  ;;  %v6181_v21 = vcombine.low %v4722_v16, %v4725_v11  ;;  %v2501_v16 = vshll.u32 %v7352_v7, 16 }
 0x165   : > { %v9161_v26 = vsel %vm7810_vm5, %v4807_v34, %v4808_v38  ;;  %v2543_v36 = vshrl.u32 %v7353_v15, 16  ;;  %v7355_v34 = vld [vmem:[%s7492_s14 + $0xa0] sm:$0xf] }
 0x166   : > { %v9141_v29 = vrot.slane %v2491_v63, 5  ;;  %v2497_v48 = vrot.slane %v2495_v62, 4  ;;  %v2591_v7 = vshrl.u32 %v7355_v34, 16 }
 0x167   : > { %6874 = vmatpush3.bf16.msra.mxu1 %v7350_v25  ;;  %v6161_v25 = vrot.slane %v6145_v2, 9 }
 0x168   : > { %v2498_v46 = vor.u32 %v2497_v48, %v9141_v29  ;;  %v2557_v48 = vshll.u32 %v5843_v12, 16 }
 0x169   : > { %6828 = vmatmul.mubr.bf16.vlgmr.msra.gmra.mrb[0].mxu0 %v6179_v18  ;;  %v7291_v18 = vld [vmem:[%s7492_s14 + $0x9c] sm:$0xff]  }
 0x16a   : > { %6604 = vmatmul.mubr.bf16.gmra.mrb[16].mxu1 %v7288_v45  ;;  %6831 = vmatprep.mubr.bf16.mxu0 %v6180_v49  ;;  %v5840_v45 = vld [vmem:[%s7492_s14 + $0x84] sm:$0xf]  ;;  %v9152_v49 = vsel %vm7810_vm5, %v6161_v25, %v4805_v54  ;;  %v2499_v62 = vrot.slane %v2498_v46, 4  ;;  %v7354_v25 = vld [vmem:[%s7492_s14 + $0x94] sm:$0xf]  ;;  %v2559_v15 = vrot.slane %v2557_v48, 5 }
 0x16b   : > { %6607 = vmatprep.mubr.bf16.mxu1 %v7289_v3  ;;  %v2488_v3 = vor.u32 %v2487_v41, %v2484_v55  ;;  %v2530_v28 = vshrl.u32 %v5840_v45, 16  ;;  %v2533_v11 = vshll.u32 %v5840_v45, 16  ;;  %v6193_v63 = vcombine.low %v9152_v49, %v9161_v26 }
 0x16c   : > { %v9170_v55 = vrot.slane %v2539_v39, 5  ;;  %v2545_v41 = vrot.slane %v2543_v36, 4  ;;  %v2563_v54 = vshll.u32 %v7354_v25, 16  ;;  %v2567_v38 = vshrl.u32 %v7354_v25, 16  ;;  %v7358_v25 = vld [vmem:[%s7492_s14 + $0xa4] sm:$0x1] }
 0x16d   : > { %v2489_v51 = vrot.slane %v2488_v3, 4  ;;  %v2532_v27 = vrot.slane %v2530_v28, 4  ;;  %v2535_v2 = vrot.slane %v2533_v11, 5  ;;  %v2587_v3 = vshll.u32 %v7355_v34, 16  ;;  %v7359_v34 = vld [vmem:[%s7492_s14 + $0xac] sm:$0xf] }
 0x16e   : > { %v2546_v28 = vor.u32 %v2545_v41, %v9170_v55  ;;  %v9187_v56 = vrot.slane %v2563_v54, 5  ;;  %v2569_v57 = vrot.slane %v2567_v38, 4  ;;  %v2593_v36 = vrot.slane %v2591_v7, 4  ;;  %v5852_v38 = vld [vmem:[%s7492_s14 + $0xb4] sm:$0xf] }
 0x16f   : > { %v2597_v54 = vshll.u32 %v7358_v25, 16  ;;  %v2615_v30 = vshrl.u32 %v7359_v34, 16  ;;  %v2629_v14 = vshll.u32 %v5852_v38, 16 }
 0x170   : > { %v2570_v41 = vor.u32 %v2569_v57, %v9187_v56 }
 0x171   : > { %6832 = vmatmul.mubr.bf16.gmra.mrb[4].mxu0 %v6181_v21  ;;  %v5846_v21 = vld [vmem:[%s7492_s14 + $0x9c] sm:$0xf] }
 0x172   : > { %6608 = vmatmul.mubr.bf16.gmra.mrb[20].mxu1 %v7290_v33  ;;  %6835 = vmatprep.mubr.bf16.mxu0 %v6182_v23  ;;  %v2503_v23 = vrot.slane %v2501_v16, 5  ;;  %v2554_v33 = vshrl.u32 %v5843_v12, 16  ;;  %v2581_v45 = vshll.u32 %v5846_v21, 16  ;;  %v2494_v16 = vsel %vm7564_vm2, %v2489_v51, %v9141_v29  ;;  %v7294_v12 = vld [vmem:[%s7492_s14 + $0xc0] sm:$0xff]  }
 0x173   : > { %6611 = vmatprep.mubr.bf16.mxu1 %v7291_v18  ;;  %v2578_v18 = vshrl.u32 %v5846_v21, 16  ;;  %v9189_v29 = vrot.slane %v2587_v3, 5  ;;  %v2611_v3 = vshll.u32 %v7359_v34, 16 }
 0x174   : > { %v2504_v46 = vsel %vm7564_vm2, %v2499_v62, %v2503_v23  ;;  %v2556_v11 = vrot.slane %v2554_v33, 4  ;;  %v2583_v39 = vrot.slane %v2581_v45, 5  ;;  %v2551_v23 = vrot.slane %v2549_v35, 5  ;;  %v7360_v35 = vld [vmem:[%s7492_s14 + $0xb8] sm:$0xf] }
 0x175   : > { %v2547_v62 = vrot.slane %v2546_v28, 4  ;;  %v2594_v48 = vor.u32 %v2593_v36, %v9189_v29  ;;  %v2635_v44 = vshll.u32 %v7360_v35, 16  ;;  %v2639_v59 = vshrl.u32 %v7360_v35, 16 }
 0x177   : > { %v2595_v28 = vrot.slane %v2594_v48, 4 }
 0x179   : > { %6836 = vmatmul.mubr.bf16.gmra.mrb[8].mxu0 %v6183_v5  ;;  %v2536_v5 = vor.u32 %v2535_v2, %v2532_v27  ;;  %v2560_v27 = vor.u32 %v2559_v15, %v2556_v11  ;;  %v7357_v2 = vld [vmem:[%s7492_s14 + $0x98] sm:$0x1]  ;;  %v2599_v11 = vrot.slane %v2597_v54, 5 }
 0x17a   : > { %6612 = vmatmul.mubr.bf16.gmra.mrb[24].mxu1 %v7292_v60  ;;  %6839 = vmatprep.mubr.bf16.mxu0 %v6184_v32  ;;  %v2580_v32 = vrot.slane %v2578_v18, 4  ;;  %v5882_v60 = vcombine.low %v2494_v16, %v2504_v46  ;;  %v2573_v21 = vshll.u32 %v7357_v2, 16  ;;  %v2626_v46 = vshrl.u32 %v5852_v38, 16 }
 0x17b   : > { %6615 = vmatprep.mubr.bf16.mxu1 %v7293_v24  ;;  %v2537_v51 = vrot.slane %v2536_v5, 4  ;;  %v5849_v24 = vld [vmem:[%s7492_s14 + $0xa8] sm:$0xf]  ;;  %v2561_v7 = vrot.slane %v2560_v27, 4  ;;  %v2600_v47 = vsel %vm7564_vm2, %v2595_v28, %v2599_v11 }
 0x17c   : > { %v2584_v33 = vor.u32 %v2583_v39, %v2580_v32  ;;  %v2602_v18 = vshrl.u32 %v5849_v24, 16  ;;  %v2605_v45 = vshll.u32 %v5849_v24, 16  ;;  %v2575_v16 = vrot.slane %v2573_v21, 5 }
 0x17d   : > { %v2542_v58 = vsel %vm7564_vm2, %v2537_v51, %v9170_v55  ;;  %v2613_v32 = vrot.slane %v2611_v3, 5  ;;  %v2617_v39 = vrot.slane %v2615_v30, 4  ;;  %v2628_v36 = vrot.slane %v2626_v46, 4  ;;  %v5855_v51 = vld [vmem:[%s7492_s14 + $0xc0] sm:$0xf] }
 0x17e   : > { %v2585_v5 = vrot.slane %v2584_v33, 4  ;;  %v2604_v15 = vrot.slane %v2602_v18, 4  ;;  %v2607_v57 = vrot.slane %v2605_v45, 5  ;;  %v2650_v24 = vshrl.u32 %v5855_v51, 16  ;;  %v7362_v33 = vld [vmem:[%s7492_s14 + $0xc4] sm:$0xf] }
 0x17f   : > { %v2659_v48 = vshll.u32 %v7362_v33, 16 }
 0x180   : > { %v2590_v2 = vsel %vm7564_vm2, %v2585_v5, %v9189_v29  ;;  %v2608_v20 = vor.u32 %v2607_v57, %v2604_v15  ;;  %v2663_v29 = vshrl.u32 %v7362_v33, 16  ;;  %v2652_v34 = vrot.slane %v2650_v24, 4 }
 0x181   : > { %6840 = vmatmul.mubr.bf16.gmra.mrb[12].mxu0 %v6185_v53  ;;  %v2552_v53 = vsel %vm7564_vm2, %v2547_v62, %v2551_v23  ;;  %v2641_v23 = vrot.slane %v2639_v59, 4  ;;  %v2566_v62 = vsel %vm7564_vm2, %v2561_v7, %v9187_v56  ;;  %v7361_v56 = vld [vmem:[%s7492_s14 + $0xb0] sm:$0x1]  ;;  %v5886_v9 = vcombine.low %v2590_v2, %v2600_v47  ;;  %v7364_v59 = vld [vmem:[%s7492_s14 + $0xc8] sm:$0x1] }
 0x182   : > { %6616 = vmatmul.mubr.bf16.gmra.mrb[28].mxu1 %v7294_v12  ;;  %6843 = vmatprep.mubr.bf16.mxu0 %v6186_v50  ;;  %v2571_v50 = vrot.slane %v2570_v41, 4  ;;  %v5884_v55 = vcombine.low %v2542_v58, %v2552_v53  ;;  %v2631_v12 = vrot.slane %v2629_v14, 5  ;;  %v2621_v21 = vshll.u32 %v7361_v56, 16 }
 0x183   : > { %6651 = vmatprep.mubr.bf16.mxu1 %v5882_v60  ;;  %v2637_v60 = vrot.slane %v2635_v44, 5  ;;  %v2653_v41 = vshll.u32 %v5855_v51, 16  ;;  %v2609_v37 = vrot.slane %v2608_v20, 4  ;;  %v2661_v30 = vrot.slane %v2659_v48, 5 }
 0x184   : > { %v2576_v27 = vsel %vm7564_vm2, %v2571_v50, %v2575_v16  ;;  %v2632_v25 = vor.u32 %v2631_v12, %v2628_v36  ;;  %v2623_v45 = vrot.slane %v2621_v21, 5  ;;  %v2665_v58 = vrot.slane %v2663_v29, 4 }
 0x185   : > { %v2642_v54 = vor.u32 %v2641_v23, %v2637_v60  ;;  %v5885_v18 = vcombine.low %v2566_v62, %v2576_v27  ;;  %v2655_v3 = vrot.slane %v2653_v41, 5  ;;  %v2614_v46 = vsel %vm7564_vm2, %v2609_v37, %v2613_v32 }
 0x186   : > { %v2633_v53 = vrot.slane %v2632_v25, 4  ;;  %v2666_v44 = vor.u32 %v2665_v58, %v2661_v30  ;;  %v2669_v50 = vshll.u32 %v7364_v59, 16 }
 0x187   : > { %v2643_v7 = vrot.slane %v2642_v54, 4  ;;  %v2656_v35 = vor.u32 %v2655_v3, %v2652_v34 }
 0x188   : > { %v2638_v19 = vsel %vm7564_vm2, %v2633_v53, %v2637_v60  ;;  %v2671_v5 = vrot.slane %v2669_v50, 5 }
 0x189   : > { %6844 = vmatmul.mubr.bf16.gmra.mrb[16].mxu0 %v6187_v13  ;;  %v2618_v13 = vor.u32 %v2617_v39, %v2613_v32  ;;  %v2657_v40 = vrot.slane %v2656_v35, 4 }
 0x18a   : > { %6652 = vmatmul.mubr.bf16.vlgmr.msra.gmra.mrb[16].mxu1 %v9012_v1  ;;  %6847 = vmatprep.mubr.bf16.mxu0 %v6188_v10  ;;  %v7363_v1 = vld [vmem:[%s7492_s14 + $0xbc] sm:$0x1]  ;;  %s6202_s14 = sshll.u32 %s7387_s18, 8 }
 0x18b   : > { %6655 = vmatprep.mubr.bf16.mxu1 %v5884_v55  ;;  %v2645_v38 = vshll.u32 %v7363_v1, 16  ;;  %v2619_v10 = vrot.slane %v2618_v13, 4  ;;  %v2662_v28 = vsel %vm7564_vm2, %v2657_v40, %v2661_v30  ;;  %s9271_s13 = scalar_lea.vmem [#allocation6], %s6202_s14 }
 0x18d   : > { %v2647_v16 = vrot.slane %v2645_v38, 5  ;;  %v2624_v14 = vsel %vm7564_vm2, %v2619_v10, %v2623_v45 }
 0x18f   : > { %v2648_v8 = vsel %vm7564_vm2, %v2643_v7, %v2647_v16 }
 0x190   : > { %v5888_v22 = vcombine.low %v2638_v19, %v2648_v8 }
 0x191   : > { %6848 = vmatmul.mubr.bf16.gmra.mrb[20].mxu0 %v6189_v4  ;;  %v5887_v4 = vcombine.low %v2614_v46, %v2624_v14 }
 0x192   : > { %6656 = vmatmul.mubr.bf16.gmra.mrb[20].mxu1 %v5885_v18  ;;  %6851 = vmatprep.mubr.bf16.mxu0 %v6190_v31  ;;  %v2667_v31 = vrot.slane %v2666_v44, 4 }
 0x193   : > { %6659 = vmatprep.mubr.bf16.mxu1 %v5886_v9 }
 0x194   : > { %v2672_v11 = vsel %vm7564_vm2, %v2667_v31, %v2671_v5 }
 0x195   : > { %v5889_v15 = vcombine.low %v2662_v28, %v2672_v11 }
 0x199   : > { %6852 = vmatmul.mubr.bf16.gmra.mrb[24].mxu0 %v6191_v17 }
 0x19a   : > { %6660 = vmatmul.mubr.bf16.gmra.mrb[24].mxu1 %v5887_v4  ;;  %6855 = vmatprep.mubr.bf16.mxu0 %v6192_v43 }
 0x19b   : > { %6663 = vmatprep.mubr.bf16.mxu1 %v5888_v22 }
 0x1a1   : > { %6856 = vmatmul.mubr.bf16.gmra.mrb[28].mxu0 %v6193_v63 }
 0x1a2   : > { %6664 = vmatmul.mubr.bf16.gmra.mrb[28].mxu1 %v5889_v15 }
 0x21d   : > { %v6589_v42 = vpop.f32.mrb[0].mxu1 }
 0x21e   : > { %v2082_v61 = vpop.f32.mrb[1].mxu1 }
 0x21f   : > { %v6590_v17 = vpop.f32.mrb[2].mxu1 }
 0x220   : > { %v2085_v57 = vpop.f32.mrb[3].mxu1 }
 0x225   : > { %v6593_v6 = vpop.f32.mrb[4].mxu1 }
 0x226   : > { %v2098_v0 = vpop.f32.mrb[5].mxu1 }
 0x227   : > { %v6594_v43 = vpop.f32.mrb[6].mxu1 }
 0x228   : > { %v2101_v32 = vpop.f32.mrb[7].mxu1 }
 0x22d   : > { %v6597_v39 = vpop.f32.mrb[8].mxu1 }
 0x22e   : > { %v2114_v55 = vpop.f32.mrb[9].mxu1 }
 0x22f   : > { %v6598_v36 = vpop.f32.mrb[10].mxu1 }
 0x230   : > { %v9260_v52 = vpop.f32.mrb[11].mxu1 }
 0x235   : > { %v9262_v12 = vpop.f32.mrb[12].mxu1 }
 0x236   : > { %v9264_v60 = vpop.f32.mrb[13].mxu1 }
 0x237   : > { %v9266_v49 = vpop.f32.mrb[14].mxu1 }
 0x238   : > { %v9268_v26 = vpop.f32.mrb[15].mxu1 }
 0x23c   : > { %v6829_v63 = vpop.f32.mrb[0].mxu0 }
 0x23d   : > { %v6875_v23 = vadd.f32 %v6829_v63, %v6589_v42  ;;  %v4973_v51 = vpop.f32.mrb[1].mxu0 }
 0x23e   : > { %v6876_v62 = vadd.f32 %v4973_v51, %v2082_v61  ;;  %v6830_v27 = vpop.f32.mrb[2].mxu0 }
 0x23f   : > { %5248 = vst [vmem:[%s9271_s13 + $0x10] sm:$0xff] %v6875_v23  ;;  %v6877_v2 = vadd.f32 %v6830_v27, %v6590_v17  ;;  %v4976_v47 = vpop.f32.mrb[3].mxu0  ;;  %v5175_v24 = vmul.f32 %v6875_v23, %v6875_v23 }
 0x240   : > { %5246 = vst [vmem:[%s9271_s13] sm:$0xff] %v6876_v62  ;;  %v6878_v20 = vadd.f32 %v4976_v47, %v2085_v57  ;;  %v5173_v13 = vmul.f32 %v6876_v62, %v6876_v62 }
 0x241   : > { %5249 = vst [vmem:[%s9271_s13 + $0x18] sm:$0xff] %v6877_v2  ;;  %v5176_v54 = vmul.f32 %v6877_v2, %v6877_v2 }
 0x242   : > { %v5133_v56 = vadd.f32 %v6878_v20, %v6876_v62  ;;  %v5174_v21 = vmul.f32 %v6878_v20, %v6878_v20  ;;  %5247 = vst [vmem:[%s9271_s13 + $0x8] sm:$0xff] %v6878_v20 }
 0x244   : > { %v5134_v41 = vadd.f32 %v6875_v23, %v5133_v56  ;;  %v5205_v33 = vadd.f32 %v5174_v21, %v5173_v13  ;;  %v6833_v48 = vpop.f32.mrb[4].mxu0 }
 0x245   : > { %v6879_v29 = vadd.f32 %v6833_v48, %v6593_v6  ;;  %v4989_v25 = vpop.f32.mrb[5].mxu0 }
 0x246   : > { %v5206_v1 = vadd.f32 %v5205_v33, %v5175_v24  ;;  %v6880_v38 = vadd.f32 %v4989_v25, %v2098_v0  ;;  %v5135_v18 = vadd.f32 %v6877_v2, %v5134_v41  ;;  %v6834_v9 = vpop.f32.mrb[6].mxu0 }
 0x247   : > { %5252 = vst [vmem:[%s9271_s13 + $0x30] sm:$0xff] %v6879_v29  ;;  %v6881_v37 = vadd.f32 %v6834_v9, %v6594_v43  ;;  %v4992_v10 = vpop.f32.mrb[7].mxu0  ;;  %v5179_v16 = vmul.f32 %v6879_v29, %v6879_v29 }
 0x248   : > { %v5136_v45 = vadd.f32 %v6880_v38, %v5135_v18  ;;  %v5177_v34 = vmul.f32 %v6880_v38, %v6880_v38  ;;  %v5207_v3 = vadd.f32 %v5206_v1, %v5176_v54  ;;  %5250 = vst [vmem:[%s9271_s13 + $0x20] sm:$0xff] %v6880_v38  ;;  %v6882_v30 = vadd.f32 %v4992_v10, %v2101_v32 }
 0x249   : > { %5253 = vst [vmem:[%s9271_s13 + $0x38] sm:$0xff] %v6881_v37  ;;  %v5180_v50 = vmul.f32 %v6881_v37, %v6881_v37 }
 0x24a   : > { %v5208_v58 = vadd.f32 %v5207_v3, %v5177_v34  ;;  %v5137_v53 = vadd.f32 %v6882_v30, %v5136_v45  ;;  %v5178_v7 = vmul.f32 %v6882_v30, %v6882_v30  ;;  %5251 = vst [vmem:[%s9271_s13 + $0x28] sm:$0xff] %v6882_v30 }
 0x24c   : > { %v5138_v46 = vadd.f32 %v6879_v29, %v5137_v53  ;;  %v5209_v14 = vadd.f32 %v5208_v58, %v5178_v7  ;;  %v6837_v35 = vpop.f32.mrb[8].mxu0 }
 0x24d   : > { %v6883_v44 = vadd.f32 %v6837_v35, %v6597_v39  ;;  %v5005_v59 = vpop.f32.mrb[9].mxu0 }
 0x24e   : > { %v5210_v19 = vadd.f32 %v5209_v14, %v5179_v16  ;;  %v6884_v8 = vadd.f32 %v5005_v59, %v2114_v55  ;;  %v5139_v4 = vadd.f32 %v6881_v37, %v5138_v46  ;;  %v6838_v22 = vpop.f32.mrb[10].mxu0 }
 0x24f   : > { %5256 = vst [vmem:[%s9271_s13 + $0x50] sm:$0xff] %v6883_v44  ;;  %v6885_v40 = vadd.f32 %v6838_v22, %v6598_v36  ;;  %v5008_v31 = vpop.f32.mrb[11].mxu0  ;;  %v5183_v57 = vmul.f32 %v6883_v44, %v6883_v44 }
 0x250   : > { %v5140_v5 = vadd.f32 %v6884_v8, %v5139_v4  ;;  %v5181_v28 = vmul.f32 %v6884_v8, %v6884_v8  ;;  %v5211_v11 = vadd.f32 %v5210_v19, %v5180_v50  ;;  %5254 = vst [vmem:[%s9271_s13 + $0x40] sm:$0xff] %v6884_v8  ;;  %v6886_v15 = vadd.f32 %v5008_v31, %v9260_v52 }
 0x251   : > { %5257 = vst [vmem:[%s9271_s13 + $0x58] sm:$0xff] %v6885_v40  ;;  %v5184_v55 = vmul.f32 %v6885_v40, %v6885_v40 }
 0x252   : > { %v5212_v42 = vadd.f32 %v5211_v11, %v5181_v28  ;;  %v5141_v61 = vadd.f32 %v6886_v15, %v5140_v5  ;;  %v5182_v17 = vmul.f32 %v6886_v15, %v6886_v15  ;;  %5255 = vst [vmem:[%s9271_s13 + $0x48] sm:$0xff] %v6886_v15 }
 0x254   : > { %v5142_v6 = vadd.f32 %v6883_v44, %v5141_v61  ;;  %v5213_v0 = vadd.f32 %v5212_v42, %v5182_v17  ;;  %v6841_v43 = vpop.f32.mrb[12].mxu0 }
 0x255   : > { %v6887_v32 = vadd.f32 %v6841_v43, %v9262_v12  ;;  %v5021_v39 = vpop.f32.mrb[13].mxu0 }
 0x256   : > { %v5214_v36 = vadd.f32 %v5213_v0, %v5183_v57  ;;  %v6888_v52 = vadd.f32 %v5021_v39, %v9264_v60  ;;  %v5143_v63 = vadd.f32 %v6885_v40, %v5142_v6  ;;  %v6842_v23 = vpop.f32.mrb[14].mxu0 }
 0x257   : > { %5260 = vst [vmem:[%s9271_s13 + $0x70] sm:$0xff] %v6887_v32  ;;  %v6889_v51 = vadd.f32 %v6842_v23, %v9266_v49  ;;  %v5024_v62 = vpop.f32.mrb[15].mxu0  ;;  %v5187_v21 = vmul.f32 %v6887_v32, %v6887_v32 }
 0x258   : > { %v5144_v27 = vadd.f32 %v6888_v52, %v5143_v63  ;;  %v5185_v2 = vmul.f32 %v6888_v52, %v6888_v52  ;;  %v5215_v47 = vadd.f32 %v5214_v36, %v5184_v55  ;;  %5258 = vst [vmem:[%s9271_s13 + $0x60] sm:$0xff] %v6888_v52  ;;  %v6890_v20 = vadd.f32 %v5024_v62, %v9268_v26 }
 0x259   : > { %5261 = vst [vmem:[%s9271_s13 + $0x78] sm:$0xff] %v6889_v51  ;;  %v5188_v49 = vmul.f32 %v6889_v51, %v6889_v51 }
 0x25a   : > { %v5216_v12 = vadd.f32 %v5215_v47, %v5185_v2  ;;  %v5145_v13 = vadd.f32 %v6890_v20, %v5144_v27  ;;  %v5186_v56 = vmul.f32 %v6890_v20, %v6890_v20  ;;  %5259 = vst [vmem:[%s9271_s13 + $0x68] sm:$0xff] %v6890_v20 }
 0x25c   : > { %v5146_v60 = vadd.f32 %v6887_v32, %v5145_v13  ;;  %v5217_v24 = vadd.f32 %v5216_v12, %v5186_v56  ;;  %v6845_v41 = vpop.f32.mrb[16].mxu0 }
 0x25d   : > { %v6653_v33 = vpop.f32.mrb[16].mxu1  ;;  %v5037_v48 = vpop.f32.mrb[17].mxu0 }
 0x25e   : > { %v5218_v29 = vadd.f32 %v5217_v24, %v5187_v21  ;;  %v6891_v25 = vadd.f32 %v6845_v41, %v6653_v33  ;;  %v2900_v54 = vpop.f32.mrb[17].mxu1  ;;  %v5147_v1 = vadd.f32 %v6889_v51, %v5146_v60  ;;  %v6846_v26 = vpop.f32.mrb[18].mxu0 }
 0x25f   : > { %v6892_v38 = vadd.f32 %v5037_v48, %v2900_v54  ;;  %v6654_v18 = vpop.f32.mrb[18].mxu1  ;;  %v5040_v9 = vpop.f32.mrb[19].mxu0 }
 0x260   : > { %5264 = vst [vmem:[%s9271_s13 + $0x90] sm:$0xff] %v6891_v25  ;;  %v5219_v37 = vadd.f32 %v5218_v29, %v5188_v49  ;;  %v6893_v10 = vadd.f32 %v6846_v26, %v6654_v18  ;;  %v2903_v45 = vpop.f32.mrb[19].mxu1  ;;  %v5191_v46 = vmul.f32 %v6891_v25, %v6891_v25 }
 0x261   : > { %v5148_v34 = vadd.f32 %v6892_v38, %v5147_v1  ;;  %v5189_v3 = vmul.f32 %v6892_v38, %v6892_v38  ;;  %5262 = vst [vmem:[%s9271_s13 + $0x80] sm:$0xff] %v6892_v38  ;;  %v6894_v30 = vadd.f32 %v5040_v9, %v2903_v45 }
 0x262   : > { %5265 = vst [vmem:[%s9271_s13 + $0x98] sm:$0xff] %v6893_v10  ;;  %v5192_v4 = vmul.f32 %v6893_v10, %v6893_v10 }
 0x263   : > { %v5220_v58 = vadd.f32 %v5219_v37, %v5189_v3  ;;  %v5149_v53 = vadd.f32 %v6894_v30, %v5148_v34  ;;  %v5190_v7 = vmul.f32 %v6894_v30, %v6894_v30  ;;  %5263 = vst [vmem:[%s9271_s13 + $0x88] sm:$0xff] %v6894_v30 }
 0x264   : > { %v6849_v16 = vpop.f32.mrb[20].mxu0 }
 0x265   : > { %v5150_v14 = vadd.f32 %v6891_v25, %v5149_v53  ;;  %v5221_v35 = vadd.f32 %v5220_v58, %v5190_v7  ;;  %v6657_v44 = vpop.f32.mrb[20].mxu1  ;;  %v5053_v59 = vpop.f32.mrb[21].mxu0 }
 0x266   : > { %v6895_v50 = vadd.f32 %v6849_v16, %v6657_v44  ;;  %v2916_v19 = vpop.f32.mrb[21].mxu1  ;;  %v6850_v8 = vpop.f32.mrb[22].mxu0 }
 0x267   : > { %v5222_v22 = vadd.f32 %v5221_v35, %v5191_v46  ;;  %v6896_v40 = vadd.f32 %v5053_v59, %v2916_v19  ;;  %v5151_v31 = vadd.f32 %v6893_v10, %v5150_v14  ;;  %v6658_v5 = vpop.f32.mrb[22].mxu1  ;;  %v5056_v28 = vpop.f32.mrb[23].mxu0 }
 0x268   : > { %5268 = vst [vmem:[%s9271_s13 + $0xb0] sm:$0xff] %v6895_v50  ;;  %v6897_v11 = vadd.f32 %v6850_v8, %v6658_v5  ;;  %v2919_v15 = vpop.f32.mrb[23].mxu1  ;;  %v5195_v39 = vmul.f32 %v6895_v50, %v6895_v50 }
 0x269   : > { %v5152_v42 = vadd.f32 %v6896_v40, %v5151_v31  ;;  %v5193_v61 = vmul.f32 %v6896_v40, %v6896_v40  ;;  %v5223_v17 = vadd.f32 %v5222_v22, %v5192_v4  ;;  %5266 = vst [vmem:[%s9271_s13 + $0xa0] sm:$0xff] %v6896_v40  ;;  %v6898_v57 = vadd.f32 %v5056_v28, %v2919_v15 }
 0x26a   : > { %5269 = vst [vmem:[%s9271_s13 + $0xb8] sm:$0xff] %v6897_v11  ;;  %v5196_v27 = vmul.f32 %v6897_v11, %v6897_v11 }
 0x26b   : > { %v5224_v6 = vadd.f32 %v5223_v17, %v5193_v61  ;;  %v5153_v0 = vadd.f32 %v6898_v57, %v5152_v42  ;;  %v5194_v43 = vmul.f32 %v6898_v57, %v6898_v57  ;;  %5267 = vst [vmem:[%s9271_s13 + $0xa8] sm:$0xff] %v6898_v57 }
 0x26c   : > { %v6853_v32 = vpop.f32.mrb[24].mxu0 }
 0x26d   : > { %v5154_v55 = vadd.f32 %v6895_v50, %v5153_v0  ;;  %v5225_v36 = vadd.f32 %v5224_v6, %v5194_v43  ;;  %v6661_v52 = vpop.f32.mrb[24].mxu1  ;;  %v5069_v63 = vpop.f32.mrb[25].mxu0 }
 0x26e   : > { %v6899_v23 = vadd.f32 %v6853_v32, %v6661_v52  ;;  %v2932_v51 = vpop.f32.mrb[25].mxu1  ;;  %v6854_v62 = vpop.f32.mrb[26].mxu0  ;;  %v5132_v32 = vld [vmem:[#allocation2] sm:$0x1] }
 0x26f   : > { %v5226_v2 = vadd.f32 %v5225_v36, %v5195_v39  ;;  %v6900_v47 = vadd.f32 %v5069_v63, %v2932_v51  ;;  %v5155_v20 = vadd.f32 %v6897_v11, %v5154_v55  ;;  %v6662_v12 = vpop.f32.mrb[26].mxu1  ;;  %v5072_v13 = vpop.f32.mrb[27].mxu0  ;;  %v5172_v36 = vld [vmem:[#allocation3] sm:$0x1] }
 0x270   : > { %5272 = vst [vmem:[%s9271_s13 + $0xd0] sm:$0xff] %v6899_v23  ;;  %v6901_v56 = vadd.f32 %v6854_v62, %v6662_v12  ;;  %v2935_v21 = vpop.f32.mrb[27].mxu1  ;;  %v5199_v54 = vmul.f32 %v6899_v23, %v6899_v23 }
 0x271   : > { %v5156_v60 = vadd.f32 %v6900_v47, %v5155_v20  ;;  %v5197_v24 = vmul.f32 %v6900_v47, %v6900_v47  ;;  %v5227_v41 = vadd.f32 %v5226_v2, %v5196_v27  ;;  %5270 = vst [vmem:[%s9271_s13 + $0xc0] sm:$0xff] %v6900_v47  ;;  %v6902_v33 = vadd.f32 %v5072_v13, %v2935_v21 }
 0x272   : > { %5273 = vst [vmem:[%s9271_s13 + $0xd8] sm:$0xff] %v6901_v56  ;;  %v5200_v45 = vmul.f32 %v6901_v56, %v6901_v56 }
 0x273   : > { %v5228_v48 = vadd.f32 %v5227_v41, %v5197_v24  ;;  %v5157_v49 = vadd.f32 %v6902_v33, %v5156_v60  ;;  %v5198_v29 = vmul.f32 %v6902_v33, %v6902_v33  ;;  %5271 = vst [vmem:[%s9271_s13 + $0xc8] sm:$0xff] %v6902_v33 }
 0x274   : > { %v6857_v25 = vpop.f32.mrb[28].mxu0 }
 0x275   : > { %v5158_v1 = vadd.f32 %v6899_v23, %v5157_v49  ;;  %v5229_v26 = vadd.f32 %v5228_v48, %v5198_v29  ;;  %v6665_v38 = vpop.f32.mrb[28].mxu1  ;;  %v5085_v18 = vpop.f32.mrb[29].mxu0 }
 0x276   : > { %v6903_v9 = vadd.f32 %v6857_v25, %v6665_v38  ;;  %v2948_v37 = vpop.f32.mrb[29].mxu1  ;;  %v6858_v10 = vpop.f32.mrb[30].mxu0 }
 0x277   : > { %v5230_v34 = vadd.f32 %v5229_v26, %v5199_v54  ;;  %v6904_v3 = vadd.f32 %v5085_v18, %v2948_v37  ;;  %v5159_v30 = vadd.f32 %v6901_v56, %v5158_v1  ;;  %v6666_v58 = vpop.f32.mrb[30].mxu1  ;;  %v5088_v53 = vpop.f32.mrb[31].mxu0 }
 0x278   : > { %5276 = vst [vmem:[%s9271_s13 + $0xf0] sm:$0xff] %v6903_v9  ;;  %v6905_v7 = vadd.f32 %v6858_v10, %v6666_v58  ;;  %v2951_v16 = vpop.f32.mrb[31].mxu1  ;;  %v5203_v8 = vmul.f32 %v6903_v9, %v6903_v9 }
 0x279   : > { %v5160_v46 = vadd.f32 %v6904_v3, %v5159_v30  ;;  %v5201_v14 = vmul.f32 %v6904_v3, %v6904_v3  ;;  %v5231_v35 = vadd.f32 %v5230_v34, %v5200_v45  ;;  %5274 = vst [vmem:[%s9271_s13 + $0xe0] sm:$0xff] %v6904_v3  ;;  %v6906_v44 = vadd.f32 %v5088_v53, %v2951_v16 }
 0x27a   : > { %5277 = vst [vmem:[%s9271_s13 + $0xf8] sm:$0xff] %v6905_v7  ;;  %v5204_v40 = vmul.f32 %v6905_v7, %v6905_v7 }
 0x27b   : > { %v5232_v59 = vadd.f32 %v5231_v35, %v5201_v14  ;;  %v5161_v50 = vadd.f32 %v6906_v44, %v5160_v46  ;;  %v5202_v19 = vmul.f32 %v6906_v44, %v6906_v44  ;;  %5275 = vst [vmem:[%s9271_s13 + $0xe8] sm:$0xff] %v6906_v44 }
 0x27d   : > { %v5162_v4 = vadd.f32 %v6903_v9, %v5161_v50  ;;  %v5233_v22 = vadd.f32 %v5232_v59, %v5202_v19 }
 0x27f   : > { %v5163_v31 = vadd.f32 %v6905_v7, %v5162_v4  ;;  %v5234_v5 = vadd.f32 %v5233_v22, %v5203_v8 }
 0x281   : > { %v5164_v28 = vrot.slane %v5163_v31, 4  ;;  %v5235_v11 = vadd.f32 %v5234_v5, %v5204_v40 }
 0x283   : > { %v5165_v15 = vadd.f32 %v5164_v28, %v5163_v31  ;;  %v5236_v42 = vrot.slane %v5235_v11, 4 }
 0x285   : > { %v5166_v61 = vrot.slane %v5165_v15, 2  ;;  %v5237_v17 = vadd.f32 %v5236_v42, %v5235_v11 }
 0x287   : > { %v5167_v57 = vadd.f32 %v5166_v61, %v5165_v15  ;;  %v5238_v6 = vrot.slane %v5237_v17, 2 }
 0x289   : > { %v5168_v0 = vrot.slane %v5167_v57, 1  ;;  %v5239_v43 = vadd.f32 %v5238_v6, %v5237_v17 }
 0x28b   : > { %v5169_v39 = vadd.f32 %v5168_v0, %v5167_v57  ;;  %v5240_v55 = vrot.slane %v5239_v43, 1 }
 0x28d   : > { %v5170_v52 = vadd.f32 %v5169_v39, %v5132_v32  ;;  %v5241_v63 = vadd.f32 %v5240_v55, %v5239_v43 }
 0x28f   : > { %5171 = vst [vmem:[#allocation2] sm:$0x1] %v5170_v52  ;;  %v5242_v23 = vadd.f32 %v5241_v63, %v5172_v36 }
 0x291   : > { %5243 = vst [vmem:[#allocation3] sm:$0x1] %v5242_v23 }
 0x292 PF: > { %p6203_p13 = scmp.ne.s32.totalorder %s7391_s19, 1 }
 0x293   : > { %s6204_s15 = sshll.u32 (!%p6203_p13), %s7387_s18, 8  ;;  %v9312_v51 = vld [vmem:[#allocation4] ss:$0 sm:$0xff] (!%p6203_p13)  ;;  %v9314_v62 = vld [vmem:[#allocation5] ss:$0 sm:$0xff] (!%p6203_p13)  ;;  %v5426_v26 = vld [vmem:[%s7482_s8 + $0x8] sm:$0xff] (!%p6203_p13) }
 0x294   : > { %5280 = sbr.rel (%p6203_p13) target bundleno = 700 (0x2bc), region = 56  ;;  %s9316_s16 = scalar_lea.vmem (!%p6203_p13), [#allocation6], %s6204_s15  ;;  %v5425_v49 = vld [vmem:[%s7482_s8] sm:$0xff] (!%p6203_p13)  ;;  %v5427_v38 = vld [vmem:[%s7482_s8 + $0x10] sm:$0xff] (!%p6203_p13)  ;;  %v5428_v9 = vld [vmem:[%s7482_s8 + $0x18] sm:$0xff] (!%p6203_p13) }
 0x295   : > { %v5283_v27 = vld [vmem:[%s9316_s16] sm:$0xff] (!%p6203_p13)  ;;  %v5284_v2 = vld [vmem:[%s9316_s16 + $0x8] sm:$0xff] (!%p6203_p13)  ;;  %v5285_v47 = vld [vmem:[%s9316_s16 + $0x10] sm:$0xff] (!%p6203_p13) }
 0x296   : > { %v5322_v20 = vmul.f32 (!%p6203_p13), %v9312_v51, %v5283_v27  ;;  %v5323_v12 = vmul.f32 (!%p6203_p13), %v9312_v51, %v5284_v2  ;;  %v5324_v13 = vmul.f32 (!%p6203_p13), %v9312_v51, %v5285_v47  ;;  %v5286_v56 = vld [vmem:[%s9316_s16 + $0x18] sm:$0xff] (!%p6203_p13)  ;;  %v5287_v21 = vld [vmem:[%s9316_s16 + $0x20] sm:$0xff] (!%p6203_p13)  ;;  %v5288_v41 = vld [vmem:[%s9316_s16 + $0x28] sm:$0xff] (!%p6203_p13) }
 0x297   : > { %v5325_v60 = vmul.f32 (!%p6203_p13), %v9312_v51, %v5286_v56  ;;  %v5326_v24 = vmul.f32 (!%p6203_p13), %v9312_v51, %v5287_v21  ;;  %v5289_v33 = vld [vmem:[%s9316_s16 + $0x30] sm:$0xff] (!%p6203_p13)  ;;  %v5327_v54 = vmul.f32 (!%p6203_p13), %v9312_v51, %v5288_v41  ;;  %v5290_v1 = vld [vmem:[%s9316_s16 + $0x38] sm:$0xff] (!%p6203_p13)  ;;  %v5429_v58 = vld [vmem:[%s7482_s8 + $0x20] sm:$0xff] (!%p6203_p13) }
 0x298   : > { %v5361_v48 = vadd.f32 (!%p6203_p13), %v9314_v62, %v5322_v20  ;;  %v5362_v29 = vadd.f32 (!%p6203_p13), %v9314_v62, %v5323_v12  ;;  %v5363_v25 = vadd.f32 (!%p6203_p13), %v9314_v62, %v5324_v13  ;;  %v5328_v10 = vmul.f32 (!%p6203_p13), %v9312_v51, %v5289_v33  ;;  %v5430_v7 = vld [vmem:[%s7482_s8 + $0x28] sm:$0xff] (!%p6203_p13)  ;;  %v5431_v16 = vld [vmem:[%s7482_s8 + $0x30] sm:$0xff] (!%p6203_p13)  ;;  %v5291_v59 = vld [vmem:[%s9316_s16 + $0x40] sm:$0xff] (!%p6203_p13) }
 0x299   : > { %v5364_v18 = vadd.f32 (!%p6203_p13), %v9314_v62, %v5325_v60  ;;  %v5365_v37 = vadd.f32 (!%p6203_p13), %v9314_v62, %v5326_v24  ;;  %v5329_v45 = vmul.f32 (!%p6203_p13), %v9312_v51, %v5290_v1  ;;  %v5366_v53 = vadd.f32 (!%p6203_p13), %v9314_v62, %v5327_v54  ;;  %v5292_v50 = vld [vmem:[%s9316_s16 + $0x48] sm:$0xff] (!%p6203_p13)  ;;  %v5293_v19 = vld [vmem:[%s9316_s16 + $0x50] sm:$0xff] (!%p6203_p13)  ;;  %v5432_v31 = vld [vmem:[%s7482_s8 + $0x38] sm:$0xff] (!%p6203_p13) }
 0x29a   : > { %v5393_v34 = vmax.f32 (!%p6203_p13), %v5361_v48, 0.0  ;;  %v5394_v3 = vmax.f32 (!%p6203_p13), %v5362_v29, 0.0  ;;  %v5395_v30 = vmax.f32 (!%p6203_p13), %v5363_v25, 0.0  ;;  %v5367_v35 = vadd.f32 (!%p6203_p13), %v9314_v62, %v5328_v10  ;;  %v5294_v5 = vld [vmem:[%s9316_s16 + $0x58] sm:$0xff] (!%p6203_p13)  ;;  %v5295_v28 = vld [vmem:[%s9316_s16 + $0x60] sm:$0xff] (!%p6203_p13)  ;;  %v5296_v17 = vld [vmem:[%s9316_s16 + $0x68] sm:$0xff] (!%p6203_p13) }
 0x29b   : > { %v5396_v46 = vmax.f32 %v5364_v18, 0.0  ;;  %v5397_v14 = vmax.f32 %v5365_v37, 0.0  ;;  %v5368_v44 = vadd.f32 %v9314_v62, %v5329_v45  ;;  %v5398_v40 = vmax.f32 %v5366_v53, 0.0  ;;  %v5297_v32 = vld [vmem:[%s9316_s16 + $0x70] sm:$0xff]  ;;  %v5298_v39 = vld [vmem:[%s9316_s16 + $0x78] sm:$0xff]  ;;  %v5433_v27 = vld [vmem:[%s7482_s8 + $0x40] sm:$0xff] }
 0x29c   : > { %v5457_v8 = vadd.f32 %v5425_v49, %v5393_v34  ;;  %v5458_v4 = vadd.f32 %v5426_v26, %v5394_v3  ;;  %v5459_v22 = vadd.f32 %v5427_v38, %v5395_v30  ;;  %v5399_v42 = vmax.f32 %v5367_v35, 0.0  ;;  %v5434_v12 = vld [vmem:[%s7482_s8 + $0x48] sm:$0xff]  ;;  %v5435_v13 = vld [vmem:[%s7482_s8 + $0x50] sm:$0xff]  ;;  %v5436_v21 = vld [vmem:[%s7482_s8 + $0x58] sm:$0xff] }
 0x29d   : > { %v5460_v11 = vadd.f32 %v5428_v9, %v5396_v46  ;;  %v5461_v15 = vadd.f32 %v5429_v58, %v5397_v14  ;;  %v5400_v61 = vmax.f32 %v5368_v44, 0.0  ;;  %v5462_v57 = vadd.f32 %v5430_v7, %v5398_v40  ;;  %v5437_v29 = vld [vmem:[%s7482_s8 + $0x60] sm:$0xff]  ;;  %v5438_v54 = vld [vmem:[%s7482_s8 + $0x68] sm:$0xff]  ;;  %v5439_v1 = vld [vmem:[%s7482_s8 + $0x70] sm:$0xff] }
 0x29e   : > { %5489 = vst [vmem:[%s7487_s11] sm:$0xff] %v5457_v8  ;;  %5490 = vst [vmem:[%s7487_s11 + $0x8] sm:$0xff] %v5458_v4  ;;  %v5330_v6 = vmul.f32 %v9312_v51, %v5291_v59  ;;  %v5331_v0 = vmul.f32 %v9312_v51, %v5292_v50  ;;  %v5332_v43 = vmul.f32 %v9312_v51, %v5293_v19  ;;  %v5299_v37 = vld [vmem:[%s9316_s16 + $0x80] sm:$0xff]  ;;  %v5300_v10 = vld [vmem:[%s9316_s16 + $0x88] sm:$0xff] }
 0x29f   : > { %5491 = vst [vmem:[%s7487_s11 + $0x10] sm:$0xff] %v5459_v22  ;;  %5492 = vst [vmem:[%s7487_s11 + $0x18] sm:$0xff] %v5460_v11  ;;  %v5463_v55 = vadd.f32 %v5431_v16, %v5399_v42  ;;  %v5464_v36 = vadd.f32 %v5432_v31, %v5400_v61  ;;  %v5333_v52 = vmul.f32 %v9312_v51, %v5294_v5  ;;  %v5301_v45 = vld [vmem:[%s9316_s16 + $0x90] sm:$0xff]  ;;  %v5440_v53 = vld [vmem:[%s7482_s8 + $0x78] sm:$0xff] }
 0x2a0   : > { %5493 = vst [vmem:[%s7487_s11 + $0x20] sm:$0xff] %v5461_v15  ;;  %v5334_v63 = vmul.f32 %v9312_v51, %v5295_v28  ;;  %5494 = vst [vmem:[%s7487_s11 + $0x28] sm:$0xff] %v5462_v57  ;;  %v5369_v23 = vadd.f32 %v9314_v62, %v5330_v6  ;;  %v5370_v2 = vadd.f32 %v9314_v62, %v5331_v0  ;;  %v5302_v7 = vld [vmem:[%s9316_s16 + $0x98] sm:$0xff]  ;;  %v5303_v16 = vld [vmem:[%s9316_s16 + $0xa0] sm:$0xff] }
 0x2a1   : > { %v5371_v47 = vadd.f32 %v9314_v62, %v5332_v43  ;;  %v5335_v20 = vmul.f32 %v9312_v51, %v5296_v17  ;;  %5495 = vst [vmem:[%s7487_s11 + $0x30] sm:$0xff] %v5463_v55  ;;  %5496 = vst [vmem:[%s7487_s11 + $0x38] sm:$0xff] %v5464_v36  ;;  %v5372_v56 = vadd.f32 %v9314_v62, %v5333_v52  ;;  %v5304_v59 = vld [vmem:[%s9316_s16 + $0xa8] sm:$0xff]  ;;  %v5305_v22 = vld [vmem:[%s9316_s16 + $0xb0] sm:$0xff] }
 0x2a2   : > { %v5373_v60 = vadd.f32 %v9314_v62, %v5334_v63  ;;  %v5336_v24 = vmul.f32 %v9312_v51, %v5297_v32  ;;  %v5337_v41 = vmul.f32 %v9312_v51, %v5298_v39  ;;  %v5401_v33 = vmax.f32 %v5369_v23, 0.0  ;;  %v5306_v40 = vld [vmem:[%s9316_s16 + $0xb8] sm:$0xff]  ;;  %v5441_v42 = vld [vmem:[%s7482_s8 + $0x80] sm:$0xff]  ;;  %v5442_v6 = vld [vmem:[%s7482_s8 + $0x88] sm:$0xff] }
 0x2a3   : > { %v5402_v48 = vmax.f32 %v5370_v2, 0.0  ;;  %v5403_v49 = vmax.f32 %v5371_v47, 0.0  ;;  %v5374_v25 = vadd.f32 %v9314_v62, %v5335_v20  ;;  %v5404_v26 = vmax.f32 %v5372_v56, 0.0  ;;  %v5443_v0 = vld [vmem:[%s7482_s8 + $0x90] sm:$0xff]  ;;  %v5444_v32 = vld [vmem:[%s7482_s8 + $0x98] sm:$0xff]  ;;  %v5446_v47 = vld [vmem:[%s7482_s8 + $0xa8] sm:$0xff] }
 0x2a4   : > { %v5405_v38 = vmax.f32 %v5373_v60, 0.0  ;;  %v5375_v18 = vadd.f32 %v9314_v62, %v5336_v24  ;;  %v5376_v9 = vadd.f32 %v9314_v62, %v5337_v41  ;;  %v5465_v34 = vadd.f32 %v5433_v27, %v5401_v33  ;;  %v5445_v27 = vld [vmem:[%s7482_s8 + $0xa0] sm:$0xff]  ;;  %v5447_v20 = vld [vmem:[%s7482_s8 + $0xb0] sm:$0xff]  ;;  %v5308_v24 = vld [vmem:[%s9316_s16 + $0xc8] sm:$0xff] }
 0x2a5   : > { %v5466_v3 = vadd.f32 %v5434_v12, %v5402_v48  ;;  %v5467_v30 = vadd.f32 %v5435_v13, %v5403_v49  ;;  %v5406_v58 = vmax.f32 %v5374_v25, 0.0  ;;  %v5468_v46 = vadd.f32 %v5436_v21, %v5404_v26  ;;  %v5307_v60 = vld [vmem:[%s9316_s16 + $0xc0] sm:$0xff]  ;;  %v5309_v41 = vld [vmem:[%s9316_s16 + $0xd0] sm:$0xff]  ;;  %v5448_v25 = vld [vmem:[%s7482_s8 + $0xb8] sm:$0xff] }
 0x2a6   : > { %v5469_v14 = vadd.f32 %v5437_v29, %v5405_v38  ;;  %v5407_v35 = vmax.f32 %v5375_v18, 0.0  ;;  %v5408_v44 = vmax.f32 %v5376_v9, 0.0  ;;  %5497 = vst [vmem:[%s7487_s11 + $0x40] sm:$0xff] %v5465_v34  ;;  %v5338_v19 = vmul.f32 %v9312_v51, %v5299_v37  ;;  %v5312_v37 = vld [vmem:[%s9316_s16 + $0xe8] sm:$0xff] }
 0x2a7   : > { %5498 = vst [vmem:[%s7487_s11 + $0x48] sm:$0xff] %v5466_v3  ;;  %5499 = vst [vmem:[%s7487_s11 + $0x50] sm:$0xff] %v5467_v30  ;;  %v5470_v50 = vadd.f32 %v5438_v54, %v5406_v58  ;;  %v5339_v8 = vmul.f32 %v9312_v51, %v5300_v10  ;;  %v5340_v4 = vmul.f32 %v9312_v51, %v5301_v45  ;;  %v5310_v54 = vld [vmem:[%s9316_s16 + $0xd8] sm:$0xff]  ;;  %v5313_v30 = vld [vmem:[%s9316_s16 + $0xf0] sm:$0xff] }
 0x2a8   : > { %5500 = vst [vmem:[%s7487_s11 + $0x58] sm:$0xff] %v5468_v46  ;;  %5501 = vst [vmem:[%s7487_s11 + $0x60] sm:$0xff] %v5469_v14  ;;  %v5471_v31 = vadd.f32 %v5439_v1, %v5407_v35  ;;  %v5472_v5 = vadd.f32 %v5440_v53, %v5408_v44  ;;  %v5341_v28 = vmul.f32 %v9312_v51, %v5302_v7  ;;  %v5311_v1 = vld [vmem:[%s9316_s16 + $0xe0] sm:$0xff]  ;;  %v5314_v58 = vld [vmem:[%s9316_s16 + $0xf8] sm:$0xff] }
 0x2a9   : > { %v5342_v11 = vmul.f32 %v9312_v51, %v5303_v16  ;;  %5502 = vst [vmem:[%s7487_s11 + $0x68] sm:$0xff] %v5470_v50  ;;  %v5377_v15 = vadd.f32 %v9314_v62, %v5338_v19  ;;  %v5378_v61 = vadd.f32 %v9314_v62, %v5339_v8  ;;  %v5379_v17 = vadd.f32 %v9314_v62, %v5340_v4  ;;  %v5449_v50 = vld [vmem:[%s7482_s8 + $0xc0] sm:$0xff]  ;;  %v5450_v19 = vld [vmem:[%s7482_s8 + $0xc8] sm:$0xff]  ;;  %v5451_v8 = vld [vmem:[%s7482_s8 + $0xd0] sm:$0xff] }
 0x2aa   : > { %v5343_v57 = vmul.f32 %v9312_v51, %v5304_v59  ;;  %5503 = vst [vmem:[%s7487_s11 + $0x70] sm:$0xff] %v5471_v31  ;;  %5504 = vst [vmem:[%s7487_s11 + $0x78] sm:$0xff] %v5472_v5  ;;  %v5380_v43 = vadd.f32 %v9314_v62, %v5341_v28  ;;  %v5344_v55 = vmul.f32 %v9312_v51, %v5305_v22 }
 0x2ab   : > { %v5381_v39 = vadd.f32 %v9314_v62, %v5342_v11  ;;  %v5345_v36 = vmul.f32 %v9312_v51, %v5306_v40  ;;  %v5409_v52 = vmax.f32 %v5377_v15, 0.0  ;;  %v5410_v63 = vmax.f32 %v5378_v61, 0.0  ;;  %v5452_v15 = vld [vmem:[%s7482_s8 + $0xd8] sm:$0xff] }
 0x2ac   : > { %v5411_v23 = vmax.f32 %v5379_v17, 0.0  ;;  %v5382_v2 = vadd.f32 %v9314_v62, %v5343_v57  ;;  %v5412_v12 = vmax.f32 %v5380_v43, 0.0  ;;  %v5383_v56 = vadd.f32 %v9314_v62, %v5344_v55 }
 0x2ad   : > { %v5413_v13 = vmax.f32 %v5381_v39, 0.0  ;;  %v5384_v21 = vadd.f32 %v9314_v62, %v5345_v36  ;;  %v5473_v33 = vadd.f32 %v5441_v42, %v5409_v52  ;;  %v5474_v48 = vadd.f32 %v5442_v6, %v5410_v63  ;;  %v5453_v42 = vld [vmem:[%s7482_s8 + $0xe0] sm:$0xff]  ;;  %v5454_v6 = vld [vmem:[%s7482_s8 + $0xe8] sm:$0xff]  ;;  %v5455_v36 = vld [vmem:[%s7482_s8 + $0xf0] sm:$0xff] }
 0x2ae   : > { %v5475_v49 = vadd.f32 %v5443_v0, %v5411_v23  ;;  %v5414_v29 = vmax.f32 %v5382_v2, 0.0  ;;  %v5476_v26 = vadd.f32 %v5444_v32, %v5412_v12  ;;  %v5415_v18 = vmax.f32 %v5383_v56, 0.0  ;;  %v5456_v52 = vld [vmem:[%s7482_s8 + $0xf8] sm:$0xff] }
 0x2af   : > { %v5477_v38 = vadd.f32 %v5445_v27, %v5413_v13  ;;  %v5416_v9 = vmax.f32 %v5384_v21, 0.0  ;;  %5505 = vst [vmem:[%s7487_s11 + $0x80] sm:$0xff] %v5473_v33  ;;  %5506 = vst [vmem:[%s7487_s11 + $0x88] sm:$0xff] %v5474_v48  ;;  %v5346_v45 = vmul.f32 %v9312_v51, %v5307_v60  ;;  %v5347_v34 = vmul.f32 %v9312_v51, %v5308_v24 }
 0x2b0   : > { %5507 = vst [vmem:[%s7487_s11 + $0x90] sm:$0xff] %v5475_v49  ;;  %v5478_v10 = vadd.f32 %v5446_v47, %v5414_v29  ;;  %v5348_v3 = vmul.f32 %v9312_v51, %v5309_v41  ;;  %5508 = vst [vmem:[%s7487_s11 + $0x98] sm:$0xff] %v5476_v26  ;;  %v5479_v53 = vadd.f32 %v5447_v20, %v5415_v18 }
 0x2b1   : > { %5509 = vst [vmem:[%s7487_s11 + $0xa0] sm:$0xff] %v5477_v38  ;;  %v5480_v7 = vadd.f32 %v5448_v25, %v5416_v9  ;;  %v5349_v16 = vmul.f32 %v9312_v51, %v5310_v54  ;;  %v5350_v46 = vmul.f32 %v9312_v51, %v5311_v1  ;;  %v5385_v14 = vadd.f32 %v9314_v62, %v5346_v45 }
 0x2b2   : > { %5510 = vst [vmem:[%s7487_s11 + $0xa8] sm:$0xff] %v5478_v10  ;;  %v5386_v35 = vadd.f32 %v9314_v62, %v5347_v34  ;;  %v5387_v44 = vadd.f32 %v9314_v62, %v5348_v3  ;;  %v5351_v59 = vmul.f32 %v9312_v51, %v5312_v37  ;;  %5511 = vst [vmem:[%s7487_s11 + $0xb0] sm:$0xff] %v5479_v53 }
 0x2b3   : > { %5512 = vst [vmem:[%s7487_s11 + $0xb8] sm:$0xff] %v5480_v7  ;;  %v5388_v4 = vadd.f32 %v9314_v62, %v5349_v16  ;;  %v5389_v22 = vadd.f32 %v9314_v62, %v5350_v46  ;;  %v5352_v40 = vmul.f32 %v9312_v51, %v5313_v30  ;;  %v5353_v31 = vmul.f32 %v9312_v51, %v5314_v58 }
 0x2b4   : > { %v5417_v5 = vmax.f32 %v5385_v14, 0.0  ;;  %v5418_v28 = vmax.f32 %v5386_v35, 0.0  ;;  %v5419_v11 = vmax.f32 %v5387_v44, 0.0  ;;  %v5390_v61 = vadd.f32 %v9314_v62, %v5351_v59 }
 0x2b5   : > { %v5420_v17 = vmax.f32 %v5388_v4, 0.0  ;;  %v5421_v57 = vmax.f32 %v5389_v22, 0.0  ;;  %v5391_v0 = vadd.f32 %v9314_v62, %v5352_v40  ;;  %v5392_v51 = vadd.f32 %v9314_v62, %v5353_v31 }
 0x2b6   : > { %v5481_v43 = vadd.f32 %v5449_v50, %v5417_v5  ;;  %v5482_v32 = vadd.f32 %v5450_v19, %v5418_v28  ;;  %v5483_v39 = vadd.f32 %v5451_v8, %v5419_v11  ;;  %v5422_v55 = vmax.f32 %v5390_v61, 0.0 }
 0x2b7   : > { %v5484_v63 = vadd.f32 %v5452_v15, %v5420_v17  ;;  %v5485_v23 = vadd.f32 %v5453_v42, %v5421_v57  ;;  %v5423_v27 = vmax.f32 %v5391_v0, 0.0  ;;  %v5424_v2 = vmax.f32 %v5392_v51, 0.0 }
 0x2b8   : > { %5513 = vst [vmem:[%s7487_s11 + $0xc0] sm:$0xff] %v5481_v43  ;;  %5514 = vst [vmem:[%s7487_s11 + $0xc8] sm:$0xff] %v5482_v32  ;;  %v5486_v47 = vadd.f32 %v5454_v6, %v5422_v55 }
 0x2b9   : > { %5515 = vst [vmem:[%s7487_s11 + $0xd0] sm:$0xff] %v5483_v39  ;;  %5516 = vst [vmem:[%s7487_s11 + $0xd8] sm:$0xff] %v5484_v63  ;;  %v5487_v62 = vadd.f32 %v5455_v36, %v5423_v27  ;;  %v5488_v20 = vadd.f32 %v5456_v52, %v5424_v2 }
 0x2ba   : > { %5517 = vst [vmem:[%s7487_s11 + $0xe0] sm:$0xff] %v5485_v23  ;;  %5518 = vst [vmem:[%s7487_s11 + $0xe8] sm:$0xff] %v5486_v47 }
 0x2bb   : > { %5519 = vst [vmem:[%s7487_s11 + $0xf0] sm:$0xff] %v5487_v62  ;;  %5520 = vst [vmem:[%s7487_s11 + $0xf8] sm:$0xff] %v5488_v20 }
 0x2bc PF: > { %s15_s22 = sadd.s32 1, %s7403_s22   ;;  %s9565_s18 = smov %s7395_s20 }
 0x2bd   : > { %p12_p0 = scmp.ge.s32.totalorder %s15_s22, 6   ;;  %s9566_s19 = smov %s7399_s21 }
 0x2be   : > { %s9567_s20 = smov %s9570_s23  ;;  %s9568_s21 = smov %s9574_s24 }
 0x2bf   :  { %14 = sbr.rel (!%p12_p0) target bundleno = 3 (0x3), region = 101 }

// kernel: residual_block.2
= control target key start
LH: loop header
LB: loop body
LE: loop exit
PB: predicated region body
PF: predicated region fallthrough
CT: control target
= control target key end

     0   :  { %s7585_s15 = smov 0   ;;  %s7587_s16 = smov 0   ;;  %s9589_s0 = inlined_call_operand.vmem [shape: bf16[2,18,18,128], index: 0, kind: input, shape index: {}]   ;;  %s9590_s1 = inlined_call_operand.vmem [shape: bf16[9,128,128], index: 1, kind: input, shape index: {}]   ;;  %s9591_s2 = inlined_call_operand.vmem [shape: f32[1,128], index: 2, kind: input, shape index: {}]   ;;  %s9592_s3 = inlined_call_operand.vmem [shape: f32[1,128], index: 3, kind: input, shape index: {}]   ;;  %s9593_s4 = inlined_call_operand.vmem [shape: bf16[2,256,128], index: 4, kind: output, shape index: {}]  }
   0x1   :  { %s7589_s17 = smov 0   ;;  %s7591_s18 = smov 0  }
   0x2   :  { %s7593_s19 = smov 0  }
   0x3 LB: > { %s23_s20 = sadd.s32 1, %s7549_s17  ;;  %s26_s21 = sadd.s32 1, %s7553_s18  ;;  %s7557_s19 = sphi %s7593_s19, %s14_s19   ;;  %s7553_s18 = sphi %s7591_s18, %s9663_s18   ;;  %s7549_s17 = sphi %s7589_s17, %s9662_s17   ;;  %s7545_s16 = sphi %s7587_s16, %s9661_s16   ;;  %s7541_s15 = sphi %s7585_s15, %s9660_s15  }
   0x4   : > { %p24_p0 = scmp.ge.s32.totalorder %s23_s20, 2  ;;  %p5609_p1 = scmp.ge.s32.totalorder %s7557_s19, 1 }
   0x5   : > { %p188_p2 = scmp.lt.s32.totalorder %s7557_s19, 5 }
   0x6   : > { %s9665_s20 = smov (%p24_p0, %s23_s20), 0  ;;  %s9667_s21 = smov (!%p24_p0, %s26_s21), %s7553_s18 }
   0x7   : > { %p189_p3 = pnand %p5609_p1, %p188_p2  ;;  %p28_p4 = scmp.ge.s32.totalorder %s9667_s21, 2 }
   0x8   : > { %s218_s22 = ssub.s32 (!%p189_p3), 1, %s7545_s16  ;;  %s229_s23 = smul.u32 (!%p189_p3), %s7541_s15, %s7545_s16 }
   0x9   : > { %s9669_s21 = smov (%p28_p4, %s9667_s21), 0  ;;  %192 = sbr.rel (%p189_p3) target bundleno = 695 (0x2b7), region = 36 }
   0xa   : > { %s219_s24 = smul.u32 (!%p189_p3), %s7541_s15, %s218_s22  ;;  %p237_p5 = scmp.eq.s32.totalorder (!%p189_p3), %s7545_s16, 0 }
   0xb   : > { %p230_p6 = scmp.lt.s32.totalorder (!%p189_p3), %s229_s23, 1  ;;  %p238_p7 = scmp.eq.s32.totalorder (!%p189_p3), %s7541_s15, 0 }
   0xc   : > { %s220_s25 = sadd.s32 (!%p189_p3), %s7545_s16, %s219_s24 }
   0xd   : > { %p221_p8 = scmp.lt.s32.totalorder (!%p189_p3), %s220_s25, 1  ;;  %p239_p9 = pnand (!%p189_p3), %p238_p7, %p237_p5 }
  0x10   : > { %s9671_s23 = smov (!%p230_p6, %s229_s23), 1  ;;  %s9673_s25 = smov (!%p221_p8, %s220_s25), 1 }
  0x11   : > { %s6237_s26 = sshll.u32 %s9671_s23, 7  ;;  %s7285_s27 = smul.u32 216, %s9673_s25  ;;  %v7559_v0 = vmov (!%p239_p9), 0.0  }
  0x12   : > { %s7631_s30 = scalar_lea.vmem %s9593_s4, %s6237_s26  ;;  %242 = sbr.rel (%p239_p9) target bundleno = 25 (0x19), region = 40  ;;  %243 = vst [vmem:[#allocation2] sm:$0x1] (!%p239_p9), %v7559_v0  ;;  %244 = vst [vmem:[#allocation3] sm:$0x1] (!%p239_p9), %v7559_v0 }
  0x13   : > { %s7636_s7 = scalar_lea.vmem %s9589_s0, %s7285_s27 }
  0x19 PF: > { %p245_p10 = scmp.eq.s32.totalorder %s7545_s16, 1 }
  0x1b   : > { %p246_p11 = pnand %p245_p10, %p238_p7 }
  0x1c   : > { %v250_v1 = vld [vmem:[#allocation2] sm:$0x1] (!%p246_p11)  ;;  %v252_v2 = vld [vmem:[#allocation3] sm:$0x1] (!%p246_p11) }
  0x1d   : > { %249 = sbr.rel (%p246_p11) target bundleno = 57 (0x39), region = 44  ;;  %v251_v3 = vmul.f32 (!%p246_p11), 0.001953125, %v250_v1  ;;  %v253_v4 = vmul.f32 (!%p246_p11), 0.001953125, %v252_v2  ;;  %v259_v9 = vld [vmem:[%s9591_s2] sm:$0x1] (!%p246_p11) }
  0x1e   : > { %v262_v12 = vld [vmem:[%s9592_s3] sm:$0x1] (!%p246_p11) }
  0x1f   : > { %v254_v5 = vmul.f32 (!%p246_p11), %v251_v3, %v251_v3 }
  0x21   : > { %v255_v6 = vsub.f32 (!%p246_p11), %v253_v4, %v254_v5 }
  0x23   : > { %v256_v7 = vmax.f32 (!%p246_p11), %v255_v6, 0.0 }
  0x25   : > { %v257_v8 = vadd.f32 1e-05, %v256_v7 }
  0x27   : > { %7327 = vrsqrt.f32 %v257_v8 }
  0x31   : > { %v7328_v10 = vpop.eup %7327 }
  0x32   : > { %v260_v11 = vmul.f32 %v7328_v10, %v259_v9 }
  0x34   : > { %261 = vst [vmem:[#allocation4] sm:$0x1] %v260_v11  ;;  %v263_v13 = vmul.f32 %v260_v11, %v251_v3 }
  0x36   : > { %v264_v14 = vsub.f32 %v262_v12, %v263_v13 }
  0x38   : > { %265 = vst [vmem:[#allocation5] sm:$0x1] %v264_v14 }
  0x39 PF: > { %p5613_p12 = scmp.ne.s32.totalorder %s7545_s16, 0 }
  0x3b   : > { %268 = sbr.rel (%p5613_p12) target bundleno = 657 (0x291), region = 48 }
  0x42   : > { %v7329_v15 = vld [vmem:[%s9590_s1 + $0x40] sm:$0xff]   ;;  %v7331_v17 = vld [vmem:[%s9590_s1 + $0x48] sm:$0xff]   ;;  %v7333_v19 = vld [vmem:[%s9590_s1 + $0x50] sm:$0xff]   ;;  %vm333_vm0 = vsmask.f32 3328  ;;  %vm1363_vm3 = vcmask 1042432  }
  0x43   : > { %v7330_v16 = vld [vmem:[%s9590_s1 + $0x100] sm:$0xff]   ;;  %6581 = vmatprep.subr.bf16.mxu1 %v7329_v15  ;;  %v7332_v18 = vld [vmem:[%s9590_s1 + $0x108] sm:$0xff]   ;;  %v7334_v20 = vld [vmem:[%s9590_s1 + $0x110] sm:$0xff]   ;;  %vm334_vm1 = vsmask.f32 7440  ;;  %vm1364_vm4 = vcmask 1046532  }
  0x44   : > { %6773 = vmatprep.subr.bf16.mxu0 %v7330_v16  ;;  %6582 = vmatpush3.bf16.msra.mxu1 %v7329_v15  ;;  %v7335_v21 = vld [vmem:[%s9590_s1 + $0x58] sm:$0xff]   ;;  %v7337_v23 = vld [vmem:[%s9590_s1 + $0x60] sm:$0xff]   ;;  %v7339_v25 = vld [vmem:[%s9590_s1 + $0x68] sm:$0xff]  }
  0x45   : > { %6774 = vmatpush3.bf16.msra.mxu0 %v7330_v16  ;;  %6583 = vmatprep.subr.bf16.mxu1 %v7331_v17  ;;  %v7336_v22 = vld [vmem:[%s9590_s1 + $0x118] sm:$0xff]   ;;  %v7338_v24 = vld [vmem:[%s9590_s1 + $0x120] sm:$0xff]   ;;  %v7340_v26 = vld [vmem:[%s9590_s1 + $0x128] sm:$0xff]  }
  0x46   : > { %6775 = vmatprep.subr.bf16.mxu0 %v7332_v18  ;;  %v269_v27 = vld [vmem:[%s7636_s7] sm:$0xf]  ;;  %v270_v28 = vld [vmem:[%s7636_s7 + $0x4] sm:$0xf]  ;;  %v317_v29 = vld [vmem:[%s7636_s7 + $0x8] sm:$0x1] }
  0x47   : > { %v337_v30 = vshrl.u32 %v269_v27, 16  ;;  %v340_v31 = vshll.u32 %v269_v27, 16  ;;  %v346_v32 = vshll.u32 %v270_v28, 16  ;;  %v350_v33 = vshrl.u32 %v270_v28, 16  ;;  %v5806_v35 = vld [vmem:[%s7636_s7 + $0xc] sm:$0xf]  ;;  %vm7708_vm2 = vmor %vm333_vm0, %vm334_vm1 }
  0x48   : > { %6584 = vmatpush3.bf16.msra.mxu1 %v7331_v17  ;;  %v356_v34 = vshll.u32 %v317_v29, 16  ;;  %v7689_v38 = vld [vmem:[%s7636_s7 + $0x10] sm:$0xf]  ;;  %v7692_v39 = vld [vmem:[%s7636_s7 + $0x14] sm:$0x1]  ;;  %v2236_v44 = vshrl.u32 %v5806_v35, 16  ;;  %vm7954_vm5 = vmor %vm1363_vm3, %vm1364_vm4 }
  0x49   : > { %6776 = vmatpush3.bf16.msra.mxu0 %v7332_v18  ;;  %6585 = vmatprep.subr.bf16.mxu1 %v7333_v19  ;;  %v339_v36 = vrot.slane %v337_v30, 4  ;;  %v342_v37 = vrot.slane %v340_v31, 5  ;;  %v7341_v40 = vld [vmem:[%s9590_s1 + $0x70] sm:$0xff]   ;;  %v348_v41 = vrot.slane %v346_v32, 5  ;;  %v352_v42 = vrot.slane %v350_v33, 4  ;;  %v7343_v51 = vld [vmem:[%s9590_s1 + $0x78] sm:$0xff]  }
  0x4a   : > { %6777 = vmatprep.subr.bf16.mxu0 %v7334_v20  ;;  %v358_v43 = vrot.slane %v356_v34, 5  ;;  %v7342_v45 = vld [vmem:[%s9590_s1 + $0x130] sm:$0xff]   ;;  %v2239_v47 = vshll.u32 %v5806_v35, 16  ;;  %v2245_v48 = vshll.u32 %v7689_v38, 16  ;;  %v2249_v49 = vshrl.u32 %v7689_v38, 16  ;;  %v7344_v2 = vld [vmem:[%s9590_s1 + $0x138] sm:$0xff]  }
  0x4b   : > { %v343_v46 = vor.u32 %v342_v37, %v339_v36  ;;  %v271_v50 = vld [vmem:[%s7636_s7 + $0xc] sm:$0xf]  ;;  %v353_v53 = vor.u32 %v352_v42, %v348_v41  ;;  %v2238_v54 = vrot.slane %v2236_v44, 4  ;;  %v2255_v55 = vshll.u32 %v7692_v39, 16  ;;  %v272_v57 = vld [vmem:[%s7636_s7 + $0x10] sm:$0xf] }
  0x4c   : > { %6586 = vmatpush3.bf16.msra.mxu1 %v7333_v19  ;;  %v3010_v56 = vrot.slane %v7692_v39, 5  ;;  %v2241_v59 = vrot.slane %v2239_v47, 5  ;;  %v2247_v60 = vrot.slane %v2245_v48, 5  ;;  %v2251_v61 = vrot.slane %v2249_v49, 4  ;;  %v318_v6 = vld [vmem:[%s7636_s7 + $0x14] sm:$0x1] }
  0x4d   : > { %6778 = vmatpush3.bf16.msra.mxu0 %v7334_v20  ;;  %6587 = vmatprep.subr.bf16.mxu1 %v7335_v21  ;;  %v344_v58 = vrot.slane %v343_v46, 4  ;;  %v354_v62 = vrot.slane %v353_v53, 4  ;;  %v2257_v63 = vrot.slane %v2255_v55, 5  ;;  %v361_v0 = vshrl.u32 %v271_v50, 16  ;;  %v5809_v8 = vld [vmem:[%s7636_s7 + $0x18] sm:$0xf] }
  0x4e   : > { %6779 = vmatprep.subr.bf16.mxu0 %v7336_v22  ;;  %v364_v1 = vshll.u32 %v271_v50, 16  ;;  %v2242_v4 = vor.u32 %v2241_v59, %v2238_v54  ;;  %v2252_v5 = vor.u32 %v2251_v61, %v2247_v60  ;;  %v370_v7 = vshll.u32 %v272_v57, 16  ;;  %v7725_v13 = vld [vmem:[%s7636_s7 + $0x1c] sm:$0xf]  ;;  %v7345_v18 = vld [vmem:[%s9590_s1] sm:$0xff]   ;;  %v7348_v61 = vld [vmem:[%s9590_s1 + $0x8] sm:$0xff]  }
  0x4f   : > { %v349_v3 = vsel %vm7708_vm2, %v344_v58, %v348_v41  ;;  %v359_v9 = vsel %vm7708_vm2, %v354_v62, %v358_v43  ;;  %v363_v10 = vrot.slane %v361_v0, 4  ;;  %v374_v12 = vshrl.u32 %v272_v57, 16  ;;  %v7733_v19 = vld [vmem:[%s9590_s1 + $0x140] sm:$0xff]   ;;  %v273_v36 = vld [vmem:[%s7636_s7 + $0x18] sm:$0xf] }
  0x50   : > { %6588 = vmatpush3.bf16.msra.mxu1 %v7335_v21  ;;  %v366_v11 = vrot.slane %v364_v1, 5  ;;  %v5630_v14 = vcombine.low %v349_v3, %v359_v9  ;;  %v2243_v15 = vrot.slane %v2242_v4, 4  ;;  %v2253_v16 = vrot.slane %v2252_v5, 4  ;;  %v274_v43 = vld [vmem:[%s7636_s7 + $0x1c] sm:$0xf] }
  0x51   : > { %6780 = vmatpush3.bf16.msra.mxu0 %v7336_v22  ;;  %6589 = vmatprep.subr.bf16.mxu1 %v7337_v23  ;;  %v372_v17 = vrot.slane %v370_v7, 5  ;;  %v376_v21 = vrot.slane %v374_v12, 4  ;;  %v380_v22 = vshll.u32 %v318_v6, 16  ;;  %v2263_v27 = vshll.u32 %v5809_v8, 16  ;;  %v319_v48 = vld [vmem:[%s7636_s7 + $0x20] sm:$0x1] }
  0x52   : > { %6781 = vmatprep.subr.bf16.mxu0 %v7338_v24  ;;  %v367_v20 = vor.u32 %v366_v11, %v363_v10  ;;  %6597 = vmatprep.mubr.bf16.mxu1 %v5630_v14  ;;  %v2269_v34 = vshll.u32 %v7725_v13, 16  ;;  %v2273_v35 = vshrl.u32 %v7725_v13, 16  ;;  %v3014_v42 = vrot.slane %v7725_v13, 5  ;;  %v5812_v54 = vld [vmem:[%s7636_s7 + $0x24] sm:$0xf]  ;;  %v7347_v14 = vld [vmem:[%s9590_s1 + $0x148] sm:$0xff]  }
  0x53   : > { %v377_v30 = vor.u32 %v376_v21, %v372_v17  ;;  %v382_v31 = vrot.slane %v380_v22, 5  ;;  %v2265_v33 = vrot.slane %v2263_v27, 5  ;;  %v385_v53 = vshrl.u32 %v273_v36, 16  ;;  %v275_v3 = vld [vmem:[%s7636_s7 + $0x24] sm:$0xf] }
  0x54   : > { %6590 = vmatpush3.bf16.msra.mxu1 %v7337_v23  ;;  %v7736_v23 = vld [vmem:[%s7636_s7 + $0x20] sm:$0x1]  ;;  %v368_v29 = vrot.slane %v367_v20, 4  ;;  %v2275_v46 = vrot.slane %v2273_v35, 4  ;;  %v388_v59 = vshll.u32 %v273_v36, 16  ;;  %v398_v0 = vshrl.u32 %v274_v43, 16 }
  0x55   : > { %6782 = vmatpush3.bf16.msra.mxu0 %v7338_v24  ;;  %6591 = vmatprep.subr.bf16.mxu1 %v7339_v25  ;;  %v2248_v24 = vsel %vm7708_vm2, %v2243_v15, %v2247_v60  ;;  %v2279_v41 = vshll.u32 %v7736_v23, 16  ;;  %v3017_v47 = vrot.slane %v7736_v23, 5  ;;  %v7761_v60 = vld [vmem:[%s7636_s7 + $0x28] sm:$0xf]  ;;  %v387_v62 = vrot.slane %v385_v53, 4 }
  0x56   : > { %6783 = vmatprep.subr.bf16.mxu0 %v7340_v26  ;;  %v373_v37 = vsel %vm7708_vm2, %v368_v29, %v372_v17  ;;  %v404_v1 = vshll.u32 %v319_v48, 16  ;;  %v390_v6 = vrot.slane %v388_v59, 5  ;;  %v2284_v7 = vshrl.u32 %v5812_v54, 16  ;;  %v276_v20 = vld [vmem:[%s7636_s7 + $0x28] sm:$0xf] }
  0x57   : > { %v2281_v50 = vrot.slane %v2279_v41, 5  ;;  %v400_v9 = vrot.slane %v398_v0, 4  ;;  %v2287_v11 = vshll.u32 %v5812_v54, 16  ;;  %v2293_v17 = vshll.u32 %v7761_v60, 16  ;;  %v7792_v48 = vld [vmem:[%s7636_s7 + $0x34] sm:$0xf] }
  0x58   : > { %6592 = vmatpush3.bf16.msra.mxu1 %v7339_v25  ;;  %v2258_v25 = vsel %vm7708_vm2, %v2253_v16, %v2257_v63  ;;  %v394_v63 = vshll.u32 %v274_v43, 16  ;;  %v406_v10 = vrot.slane %v404_v1, 5  ;;  %v391_v15 = vor.u32 %v390_v6, %v387_v62 }
  0x59   : > { %6784 = vmatpush3.bf16.msra.mxu0 %v7340_v26  ;;  %6593 = vmatprep.subr.bf16.mxu1 %v7341_v40  ;;  %v2260_v26 = vshrl.u32 %v5809_v8, 16  ;;  %v5870_v28 = vcombine.low %v2248_v24, %v2258_v25  ;;  %v2286_v16 = vrot.slane %v2284_v7, 4  ;;  %v2289_v24 = vrot.slane %v2287_v11, 5  ;;  %v7357_v11 = vld [vmem:[%s9590_s1 + $0x20] sm:$0xff]  }
  0x5a   : > { %6785 = vmatprep.subr.bf16.mxu0 %v7342_v45  ;;  %v396_v8 = vrot.slane %v394_v63, 5  ;;  %v2297_v25 = vshrl.u32 %v7761_v60, 16  ;;  %v392_v27 = vrot.slane %v391_v15, 4  ;;  %v412_v35 = vshll.u32 %v275_v3, 16  ;;  %v7350_v63 = vld [vmem:[%s9590_s1 + $0x158] sm:$0xff]  }
  0x5b   : > { %v2262_v32 = vrot.slane %v2260_v26, 4  ;;  %6789 = vmatprep.mubr.bf16.mxu0 %v5870_v28  ;;  %v320_v26 = vld [vmem:[%s7636_s7 + $0x2c] sm:$0x1]  ;;  %v2295_v28 = vrot.slane %v2293_v17, 5  ;;  %v418_v41 = vshll.u32 %v276_v20, 16  ;;  %v422_v54 = vshrl.u32 %v276_v20, 16 }
  0x5c   : > { %6594 = vmatpush3.bf16.msra.mxu1 %v7341_v40  ;;  %v378_v40 = vrot.slane %v377_v30, 4  ;;  %v401_v22 = vor.u32 %v400_v9, %v396_v8  ;;  %v409_v30 = vshrl.u32 %v275_v3, 16  ;;  %v397_v36 = vsel %vm7708_vm2, %v392_v27, %v396_v8  ;;  %v321_v17 = vld [vmem:[%s7636_s7 + $0x38] sm:$0x1] }
  0x5d   : > { %6786 = vmatpush3.bf16.msra.mxu0 %v7342_v45  ;;  %6595 = vmatprep.subr.bf16.mxu1 %v7343_v51  ;;  %v2266_v44 = vor.u32 %v2265_v33, %v2262_v32  ;;  %v2271_v45 = vrot.slane %v2269_v34, 5  ;;  %v2290_v33 = vor.u32 %v2289_v24, %v2286_v16  ;;  %v2299_v34 = vrot.slane %v2297_v25, 4  ;;  %v5818_v24 = vld [vmem:[%s7636_s7 + $0x3c] sm:$0xf] }
  0x5e   : > { %6787 = vmatprep.subr.bf16.mxu0 %v7344_v2  ;;  %v383_v49 = vsel %vm7708_vm2, %v378_v40, %v382_v31  ;;  %v5815_v31 = vld [vmem:[%s7636_s7 + $0x30] sm:$0xf]  ;;  %v402_v32 = vrot.slane %v401_v22, 4  ;;  %v411_v40 = vrot.slane %v409_v30, 4  ;;  %v420_v53 = vrot.slane %v418_v41, 5 }
  0x5f   : > { %v5631_v55 = vcombine.low %v373_v37, %v383_v49  ;;  %v2267_v57 = vrot.slane %v2266_v44, 4  ;;  %v2276_v58 = vor.u32 %v2275_v46, %v2271_v45  ;;  %v2291_v44 = vrot.slane %v2290_v33, 4  ;;  %v7354_v49 = vld [vmem:[%s9590_s1 + $0x18] sm:$0xff]  }
  0x60   : > { %6596 = vmatpush3.bf16.msra.mxu1 %v7343_v51  ;;  %v7757_v51 = vrot.slane %v3014_v42, 4  ;;  %v407_v43 = vsel %vm7708_vm2, %v402_v32, %v406_v10  ;;  %v414_v46 = vrot.slane %v412_v35, 5  ;;  %v2308_v62 = vshrl.u32 %v5815_v31, 16  ;;  %v278_v10 = vld [vmem:[%s7636_s7 + $0x34] sm:$0xf]  ;;  %v7352_v35 = vld [vmem:[%s9590_s1 + $0x160] sm:$0xff]  }
  0x61   : > { %6788 = vmatpush3.bf16.msra.mxu0 %v7344_v2  ;;  %6629 = vmatprep.subr.bf16.mxu1 %v7345_v18  ;;  %v7767_v2 = vld [vmem:[%s7636_s7 + $0x2c] sm:$0x1]  ;;  %v2272_v4 = vsel %vm7708_vm2, %v2267_v57, %v2271_v45  ;;  %v2277_v5 = vrot.slane %v2276_v58, 4  ;;  %v2300_v45 = vor.u32 %v2299_v34, %v2295_v28  ;;  %v2296_v57 = vsel %vm7708_vm2, %v2291_v44, %v2295_v28  ;;  %v7826_v34 = vld [vmem:[%s7636_s7 + $0x40] sm:$0xf] }
  0x62   : > { %6821 = vmatprep.subr.bf16.mxu0 %v7733_v19  ;;  %v2303_v29 = vshll.u32 %v7767_v2, 16  ;;  %v415_v59 = vor.u32 %v414_v46, %v411_v40  ;;  %v424_v0 = vrot.slane %v422_v54, 4  ;;  %v2311_v3 = vshll.u32 %v5815_v31, 16 }
  0x63   : > { %6598 = vmatmul.mubr.bf16.vlgmr.msra.gmra.mrb[0].mxu1 %v5631_v55  ;;  %v2282_v12 = vsel %vm7708_vm2, %v2277_v5, %v2281_v50  ;;  %v5632_v50 = vcombine.low %v397_v36, %v407_v43  ;;  %v428_v55 = vshll.u32 %v320_v26, 16  ;;  %v2301_v58 = vrot.slane %v2300_v45, 4  ;;  %v277_v5 = vld [vmem:[%s7636_s7 + $0x30] sm:$0xf]  ;;  %v7834_v43 = vld [vmem:[%s7636_s7 + $0x44] sm:$0x1] }
  0x64   : > { %6630 = vmatpush3.bf16.msra.mxu1 %v7345_v18  ;;  %v7351_v18 = vld [vmem:[%s9590_s1 + $0x10] sm:$0xff]   ;;  %v5871_v21 = vcombine.low %v2272_v4, %v2282_v12  ;;  %v2305_v37 = vrot.slane %v2303_v29, 5  ;;  %v2317_v4 = vshll.u32 %v7792_v48, 16  ;;  %v416_v7 = vrot.slane %v415_v59, 4  ;;  %v7359_v29 = vld [vmem:[%s9590_s1 + $0x28] sm:$0xff]  }
  0x65   : > { %6631 = vmatprep.subr.bf16.mxu1 %v7348_v61  ;;  %6601 = vmatprep.mubr.bf16.mxu1 %v5632_v50  ;;  %v430_v1 = vrot.slane %v428_v55, 5  ;;  %v2310_v8 = vrot.slane %v2308_v62, 4  ;;  %v2321_v9 = vshrl.u32 %v7792_v48, 16  ;;  %v2313_v15 = vrot.slane %v2311_v3, 5  ;;  %v7361_v50 = vld [vmem:[%s9590_s1 + $0x30] sm:$0xff]  }
  0x66   : > { %6790 = vmatmul.mubr.bf16.vlgmr.msra.gmra.mrb[0].mxu0 %v5871_v21  ;;  %v2306_v6 = vsel %vm7708_vm2, %v2301_v58, %v2305_v37  ;;  %v2319_v16 = vrot.slane %v2317_v4, 5  ;;  %v421_v20 = vsel %vm7708_vm2, %v416_v7, %v420_v53  ;;  %v433_v22 = vshrl.u32 %v277_v5, 16 }
  0x67   : > { %6822 = vmatpush3.bf16.msra.mxu0 %v7733_v19  ;;  %v7349_v19 = vld [vmem:[%s9590_s1 + $0x150] sm:$0xff]   ;;  %v5872_v12 = vcombine.low %v2296_v57, %v2306_v6  ;;  %v2314_v26 = vor.u32 %v2313_v15, %v2310_v8  ;;  %v436_v27 = vshll.u32 %v277_v5, 16  ;;  %v442_v28 = vshll.u32 %v278_v10, 16  ;;  %v280_v6 = vld [vmem:[%s7636_s7 + $0x40] sm:$0xf] }
  0x68   : > { %6632 = vmatpush3.bf16.msra.mxu1 %v7348_v61  ;;  %6823 = vmatprep.subr.bf16.mxu0 %v7347_v14  ;;  %v7803_v61 = vld [vmem:[%s7636_s7 + $0x38] sm:$0x1]  ;;  %v435_v32 = vrot.slane %v433_v22, 4  ;;  %v446_v33 = vshrl.u32 %v278_v10, 16  ;;  %v2332_v55 = vshrl.u32 %v5818_v24, 16  ;;  %v2335_v57 = vshll.u32 %v5818_v24, 16 }
  0x69   : > { %6633 = vmatprep.subr.bf16.mxu1 %v7351_v18  ;;  %v2327_v21 = vshll.u32 %v7803_v61, 16  ;;  %6793 = vmatprep.mubr.bf16.mxu0 %v5872_v12  ;;  %v2315_v37 = vrot.slane %v2314_v26, 4  ;;  %v438_v40 = vrot.slane %v436_v27, 5  ;;  %v444_v41 = vrot.slane %v442_v28, 5  ;;  %v5821_v24 = vld [vmem:[%s7636_s7 + $0x48] sm:$0xf] }
  0x6a   : > { %v448_v46 = vrot.slane %v446_v33, 4  ;;  %v2334_v4 = vrot.slane %v2332_v55, 4  ;;  %v2337_v5 = vrot.slane %v2335_v57, 5  ;;  %v2351_v10 = vshll.u32 %v7834_v43, 16 }
  0x6b   : > { %6824 = vmatpush3.bf16.msra.mxu0 %v7347_v14  ;;  %v425_v14 = vor.u32 %v424_v0, %v420_v53  ;;  %v2329_v31 = vrot.slane %v2327_v21, 5  ;;  %v2320_v53 = vsel %vm7708_vm2, %v2315_v37, %v2319_v16  ;;  %v439_v54 = vor.u32 %v438_v40, %v435_v32  ;;  %v7867_v37 = vld [vmem:[%s7636_s7 + $0x50] sm:$0x1] }
  0x6c   : > { %6634 = vmatpush3.bf16.msra.mxu1 %v7351_v18  ;;  %6825 = vmatprep.subr.bf16.mxu0 %v7349_v19  ;;  %v2323_v18 = vrot.slane %v2321_v9, 4  ;;  %v449_v59 = vor.u32 %v448_v46, %v444_v41  ;;  %v2341_v0 = vshll.u32 %v7826_v34, 16  ;;  %v2345_v9 = vshrl.u32 %v7826_v34, 16  ;;  %v7356_v46 = vld [vmem:[%s9590_s1 + $0x178] sm:$0xff]  }
  0x6d   : > { %6635 = vmatprep.subr.bf16.mxu1 %v7354_v49  ;;  %v426_v25 = vrot.slane %v425_v14, 4  ;;  %v440_v3 = vrot.slane %v439_v54, 4  ;;  %v2338_v12 = vor.u32 %v2337_v5, %v2334_v4  ;;  %v322_v14 = vld [vmem:[%s7636_s7 + $0x44] sm:$0x1]  ;;  %v2353_v21 = vrot.slane %v2351_v10, 5 }
  0x6e   : > { %v2324_v30 = vor.u32 %v2323_v18, %v2319_v16  ;;  %v450_v7 = vrot.slane %v449_v59, 4  ;;  %v2343_v8 = vrot.slane %v2341_v0, 5  ;;  %v2347_v18 = vrot.slane %v2345_v9, 4  ;;  %v282_v4 = vld [vmem:[%s7636_s7 + $0x4c] sm:$0xf] }
  0x6f   : > { %6826 = vmatpush3.bf16.msra.mxu0 %v7349_v19  ;;  %v431_v36 = vsel %vm7708_vm2, %v426_v25, %v430_v1  ;;  %v452_v19 = vshll.u32 %v321_v17, 16  ;;  %v7363_v17 = vld [vmem:[%s9590_s1 + $0x38] sm:$0xff]   ;;  %v466_v22 = vshll.u32 %v280_v6, 16  ;;  %v2339_v26 = vrot.slane %v2338_v12, 4  ;;  %v323_v5 = vld [vmem:[%s7636_s7 + $0x50] sm:$0x1] }
  0x70   : > { %6636 = vmatpush3.bf16.msra.mxu1 %v7354_v49  ;;  %6827 = vmatprep.subr.bf16.mxu0 %v7350_v63  ;;  %v5633_v44 = vcombine.low %v421_v20, %v431_v36  ;;  %v2325_v45 = vrot.slane %v2324_v30, 4  ;;  %v279_v49 = vld [vmem:[%s7636_s7 + $0x3c] sm:$0xf]  ;;  %v7355_v30 = vld [vmem:[%s9590_s1 + $0x170] sm:$0xff]   ;;  %v470_v33 = vshrl.u32 %v280_v6, 16  ;;  %v476_v36 = vshll.u32 %v322_v14, 16 }
  0x71   : > { %6637 = vmatprep.subr.bf16.mxu1 %v7357_v11  ;;  %v454_v62 = vrot.slane %v452_v19, 5  ;;  %v457_v15 = vshrl.u32 %v279_v49, 16  ;;  %v460_v16 = vshll.u32 %v279_v49, 16  ;;  %v468_v32 = vrot.slane %v466_v22, 5  ;;  %v7878_v19 = vld [vmem:[%s9590_s1 + $0x80] sm:$0xff]  }
  0x72   : > { %6602 = vmatmul.mubr.bf16.gmra.mrb[4].mxu1 %v5633_v44  ;;  %v2330_v58 = vsel %vm7708_vm2, %v2325_v45, %v2329_v31  ;;  %v2348_v31 = vor.u32 %v2347_v18, %v2343_v8  ;;  %v2359_v44 = vshll.u32 %v5821_v24, 16  ;;  %v281_v45 = vld [vmem:[%s7636_s7 + $0x48] sm:$0xf]  ;;  %v5824_v9 = vld [vmem:[%s7636_s7 + $0x54] sm:$0xf]  ;;  %v494_v18 = vshrl.u32 %v282_v4, 16 }
  0x73   : > { %6828 = vmatpush3.bf16.msra.mxu0 %v7350_v63  ;;  %v5873_v1 = vcombine.low %v2320_v53, %v2330_v58  ;;  %v7353_v63 = vld [vmem:[%s9590_s1 + $0x168] sm:$0xff]   ;;  %v455_v20 = vsel %vm7708_vm2, %v450_v7, %v454_v62  ;;  %v459_v27 = vrot.slane %v457_v15, 4  ;;  %v462_v28 = vrot.slane %v460_v16, 5  ;;  %v7892_v15 = vld [vmem:[%s7636_s7 + $0x58] sm:$0xf] }
  0x74   : > { %6638 = vmatpush3.bf16.msra.mxu1 %v7357_v11  ;;  %6829 = vmatprep.subr.bf16.mxu0 %v7352_v35  ;;  %v445_v11 = vsel %vm7708_vm2, %v440_v3, %v444_v41  ;;  %v2356_v41 = vshrl.u32 %v5821_v24, 16  ;;  %v2349_v49 = vrot.slane %v2348_v31, 4  ;;  %v478_v53 = vrot.slane %v476_v36, 5 }
  0x75   : > { %6639 = vmatprep.subr.bf16.mxu1 %v7359_v29  ;;  %6794 = vmatmul.mubr.bf16.gmra.mrb[4].mxu0 %v5873_v1  ;;  %v5634_v25 = vcombine.low %v445_v11, %v455_v20  ;;  %v463_v40 = vor.u32 %v462_v28, %v459_v27  ;;  %v2361_v58 = vrot.slane %v2359_v44, 5  ;;  %v2375_v3 = vshll.u32 %v7867_v37, 16 }
  0x76   : > { %v2358_v57 = vrot.slane %v2356_v41, 4  ;;  %v2354_v62 = vsel %vm7708_vm2, %v2349_v49, %v2353_v21  ;;  %v481_v12 = vshrl.u32 %v281_v45, 16  ;;  %v484_v14 = vshll.u32 %v281_v45, 16  ;;  %v7897_v21 = vld [vmem:[%s9590_s1 + $0x180] sm:$0xff]  }
  0x77   : > { %6830 = vmatpush3.bf16.msra.mxu0 %v7352_v35  ;;  %6605 = vmatprep.mubr.bf16.mxu1 %v5634_v25  ;;  %v2344_v35 = vsel %vm7708_vm2, %v2339_v26, %v2343_v8  ;;  %v464_v55 = vrot.slane %v463_v40, 4  ;;  %v2377_v11 = vrot.slane %v2375_v3, 5  ;;  %v500_v26 = vshll.u32 %v323_v5, 16  ;;  %v5827_v3 = vld [vmem:[%s7636_s7 + $0x60] sm:$0xf] }
  0x78   : > { %6640 = vmatpush3.bf16.msra.mxu1 %v7359_v29  ;;  %v7861_v29 = vld [vmem:[%s7636_s7 + $0x4c] sm:$0xf]  ;;  %6831 = vmatprep.subr.bf16.mxu0 %v7353_v63  ;;  %v5874_v6 = vcombine.low %v2344_v35, %v2354_v62  ;;  %v2362_v7 = vor.u32 %v2361_v58, %v2358_v57  ;;  %v483_v24 = vrot.slane %v481_v12, 4  ;;  %v486_v25 = vrot.slane %v484_v14, 5  ;;  %v7904_v35 = vld [vmem:[%s7636_s7 + $0x5c] sm:$0x1] }
  0x79   : > { %6641 = vmatprep.subr.bf16.mxu1 %v7361_v50  ;;  %v2365_v54 = vshll.u32 %v7861_v29, 16  ;;  %v2369_v59 = vshrl.u32 %v7861_v29, 16  ;;  %v502_v36 = vrot.slane %v500_v26, 5  ;;  %v2380_v40 = vshrl.u32 %v5824_v9, 16  ;;  %v284_v58 = vld [vmem:[%s7636_s7 + $0x58] sm:$0xf] }
  0x7a   : > { %6797 = vmatprep.mubr.bf16.mxu0 %v5874_v6  ;;  %v2363_v16 = vrot.slane %v2362_v7, 4  ;;  %v2383_v44 = vshll.u32 %v5824_v9, 16  ;;  %v2389_v45 = vshll.u32 %v7892_v15, 16  ;;  %v2393_v49 = vshrl.u32 %v7892_v15, 16 }
  0x7b   : > { %6832 = vmatpush3.bf16.msra.mxu0 %v7353_v63  ;;  %v2367_v1 = vrot.slane %v2365_v54, 5  ;;  %v469_v63 = vsel %vm7708_vm2, %v464_v55, %v468_v32  ;;  %v2371_v8 = vrot.slane %v2369_v59, 4  ;;  %v2382_v57 = vrot.slane %v2380_v40, 4  ;;  %v7932_v40 = vld [vmem:[%s7636_s7 + $0x60] sm:$0xf] }
  0x7c   : > { %6642 = vmatpush3.bf16.msra.mxu1 %v7361_v50  ;;  %v472_v50 = vrot.slane %v470_v33, 4  ;;  %6833 = vmatprep.subr.bf16.mxu0 %v7355_v30  ;;  %v496_v33 = vrot.slane %v494_v18, 4  ;;  %v2391_v59 = vrot.slane %v2389_v45, 5  ;;  %v2395_v62 = vrot.slane %v2393_v49, 4 }
  0x7d   : > { %6643 = vmatprep.subr.bf16.mxu1 %v7363_v17  ;;  %v2372_v20 = vor.u32 %v2371_v8, %v2367_v1  ;;  %v2368_v28 = vsel %vm7708_vm2, %v2363_v16, %v2367_v1  ;;  %v324_v1 = vld [vmem:[%s7636_s7 + $0x5c] sm:$0x1] }
  0x7e   : > { %v473_v0 = vor.u32 %v472_v50, %v468_v32  ;;  %v487_v32 = vor.u32 %v486_v25, %v483_v24  ;;  %v283_v50 = vld [vmem:[%s7636_s7 + $0x54] sm:$0xf]  ;;  %v2396_v8 = vor.u32 %v2395_v62, %v2391_v59 }
  0x7f   : > { %6834 = vmatpush3.bf16.msra.mxu0 %v7355_v30  ;;  %v2373_v30 = vrot.slane %v2372_v20, 4  ;;  %v505_v6 = vshrl.u32 %v283_v50, 16  ;;  %v518_v20 = vshrl.u32 %v284_v58, 16 }
  0x80   : > { %6644 = vmatpush3.bf16.msra.mxu1 %v7363_v17  ;;  %v474_v10 = vrot.slane %v473_v0, 4  ;;  %v490_v17 = vshll.u32 %v282_v4, 16  ;;  %6835 = vmatprep.subr.bf16.mxu0 %v7356_v46  ;;  %v488_v54 = vrot.slane %v487_v32, 4  ;;  %v2399_v0 = vshll.u32 %v7904_v35, 16  ;;  %v7928_v32 = vld [vmem:[%s7636_s7 + $0x68] sm:$0x1] }
  0x81   : > { %6677 = vmatprep.subr.bf16.mxu1 %v7878_v19  ;;  %v2378_v41 = vsel %vm7708_vm2, %v2373_v30, %v2377_v11  ;;  %v7919_v11 = vld [vmem:[%s7636_s7 + $0x64] sm:$0xf]  ;;  %v507_v14 = vrot.slane %v505_v6, 4  ;;  %v520_v26 = vrot.slane %v518_v20, 4  ;;  %v2423_v62 = vshll.u32 %v7928_v32, 16 }
  0x82   : > { %v479_v22 = vsel %vm7708_vm2, %v474_v10, %v478_v53  ;;  %v492_v31 = vrot.slane %v490_v17, 5  ;;  %v5875_v53 = vcombine.low %v2368_v28, %v2378_v41  ;;  %v2401_v9 = vrot.slane %v2399_v0, 5  ;;  %v7950_v20 = vld [vmem:[%s7636_s7 + $0x6c] sm:$0xf] }
  0x83   : > { %v5635_v27 = vcombine.low %v469_v63, %v479_v22  ;;  %6836 = vmatpush3.bf16.msra.mxu0 %v7356_v46  ;;  %v2385_v46 = vrot.slane %v2383_v44, 5  ;;  %v508_v63 = vshll.u32 %v283_v50, 16  ;;  %v514_v10 = vshll.u32 %v284_v58, 16  ;;  %v7935_v50 = vld [vmem:[%s7636_s7 + $0x64] sm:$0xf] }
  0x84   : > { %6869 = vmatprep.subr.bf16.mxu0 %v7897_v21  ;;  %v497_v55 = vor.u32 %v496_v33, %v492_v31  ;;  %6798 = vmatmul.mubr.bf16.gmra.mrb[8].mxu0 %v5875_v53  ;;  %v493_v4 = vsel %vm7708_vm2, %v488_v54, %v492_v31  ;;  %v2397_v22 = vrot.slane %v2396_v8, 4  ;;  %v2404_v28 = vshrl.u32 %v5827_v3, 16  ;;  %v325_v58 = vld [vmem:[%s7636_s7 + $0x68] sm:$0x1] }
  0x85   : > { %6606 = vmatmul.mubr.bf16.gmra.mrb[8].mxu1 %v5635_v27  ;;  %v2386_v7 = vor.u32 %v2385_v46, %v2382_v57  ;;  %v510_v16 = vrot.slane %v508_v63, 5  ;;  %v516_v24 = vrot.slane %v514_v10, 5  ;;  %v524_v27 = vshll.u32 %v324_v1, 16  ;;  %v5894_v1 = vld [vmem:[%s7636_s7 + $0xc] sm:$0xe] }
  0x86   : > { %v498_v5 = vrot.slane %v497_v55, 4  ;;  %v2402_v31 = vsel %vm7708_vm2, %v2397_v22, %v2401_v9  ;;  %v2407_v33 = vshll.u32 %v5827_v3, 16  ;;  %v2406_v53 = vrot.slane %v2404_v28, 4 }
  0x87   : > { %v2387_v18 = vrot.slane %v2386_v7, 4  ;;  %v511_v25 = vor.u32 %v510_v16, %v507_v14  ;;  %v521_v45 = vor.u32 %v520_v26, %v516_v24  ;;  %v526_v49 = vrot.slane %v524_v27, 5 }
  0x88   : > { %v503_v12 = vsel %vm7708_vm2, %v498_v5, %v502_v36  ;;  %v2413_v36 = vshll.u32 %v7919_v11, 16  ;;  %v2409_v54 = vrot.slane %v2407_v33, 5  ;;  %v2417_v57 = vshrl.u32 %v7919_v11, 16 }
  0x89   : > { %v5636_v17 = vcombine.low %v493_v4, %v503_v12  ;;  %v2392_v30 = vsel %vm7708_vm2, %v2387_v18, %v2391_v59  ;;  %v512_v44 = vrot.slane %v511_v25, 4  ;;  %v522_v59 = vrot.slane %v521_v45, 4 }
  0x8a   : > { %v5876_v41 = vcombine.low %v2392_v30, %v2402_v31  ;;  %v2415_v55 = vrot.slane %v2413_v36, 5  ;;  %v529_v0 = vshrl.u32 %v7932_v40, 16  ;;  %v2410_v3 = vor.u32 %v2409_v54, %v2406_v53  ;;  %v7962_v36 = vld [vmem:[%s7636_s7 + $0x70] sm:$0xf] }
  0x8b   : > { %6609 = vmatprep.mubr.bf16.mxu1 %v5636_v17  ;;  %v517_v46 = vsel %vm7708_vm2, %v512_v44, %v516_v24  ;;  %v2419_v4 = vrot.slane %v2417_v57, 4  ;;  %v532_v5 = vshll.u32 %v7932_v40, 16  ;;  %v538_v6 = vshll.u32 %v7935_v50, 16  ;;  %v7447_v24 = vld [vmem:[%s7636_s7 + $0xb4] sm:$0xff]  }
  0x8c   : > { %6801 = vmatprep.mubr.bf16.mxu0 %v5876_v41  ;;  %v527_v63 = vsel %vm7708_vm2, %v522_v59, %v526_v49  ;;  %v2425_v7 = vrot.slane %v2423_v62, 5  ;;  %v531_v8 = vrot.slane %v529_v0, 4  ;;  %v542_v9 = vshrl.u32 %v7935_v50, 16  ;;  %v7973_v62 = vld [vmem:[%s7636_s7 + $0x78] sm:$0xf] }
  0x8d   : > { %v5637_v10 = vcombine.low %v517_v46, %v527_v63  ;;  %v2411_v12 = vrot.slane %v2410_v3, 4  ;;  %v2420_v14 = vor.u32 %v2419_v4, %v2415_v55  ;;  %v534_v16 = vrot.slane %v532_v5, 5  ;;  %v7984_v5 = vld [vmem:[%s7636_s7 + $0x7c] sm:$0xf] }
  0x8e   : > { %v540_v17 = vrot.slane %v538_v6, 5  ;;  %v544_v18 = vrot.slane %v542_v9, 4  ;;  %v548_v22 = vshll.u32 %v325_v58, 16  ;;  %v5910_v25 = vrot.slane %v5894_v1, 9  ;;  %v327_v9 = vld [vmem:[%s7636_s7 + $0x80] sm:$0x1] }
  0x8f   : > { %6610 = vmatmul.mubr.bf16.gmra.mrb[12].mxu1 %v5637_v10  ;;  %v2416_v26 = vsel %vm7708_vm2, %v2411_v12, %v2415_v55  ;;  %v2421_v27 = vrot.slane %v2420_v14, 4  ;;  %v535_v28 = vor.u32 %v534_v16, %v531_v8  ;;  %v3007_v30 = vrot.slane %v7689_v38, 5  ;;  %v326_v55 = vld [vmem:[%s7636_s7 + $0x74] sm:$0x1]  ;;  %v5895_v38 = vld [vmem:[%s7636_s7 + $0x18] sm:$0xe] }
  0x90   : > { %v545_v31 = vor.u32 %v544_v18, %v540_v17  ;;  %v550_v33 = vrot.slane %v548_v22, 5  ;;  %v553_v41 = vshrl.u32 %v7950_v20, 16  ;;  %v556_v44 = vshll.u32 %v7950_v20, 16 }
  0x91   : > { %v2426_v45 = vsel %vm7708_vm2, %v2421_v27, %v2425_v7  ;;  %v536_v49 = vrot.slane %v535_v28, 4  ;;  %v3008_v53 = vsel %vm7954_vm5, %v5910_v25, %v3007_v30  ;;  %v3009_v54 = vrot.slane %v3007_v30, 4  ;;  %v5896_v28 = vld [vmem:[%s7636_s7 + $0x24] sm:$0xe] }
  0x92   : > { %v5877_v57 = vcombine.low %v2416_v26, %v2426_v45  ;;  %v546_v58 = vrot.slane %v545_v31, 4  ;;  %v555_v46 = vrot.slane %v553_v41, 4  ;;  %v558_v59 = vrot.slane %v556_v44, 5  ;;  %v8006_v31 = vld [vmem:[%s7636_s7 + $0x84] sm:$0xf]  ;;  %v7360_v44 = vld [vmem:[%s9590_s1 + $0x188] sm:$0xff]  }
  0x93   : > { %v541_v0 = vsel %vm7708_vm2, %v536_v49, %v540_v17  ;;  %v3011_v1 = vsel %vm7954_vm5, %v3009_v54, %v3010_v56  ;;  %v562_v3 = vshll.u32 %v7962_v36, 16  ;;  %v566_v4 = vshrl.u32 %v7962_v36, 16 }
  0x94   : > { %6802 = vmatmul.mubr.bf16.gmra.mrb[12].mxu0 %v5877_v57  ;;  %v551_v6 = vsel %vm7708_vm2, %v546_v58, %v550_v33  ;;  %v5942_v63 = vcombine.low %v3008_v53, %v3011_v1  ;;  %v559_v7 = vor.u32 %v558_v59, %v555_v46  ;;  %v572_v8 = vshll.u32 %v326_v55, 16  ;;  %v8014_v55 = vld [vmem:[%s7636_s7 + $0x88] sm:$0xf]  ;;  %v328_v46 = vld [vmem:[%s7636_s7 + $0x8c] sm:$0x1] }
  0x95   : > { %v5638_v10 = vcombine.low %v541_v0, %v551_v6  ;;  %v564_v39 = vrot.slane %v562_v3, 5  ;;  %v568_v12 = vrot.slane %v566_v4, 4  ;;  %v5911_v14 = vrot.slane %v5895_v38, 9 }
  0x96   : > { %6837 = vmatprep.mubr.bf16.mxu0 %v5942_v63  ;;  %v560_v56 = vrot.slane %v559_v7, 4  ;;  %v574_v16 = vrot.slane %v572_v8, 5  ;;  %v3018_v17 = vsel %vm7954_vm5, %v7757_v51, %v3017_v47  ;;  %v577_v18 = vshrl.u32 %v7973_v62, 16 }
  0x97   : > { %6613 = vmatprep.mubr.bf16.mxu1 %v5638_v10  ;;  %v569_v22 = vor.u32 %v568_v12, %v564_v39  ;;  %v3015_v25 = vsel %vm7954_vm5, %v5911_v14, %v3014_v42  ;;  %v580_v26 = vshll.u32 %v7973_v62, 16  ;;  %v586_v27 = vshll.u32 %v7984_v5, 16 }
  0x98   : > { %v565_v23 = vsel %vm7708_vm2, %v560_v56, %v564_v39  ;;  %v5943_v30 = vcombine.low %v3015_v25, %v3018_v17  ;;  %v579_v47 = vrot.slane %v577_v18, 4  ;;  %v590_v51 = vshrl.u32 %v7984_v5, 16  ;;  %v8035_v17 = vld [vmem:[%s7636_s7 + $0x90] sm:$0xf]  ;;  %v8038_v18 = vld [vmem:[%s7636_s7 + $0x94] sm:$0xf] }
  0x99   : > { %v570_v13 = vrot.slane %v569_v22, 4  ;;  %v582_v33 = vrot.slane %v580_v26, 5  ;;  %v588_v41 = vrot.slane %v586_v27, 5  ;;  %v596_v42 = vshll.u32 %v327_v9, 16 }
  0x9a   : > { %v592_v45 = vrot.slane %v590_v51, 4  ;;  %v5912_v49 = vrot.slane %v5896_v28, 9  ;;  %v3021_v53 = vrot.slane %v7761_v60, 5  ;;  %v3024_v54 = vrot.slane %v7767_v2, 5  ;;  %v5897_v60 = vld [vmem:[%s7636_s7 + $0x30] sm:$0xe] }
  0x9b   : > { %v575_v38 = vsel %vm7708_vm2, %v570_v13, %v574_v16  ;;  %v583_v57 = vor.u32 %v582_v33, %v579_v47  ;;  %v598_v58 = vrot.slane %v596_v42, 5  ;;  %v601_v59 = vshrl.u32 %v8006_v31, 16  ;;  %v329_v13 = vld [vmem:[%s7636_s7 + $0x98] sm:$0x1] }
  0x9c   : > { %v5639_v0 = vcombine.low %v565_v23, %v575_v38  ;;  %6838 = vmatmul.mubr.bf16.vlgmr.msra.gmra.mrb[0].mxu0 %v5943_v30  ;;  %v593_v1 = vor.u32 %v592_v45, %v588_v41  ;;  %v3022_v3 = vsel %vm7954_vm5, %v5912_v49, %v3021_v53  ;;  %v3023_v4 = vrot.slane %v3021_v53, 4  ;;  %v7364_v45 = vld [vmem:[%s9590_s1 + $0x198] sm:$0xff]  }
  0x9d   : > { %6870 = vmatpush3.bf16.msra.mxu0 %v7897_v21  ;;  %v584_v2 = vrot.slane %v583_v57, 4  ;;  %v603_v6 = vrot.slane %v601_v59, 4  ;;  %v604_v63 = vshll.u32 %v8006_v31, 16  ;;  %v610_v7 = vshll.u32 %v8014_v55, 16  ;;  %v7362_v21 = vld [vmem:[%s9590_s1 + $0x190] sm:$0xff]  }
  0x9e   : > { %6614 = vmatmul.mubr.bf16.gmra.mrb[16].mxu1 %v5639_v0  ;;  %v594_v8 = vrot.slane %v593_v1, 4  ;;  %v3025_v9 = vsel %vm7954_vm5, %v3023_v4, %v3024_v54  ;;  %v614_v10 = vshrl.u32 %v8014_v55, 16  ;;  %v620_v39 = vshll.u32 %v328_v46, 16  ;;  %6871 = vmatprep.subr.bf16.mxu0 %v7360_v44  ;;  %v5898_v53 = vld [vmem:[%s7636_s7 + $0x3c] sm:$0xe] }
  0x9f   : > { %v589_v12 = vsel %vm7708_vm2, %v584_v2, %v588_v41  ;;  %v5944_v14 = vcombine.low %v3022_v3, %v3025_v9  ;;  %v606_v56 = vrot.slane %v604_v63, 5  ;;  %v612_v16 = vrot.slane %v610_v7, 5  ;;  %v8056_v46 = vld [vmem:[%s7636_s7 + $0x9c] sm:$0xf]  ;;  %v8065_v63 = vld [vmem:[%s7636_s7 + $0xa0] sm:$0xf] }
  0xa0   : > { %v599_v22 = vsel %vm7708_vm2, %v594_v8, %v598_v58  ;;  %v616_v25 = vrot.slane %v614_v10, 4  ;;  %v622_v26 = vrot.slane %v620_v39, 5  ;;  %v5913_v27 = vrot.slane %v5897_v60, 9  ;;  %v7368_v7 = vld [vmem:[%s9590_s1 + $0x1a0] sm:$0xff]  }
  0xa1   : > { %v5640_v28 = vcombine.low %v589_v12, %v599_v22  ;;  %6841 = vmatprep.mubr.bf16.mxu0 %v5944_v14  ;;  %v607_v23 = vor.u32 %v606_v56, %v603_v6  ;;  %v3028_v30 = vrot.slane %v7792_v48, 5  ;;  %v3031_v47 = vrot.slane %v7803_v61, 5  ;;  %6872 = vmatpush3.bf16.msra.mxu0 %v7360_v44  ;;  %v330_v12 = vld [vmem:[%s7636_s7 + $0xa4] sm:$0x1] }
  0xa2   : > { %v617_v51 = vor.u32 %v616_v25, %v612_v16  ;;  %v625_v33 = vshrl.u32 %v8035_v17, 16  ;;  %v628_v41 = vshll.u32 %v8035_v17, 16  ;;  %v634_v42 = vshll.u32 %v8038_v18, 16  ;;  %6873 = vmatprep.subr.bf16.mxu0 %v7362_v21 }
  0xa3   : > { %6617 = vmatprep.mubr.bf16.mxu1 %v5640_v28  ;;  %v608_v49 = vrot.slane %v607_v23, 4  ;;  %v3029_v48 = vsel %vm7954_vm5, %v5913_v27, %v3028_v30  ;;  %v3030_v61 = vrot.slane %v3028_v30, 4  ;;  %v638_v44 = vshrl.u32 %v8038_v18, 16  ;;  %v5899_v30 = vld [vmem:[%s7636_s7 + $0x48] sm:$0xe] }
  0xa4   : > { %v618_v54 = vrot.slane %v617_v51, 4  ;;  %v627_v38 = vrot.slane %v625_v33, 4  ;;  %v630_v57 = vrot.slane %v628_v41, 5  ;;  %v636_v58 = vrot.slane %v634_v42, 5  ;;  %v8090_v42 = vld [vmem:[%s7636_s7 + $0xa8] sm:$0xf] }
  0xa5   : > { %v613_v59 = vsel %vm7708_vm2, %v608_v49, %v612_v16  ;;  %v3032_v0 = vsel %vm7954_vm5, %v3030_v61, %v3031_v47  ;;  %v640_v1 = vrot.slane %v638_v44, 4  ;;  %v644_v3 = vshll.u32 %v329_v13, 16  ;;  %6874 = vmatpush3.bf16.msra.mxu0 %v7362_v21  ;;  %v7372_v47 = vld [vmem:[%s9590_s1 + $0x1a8] sm:$0xff]  }
  0xa6   : > { %v623_v4 = vsel %vm7708_vm2, %v618_v54, %v622_v26  ;;  %v5945_v60 = vcombine.low %v3029_v48, %v3032_v0  ;;  %v631_v2 = vor.u32 %v630_v57, %v627_v38  ;;  %v5914_v6 = vrot.slane %v5898_v53, 9  ;;  %6875 = vmatprep.subr.bf16.mxu0 %v7364_v45  ;;  %v8093_v44 = vld [vmem:[%s7636_s7 + $0xac] sm:$0xf] }
  0xa7   : > { %v5641_v8 = vcombine.low %v613_v59, %v623_v4  ;;  %v641_v9 = vor.u32 %v640_v1, %v636_v58  ;;  %v646_v10 = vrot.slane %v644_v3, 5  ;;  %v3035_v39 = vrot.slane %v7826_v34, 5  ;;  %v5900_v4 = vld [vmem:[%s7636_s7 + $0x54] sm:$0xe] }
  0xa8   : > { %6842 = vmatmul.mubr.bf16.gmra.mrb[4].mxu0 %v5945_v60  ;;  %v632_v21 = vrot.slane %v631_v2, 4  ;;  %v3038_v14 = vrot.slane %v7834_v43, 5  ;;  %v649_v56 = vshrl.u32 %v8056_v46, 16  ;;  %v652_v16 = vshll.u32 %v8056_v46, 16  ;;  %v7376_v60 = vld [vmem:[%s9590_s1 + $0x1b0] sm:$0xff]  }
  0xa9   : > { %6618 = vmatmul.mubr.bf16.gmra.mrb[20].mxu1 %v5641_v8  ;;  %v642_v22 = vrot.slane %v641_v9, 4  ;;  %v3036_v25 = vsel %vm7954_vm5, %v5914_v6, %v3035_v39  ;;  %v3037_v26 = vrot.slane %v3035_v39, 4  ;;  %v658_v27 = vshll.u32 %v8065_v63, 16  ;;  %6876 = vmatpush3.bf16.msra.mxu0 %v7364_v45 }
  0xaa   : > { %v637_v34 = vsel %vm7708_vm2, %v632_v21, %v636_v58  ;;  %v651_v28 = vrot.slane %v649_v56, 4  ;;  %v654_v43 = vrot.slane %v652_v16, 5  ;;  %v662_v23 = vshrl.u32 %v8065_v63, 16  ;;  %6877 = vmatprep.subr.bf16.mxu0 %v7368_v7  ;;  %v331_v58 = vld [vmem:[%s7636_s7 + $0xb0] sm:$0x1] }
  0xab   : > { %v647_v51 = vsel %vm7708_vm2, %v642_v22, %v646_v10  ;;  %v3039_v13 = vsel %vm7954_vm5, %v3037_v26, %v3038_v14  ;;  %v660_v33 = vrot.slane %v658_v27, 5  ;;  %v668_v41 = vshll.u32 %v330_v12, 16  ;;  %v8113_v56 = vld [vmem:[%s7636_s7 + $0xb4] sm:$0xf]  ;;  %v8118_v27 = vld [vmem:[%s7636_s7 + $0xb8] sm:$0xf] }
  0xac   : > { %v5642_v45 = vcombine.low %v637_v34, %v647_v51  ;;  %v5946_v49 = vcombine.low %v3036_v25, %v3039_v13  ;;  %v655_v48 = vor.u32 %v654_v43, %v651_v28  ;;  %v664_v61 = vrot.slane %v662_v23, 4  ;;  %v332_v34 = vld [vmem:[%s7636_s7 + $0xbc] sm:$0x1] }
  0xad   : > { %v670_v53 = vrot.slane %v668_v41, 5  ;;  %v5915_v54 = vrot.slane %v5899_v30, 9  ;;  %v3042_v38 = vrot.slane %v7861_v29, 5  ;;  %v3045_v57 = vrot.slane %v7867_v37, 5  ;;  %6878 = vmatpush3.bf16.msra.mxu0 %v7368_v7  ;;  %v7380_v28 = vld [vmem:[%s9590_s1 + $0x1b8] sm:$0xff]  }
  0xae   : > { %6621 = vmatprep.mubr.bf16.mxu1 %v5642_v45  ;;  %6845 = vmatprep.mubr.bf16.mxu0 %v5946_v49  ;;  %v656_v59 = vrot.slane %v655_v48, 4  ;;  %v665_v0 = vor.u32 %v664_v61, %v660_v33  ;;  %v673_v1 = vshrl.u32 %v8090_v42, 16  ;;  %v676_v3 = vshll.u32 %v8090_v42, 16  ;;  %v5901_v45 = vld [vmem:[%s7636_s7 + $0x60] sm:$0xe] }
  0xaf   : > { %v3043_v29 = vsel %vm7954_vm5, %v5915_v54, %v3042_v38  ;;  %v3044_v37 = vrot.slane %v3042_v38, 4  ;;  %v682_v2 = vshll.u32 %v8093_v44, 16  ;;  %v686_v6 = vshrl.u32 %v8093_v44, 16  ;;  %6879 = vmatprep.subr.bf16.mxu0 %v7372_v47  ;;  %v5831_v54 = vld [vmem:[%s7636_s7 + $0x70] sm:$0xf] }
  0xb0   : > { %v661_v7 = vsel %vm7708_vm2, %v656_v59, %v660_v33  ;;  %v666_v8 = vrot.slane %v665_v0, 4  ;;  %v675_v9 = vrot.slane %v673_v1, 4  ;;  %v678_v10 = vrot.slane %v676_v3, 5  ;;  %v8140_v59 = vld [vmem:[%s9590_s1 + $0x1c0] sm:$0xff]  }
  0xb1   : > { %v3046_v39 = vsel %vm7954_vm5, %v3044_v37, %v3045_v57  ;;  %v684_v12 = vrot.slane %v682_v2, 5  ;;  %v688_v21 = vrot.slane %v686_v6, 4  ;;  %v692_v14 = vshll.u32 %v331_v58, 16  ;;  %6880 = vmatpush3.bf16.msra.mxu0 %v7372_v47  ;;  %v5902_v58 = vld [vmem:[%s7636_s7 + $0x6c] sm:$0xe] }
  0xb2   : > { %v671_v16 = vsel %vm7708_vm2, %v666_v8, %v670_v53  ;;  %v5947_v22 = vcombine.low %v3043_v29, %v3046_v39  ;;  %v679_v25 = vor.u32 %v678_v10, %v675_v9  ;;  %v5916_v26 = vrot.slane %v5900_v4, 9  ;;  %6881 = vmatprep.subr.bf16.mxu0 %v7376_v60  ;;  %v5832_v6 = vld [vmem:[%s7636_s7 + $0x74] sm:$0x1]  ;;  %v5903_v39 = vld [vmem:[%s7636_s7 + $0x78] sm:$0xe] }
  0xb3   : > { %v5643_v43 = vcombine.low %v661_v7, %v671_v16  ;;  %v689_v23 = vor.u32 %v688_v21, %v684_v12  ;;  %v694_v30 = vrot.slane %v692_v14, 5  ;;  %v3049_v47 = vrot.slane %v7892_v15, 5 }
  0xb4   : > { %6846 = vmatmul.mubr.bf16.gmra.mrb[8].mxu0 %v5947_v22  ;;  %v680_v51 = vrot.slane %v679_v25, 4  ;;  %v3052_v13 = vrot.slane %v7904_v35, 5  ;;  %v697_v33 = vshrl.u32 %v8113_v56, 16  ;;  %v700_v41 = vshll.u32 %v8113_v56, 16 }
  0xb5   : > { %6622 = vmatmul.mubr.bf16.gmra.mrb[24].mxu1 %v5643_v43  ;;  %v690_v49 = vrot.slane %v689_v23, 4  ;;  %v3050_v48 = vsel %vm7954_vm5, %v5916_v26, %v3049_v47  ;;  %v3051_v61 = vrot.slane %v3049_v47, 4  ;;  %v706_v53 = vshll.u32 %v8118_v27, 16  ;;  %6882 = vmatpush3.bf16.msra.mxu0 %v7376_v60  ;;  %v8153_v26 = vld [vmem:[%s7636_s7 + $0x7c] sm:$0xf] }
  0xb6   : > { %v685_v15 = vsel %vm7708_vm2, %v680_v51, %v684_v12  ;;  %v699_v35 = vrot.slane %v697_v33, 4  ;;  %v702_v38 = vrot.slane %v700_v41, 5  ;;  %v710_v57 = vshrl.u32 %v8118_v27, 16  ;;  %6883 = vmatprep.subr.bf16.mxu0 %v7380_v28  ;;  %v7449_v51 = vld [vmem:[%s7636_s7] sm:$0xf] }
  0xb7   : > { %v695_v0 = vsel %vm7708_vm2, %v690_v49, %v694_v30  ;;  %v3053_v1 = vsel %vm7954_vm5, %v3051_v61, %v3052_v13  ;;  %v708_v3 = vrot.slane %v706_v53, 5  ;;  %v716_v4 = vshll.u32 %v332_v34, 16  ;;  %v5837_v30 = vld [vmem:[%s7636_s7 + $0x88] sm:$0xf]  ;;  %v8168_v13 = vld [vmem:[%s7636_s7 + $0x4] sm:$0xf] }
  0xb8   : > { %v5644_v60 = vcombine.low %v685_v15, %v695_v0  ;;  %v5948_v29 = vcombine.low %v3050_v48, %v3053_v1  ;;  %v703_v37 = vor.u32 %v702_v38, %v699_v35  ;;  %v712_v2 = vrot.slane %v710_v57, 4  ;;  %v5838_v41 = vld [vmem:[%s7636_s7 + $0x8c] sm:$0x1]  ;;  %v5841_v38 = vld [vmem:[%s7636_s7 + $0x98] sm:$0x1] }
  0xb9   : > { %v718_v7 = vrot.slane %v716_v4, 5  ;;  %v5917_v8 = vrot.slane %v5901_v45, 9  ;;  %v3056_v9 = vrot.slane %v7919_v11, 5  ;;  %v3059_v10 = vrot.slane %v7928_v32, 5  ;;  %6884 = vmatpush3.bf16.msra.mxu0 %v7380_v28  ;;  %v8156_v32 = vld [vmem:[%s7636_s7 + $0x80] sm:$0x1] }
  0xba   : > { %6625 = vmatprep.mubr.bf16.mxu1 %v5644_v60  ;;  %6849 = vmatprep.mubr.bf16.mxu0 %v5948_v29  ;;  %v704_v12 = vrot.slane %v703_v37, 4  ;;  %v713_v21 = vor.u32 %v712_v2, %v708_v3  ;;  %v5918_v14 = vrot.slane %v5902_v58, 9  ;;  %v3063_v16 = vrot.slane %v5831_v54, 5  ;;  %v5904_v45 = vld [vmem:[%s7636_s7 + $0x84] sm:$0xe] }
  0xbb   : > { %v3057_v22 = vsel %vm7954_vm5, %v5917_v8, %v3056_v9  ;;  %v3058_v25 = vrot.slane %v3056_v9, 4  ;;  %v3066_v11 = vrot.slane %v5832_v6, 5  ;;  %6917 = vmatprep.subr.bf16.mxu0 %v8140_v59  ;;  %v5654_v33 = vcombine.low %v7449_v51, %v8168_v13  ;;  %v5840_v54 = vld [vmem:[%s7636_s7 + $0x94] sm:$0xf]  ;;  %v5905_v57 = vld [vmem:[%s7636_s7 + $0x90] sm:$0xe] }
  0xbc   : > { %v709_v34 = vsel %vm7708_vm2, %v704_v12, %v708_v3  ;;  %v714_v28 = vrot.slane %v713_v21, 4  ;;  %v3064_v43 = vsel %vm7954_vm5, %v5918_v14, %v3063_v16  ;;  %v3065_v23 = vrot.slane %v3063_v16, 4  ;;  %v5906_v1 = vld [vmem:[%s7636_s7 + $0x9c] sm:$0xe]  ;;  %v5843_v29 = vld [vmem:[%s7636_s7 + $0xa0] sm:$0xf] }
  0xbd   : > { %v3060_v47 = vsel %vm7954_vm5, %v3058_v25, %v3059_v10  ;;  %v5919_v53 = vrot.slane %v5903_v39, 9  ;;  %v3070_v58 = vrot.slane %v8153_v26, 5  ;;  %v3073_v0 = vrot.slane %v8156_v32, 5  ;;  %v5844_v37 = vld [vmem:[%s7636_s7 + $0xa4] sm:$0x1] }
  0xbe   : > { %v719_v49 = vsel %vm7708_vm2, %v714_v28, %v718_v7  ;;  %v5949_v48 = vcombine.low %v3057_v22, %v3060_v47  ;;  %v3067_v61 = vsel %vm7954_vm5, %v3065_v23, %v3066_v11  ;;  %v5920_v3 = vrot.slane %v5904_v45, 9  ;;  %v5846_v10 = vld [vmem:[%s7636_s7 + $0xac] sm:$0xf]  ;;  %v8192_v12 = vld [vmem:[%s7636_s7 + $0x10] sm:$0xf] }
  0xbf   : > { %v5645_v15 = vcombine.low %v709_v34, %v719_v49  ;;  %v5950_v35 = vcombine.low %v3064_v43, %v3067_v61  ;;  %v3077_v4 = vrot.slane %v5837_v30, 5  ;;  %v3080_v60 = vrot.slane %v5838_v41, 5  ;;  %v7451_v39 = vld [vmem:[%s7636_s7 + $0xc] sm:$0xf]  ;;  %v7453_v23 = vld [vmem:[%s7636_s7 + $0x18] sm:$0xf] }
  0xc0   : > { %6850 = vmatmul.mubr.bf16.gmra.mrb[12].mxu0 %v5949_v48  ;;  %v3071_v2 = vsel %vm7954_vm5, %v5919_v53, %v3070_v58  ;;  %v3072_v6 = vrot.slane %v3070_v58, 4  ;;  %v3084_v9 = vrot.slane %v5840_v54, 5  ;;  %v5655_v21 = vcombine.low %v7451_v39, %v8192_v12  ;;  %v7371_v34 = vld [vmem:[%s9590_s1 + $0x88] sm:$0xff]   ;;  %v8204_v30 = vld [vmem:[%s7636_s7 + $0x1c] sm:$0xf] }
  0xc1   : > { %6626 = vmatmul.mubr.bf16.gmra.mrb[28].mxu1 %v5645_v15  ;;  %6853 = vmatprep.mubr.bf16.mxu0 %v5950_v35  ;;  %v3078_v7 = vsel %vm7954_vm5, %v5920_v3, %v3077_v4  ;;  %v3079_v8 = vrot.slane %v3077_v4, 4  ;;  %v5921_v16 = vrot.slane %v5905_v57, 9  ;;  %v3087_v22 = vrot.slane %v5841_v38, 5  ;;  %v5847_v45 = vld [vmem:[%s7636_s7 + $0xb0] sm:$0x1] }
  0xc2   : > { %6645 = vmatprep.mubr.bf16.mxu1 %v5654_v33  ;;  %v3074_v14 = vsel %vm7954_vm5, %v3072_v6, %v3073_v0  ;;  %v3086_v28 = vrot.slane %v3084_v9, 4  ;;  %v5922_v43 = vrot.slane %v5906_v1, 9  ;;  %v5656_v47 = vcombine.low %v7453_v23, %v8204_v30  ;;  %v5907_v49 = vld [vmem:[%s7636_s7 + $0xa8] sm:$0xe]  ;;  %v5849_v48 = vld [vmem:[%s7636_s7 + $0xb8] sm:$0xf] }
  0xc3   : > { %v5951_v25 = vcombine.low %v3071_v2, %v3074_v14  ;;  %v3081_v11 = vsel %vm7954_vm5, %v3079_v8, %v3080_v60  ;;  %v3091_v33 = vrot.slane %v5843_v29, 5  ;;  %v3094_v41 = vrot.slane %v5844_v37, 5  ;;  %v5850_v35 = vld [vmem:[%s7636_s7 + $0xbc] sm:$0x1]  ;;  %v5908_v38 = vld [vmem:[%s7636_s7 + $0xb4] sm:$0xe] }
  0xc4   : > { %v5952_v51 = vcombine.low %v3078_v7, %v3081_v11  ;;  %v3098_v53 = vrot.slane %v5846_v10, 5  ;;  %v3085_v54 = vsel %vm7954_vm5, %v5921_v16, %v3084_v9  ;;  %v3088_v15 = vsel %vm7954_vm5, %v3086_v28, %v3087_v22  ;;  %v7375_v1 = vld [vmem:[%s9590_s1 + $0x90] sm:$0xff]   ;;  %v5852_v4 = vld [vmem:[%s7636_s7 + $0xc4] sm:$0xf]  ;;  %v8227_v2 = vld [vmem:[%s7636_s7 + $0x28] sm:$0xf] }
  0xc5   : > { %v3093_v61 = vrot.slane %v3091_v33, 4  ;;  %v3092_v57 = vsel %vm7954_vm5, %v5922_v43, %v3091_v33  ;;  %v3105_v0 = vrot.slane %v5849_v48, 5  ;;  %v5923_v3 = vrot.slane %v5907_v49, 9  ;;  %v7455_v37 = vld [vmem:[%s7636_s7 + $0x24] sm:$0xf]  ;;  %v7379_v16 = vld [vmem:[%s9590_s1 + $0x98] sm:$0xff]  }
  0xc6   : > { %v5953_v60 = vcombine.low %v3085_v54, %v3088_v15  ;;  %v3100_v29 = vrot.slane %v3098_v53, 4  ;;  %v5657_v6 = vcombine.low %v7455_v37, %v8227_v2  ;;  %v7457_v8 = vld [vmem:[%s7636_s7 + $0x30] sm:$0xf]  ;;  %v8232_v9 = vld [vmem:[%s7636_s7 + $0x34] sm:$0xf]  ;;  %v5924_v39 = vrot.slane %v5908_v38, 9 }
  0xc7   : > { %v3095_v58 = vsel %vm7954_vm5, %v3093_v61, %v3094_v41  ;;  %v5658_v10 = vcombine.low %v7457_v8, %v8232_v9  ;;  %v3108_v14 = vrot.slane %v5850_v35, 5  ;;  %v5909_v22 = vld [vmem:[%s7636_s7 + $0xc0] sm:$0xe]  ;;  %v3099_v11 = vsel %vm7954_vm5, %v5923_v3, %v3098_v53  ;;  %v5853_v23 = vld [vmem:[%s7636_s7 + $0xc8] sm:$0x1]  ;;  %v7382_v37 = vld [vmem:[%s7636_s7 + $0x18] sm:$0xff]  }
  0xc8   : > { %6854 = vmatmul.mubr.bf16.gmra.mrb[16].mxu0 %v5951_v25  ;;  %v5954_v7 = vcombine.low %v3092_v57, %v3095_v58  ;;  %v3112_v25 = vrot.slane %v5852_v4, 5  ;;  %v3106_v28 = vsel %vm7954_vm5, %v5924_v39, %v3105_v0  ;;  %v5925_v33 = vrot.slane %v5909_v22, 9  ;;  %v7459_v41 = vld [vmem:[%s7636_s7 + $0x3c] sm:$0xf]  ;;  %v7461_v54 = vld [vmem:[%s7636_s7 + $0x48] sm:$0xf] }
  0xc9   : > { %6646 = vmatmul.mubr.bf16.vlgmr.msra.gmra.mrb[0].mxu1 %v5655_v21  ;;  %6857 = vmatprep.mubr.bf16.mxu0 %v5952_v51  ;;  %v3107_v21 = vrot.slane %v3105_v0, 4  ;;  %v3115_v53 = vrot.slane %v5853_v23, 5  ;;  %v8258_v15 = vld [vmem:[%s7636_s7 + $0x4c] sm:$0xf]  ;;  %v7396_v0 = vld [vmem:[%s9590_s1 + $0xb0] sm:$0xff]   ;;  %v2465_v3 = vshrl.u32 %v8153_v26, 16 }
  0xca   : > { %6678 = vmatpush3.bf16.msra.mxu1 %v7878_v19  ;;  %6649 = vmatprep.mubr.bf16.mxu1 %v5656_v47  ;;  %v3101_v19 = vrot.slane %v5847_v45, 5  ;;  %v7384_v47 = vld [vmem:[%s9590_s1 + $0xa0] sm:$0xff]   ;;  %v3114_v61 = vrot.slane %v3112_v25, 4  ;;  %v5660_v35 = vcombine.low %v7461_v54, %v8258_v15  ;;  %v7390_v38 = vld [vmem:[%s9590_s1 + $0xa8] sm:$0xff]   ;;  %v3113_v57 = vsel %vm7954_vm5, %v5925_v33, %v3112_v25  ;;  %v7388_v33 = vld [vmem:[%s7636_s7 + $0x30] sm:$0xff]  }
  0xcb   : > { %6679 = vmatprep.subr.bf16.mxu1 %v7371_v34  ;;  %v3109_v43 = vsel %vm7954_vm5, %v3107_v21, %v3108_v14  ;;  %v8253_v45 = vld [vmem:[%s7636_s7 + $0x40] sm:$0xf]  ;;  %v8286_v8 = vrot.slane %v2465_v3, 4  ;;  %v7385_v21 = vld [vmem:[%s7636_s7 + $0x24] sm:$0xff]   ;;  %v1375_v22 = vrot.slane %v8192_v12, 5  ;;  %v2471_v23 = vshll.u32 %v8156_v32, 16 }
  0xcc   : > { %v5659_v49 = vcombine.low %v7459_v41, %v8253_v45  ;;  %v5956_v48 = vcombine.low %v3106_v28, %v3109_v43  ;;  %v3116_v58 = vsel %vm7954_vm5, %v3114_v61, %v3115_v53  ;;  %v1315_v14 = vld [vmem:[%s7636_s7] sm:$0xe]  ;;  %v1316_v25 = vld [vmem:[%s7636_s7 + $0xc] sm:$0xe]  ;;  %v1382_v28 = vrot.slane %v8204_v30, 5 }
  0xcd   : > { %v5957_v4 = vcombine.low %v3113_v57, %v3116_v58  ;;  %v1318_v12 = vld [vmem:[%s7636_s7 + $0x24] sm:$0xe]  ;;  %v5665_v30 = vcombine.low %v8006_v31, %v8014_v55  ;;  %v5666_v41 = vcombine.low %v8035_v17, %v8038_v18  ;;  %v5678_v32 = vrot.slane %v1315_v14, 9  ;;  %v7467_v53 = vld [vmem:[%s7636_s7 + $0x20] sm:$0x1]  ;;  %v7397_v17 = vld [vmem:[%s7636_s7 + $0x54] sm:$0xff]  }
  0xce   : > { %6680 = vmatpush3.bf16.msra.mxu1 %v7371_v34  ;;  %v3102_v34 = vsel %vm7954_vm5, %v3100_v29, %v3101_v19  ;;  %v8275_v29 = vld [vmem:[%s7636_s7 + $0x58] sm:$0xf]  ;;  %v1384_v61 = vrot.slane %v1382_v28, 4  ;;  %v1385_v54 = vrot.slane %v7467_v53, 5  ;;  %v7468_v58 = vld [vmem:[%s7636_s7 + $0x2c] sm:$0x1] }
  0xcf   : > { %6681 = vmatprep.subr.bf16.mxu1 %v7375_v1  ;;  %v5955_v51 = vcombine.low %v3099_v11, %v3102_v34  ;;  %v8301_v11 = vld [vmem:[%s9590_s1 + $0xc0] sm:$0xff]   ;;  %v1317_v34 = vld [vmem:[%s7636_s7 + $0x18] sm:$0xe]  ;;  %v7471_v53 = vld [vmem:[%s7636_s7 + $0x50] sm:$0x1]  ;;  %v1417_v31 = vrot.slane %v8275_v29, 5 }
  0xd0   : > { %6858 = vmatmul.mubr.bf16.gmra.mrb[20].mxu0 %v5953_v60  ;;  %v7463_v60 = vld [vmem:[%s7636_s7 + $0x54] sm:$0xf]  ;;  %v8424_v55 = vld [vmem:[%s7636_s7 + $0x64] sm:$0xf] }
  0xd1   : > { %6650 = vmatmul.mubr.bf16.gmra.mrb[4].mxu1 %v5657_v6  ;;  %6861 = vmatprep.mubr.bf16.mxu0 %v5954_v7  ;;  %v5661_v19 = vcombine.low %v7463_v60, %v8275_v29  ;;  %v5662_v6 = vcombine.low %v7932_v40, %v7935_v50  ;;  %v7402_v7 = vld [vmem:[%s9590_s1 + $0xb8] sm:$0xff]   ;;  %v7466_v40 = vld [vmem:[%s7636_s7 + $0x14] sm:$0x1]  ;;  %v7400_v18 = vld [vmem:[%s7636_s7 + $0x60] sm:$0xff]  }
  0xd2   : > { %6653 = vmatprep.mubr.bf16.mxu1 %v5658_v10  ;;  %6682 = vmatpush3.bf16.msra.mxu1 %v7375_v1  ;;  %v2461_v1 = vshll.u32 %v8153_v26, 16  ;;  %v8289_v10 = vld [vmem:[%s7636_s7 + $0x8] sm:$0x1]  ;;  %v1378_v50 = vrot.slane %v7466_v40, 5 }
  0xd3   : > { %6683 = vmatprep.subr.bf16.mxu1 %v7379_v16  ;;  %v1371_v39 = vrot.slane %v8289_v10, 5 }
  0xd4   : > { %v8284_v26 = vrot.slane %v2461_v1, 5 }
  0xd6   : > { %6684 = vmatpush3.bf16.msra.mxu1 %v7379_v16  ;;  %v1368_v16 = vrot.slane %v8168_v13, 5  ;;  %v5663_v13 = vcombine.low %v7950_v20, %v7962_v36  ;;  %v5679_v36 = vrot.slane %v1316_v25, 9  ;;  %v6038_v25 = vld [vmem:[%s7636_s7 + $0x18] sm:$0xf] }
  0xd7   : > { %6685 = vmatprep.subr.bf16.mxu1 %v7384_v47 }
  0xd8   : > { %6862 = vmatmul.mubr.bf16.gmra.mrb[24].mxu0 %v5955_v51  ;;  %v5664_v51 = vcombine.low %v7973_v62, %v7984_v5  ;;  %v1370_v20 = vrot.slane %v1368_v16, 4  ;;  %v7392_v62 = vld [vmem:[%s9590_s1 + $0x1c8] sm:$0xff]   ;;  %v5680_v5 = vrot.slane %v1317_v34, 9  ;;  %v8344_v10 = vsel %vm7954_vm5, %v5678_v32, %v1368_v16  ;;  %v6039_v34 = vld [vmem:[%s7636_s7 + $0x1c] sm:$0xf] }
  0xd9   : > { %6654 = vmatmul.mubr.bf16.gmra.mrb[8].mxu1 %v5659_v49  ;;  %6865 = vmatprep.mubr.bf16.mxu0 %v5956_v48  ;;  %v1396_v49 = vrot.slane %v8232_v9, 5  ;;  %v1377_v48 = vrot.slane %v1375_v22, 4  ;;  %v5681_v9 = vrot.slane %v1318_v12, 9  ;;  %v1410_v16 = vrot.slane %v8258_v15, 5  ;;  %v7394_v15 = vld [vmem:[%s7636_s7 + $0x48] sm:$0xff]  }
  0xda   : > { %6657 = vmatprep.mubr.bf16.mxu1 %v5660_v35  ;;  %6686 = vmatpush3.bf16.msra.mxu1 %v7384_v47  ;;  %v1389_v47 = vrot.slane %v8227_v2, 5  ;;  %v1319_v2 = vld [vmem:[%s7636_s7 + $0x30] sm:$0xe]  ;;  %v5667_v35 = vcombine.low %v8056_v46, %v8065_v63  ;;  %v8352_v40 = vsel %vm7954_vm5, %v1370_v20, %v1371_v39  ;;  %v8360_v14 = vsel %vm7954_vm5, %v5680_v5, %v1382_v28  ;;  %v1321_v28 = vld [vmem:[%s7636_s7 + $0x48] sm:$0xe] }
  0xdb   : > { %6687 = vmatprep.subr.bf16.mxu1 %v7390_v38  ;;  %v5682_v1 = vrot.slane %v1319_v2, 9  ;;  %v1398_v3 = vrot.slane %v1396_v49, 4  ;;  %v3875_v20 = vshrl.u32 %v6038_v25, 16  ;;  %v3888_v2 = vshrl.u32 %v6039_v34, 16  ;;  %v7403_v63 = vld [vmem:[%s7636_s7 + $0x6c] sm:$0xff]  }
  0xdc   : > { %v1391_v57 = vrot.slane %v1389_v47, 4  ;;  %v8372_v39 = vsel %vm7954_vm5, %v5681_v9, %v1389_v47  ;;  %v7470_v47 = vld [vmem:[%s7636_s7 + $0x44] sm:$0x1]  ;;  %v5684_v5 = vrot.slane %v1321_v28, 9  ;;  %v6042_v28 = vld [vmem:[%s7636_s7 + $0x28] sm:$0xf] }
  0xdd   : > { %v8382_v12 = vsel %vm7954_vm5, %v5682_v1, %v1396_v49  ;;  %v1406_v32 = vrot.slane %v7470_v47, 5  ;;  %v6040_v1 = vld [vmem:[%s7636_s7 + $0x20] sm:$0x1]  ;;  %v1323_v47 = vld [vmem:[%s7636_s7 + $0x60] sm:$0xe] }
  0xde   : > { %6688 = vmatpush3.bf16.msra.mxu1 %v7390_v38  ;;  %v5668_v38 = vcombine.low %v8090_v42, %v8093_v44 }
  0xdf   : > { %6689 = vmatprep.subr.bf16.mxu1 %v7396_v0 }
  0xe0   : > { %6866 = vmatmul.mubr.bf16.gmra.mrb[28].mxu0 %v5957_v4  ;;  %v7469_v4 = vld [vmem:[%s7636_s7 + $0x38] sm:$0x1] }
  0xe1   : > { %6658 = vmatmul.mubr.bf16.gmra.mrb[12].mxu1 %v5661_v19  ;;  %6885 = vmatprep.mubr.bf16.mxu0 %v7382_v37  ;;  %v1399_v60 = vrot.slane %v7469_v4, 5  ;;  %v1320_v19 = vld [vmem:[%s7636_s7 + $0x3c] sm:$0xe]  ;;  %v1403_v37 = vrot.slane %v8253_v45, 5  ;;  %v8348_v45 = vsel %vm7954_vm5, %v5679_v36, %v1375_v22  ;;  %v3878_v36 = vshll.u32 %v6038_v25, 16  ;;  %v7408_v4 = vld [vmem:[%s9590_s1 + $0x1e0] sm:$0xff]  }
  0xe2   : > { %6661 = vmatprep.mubr.bf16.mxu1 %v5662_v6  ;;  %6690 = vmatpush3.bf16.msra.mxu1 %v7396_v0  ;;  %v1392_v0 = vrot.slane %v7468_v58, 5  ;;  %v8335_v6 = vrot.slane %v2471_v23, 5  ;;  %v7391_v22 = vld [vmem:[%s7636_s7 + $0x3c] sm:$0xff]   ;;  %v8368_v23 = vsel %vm7954_vm5, %v1384_v61, %v1385_v54  ;;  %v1412_v61 = vrot.slane %v1410_v16, 4  ;;  %v6044_v58 = vld [vmem:[%s7636_s7 + $0x30] sm:$0xf] }
  0xe3   : > { %6691 = vmatprep.subr.bf16.mxu1 %v7402_v7  ;;  %v1413_v54 = vrot.slane %v7471_v53, 5  ;;  %v3877_v25 = vrot.slane %v3875_v20, 4 }
  0xe4   : > { %9612 = vst [vmem:[#allocation7_spill] sm:$0xff] %v8335_v6 }
  0xe6   : > { %6692 = vmatpush3.bf16.msra.mxu1 %v7402_v7  ;;  %v7398_v7 = vld [vmem:[%s9590_s1 + $0x1d0] sm:$0xff]  }
  0xe7   : > { %6725 = vmatprep.subr.bf16.mxu1 %v8301_v11 }
  0xe8   : > { %6886 = vmatmul.mubr.bf16.vlgmr.msra.gmra.mrb[0].mxu0 %v7385_v21  ;;  %v8356_v21 = vsel %vm7954_vm5, %v1377_v48, %v1378_v50  ;;  %v8376_v50 = vsel %vm7954_vm5, %v1391_v57, %v1392_v0  ;;  %v3884_v48 = vshll.u32 %v6039_v34, 16  ;;  %v3880_v34 = vrot.slane %v3878_v36, 5  ;;  %v1324_v36 = vld [vmem:[%s7636_s7 + $0x6c] sm:$0xe] }
  0xe9   : > { %6662 = vmatmul.mubr.bf16.gmra.mrb[16].mxu1 %v5663_v13  ;;  %6918 = vmatpush3.bf16.msra.mxu0 %v8140_v59  ;;  %v5683_v13 = vrot.slane %v1320_v19, 9  ;;  %v5687_v9 = vrot.slane %v1324_v36, 9 }
  0xea   : > { %6665 = vmatprep.mubr.bf16.mxu1 %v5664_v51  ;;  %6889 = vmatprep.mubr.bf16.mxu0 %v7388_v33  ;;  %v8386_v51 = vsel %vm7954_vm5, %v1398_v3, %v1399_v60  ;;  %v1405_v33 = vrot.slane %v1403_v37, 4  ;;  %v6041_v3 = vld [vmem:[%s7636_s7 + $0x24] sm:$0xf]  ;;  %v3912_v60 = vshrl.u32 %v6042_v28, 16 }
  0xeb   : > { %6919 = vmatprep.subr.bf16.mxu0 %v7392_v62  ;;  %v8403_v0 = vsel %vm7954_vm5, %v5683_v13, %v1403_v37  ;;  %v8420_v37 = vld [vmem:[%s7636_s7 + $0x54] sm:$0xe]  ;;  %v3890_v13 = vrot.slane %v3888_v2, 4  ;;  %v3899_v53 = vshrl.u32 %v6041_v3, 16  ;;  %v3902_v43 = vshll.u32 %v6041_v3, 16 }
  0xec   : > { %v8417_v19 = vsel %vm7954_vm5, %v1405_v33, %v1406_v32  ;;  %v3894_v32 = vshll.u32 %v6040_v1, 16  ;;  %v5685_v20 = vrot.slane %v8420_v37, 9  ;;  %v7412_v1 = vld [vmem:[%s9590_s1 + $0x1e8] sm:$0xff]   ;;  %v1419_v3 = vrot.slane %v1417_v31, 4 }
  0xed   : > { %6920 = vmatpush3.bf16.msra.mxu0 %v7392_v62  ;;  %v7404_v62 = vld [vmem:[%s9590_s1 + $0x1d8] sm:$0xff]   ;;  %v3881_v37 = vor.u32 %v3880_v34, %v3877_v25  ;;  %v3901_v49 = vrot.slane %v3899_v53, 4  ;;  %v3904_v59 = vrot.slane %v3902_v43, 5  ;;  %v7476_v25 = vld [vmem:[%s7636_s7 + $0x74] sm:$0x1]  ;;  %v3914_v43 = vrot.slane %v3912_v60, 4 }
  0xee   : > { %6921 = vmatprep.subr.bf16.mxu0 %v7398_v7  ;;  %v8458_v57 = vrot.slane %v3894_v32, 5  ;;  %v1434_v34 = vrot.slane %v7476_v25, 5  ;;  %v3923_v53 = vshrl.u32 %v6044_v58, 16  ;;  %v8483_v42 = vsel %vm7954_vm5, %v5685_v20, %v1417_v31 }
  0xef   : > { %v3882_v36 = vrot.slane %v3881_v37, 4 }
  0xf0   : > { %6890 = vmatmul.mubr.bf16.gmra.mrb[4].mxu0 %v7391_v22  ;;  %v8430_v22 = vrot.slane %v3884_v48, 5  ;;  %v7474_v48 = vld [vmem:[%s7636_s7 + $0x70] sm:$0xf] }
  0xf1   : > { %6666 = vmatmul.mubr.bf16.gmra.mrb[20].mxu1 %v5665_v30  ;;  %6893 = vmatprep.mubr.bf16.mxu0 %v7394_v15  ;;  %v1424_v30 = vrot.slane %v8424_v55, 5  ;;  %v7473_v15 = vld [vmem:[%s7636_s7 + $0x5c] sm:$0x1]  ;;  %v1431_v2 = vrot.slane %v7474_v48, 5 }
  0xf2   : > { %6669 = vmatprep.mubr.bf16.mxu1 %v5666_v41  ;;  %6922 = vmatpush3.bf16.msra.mxu0 %v7398_v7  ;;  %v1420_v33 = vrot.slane %v7473_v15, 5  ;;  %v8439_v41 = vsel %vm7954_vm5, %v5684_v5, %v1410_v16  ;;  %v8443_v7 = vsel %vm7954_vm5, %v1412_v61, %v1413_v54  ;;  %v7475_v16 = vld [vmem:[%s7636_s7 + $0x68] sm:$0x1]  ;;  %v3908_v15 = vshll.u32 %v6042_v28, 16  ;;  %v7420_v55 = vld [vmem:[%s9590_s1 + $0x1f8] sm:$0xff]  }
  0xf3   : > { %6923 = vmatprep.subr.bf16.mxu0 %v7404_v62  ;;  %v1427_v5 = vrot.slane %v7475_v16, 5  ;;  %v5686_v61 = vrot.slane %v1323_v47, 9  ;;  %v1426_v54 = vrot.slane %v1424_v30, 4  ;;  %v3891_v48 = vor.u32 %v3890_v13, %v8430_v22  ;;  %v6045_v16 = vld [vmem:[%s7636_s7 + $0x34] sm:$0xf] }
  0xf4   : > { %v1433_v47 = vrot.slane %v1431_v2, 4  ;;  %v6043_v13 = vld [vmem:[%s7636_s7 + $0x2c] sm:$0x1]  ;;  %v8470_v32 = vrot.slane %v3908_v15, 5  ;;  %v3932_v28 = vshll.u32 %v6045_v16, 16  ;;  %v3936_v46 = vshrl.u32 %v6045_v16, 16 }
  0xf5   : > { %v3892_v25 = vrot.slane %v3891_v48, 4  ;;  %v8487_v44 = vsel %vm7954_vm5, %v1419_v3, %v1420_v33  ;;  %v8494_v60 = vsel %vm7954_vm5, %v5686_v61, %v1424_v30  ;;  %v8498_v29 = vsel %vm7954_vm5, %v1426_v54, %v1427_v5  ;;  %v1325_v33 = vld [vmem:[%s7636_s7 + $0x78] sm:$0xe] }
  0xf6   : > { %6924 = vmatpush3.bf16.msra.mxu0 %v7404_v62  ;;  %v8502_v31 = vsel %vm7954_vm5, %v5687_v9, %v1431_v2  ;;  %v8512_v30 = vsel %vm7954_vm5, %v1433_v47, %v1434_v34  ;;  %v3915_v20 = vor.u32 %v3914_v43, %v8470_v32  ;;  %v3925_v3 = vrot.slane %v3923_v53, 4  ;;  %v6047_v9 = vld [vmem:[%s7636_s7 + $0x3c] sm:$0xf]  ;;  %v6048_v2 = vld [vmem:[%s7636_s7 + $0x40] sm:$0xf] }
  0xf7   : > { %6925 = vmatprep.subr.bf16.mxu0 %v7408_v4  ;;  %v3887_v15 = vsel %vm7708_vm2, %v3882_v36, %v8430_v22  ;;  %v3897_v61 = vsel %vm7708_vm2, %v3892_v25, %v8458_v57  ;;  %v8523_v54 = vrot.slane %v3932_v28, 5  ;;  %v3938_v37 = vrot.slane %v3936_v46, 4  ;;  %v7478_v34 = vld [vmem:[%s7636_s7 + $0x80] sm:$0x1]  ;;  %v8682_v62 = vld [vmem:[%s7636_s7 + $0x68] sm:$0x1] }
  0xf8   : > { %6894 = vmatmul.mubr.bf16.gmra.mrb[8].mxu0 %v7397_v17  ;;  %v3926_v17 = vshll.u32 %v6044_v58, 16  ;;  %v3918_v58 = vshll.u32 %v6043_v13, 16  ;;  %v5688_v47 = vrot.slane %v1325_v33, 9  ;;  %v1326_v13 = vld [vmem:[%s7636_s7 + $0x84] sm:$0xe]  ;;  %v3947_v43 = vshrl.u32 %v6047_v9, 16 }
  0xf9   : > { %6670 = vmatmul.mubr.bf16.gmra.mrb[24].mxu1 %v5667_v35  ;;  %6897 = vmatprep.mubr.bf16.mxu0 %v7400_v18  ;;  %v7416_v35 = vld [vmem:[%s9590_s1 + $0x1f0] sm:$0xff]   ;;  %v7477_v18 = vld [vmem:[%s7636_s7 + $0x7c] sm:$0xf]  ;;  %v3950_v22 = vshll.u32 %v6047_v9, 16  ;;  %v3956_v53 = vshll.u32 %v6048_v2, 16  ;;  %v9613_v57 = vcombine.low %v8113_v56, %v8118_v27  ;;  %v8534_v28 = vrot.slane %v3915_v20, 4 }
  0xfa   : > { %6673 = vmatprep.mubr.bf16.mxu1 %v5668_v38  ;;  %6926 = vmatpush3.bf16.msra.mxu0 %v7408_v4  ;;  %v3905_v38 = vor.u32 %v3904_v59, %v3901_v49  ;;  %v7405_v4 = vld [vmem:[%s7636_s7 + $0x78] sm:$0xff]   ;;  %v1438_v59 = vrot.slane %v7477_v18, 5  ;;  %v3928_v5 = vrot.slane %v3926_v17, 5  ;;  %v8527_v16 = vrot.slane %v3918_v58, 5  ;;  %v8539_v36 = vld [vmem:[%s9590_s1 + $0x200] sm:$0xff]   ;;  %9621 = vst [vmem:[#allocation10_spill] sm:$0xff] %v8682_v62 }
  0xfb   : > { %6927 = vmatprep.subr.bf16.mxu0 %v7412_v1  ;;  %v6046_v49 = vld [vmem:[%s7636_s7 + $0x38] sm:$0x1]  ;;  %v3960_v17 = vshrl.u32 %v6048_v2, 16  ;;  %v7407_v58 = vld [vmem:[%s7636_s7 + $0x84] sm:$0xff]   ;;  %v3939_v27 = vor.u32 %v3938_v37, %v8523_v54  ;;  %v3952_v9 = vrot.slane %v3950_v22, 5  ;;  %v8561_v2 = vrot.slane %v3956_v53, 5 }
  0xfc   : > { %v8525_v48 = vrot.slane %v3905_v38, 4  ;;  %v1440_v25 = vrot.slane %v1438_v59, 4  ;;  %v3929_v46 = vor.u32 %v3928_v5, %v3925_v3  ;;  %v9614_v38 = vcombine.low %v8344_v10, %v8352_v40  ;;  %v7479_v33 = vld [vmem:[%s7636_s7 + $0x88] sm:$0xf]  ;;  %v6049_v20 = vld [vmem:[%s7636_s7 + $0x44] sm:$0x1] }
  0xfd   : > { %v1445_v18 = vrot.slane %v7479_v33, 5  ;;  %v8552_v10 = vcombine.low %v3887_v15, %v3897_v61  ;;  %v6050_v3 = vld [vmem:[%s7636_s7 + $0x48] sm:$0xf]  ;;  %v3949_v5 = vrot.slane %v3947_v43, 4  ;;  %v3962_v37 = vrot.slane %v3960_v17, 4 }
  0xfe   : > { %6928 = vmatpush3.bf16.msra.mxu0 %v7412_v1  ;;  %v1441_v1 = vrot.slane %v7478_v34, 5  ;;  %v7409_v34 = vld [vmem:[%s7636_s7 + $0x90] sm:$0xff]   ;;  %v3911_v15 = vsel %vm7708_vm2, %v8525_v48, %v8470_v32  ;;  %v3930_v61 = vrot.slane %v3929_v46, 4  ;;  %v3921_v43 = vsel %vm7708_vm2, %v8534_v28, %v8527_v16  ;;  %v8583_v48 = vld [vmem:[%s7636_s7 + $0x58] sm:$0xf]  ;;  %v7410_v46 = vld [vmem:[%s9590_s1 + $0xc8] sm:$0xff]  }
  0xff   : > { %6929 = vmatprep.subr.bf16.mxu0 %v7416_v35  ;;  %v3940_v53 = vrot.slane %v3939_v27, 4  ;;  %v1447_v17 = vrot.slane %v1445_v18, 4  ;;  %v6053_v32 = vld [vmem:[%s7636_s7 + $0x54] sm:$0xf]  ;;  %v3966_v16 = vshll.u32 %v6049_v20, 16  ;;  %v3971_v28 = vshrl.u32 %v6050_v3, 16 }
 0x100   : > { %6898 = vmatmul.mubr.bf16.gmra.mrb[12].mxu0 %v7403_v63  ;;  %v3942_v63 = vshll.u32 %v6046_v49, 16  ;;  %v8579_v22 = vsel %vm7954_vm5, %v1440_v25, %v1441_v1  ;;  %v3974_v1 = vshll.u32 %v6050_v3, 16  ;;  %v3953_v25 = vor.u32 %v3952_v9, %v3949_v5  ;;  %v7411_v5 = vld [vmem:[%s7636_s7 + $0x9c] sm:$0xff]   ;;  %v7485_v56 = vld [vmem:[%s7636_s7 + $0xac] sm:$0xf] }
 0x101   : > { %6674 = vmatmul.mubr.bf16.gmra.mrb[28].mxu1 %v9613_v57  ;;  %6901 = vmatprep.mubr.bf16.mxu0 %v7405_v4  ;;  %v5689_v4 = vrot.slane %v1326_v13, 9  ;;  %v7480_v57 = vld [vmem:[%s7636_s7 + $0x8c] sm:$0x1]  ;;  %v4004_v20 = vshll.u32 %v8583_v48, 16  ;;  %v9616_v3 = vcombine.low %v8360_v14, %v8368_v23  ;;  %v8619_v14 = vld [vmem:[%s7636_s7 + $0x50] sm:$0x1] }
 0x102   : > { %6693 = vmatprep.mubr.bf16.mxu1 %v9614_v38  ;;  %6930 = vmatpush3.bf16.msra.mxu0 %v7416_v35  ;;  %v8558_v35 = vsel %vm7954_vm5, %v5688_v47, %v1438_v59  ;;  %v3944_v13 = vrot.slane %v3942_v63, 5  ;;  %v1448_v38 = vrot.slane %v7480_v57, 5  ;;  %v1327_v59 = vld [vmem:[%s7636_s7 + $0x90] sm:$0xe]  ;;  %v8571_v47 = vld [vmem:[%s7636_s7 + $0x4c] sm:$0xf]  ;;  %v3963_v63 = vor.u32 %v3962_v37, %v8561_v2 }
 0x103   : > { %6931 = vmatprep.subr.bf16.mxu0 %v7420_v55  ;;  %v3980_v27 = vshll.u32 %v8571_v47, 16  ;;  %v3984_v33 = vshrl.u32 %v8571_v47, 16  ;;  %v9615_v57 = vcombine.low %v8348_v45, %v8356_v21  ;;  %v7414_v45 = vld [vmem:[%s9590_s1 + $0xd0] sm:$0xff]   ;;  %v3935_v21 = vsel %vm7708_vm2, %v3930_v61, %v8523_v54  ;;  %v7413_v23 = vld [vmem:[%s7636_s7 + $0xa8] sm:$0xff]   ;;  %v8626_v54 = vld [vmem:[%s7636_s7 + $0x5c] sm:$0x1] }
 0x104   : > { %v3945_v9 = vsel %vm7708_vm2, %v3940_v53, %v3944_v13  ;;  %v5690_v37 = vrot.slane %v1327_v59, 9  ;;  %v3976_v40 = vrot.slane %v3974_v1, 5  ;;  %9617 = vst [vmem:[#allocation8_spill] sm:$0xff] %v8626_v54  ;;  %v3954_v61 = vrot.slane %v3953_v25, 4 }
 0x105   : > { %v3964_v13 = vrot.slane %v3963_v63, 4  ;;  %v8628_v53 = vrot.slane %v3980_v27, 5  ;;  %v8630_v49 = vrot.slane %v4004_v20, 5  ;;  %v8635_v1 = vcombine.low %v3911_v15, %v3921_v43  ;;  %v6056_v43 = vld [vmem:[%s7636_s7 + $0x60] sm:$0xf] }
 0x106   : > { %6932 = vmatpush3.bf16.msra.mxu0 %v7420_v55  ;;  %v8591_v55 = vsel %vm7954_vm5, %v5689_v4, %v1445_v18  ;;  %v3995_v4 = vshrl.u32 %v6053_v32, 16  ;;  %v3998_v18 = vshll.u32 %v6053_v32, 16  ;;  %v7481_v32 = vld [vmem:[%s7636_s7 + $0x94] sm:$0xf]  ;;  %v8639_v63 = vcombine.low %v3935_v21, %v3945_v9 }
 0x107   : > { %6965 = vmatprep.subr.bf16.mxu0 %v8539_v36  ;;  %v3990_v15 = vshll.u32 %v8619_v14, 16  ;;  %v3959_v21 = vsel %vm7708_vm2, %v3954_v61, %v8561_v2  ;;  %v9620_v61 = vcombine.low %v8382_v12, %v8386_v51 }
 0x108   : > { %6902 = vmatmul.mubr.bf16.gmra.mrb[16].mxu0 %v7407_v58  ;;  %v4008_v58 = vshrl.u32 %v8583_v48, 16  ;;  %v3997_v59 = vrot.slane %v3995_v4, 4  ;;  %v7482_v4 = vld [vmem:[%s7636_s7 + $0x98] sm:$0x1] }
 0x109   : > { %6694 = vmatmul.mubr.bf16.vlgmr.msra.gmra.mrb[0].mxu1 %v9615_v57  ;;  %6905 = vmatprep.mubr.bf16.mxu0 %v7409_v34  ;;  %v8622_v34 = vrot.slane %v3966_v16, 5  ;;  %v1452_v57 = vrot.slane %v7481_v32, 5  ;;  %v7483_v32 = vld [vmem:[%s7636_s7 + $0xa0] sm:$0xf]  ;;  %v3992_v51 = vrot.slane %v3990_v15, 5 }
 0x10a   : > { %6726 = vmatpush3.bf16.msra.mxu1 %v8301_v11  ;;  %6697 = vmatprep.mubr.bf16.mxu1 %v9616_v3  ;;  %v8616_v11 = vsel %vm7954_vm5, %v1447_v17, %v1448_v38  ;;  %v3973_v3 = vrot.slane %v3971_v28, 4  ;;  %v3986_v38 = vrot.slane %v3984_v33, 4  ;;  %v4000_v17 = vrot.slane %v3998_v18, 5  ;;  %v7418_v28 = vld [vmem:[%s9590_s1 + $0xd8] sm:$0xff]  }
 0x10b   : > { %6727 = vmatprep.subr.bf16.mxu1 %v7410_v46  ;;  %v4010_v16 = vrot.slane %v4008_v58, 4  ;;  %v1328_v33 = vld [vmem:[%s7636_s7 + $0x9c] sm:$0xe]  ;;  %v1455_v18 = vrot.slane %v7482_v4, 5  ;;  %v8652_v58 = vld [vmem:[%s7636_s7 + $0x64] sm:$0xf] }
 0x10c   : > { %v3977_v20 = vor.u32 %v3976_v40, %v3973_v3  ;;  %9618 = vst [vmem:[#allocation9_spill] sm:$0xff] %v8652_v58  ;;  %v3987_v9 = vor.u32 %v3986_v38, %v8628_v53  ;;  %v1459_v27 = vrot.slane %v7483_v32, 5  ;;  %v9619_v40 = vcombine.low %v8372_v39, %v8376_v50  ;;  %v7415_v38 = vld [vmem:[%s7636_s7 + $0xb4] sm:$0xff]   ;;  %v7421_v39 = vld [vmem:[%s9590_s1 + $0xe0] sm:$0xff]   ;;  %v6059_v32 = vld [vmem:[%s7636_s7 + $0x6c] sm:$0xf] }
 0x10d   : > { %v1454_v3 = vrot.slane %v1452_v57, 4  ;;  %v4001_v4 = vor.u32 %v4000_v17, %v3997_v59  ;;  %v4011_v2 = vor.u32 %v4010_v16, %v8630_v49  ;;  %v4019_v50 = vshrl.u32 %v6056_v43, 16  ;;  %v7484_v17 = vld [vmem:[%s7636_s7 + $0xa4] sm:$0x1] }
 0x10e   : > { %6728 = vmatpush3.bf16.msra.mxu1 %v7410_v46  ;;  %v8646_v46 = vsel %vm7954_vm5, %v5690_v37, %v1452_v57  ;;  %v4014_v37 = vshll.u32 %v8626_v54, 16  ;;  %v4032_v57 = vshrl.u32 %v8652_v58, 16  ;;  %v3978_v12 = vrot.slane %v3977_v20, 4  ;;  %v8821_v54 = vld [vmem:[%s7636_s7 + $0x98] sm:$0x1] }
 0x10f   : > { %6729 = vmatprep.subr.bf16.mxu1 %v7414_v45  ;;  %v5691_v59 = vrot.slane %v1328_v33, 9  ;;  %v1462_v16 = vrot.slane %v7484_v17, 5  ;;  %v4002_v20 = vrot.slane %v4001_v4, 4  ;;  %v4012_v33 = vrot.slane %v4011_v2, 4  ;;  %9634 = vst [vmem:[#allocation19_spill] sm:$0xff] %v8821_v54 }
 0x110   : > { %6906 = vmatmul.mubr.bf16.gmra.mrb[20].mxu0 %v7411_v5  ;;  %v3969_v5 = vsel %vm7708_vm2, %v3964_v13, %v8622_v34  ;;  %v4028_v34 = vshll.u32 %v8652_v58, 16  ;;  %v7417_v13 = vld [vmem:[%s7636_s7 + $0xc0] sm:$0xff]   ;;  %v4016_v25 = vrot.slane %v4014_v37, 5  ;;  %v8688_v58 = vsel %vm7954_vm5, %v1454_v3, %v1455_v18 }
 0x111   : > { %6698 = vmatmul.mubr.bf16.gmra.mrb[4].mxu1 %v9619_v40  ;;  %6909 = vmatprep.mubr.bf16.mxu0 %v7413_v23  ;;  %v4022_v23 = vshll.u32 %v6056_v43, 16  ;;  %v3988_v40 = vrot.slane %v3987_v9, 4  ;;  %v1466_v43 = vrot.slane %v7485_v56, 5  ;;  %v8684_v6 = vcombine.low %v3959_v21, %v3969_v5  ;;  %v7423_v56 = vld [vmem:[%s9590_s1 + $0xe8] sm:$0xff]  }
 0x112   : > { %6701 = vmatprep.mubr.bf16.mxu1 %v9620_v61  ;;  %6730 = vmatpush3.bf16.msra.mxu1 %v7414_v45  ;;  %v1329_v45 = vld [vmem:[%s7636_s7 + $0xa8] sm:$0xe]  ;;  %v1461_v61 = vrot.slane %v1459_v27, 4  ;;  %v4021_v15 = vrot.slane %v4019_v50, 4  ;;  %v8690_v9 = vrot.slane %v4028_v34, 5  ;;  %v4034_v37 = vrot.slane %v4032_v57, 4 }
 0x113   : > { %6731 = vmatprep.subr.bf16.mxu1 %v7418_v28  ;;  %v4024_v17 = vrot.slane %v4022_v23, 5  ;;  %v3983_v18 = vsel %vm7708_vm2, %v3978_v12, %v8628_v53  ;;  %v8700_v21 = vsel %vm7954_vm5, %v5691_v59, %v1459_v27  ;;  %v4043_v5 = vshrl.u32 %v6059_v32, 16  ;;  %v7486_v53 = vld [vmem:[%s7636_s7 + $0xb0] sm:$0x1]  ;;  %v1330_v34 = vld [vmem:[%s7636_s7 + $0xb4] sm:$0xe] }
 0x114   : > { %v4046_v3 = vshll.u32 %v6059_v32, 16  ;;  %v3993_v4 = vsel %vm7708_vm2, %v3988_v40, %v3992_v51  ;;  %v8709_v2 = vsel %vm7954_vm5, %v1461_v61, %v1462_v16  ;;  %v5692_v50 = vrot.slane %v1329_v45, 9  ;;  %v8731_v45 = vld [vmem:[%s7636_s7 + $0x74] sm:$0x1]  ;;  %v7487_v40 = vld [vmem:[%s7636_s7 + $0xb8] sm:$0xf] }
 0x115   : > { %v1469_v23 = vrot.slane %v7486_v53, 5  ;;  %v9623_v27 = vcombine.low %v8403_v0, %v8417_v19  ;;  %v4007_v57 = vsel %vm7708_vm2, %v4002_v20, %v8630_v49  ;;  %v4017_v12 = vsel %vm7708_vm2, %v4012_v33, %v4016_v25  ;;  %v7419_v19 = vld [vmem:[%s7636_s7 + $0xcc] sm:$0xff]   ;;  %9625 = vst [vmem:[#allocation12_spill] sm:$0xff] %v8731_v45  ;;  %v6065_v53 = vld [vmem:[%s7636_s7 + $0x84] sm:$0xf] }
 0x116   : > { %6732 = vmatpush3.bf16.msra.mxu1 %v7418_v28  ;;  %v8703_v28 = vld [vmem:[%s7636_s7 + $0x70] sm:$0xf]  ;;  %v1468_v51 = vrot.slane %v1466_v43, 4  ;;  %v4038_v59 = vshll.u32 %v8682_v62, 16  ;;  %v9624_v0 = vcombine.low %v8439_v41, %v8443_v7  ;;  %v4035_v16 = vor.u32 %v4034_v37, %v8690_v9  ;;  %v8748_v37 = vld [vmem:[%s7636_s7 + $0x7c] sm:$0xf] }
 0x117   : > { %6733 = vmatprep.subr.bf16.mxu1 %v7421_v39  ;;  %9622 = vst [vmem:[#allocation11_spill] sm:$0xff] %v8703_v28  ;;  %v4052_v49 = vshll.u32 %v8703_v28, 16  ;;  %v4056_v25 = vshrl.u32 %v8703_v28, 16  ;;  %v5693_v32 = vrot.slane %v1330_v34, 9  ;;  %v1473_v61 = vrot.slane %v7487_v40, 5  ;;  %9626 = vst [vmem:[#allocation13_spill] sm:$0xff] %v8748_v37 }
 0x118   : > { %6910 = vmatmul.mubr.bf16.gmra.mrb[24].mxu0 %v7415_v38  ;;  %v7425_v38 = vld [vmem:[%s9590_s1 + $0xf0] sm:$0xff]   ;;  %v4045_v41 = vrot.slane %v4043_v5, 4  ;;  %v4048_v7 = vrot.slane %v4046_v3, 5  ;;  %v8739_v33 = vcombine.low %v3983_v18, %v3993_v4  ;;  %v8751_v34 = vcombine.low %v4007_v57, %v4017_v12  ;;  %v7488_v18 = vld [vmem:[%s7636_s7 + $0xbc] sm:$0x1] }
 0x119   : > { %6702 = vmatmul.mubr.bf16.gmra.mrb[8].mxu1 %v9623_v27  ;;  %6913 = vmatprep.mubr.bf16.mxu0 %v7417_v13  ;;  %v4025_v13 = vor.u32 %v4024_v17, %v4021_v15  ;;  %v8745_v17 = vsel %vm7954_vm5, %v5692_v50, %v1466_v43  ;;  %v8755_v5 = vsel %vm7954_vm5, %v1468_v51, %v1469_v23  ;;  %v8757_v3 = vrot.slane %v4038_v59, 5  ;;  %v7427_v27 = vld [vmem:[%s9590_s1 + $0xf8] sm:$0xff]   ;;  %v8764_v43 = vld [vmem:[%s7636_s7 + $0x88] sm:$0xf] }
 0x11a   : > { %6705 = vmatprep.mubr.bf16.mxu1 %v9624_v0  ;;  %6734 = vmatpush3.bf16.msra.mxu1 %v7421_v39  ;;  %v6062_v39 = vld [vmem:[%s7636_s7 + $0x78] sm:$0xf]  ;;  %v1476_v4 = vrot.slane %v7488_v18, 5  ;;  %9627 = vst [vmem:[#allocation14_spill] sm:$0xff] %v8764_v43  ;;  %v8768_v57 = vrot.slane %v4035_v16, 4  ;;  %v8770_v12 = vrot.slane %v4052_v49, 5  ;;  %v8774_v51 = vsel %vm7954_vm5, %v5693_v32, %v1473_v61 }
 0x11b   : > { %6735 = vmatprep.subr.bf16.mxu1 %v7423_v56  ;;  %v8766_v50 = vrot.slane %v4025_v13, 4  ;;  %v4058_v23 = vrot.slane %v4056_v25, 4  ;;  %v1475_v59 = vrot.slane %v1473_v61, 4  ;;  %v4049_v0 = vor.u32 %v4048_v7, %v4045_v41  ;;  %v6068_v18 = vld [vmem:[%s7636_s7 + $0x90] sm:$0xf] }
 0x11c   : > { %v4062_v40 = vshll.u32 %v8731_v45, 16  ;;  %v4070_v15 = vshll.u32 %v6062_v39, 16  ;;  %v4076_v13 = vshll.u32 %v8748_v37, 16  ;;  %v4080_v16 = vshrl.u32 %v8748_v37, 16  ;;  %v8781_v49 = vld [vmem:[%s7636_s7 + $0x94] sm:$0xf] }
 0x11d   : > { %9628 = vst [vmem:[#allocation15_spill] sm:$0xff] %v8781_v49  ;;  %v9629_v25 = vcombine.low %v8483_v42, %v8487_v44  ;;  %v4091_v32 = vshrl.u32 %v6065_v53, 16  ;;  %v4094_v61 = vshll.u32 %v6065_v53, 16  ;;  %v4104_v41 = vshrl.u32 %v8764_v43, 16  ;;  %v6071_v53 = vld [vmem:[%s7636_s7 + $0x9c] sm:$0xf] }
 0x11e   : > { %6736 = vmatpush3.bf16.msra.mxu1 %v7423_v56  ;;  %v4067_v56 = vshrl.u32 %v6062_v39, 16  ;;  %v9630_v7 = vcombine.low %v8494_v60, %v8498_v29  ;;  %v4059_v44 = vor.u32 %v4058_v23, %v8770_v12  ;;  %v4118_v39 = vshll.u32 %v6068_v18, 16  ;;  %v8803_v60 = vld [vmem:[%s7636_s7 + $0x80] sm:$0x1] }
 0x11f   : > { %6737 = vmatprep.subr.bf16.mxu1 %v7425_v38  ;;  %v8800_v20 = vrot.slane %v4062_v40, 5  ;;  %9631 = vst [vmem:[#allocation16_spill] sm:$0xff] %v8803_v60  ;;  %v4124_v29 = vshll.u32 %v8781_v49, 16  ;;  %v4072_v42 = vrot.slane %v4070_v15, 5  ;;  %v4082_v23 = vrot.slane %v4080_v16, 4 }
 0x120   : > { %6914 = vmatmul.mubr.bf16.gmra.mrb[28].mxu0 %v7419_v19  ;;  %v4100_v19 = vshll.u32 %v8764_v43, 16  ;;  %v8807_v43 = vrot.slane %v4076_v13, 5  ;;  %v8813_v37 = vld [vmem:[%s7636_s7 + $0xa0] sm:$0xf]  ;;  %v4093_v40 = vrot.slane %v4091_v32, 4  ;;  %v4096_v45 = vrot.slane %v4094_v61, 5 }
 0x121   : > { %6706 = vmatmul.mubr.bf16.gmra.mrb[12].mxu1 %v9629_v25  ;;  %6933 = vmatprep.mubr.bf16.mxu0 %v8552_v10  ;;  %v4115_v10 = vshrl.u32 %v6068_v18, 16  ;;  %v8798_v25 = vrot.slane %v4049_v0, 4  ;;  %v8810_v18 = vld [vmem:[%s7636_s7 + $0x8c] sm:$0x1]  ;;  %9633 = vst [vmem:[#allocation18_spill] sm:$0xff] %v8813_v37  ;;  %v4106_v62 = vrot.slane %v4104_v41, 4  ;;  %v8830_v13 = vsel %vm7954_vm5, %v1475_v59, %v1476_v4 }
 0x122   : > { %6709 = vmatprep.mubr.bf16.mxu1 %v9630_v7  ;;  %6738 = vmatpush3.bf16.msra.mxu1 %v7425_v38  ;;  %v4128_v38 = vshrl.u32 %v8781_v49, 16  ;;  %v4069_v7 = vrot.slane %v4067_v56, 4  ;;  %9632 = vst [vmem:[#allocation17_spill] sm:$0xff] %v8810_v18  ;;  %v7424_v0 = vld [vmem:[%s9590_s1 + $0x208] sm:$0xff]   ;;  %v8818_v28 = vrot.slane %v4100_v19, 5  ;;  %v4120_v49 = vrot.slane %v4118_v39, 5 }
 0x123   : > { %6739 = vmatprep.subr.bf16.mxu1 %v7427_v27  ;;  %v6074_v56 = vld [vmem:[%s7636_s7 + $0xa8] sm:$0xf]  ;;  %v4117_v16 = vrot.slane %v4115_v10, 4  ;;  %v8835_v32 = vld [vmem:[%s9590_s1 + $0x100] sm:$0xff]   ;;  %v8838_v61 = vrot.slane %v4124_v29, 5  ;;  %v4139_v41 = vshrl.u32 %v6071_v53, 16  ;;  %v9636_v39 = vcombine.low %v8502_v31, %v8512_v30 }
 0x124   : > { %9635 = vst [vmem:[#allocation20_spill] sm:$0xff] %v8835_v32  ;;  %v4130_v19 = vrot.slane %v4128_v38, 4  ;;  %v4142_v15 = vshll.u32 %v6071_v53, 16  ;;  %v8841_v4 = vrot.slane %v4059_v44, 4  ;;  %v4148_v59 = vshll.u32 %v8813_v37, 16  ;;  %v7426_v31 = vld [vmem:[%s9590_s1 + $0x210] sm:$0xff]  }
 0x125   : > { %v4152_v10 = vshrl.u32 %v8813_v37, 16  ;;  %v4073_v29 = vor.u32 %v4072_v42, %v4069_v7  ;;  %v4083_v53 = vor.u32 %v4082_v23, %v8807_v43  ;;  %v4097_v38 = vor.u32 %v4096_v45, %v4093_v40  ;;  %v8853_v44 = vld [vmem:[%s7636_s7 + $0xac] sm:$0xf]  ;;  %v8866_v40 = vld [vmem:[%s7636_s7 + $0xa4] sm:$0x1] }
 0x126   : > { %6740 = vmatpush3.bf16.msra.mxu1 %v7427_v27  ;;  %v4086_v27 = vshll.u32 %v8803_v60, 16  ;;  %9637 = vst [vmem:[#allocation21_spill] sm:$0xff] %v8853_v44  ;;  %v4107_v30 = vor.u32 %v4106_v62, %v8818_v28  ;;  %v4163_v42 = vshrl.u32 %v6074_v56, 16  ;;  %v4166_v45 = vshll.u32 %v6074_v56, 16 }
 0x127   : > { %7013 = vmatprep.subr.bf16.mxu1 %v8835_v32  ;;  %v9638_v32 = vcombine.low %v8558_v35, %v8579_v22  ;;  %v4121_v7 = vor.u32 %v4120_v49, %v4117_v16  ;;  %v4131_v23 = vor.u32 %v4130_v19, %v8838_v61  ;;  %v4141_v35 = vrot.slane %v4139_v41, 4 }
 0x128   : > { %6934 = vmatmul.mubr.bf16.vlgmr.msra.gmra.mrb[0].mxu0 %v8635_v1  ;;  %v4110_v1 = vshll.u32 %v8810_v18, 16  ;;  %v4144_v22 = vrot.slane %v4142_v15, 5  ;;  %v4176_v37 = vshrl.u32 %v8853_v44, 16  ;;  %v4074_v62 = vrot.slane %v4073_v29, 4  ;;  %v7428_v15 = vld [vmem:[%s9590_s1 + $0x218] sm:$0xff]  }
 0x129   : > { %6710 = vmatmul.mubr.bf16.gmra.mrb[16].mxu1 %v9636_v39  ;;  %6966 = vmatpush3.bf16.msra.mxu0 %v8539_v36  ;;  %v4134_v36 = vshll.u32 %v8821_v54, 16  ;;  %v4172_v39 = vshll.u32 %v8853_v44, 16  ;;  %v4084_v54 = vrot.slane %v4083_v53, 4  ;;  %v4088_v18 = vrot.slane %v4086_v27, 5 }
 0x12a   : > { %6713 = vmatprep.mubr.bf16.mxu1 %v9638_v32  ;;  %6937 = vmatprep.mubr.bf16.mxu0 %v8639_v63  ;;  %v8868_v32 = vrot.slane %v4148_v59, 5  ;;  %v4154_v63 = vrot.slane %v4152_v10, 4  ;;  %v4112_v56 = vrot.slane %v4110_v1, 5  ;;  %v4098_v49 = vrot.slane %v4097_v38, 4 }
 0x12b   : > { %6967 = vmatprep.subr.bf16.mxu0 %v7424_v0  ;;  %v4108_v16 = vrot.slane %v4107_v30, 4  ;;  %v4165_v19 = vrot.slane %v4163_v42, 4  ;;  %v4168_v60 = vrot.slane %v4166_v45, 5  ;;  %v4122_v41 = vrot.slane %v4121_v7, 4  ;;  %v8934_v42 = vld [vmem:[%s7636_s7 + $0xbc] sm:$0x1] }
 0x12c   : > { %v4136_v59 = vrot.slane %v4134_v36, 5  ;;  %v4145_v10 = vor.u32 %v4144_v22, %v4141_v35  ;;  %v4158_v44 = vshll.u32 %v8866_v40, 16  ;;  %v4155_v27 = vor.u32 %v4154_v63, %v8868_v32  ;;  %v8901_v36 = vld [vmem:[%s7636_s7 + $0xb0] sm:$0x1] }
 0x12d   : > { %6968 = vmatpush3.bf16.msra.mxu0 %v7424_v0  ;;  %v4132_v0 = vrot.slane %v4131_v23, 4  ;;  %v8878_v29 = vrot.slane %v4172_v39, 5  ;;  %v4178_v53 = vrot.slane %v4176_v37, 4  ;;  %v9639_v38 = vor.u32 %v8286_v8, %v8284_v26 }
 0x12e   : > { %6969 = vmatprep.subr.bf16.mxu0 %v7426_v31  ;;  %v9640_v30 = vcombine.low %v8591_v55, %v8616_v11  ;;  %v4065_v37 = vsel %vm7708_vm2, %v8841_v4, %v8800_v20  ;;  %v4079_v8 = vsel %vm7708_vm2, %v4074_v62, %v8807_v43  ;;  %v9641_v55 = vcombine.low %v8646_v46, %v8688_v58  ;;  %v7431_v46 = vld [vmem:[%s9590_s1 + $0x220] sm:$0xff]  }
 0x12f   : > { %v8883_v1 = vrot.slane %v9639_v38, 4  ;;  %v4089_v11 = vsel %vm7708_vm2, %v4084_v54, %v4088_v18  ;;  %v4169_v20 = vor.u32 %v4168_v60, %v4165_v19  ;;  %v4113_v43 = vsel %vm7708_vm2, %v4108_v16, %v4112_v56  ;;  %v6130_v56 = vld [vmem:[%s7636_s7 + $0x48] sm:$0xe] }
 0x130   : > { %6938 = vmatmul.mubr.bf16.gmra.mrb[4].mxu0 %v8684_v6  ;;  %v4055_v6 = vsel %vm7708_vm2, %v8798_v25, %v8770_v12  ;;  %v6077_v12 = vld [vmem:[%s7636_s7 + $0xb4] sm:$0xf]  ;;  %v8913_v25 = vld [vmem:[%s7636_s7 + $0xb8] sm:$0xf]  ;;  %v4127_v54 = vsel %vm7708_vm2, %v4122_v41, %v8838_v61  ;;  %v8923_v58 = vrot.slane %v4145_v10, 4  ;;  %v8925_v18 = vrot.slane %v4158_v44, 5 }
 0x131   : > { %6714 = vmatmul.mubr.bf16.gmra.mrb[20].mxu1 %v9640_v30  ;;  %6941 = vmatprep.mubr.bf16.mxu0 %v8739_v33  ;;  %v4103_v33 = vsel %vm7708_vm2, %v4098_v49, %v8818_v28  ;;  %v4137_v28 = vsel %vm7708_vm2, %v4132_v0, %v4136_v59  ;;  %v8929_v60 = vrot.slane %v4155_v27, 4  ;;  %v4179_v4 = vor.u32 %v4178_v53, %v8878_v29  ;;  %v6131_v41 = vld [vmem:[%s7636_s7 + $0x54] sm:$0xe] }
 0x132   : > { %6717 = vmatprep.mubr.bf16.mxu1 %v9641_v55  ;;  %6970 = vmatpush3.bf16.msra.mxu0 %v7426_v31  ;;  %v4182_v31 = vshll.u32 %v8901_v36, 16  ;;  %v9642_v61 = vsel %vm7708_vm2, %v8768_v57, %v8757_v3  ;;  %v9643_v44 = vsel %vm7708_vm2, %v8766_v50, %v8690_v9  ;;  %v4187_v7 = vshrl.u32 %v6077_v12, 16 }
 0x133   : > { %6971 = vmatprep.subr.bf16.mxu0 %v7428_v15  ;;  %v6108_v45 = vcombine.low %v9643_v44, %v9642_v61  ;;  %v4190_v23 = vshll.u32 %v6077_v12, 16  ;;  %v4196_v35 = vshll.u32 %v8913_v25, 16  ;;  %v5724_v22 = vcombine.low %v8745_v17, %v8755_v5  ;;  %v7434_v17 = vld [vmem:[%s9590_s1 + $0x228] sm:$0xff]   ;;  %v6080_v5 = vld [vmem:[%s7636_s7 + $0xc0] sm:$0xf] }
 0x134   : > { %v5725_v63 = vcombine.low %v8774_v51, %v8830_v13  ;;  %v6109_v39 = vcombine.low %v4055_v6, %v4065_v37  ;;  %v8951_v3 = vrot.slane %v4169_v20, 4  ;;  %v6110_v57 = vcombine.low %v4079_v8, %v4089_v11  ;;  %v9647_v44 = vld [vmem:[#allocation10_spill] sm:$0xff] }
 0x135   : > { %v8953_v9 = vcombine.low %v4103_v33, %v4113_v43  ;;  %v8955_v50 = vcombine.low %v4127_v54, %v4137_v28  ;;  %v4151_v62 = vsel %vm7708_vm2, %v8923_v58, %v8868_v32  ;;  %v4161_v49 = vsel %vm7708_vm2, %v8929_v60, %v8925_v18  ;;  %v6133_v43 = vld [vmem:[%s7636_s7 + $0x6c] sm:$0xe] }
 0x136   : > { %6972 = vmatpush3.bf16.msra.mxu0 %v7428_v15  ;;  %v8971_v16 = vrot.slane %v4179_v4, 4  ;;  %v8973_v19 = vrot.slane %v4182_v31, 5  ;;  %v4200_v15 = vshrl.u32 %v8913_v25, 16  ;;  %v9644_v59 = vcombine.low %v8700_v21, %v8709_v2  ;;  %v7437_v21 = vld [vmem:[%s9590_s1 + $0x230] sm:$0xff]   ;;  %v8995_v2 = vld [vmem:[%s7636_s7 + $0xc4] sm:$0xf] }
 0x137   : > { %6973 = vmatprep.subr.bf16.mxu0 %v7431_v46  ;;  %v8980_v10 = vrot.slane %v4187_v7, 4  ;;  %v8984_v0 = vrot.slane %v4196_v35, 5  ;;  %v4206_v27 = vshll.u32 %v8934_v42, 16  ;;  %v4175_v53 = vsel %vm7708_vm2, %v8951_v3, %v8878_v29  ;;  %v6132_v29 = vld [vmem:[%s7636_s7 + $0x60] sm:$0xe]  ;;  %v9645_v54 = vld [vmem:[#allocation8_spill] sm:$0xff] }
 0x138   : > { %6942 = vmatmul.mubr.bf16.gmra.mrb[8].mxu0 %v8751_v34  ;;  %v8982_v34 = vrot.slane %v4190_v23, 5  ;;  %v4211_v38 = vshrl.u32 %v6080_v5, 16  ;;  %v6146_v30 = vrot.slane %v6130_v56, 9  ;;  %v4674_v6 = vrot.slane %v8571_v47, 5  ;;  %v7429_v28 = vld [vmem:[%s7636_s7 + $0xc] sm:$0xff]   ;;  %v9646_v31 = vld [vmem:[#allocation9_spill] sm:$0xff] }
 0x139   : > { %6718 = vmatmul.mubr.bf16.gmra.mrb[24].mxu1 %v9644_v59  ;;  %6945 = vmatprep.mubr.bf16.mxu0 %v6108_v45  ;;  %v4214_v37 = vshll.u32 %v6080_v5, 16  ;;  %v4677_v8 = vrot.slane %v8619_v14, 5  ;;  %v6147_v55 = vrot.slane %v6131_v41, 9  ;;  %v4681_v11 = vrot.slane %v8583_v48, 5  ;;  %v7440_v7 = vld [vmem:[%s9590_s1 + $0x238] sm:$0xff]   ;;  %v9648_v3 = vld [vmem:[#allocation11_spill] sm:$0xff] }
 0x13a   : > { %6721 = vmatprep.mubr.bf16.mxu1 %v5724_v22  ;;  %6974 = vmatpush3.bf16.msra.mxu0 %v7431_v46  ;;  %v4185_v33 = vsel %vm7708_vm2, %v8971_v16, %v8973_v19  ;;  %v9005_v20 = vrot.slane %v4200_v15, 4  ;;  %v9009_v12 = vsel %vm7954_vm5, %v6146_v30, %v4674_v6  ;;  %v4676_v47 = vrot.slane %v4674_v6, 4  ;;  %v9649_v19 = vld [vmem:[#allocation12_spill] sm:$0xff]  ;;  %v9046_v41 = vld [vmem:[%s7636_s7 + $0xc8] sm:$0x1] }
 0x13b   : > { %6975 = vmatprep.subr.bf16.mxu0 %v7434_v17  ;;  %v4220_v46 = vshll.u32 %v8995_v2, 16  ;;  %v9015_v14 = vsel %vm7954_vm5, %v6147_v55, %v4681_v11  ;;  %v4683_v48 = vrot.slane %v4681_v11, 4  ;;  %v4684_v18 = vrot.slane %v9645_v54, 5  ;;  %v7430_v55 = vld [vmem:[%s7636_s7 + $0x18] sm:$0xff]   ;;  %v7432_v54 = vld [vmem:[%s7636_s7 + $0x24] sm:$0xff]  }
 0x13c   : > { %v9021_v60 = vsel %vm7954_vm5, %v4676_v47, %v4677_v8  ;;  %v6148_v4 = vrot.slane %v6132_v29, 9  ;;  %v4688_v61 = vrot.slane %v9646_v31, 5  ;;  %v4691_v45 = vrot.slane %v9647_v44, 5 }
 0x13d   : > { %v6178_v23 = vcombine.low %v9009_v12, %v9021_v60  ;;  %v9032_v35 = vsel %vm7954_vm5, %v4683_v48, %v4684_v18  ;;  %v6149_v22 = vrot.slane %v6133_v43, 9  ;;  %v4698_v15 = vrot.slane %v9649_v19, 5  ;;  %v9651_v43 = vld [vmem:[#allocation16_spill] sm:$0xff] }
 0x13e   : > { %6976 = vmatpush3.bf16.msra.mxu0 %v7434_v17  ;;  %v4695_v17 = vrot.slane %v9648_v3, 5  ;;  %v6179_v5 = vcombine.low %v9015_v14, %v9032_v35  ;;  %v9039_v56 = vsel %vm7954_vm5, %v6148_v4, %v4688_v61  ;;  %v4690_v16 = vrot.slane %v4688_v61, 4  ;;  %v9652_v4 = vld [vmem:[#allocation7_spill] sm:$0xff]  ;;  %v5839_v12 = vld [vmem:[%s7636_s7 + $0x90] sm:$0xf] }
 0x13f   : > { %6977 = vmatprep.subr.bf16.mxu0 %v7437_v21  ;;  %v9048_v59 = vrot.slane %v4211_v38, 4  ;;  %v9061_v51 = vcombine.low %v4151_v62, %v4161_v49  ;;  %v4193_v13 = vor.u32 %v8982_v34, %v8980_v10  ;;  %v6134_v38 = vld [vmem:[%s7636_s7 + $0x78] sm:$0xe]  ;;  %v9073_v8 = vrot.slane %v4206_v27, 5  ;;  %v6083_v27 = vld [vmem:[%s7636_s7 + $0xcc] sm:$0xf] }
 0x140   : > { %6946 = vmatmul.mubr.bf16.gmra.mrb[12].mxu0 %v6109_v39  ;;  %v9050_v39 = vrot.slane %v4214_v37, 5  ;;  %v9054_v30 = vsel %vm7954_vm5, %v6149_v22, %v4695_v17  ;;  %v4697_v6 = vrot.slane %v4695_v17, 4  ;;  %v9071_v37 = vcombine.low %v4175_v53, %v4185_v33  ;;  %v5833_v62 = vld [vmem:[%s7636_s7 + $0x78] sm:$0xf]  ;;  %v7446_v60 = vld [vmem:[%s7636_s7 + $0xa8] sm:$0xff]  }
 0x141   : > { %6722 = vmatmul.mubr.bf16.gmra.mrb[28].mxu1 %v5725_v63  ;;  %6949 = vmatprep.mubr.bf16.mxu0 %v6110_v57  ;;  %v4224_v63 = vshrl.u32 %v8995_v2, 16  ;;  %v9068_v57 = vsel %vm7954_vm5, %v4690_v16, %v4691_v45  ;;  %v4203_v49 = vor.u32 %v9005_v20, %v8984_v0  ;;  %v9084_v10 = vrot.slane %v4220_v46, 5  ;;  %v9650_v33 = vld [vmem:[#allocation13_spill] sm:$0xff]  ;;  %v9098_v46 = vld [vmem:[%s7636_s7 + $0xd0] sm:$0xf]  ;;  %v9653_v16 = vld [vmem:[#allocation14_spill] sm:$0xff] }
 0x142   : > { %6741 = vmatprep.mubr.bf16.mxu1 %v7429_v28  ;;  %6978 = vmatpush3.bf16.msra.mxu0 %v7437_v21  ;;  %v6180_v32 = vcombine.low %v9039_v56, %v9068_v57  ;;  %v9079_v58 = vsel %vm7954_vm5, %v4697_v6, %v4698_v15  ;;  %v4230_v34 = vshll.u32 %v9046_v41, 16  ;;  %v6135_v21 = vld [vmem:[%s7636_s7 + $0x84] sm:$0xe]  ;;  %v4217_v11 = vor.u32 %v9050_v39, %v9048_v59  ;;  %v9654_v39 = vld [vmem:[#allocation17_spill] sm:$0xff]  ;;  %v7510_v14 = vld [vmem:[%s7636_s7 + $0x8c] sm:$0x1] }
 0x143   : > { %6979 = vmatprep.subr.bf16.mxu0 %v7440_v7  ;;  %v6181_v53 = vcombine.low %v9054_v30, %v9079_v58  ;;  %v6150_v29 = vrot.slane %v6134_v38, 9  ;;  %v4702_v47 = vrot.slane %v9650_v33, 5  ;;  %v4705_v48 = vrot.slane %v9651_v43, 5 }
 0x144   : > { %v4226_v20 = vrot.slane %v4224_v63, 4  ;;  %v2452_v18 = vshrl.u32 %v5833_v62, 16  ;;  %v2455_v28 = vshll.u32 %v5833_v62, 16  ;;  %v2474_v31 = vsel %vm7708_vm2, %v8883_v1, %v9652_v4 }
 0x145   : > { %v4235_v61 = vshrl.u32 %v6083_v27, 16  ;;  %v9106_v44 = vsel %vm7954_vm5, %v6150_v29, %v4702_v47  ;;  %v4704_v45 = vrot.slane %v4702_v47, 4  ;;  %v6151_v22 = vrot.slane %v6135_v21, 9  ;;  %v7490_v21 = vld [vmem:[%s9590_s1 + $0x108] sm:$0xff]  }
 0x146   : > { %6980 = vmatpush3.bf16.msra.mxu0 %v7440_v7  ;;  %v4238_v3 = vshll.u32 %v6083_v27, 16  ;;  %v2454_v17 = vrot.slane %v2452_v18, 4  ;;  %v2457_v7 = vrot.slane %v2455_v28, 5  ;;  %v4709_v19 = vrot.slane %v9653_v16, 5  ;;  %v6136_v27 = vld [vmem:[%s7636_s7 + $0x90] sm:$0xe] }
 0x147   : > { %v4244_v1 = vshll.u32 %v9098_v46, 16  ;;  %v4248_v15 = vshrl.u32 %v9098_v46, 16  ;;  %v9115_v59 = vsel %vm7954_vm5, %v4704_v45, %v4705_v48  ;;  %v4712_v6 = vrot.slane %v9654_v39, 5  ;;  %v7433_v18 = vld [vmem:[%s7636_s7 + $0x30] sm:$0xff]  }
 0x148   : > { %6950 = vmatmul.mubr.bf16.gmra.mrb[16].mxu0 %v8953_v9  ;;  %v9655_v9 = vld [vmem:[#allocation20_spill] sm:$0xff]  ;;  %v4227_v63 = vor.u32 %v4226_v20, %v9084_v10  ;;  %v2458_v38 = vor.u32 %v2457_v7, %v2454_v17  ;;  %v4711_v62 = vrot.slane %v4709_v19, 4  ;;  %v4204_v29 = vrot.slane %v4203_v49, 4  ;;  %v9136_v28 = vld [vmem:[%s7636_s7 + $0xd4] sm:$0x1]  ;;  %v9656_v17 = vld [vmem:[#allocation15_spill] sm:$0xff] }
 0x149   : > { %6742 = vmatmul.mubr.bf16.vlgmr.msra.gmra.mrb[0].mxu1 %v7430_v55  ;;  %6953 = vmatprep.mubr.bf16.mxu0 %v8955_v50  ;;  %v6182_v50 = vcombine.low %v9106_v44, %v9115_v59  ;;  %v4194_v55 = vrot.slane %v4193_v13, 4  ;;  %v4232_v33 = vrot.slane %v4230_v34, 5  ;;  %v9128_v47 = vsel %vm7954_vm5, %v6151_v22, %v4709_v19  ;;  %v7435_v34 = vld [vmem:[%s7636_s7 + $0x3c] sm:$0xff]   ;;  %v7491_v16 = vld [vmem:[%s9590_s1 + $0x110] sm:$0xff]  }
 0x14a   : > { %7021 = vmatpush3.bf16.msra.mxu1 %v9655_v9  ;;  %6745 = vmatprep.mubr.bf16.mxu1 %v7432_v54  ;;  %v4237_v43 = vrot.slane %v4235_v61, 4  ;;  %v4240_v48 = vrot.slane %v4238_v3, 5  ;;  %v2459_v54 = vrot.slane %v2458_v38, 4  ;;  %v9132_v20 = vsel %vm7954_vm5, %v4711_v62, %v4712_v6  ;;  %v7492_v62 = vld [vmem:[%s7636_s7 + $0x1c] sm:$0xf] }
 0x14b   : > { %7014 = vmatprep.subr.bf16.mxu1 %v7490_v21  ;;  %v9138_v4 = vrot.slane %v4244_v1, 5  ;;  %v4250_v45 = vrot.slane %v4248_v15, 4  ;;  %v6183_v13 = vcombine.low %v9128_v47, %v9132_v20  ;;  %v6152_v49 = vrot.slane %v6136_v27, 9 }
 0x14c   : > { %v4218_v22 = vrot.slane %v4217_v11, 4  ;;  %v4228_v61 = vrot.slane %v4227_v63, 4  ;;  %v2464_v3 = vsel %vm7708_vm2, %v2459_v54, %v8284_v26  ;;  %v4716_v7 = vrot.slane %v9656_v17, 5  ;;  %v9657_v26 = vld [vmem:[#allocation19_spill] sm:$0xff]  ;;  %v7494_v17 = vld [vmem:[%s7636_s7 + $0x20] sm:$0x1] }
 0x14d   : > { %v4199_v19 = vsel %vm7708_vm2, %v4194_v55, %v8984_v0  ;;  %v4209_v11 = vsel %vm7708_vm2, %v4204_v29, %v9073_v8  ;;  %v9156_v1 = vcombine.low %v2464_v3, %v2474_v31  ;;  %v4719_v15 = vrot.slane %v9657_v26, 5  ;;  %v6126_v8 = vld [vmem:[%s7636_s7 + $0x18] sm:$0xe]  ;;  %v6137_v31 = vld [vmem:[%s7636_s7 + $0x9c] sm:$0xe]  ;;  %v7436_v54 = vld [vmem:[%s7636_s7 + $0x48] sm:$0xff]  }
 0x14e   : > { %7022 = vmatpush3.bf16.msra.mxu1 %v7490_v21  ;;  %v4241_v39 = vor.u32 %v4240_v48, %v4237_v43  ;;  %v4254_v6 = vshll.u32 %v9136_v28, 16  ;;  %v9163_v9 = vsel %vm7954_vm5, %v6152_v49, %v4716_v7  ;;  %v4718_v63 = vrot.slane %v4716_v7, 4  ;;  %v7493_v55 = vld [vmem:[%s9590_s1 + $0x118] sm:$0xff]   ;;  %v6138_v26 = vld [vmem:[%s7636_s7 + $0xa8] sm:$0xe] }
 0x14f   : > { %7015 = vmatprep.subr.bf16.mxu1 %v7491_v16  ;;  %v4251_v0 = vor.u32 %v4250_v45, %v9138_v4  ;;  %v4233_v38 = vsel %vm7708_vm2, %v4228_v61, %v4232_v33  ;;  %v4646_v27 = vrot.slane %v7492_v62, 5  ;;  %v6115_v21 = vcombine.low %v4199_v19, %v4209_v11  ;;  %v9658_v49 = vld [vmem:[#allocation18_spill] sm:$0xff]  ;;  %v7438_v61 = vld [vmem:[%s7636_s7 + $0x54] sm:$0xff]  }
 0x150   : > { %6954 = vmatmul.mubr.bf16.gmra.mrb[20].mxu0 %v9061_v51  ;;  %v4223_v51 = vsel %vm7708_vm2, %v4218_v22, %v9084_v10  ;;  %v4242_v29 = vrot.slane %v4241_v39, 4  ;;  %v4256_v43 = vrot.slane %v4254_v6, 5  ;;  %v6142_v33 = vrot.slane %v6126_v8, 9  ;;  %v6127_v6 = vld [vmem:[%s7636_s7 + $0x24] sm:$0xe] }
 0x151   : > { %6746 = vmatmul.mubr.bf16.gmra.mrb[4].mxu1 %v7433_v18  ;;  %6957 = vmatprep.mubr.bf16.mxu0 %v9071_v37  ;;  %v9177_v37 = vsel %vm7954_vm5, %v4718_v63, %v4719_v15  ;;  %v6153_v48 = vrot.slane %v6137_v31, 9  ;;  %v6116_v18 = vcombine.low %v4223_v51, %v4233_v38  ;;  %v4252_v45 = vrot.slane %v4251_v0, 4  ;;  %v7496_v63 = vld [vmem:[%s7636_s7 + $0x28] sm:$0xf]  ;;  %v7497_v51 = vld [vmem:[%s7636_s7 + $0x34] sm:$0xf] }
 0x152   : > { %6749 = vmatprep.mubr.bf16.mxu1 %v7435_v34  ;;  %7023 = vmatpush3.bf16.msra.mxu1 %v7491_v16  ;;  %v6184_v10 = vcombine.low %v9163_v9, %v9177_v37  ;;  %v4723_v34 = vrot.slane %v9658_v49, 5  ;;  %v4726_v22 = vrot.slane %v8866_v40, 5  ;;  %v4648_v3 = vrot.slane %v4646_v27, 4  ;;  %v7495_v16 = vld [vmem:[%s9590_s1 + $0x120] sm:$0xff]  }
 0x153   : > { %7016 = vmatprep.subr.bf16.mxu1 %v7493_v55  ;;  %v4649_v7 = vrot.slane %v7494_v17, 5  ;;  %v4647_v40 = vsel %vm7954_vm5, %v6142_v33, %v4646_v27  ;;  %v4247_v15 = vsel %vm7708_vm2, %v4242_v29, %v9138_v4  ;;  %v4257_v39 = vsel %vm7708_vm2, %v4252_v45, %v4256_v43  ;;  %v6128_v27 = vld [vmem:[%s7636_s7 + $0x30] sm:$0xe]  ;;  %v7439_v45 = vld [vmem:[%s7636_s7 + $0x60] sm:$0xff]  }
 0x154   : > { %v9194_v19 = vsel %vm7954_vm5, %v6153_v48, %v4723_v34  ;;  %v4725_v11 = vrot.slane %v4723_v34, 4  ;;  %v4653_v0 = vrot.slane %v7496_v63, 5  ;;  %v4660_v38 = vrot.slane %v7497_v51, 5  ;;  %v7499_v48 = vld [vmem:[%s7636_s7 + $0x2c] sm:$0x1] }
 0x155   : > { %v4650_v31 = vsel %vm7954_vm5, %v4648_v3, %v4649_v7  ;;  %v6154_v62 = vrot.slane %v6138_v26, 9  ;;  %v6117_v43 = vcombine.low %v4247_v15, %v4257_v39  ;;  %v6143_v33 = vrot.slane %v6127_v6, 9  ;;  %v7441_v3 = vld [vmem:[%s7636_s7 + $0x6c] sm:$0xff]   ;;  %v6139_v26 = vld [vmem:[%s7636_s7 + $0xb4] sm:$0xe] }
 0x156   : > { %7024 = vmatpush3.bf16.msra.mxu1 %v7493_v55  ;;  %v9208_v8 = vsel %vm7954_vm5, %v4725_v11, %v4726_v22  ;;  %v9659_v55 = vld [vmem:[#allocation21_spill] sm:$0xff]  ;;  %v6174_v49 = vcombine.low %v4647_v40, %v4650_v31  ;;  %v4655_v34 = vrot.slane %v4653_v0, 4  ;;  %v6144_v17 = vrot.slane %v6128_v27, 9  ;;  %v6129_v15 = vld [vmem:[%s7636_s7 + $0x3c] sm:$0xe] }
 0x157   : > { %7017 = vmatprep.subr.bf16.mxu1 %v7495_v16  ;;  %v6185_v4 = vcombine.low %v9194_v19, %v9208_v8  ;;  %v4730_v29 = vrot.slane %v9659_v55, 5  ;;  %v4662_v7 = vrot.slane %v4660_v38, 4  ;;  %v7501_v39 = vld [vmem:[%s7636_s7 + $0x40] sm:$0xf]  ;;  %v4654_v63 = vsel %vm7954_vm5, %v6143_v33, %v4653_v0  ;;  %v7503_v33 = vld [vmem:[%s7636_s7 + $0x44] sm:$0x1] }
 0x158   : > { %6958 = vmatmul.mubr.bf16.gmra.mrb[24].mxu0 %v6115_v21  ;;  %v7498_v21 = vld [vmem:[%s9590_s1 + $0x128] sm:$0xff]   ;;  %v4667_v6 = vrot.slane %v7501_v39, 5  ;;  %v4737_v27 = vrot.slane %v8913_v25, 5  ;;  %v4661_v0 = vsel %vm7954_vm5, %v6144_v17, %v4660_v38  ;;  %v7504_v25 = vld [vmem:[%s9590_s1 + $0x138] sm:$0xff]   ;;  %v6140_v38 = vld [vmem:[%s7636_s7 + $0xc0] sm:$0xe] }
 0x159   : > { %6750 = vmatmul.mubr.bf16.gmra.mrb[8].mxu1 %v7436_v54  ;;  %6961 = vmatprep.mubr.bf16.mxu0 %v6116_v18  ;;  %v4656_v54 = vrot.slane %v7499_v48, 5  ;;  %v4733_v18 = vrot.slane %v8901_v36, 5  ;;  %v9225_v22 = vsel %vm7954_vm5, %v6154_v62, %v4730_v29  ;;  %v7502_v36 = vld [vmem:[%s9590_s1 + $0x130] sm:$0xff]   ;;  %v6155_v62 = vrot.slane %v6139_v26, 9 }
 0x15a   : > { %6753 = vmatprep.mubr.bf16.mxu1 %v7438_v61  ;;  %7025 = vmatpush3.bf16.msra.mxu1 %v7495_v16  ;;  %v4732_v61 = vrot.slane %v4730_v29, 4  ;;  %v7500_v16 = vld [vmem:[%s7636_s7 + $0x38] sm:$0x1]  ;;  %v6145_v29 = vrot.slane %v6129_v15, 9  ;;  %v4670_v48 = vrot.slane %v7503_v33, 5  ;;  %v4744_v26 = vrot.slane %v8995_v2, 5 }
 0x15b   : > { %7018 = vmatprep.subr.bf16.mxu1 %v7498_v21  ;;  %v4663_v11 = vrot.slane %v7500_v16, 5  ;;  %v4657_v51 = vsel %vm7954_vm5, %v4655_v34, %v4656_v54  ;;  %v4739_v54 = vrot.slane %v4737_v27, 4  ;;  %v5830_v34 = vld [vmem:[%s7636_s7 + $0x6c] sm:$0xf]  ;;  %v7444_v33 = vld [vmem:[%s7636_s7 + $0x90] sm:$0xff]   ;;  %v2495_v35 = vshll.u32 %v7510_v14, 16 }
 0x15c   : > { %v9237_v40 = vsel %vm7954_vm5, %v4732_v61, %v4733_v18  ;;  %v6175_v18 = vcombine.low %v4654_v63, %v4657_v51  ;;  %v4668_v16 = vsel %vm7954_vm5, %v6145_v29, %v4667_v6  ;;  %v2428_v15 = vshrl.u32 %v5830_v34, 16  ;;  %v6141_v2 = vld [vmem:[%s7636_s7 + $0xcc] sm:$0xe] }
 0x15d   : > { %v6186_v31 = vcombine.low %v9225_v22, %v9237_v40  ;;  %v4664_v55 = vsel %vm7954_vm5, %v4662_v7, %v4663_v11  ;;  %v6156_v7 = vrot.slane %v6140_v38, 9  ;;  %v2431_v39 = vshll.u32 %v5830_v34, 16 }
 0x15e   : > { %7026 = vmatpush3.bf16.msra.mxu1 %v7498_v21  ;;  %v4740_v21 = vrot.slane %v8934_v42, 5  ;;  %v9257_v42 = vsel %vm7954_vm5, %v6155_v62, %v4737_v27  ;;  %v4747_v51 = vrot.slane %v9046_v41, 5  ;;  %v4746_v27 = vrot.slane %v4744_v26, 4 }
 0x15f   : > { %7019 = vmatprep.subr.bf16.mxu1 %v7502_v36  ;;  %v2433_v41 = vrot.slane %v2431_v39, 5  ;;  %v4754_v38 = vrot.slane %v9136_v28, 5 }
 0x160   : > { %6962 = vmatmul.mubr.bf16.gmra.mrb[28].mxu0 %v6117_v43  ;;  %v4669_v43 = vrot.slane %v4667_v6, 4  ;;  %v9264_v61 = vsel %vm7954_vm5, %v4739_v54, %v4740_v21  ;;  %v9278_v6 = vsel %vm7954_vm5, %v6156_v7, %v4744_v26  ;;  %v4751_v54 = vrot.slane %v9098_v46, 5  ;;  %v7506_v7 = vld [vmem:[%s7636_s7 + $0x74] sm:$0x1] }
 0x161   : > { %6754 = vmatmul.mubr.bf16.gmra.mrb[12].mxu1 %v7439_v45  ;;  %6981 = vmatprep.mubr.bf16.mxu0 %v6174_v49  ;;  %v7442_v45 = vld [vmem:[%s7636_s7 + $0x78] sm:$0xff]   ;;  %v6176_v49 = vcombine.low %v4661_v0, %v4664_v55  ;;  %v6187_v17 = vcombine.low %v9257_v42, %v9264_v61  ;;  %v9283_v0 = vsel %vm7954_vm5, %v4746_v27, %v4747_v51  ;;  %v2430_v55 = vrot.slane %v2428_v15, 4  ;;  %v7507_v15 = vld [vmem:[%s7636_s7 + $0x88] sm:$0xf] }
 0x162   : > { %6757 = vmatprep.mubr.bf16.mxu1 %v7441_v3  ;;  %7027 = vmatpush3.bf16.msra.mxu1 %v7502_v36  ;;  %v7443_v3 = vld [vmem:[%s7636_s7 + $0x84] sm:$0xff]   ;;  %v4671_v11 = vsel %vm7954_vm5, %v4669_v43, %v4670_v48  ;;  %v7505_v36 = vld [vmem:[%s7636_s7 + $0x70] sm:$0xf]  ;;  %v6188_v43 = vcombine.low %v9278_v6, %v9283_v0  ;;  %v4753_v34 = vrot.slane %v4751_v54, 4  ;;  %v2485_v39 = vshll.u32 %v7507_v15, 16 }
 0x163   : > { %7020 = vmatprep.subr.bf16.mxu1 %v7504_v25  ;;  %v2437_v63 = vshll.u32 %v7505_v36, 16  ;;  %v2441_v62 = vshrl.u32 %v7505_v36, 16  ;;  %v6177_v21 = vcombine.low %v4668_v16, %v4671_v11  ;;  %v2447_v16 = vshll.u32 %v7506_v7, 16 }
 0x164   : > { %v9305_v26 = vsel %vm7954_vm5, %v4753_v34, %v4754_v38  ;;  %v2489_v36 = vshrl.u32 %v7507_v15, 16  ;;  %v7509_v34 = vld [vmem:[%s7636_s7 + $0xa0] sm:$0xf] }
 0x165   : > { %v9285_v29 = vrot.slane %v2437_v63, 5  ;;  %v2443_v48 = vrot.slane %v2441_v62, 4  ;;  %v2537_v7 = vshrl.u32 %v7509_v34, 16 }
 0x166   : > { %7028 = vmatpush3.bf16.msra.mxu1 %v7504_v25  ;;  %v6157_v25 = vrot.slane %v6141_v2, 9 }
 0x167   : > { %v2444_v46 = vor.u32 %v2443_v48, %v9285_v29  ;;  %v2503_v48 = vshll.u32 %v5839_v12, 16 }
 0x168   : > { %6982 = vmatmul.mubr.bf16.vlgmr.msra.gmra.mrb[0].mxu0 %v6175_v18  ;;  %v7445_v18 = vld [vmem:[%s7636_s7 + $0x9c] sm:$0xff]  }
 0x169   : > { %6758 = vmatmul.mubr.bf16.gmra.mrb[16].mxu1 %v7442_v45  ;;  %6985 = vmatprep.mubr.bf16.mxu0 %v6176_v49  ;;  %v5836_v45 = vld [vmem:[%s7636_s7 + $0x84] sm:$0xf]  ;;  %v9296_v49 = vsel %vm7954_vm5, %v6157_v25, %v4751_v54  ;;  %v2445_v62 = vrot.slane %v2444_v46, 4  ;;  %v7508_v25 = vld [vmem:[%s7636_s7 + $0x94] sm:$0xf]  ;;  %v2505_v15 = vrot.slane %v2503_v48, 5 }
 0x16a   : > { %6761 = vmatprep.mubr.bf16.mxu1 %v7443_v3  ;;  %v2434_v3 = vor.u32 %v2433_v41, %v2430_v55  ;;  %v2476_v28 = vshrl.u32 %v5836_v45, 16  ;;  %v2479_v11 = vshll.u32 %v5836_v45, 16  ;;  %v6189_v63 = vcombine.low %v9296_v49, %v9305_v26 }
 0x16b   : > { %v9314_v55 = vrot.slane %v2485_v39, 5  ;;  %v2491_v41 = vrot.slane %v2489_v36, 4  ;;  %v2509_v54 = vshll.u32 %v7508_v25, 16  ;;  %v2513_v38 = vshrl.u32 %v7508_v25, 16  ;;  %v7512_v25 = vld [vmem:[%s7636_s7 + $0xa4] sm:$0x1] }
 0x16c   : > { %v2435_v51 = vrot.slane %v2434_v3, 4  ;;  %v2478_v27 = vrot.slane %v2476_v28, 4  ;;  %v2481_v2 = vrot.slane %v2479_v11, 5  ;;  %v2533_v3 = vshll.u32 %v7509_v34, 16  ;;  %v7513_v34 = vld [vmem:[%s7636_s7 + $0xac] sm:$0xf] }
 0x16d   : > { %v2492_v28 = vor.u32 %v2491_v41, %v9314_v55  ;;  %v9331_v56 = vrot.slane %v2509_v54, 5  ;;  %v2515_v57 = vrot.slane %v2513_v38, 4  ;;  %v2539_v36 = vrot.slane %v2537_v7, 4  ;;  %v5848_v38 = vld [vmem:[%s7636_s7 + $0xb4] sm:$0xf] }
 0x16e   : > { %v2543_v54 = vshll.u32 %v7512_v25, 16  ;;  %v2561_v30 = vshrl.u32 %v7513_v34, 16  ;;  %v2575_v14 = vshll.u32 %v5848_v38, 16 }
 0x16f   : > { %v2516_v41 = vor.u32 %v2515_v57, %v9331_v56 }
 0x170   : > { %6986 = vmatmul.mubr.bf16.gmra.mrb[4].mxu0 %v6177_v21  ;;  %v5842_v21 = vld [vmem:[%s7636_s7 + $0x9c] sm:$0xf] }
 0x171   : > { %6762 = vmatmul.mubr.bf16.gmra.mrb[20].mxu1 %v7444_v33  ;;  %6989 = vmatprep.mubr.bf16.mxu0 %v6178_v23  ;;  %v2449_v23 = vrot.slane %v2447_v16, 5  ;;  %v2500_v33 = vshrl.u32 %v5839_v12, 16  ;;  %v2527_v45 = vshll.u32 %v5842_v21, 16  ;;  %v2440_v16 = vsel %vm7708_vm2, %v2435_v51, %v9285_v29  ;;  %v7448_v12 = vld [vmem:[%s7636_s7 + $0xc0] sm:$0xff]  }
 0x172   : > { %6765 = vmatprep.mubr.bf16.mxu1 %v7445_v18  ;;  %v2524_v18 = vshrl.u32 %v5842_v21, 16  ;;  %v9333_v29 = vrot.slane %v2533_v3, 5  ;;  %v2557_v3 = vshll.u32 %v7513_v34, 16 }
 0x173   : > { %v2450_v46 = vsel %vm7708_vm2, %v2445_v62, %v2449_v23  ;;  %v2502_v11 = vrot.slane %v2500_v33, 4  ;;  %v2529_v39 = vrot.slane %v2527_v45, 5  ;;  %v2497_v23 = vrot.slane %v2495_v35, 5  ;;  %v7514_v35 = vld [vmem:[%s7636_s7 + $0xb8] sm:$0xf] }
 0x174   : > { %v2493_v62 = vrot.slane %v2492_v28, 4  ;;  %v2540_v48 = vor.u32 %v2539_v36, %v9333_v29  ;;  %v2581_v44 = vshll.u32 %v7514_v35, 16  ;;  %v2585_v59 = vshrl.u32 %v7514_v35, 16 }
 0x176   : > { %v2541_v28 = vrot.slane %v2540_v48, 4 }
 0x178   : > { %6990 = vmatmul.mubr.bf16.gmra.mrb[8].mxu0 %v6179_v5  ;;  %v2482_v5 = vor.u32 %v2481_v2, %v2478_v27  ;;  %v2506_v27 = vor.u32 %v2505_v15, %v2502_v11  ;;  %v7511_v2 = vld [vmem:[%s7636_s7 + $0x98] sm:$0x1]  ;;  %v2545_v11 = vrot.slane %v2543_v54, 5 }
 0x179   : > { %6766 = vmatmul.mubr.bf16.gmra.mrb[24].mxu1 %v7446_v60  ;;  %6993 = vmatprep.mubr.bf16.mxu0 %v6180_v32  ;;  %v2526_v32 = vrot.slane %v2524_v18, 4  ;;  %v5878_v60 = vcombine.low %v2440_v16, %v2450_v46  ;;  %v2519_v21 = vshll.u32 %v7511_v2, 16  ;;  %v2572_v46 = vshrl.u32 %v5848_v38, 16 }
 0x17a   : > { %6769 = vmatprep.mubr.bf16.mxu1 %v7447_v24  ;;  %v2483_v51 = vrot.slane %v2482_v5, 4  ;;  %v5845_v24 = vld [vmem:[%s7636_s7 + $0xa8] sm:$0xf]  ;;  %v2507_v7 = vrot.slane %v2506_v27, 4  ;;  %v2546_v47 = vsel %vm7708_vm2, %v2541_v28, %v2545_v11 }
 0x17b   : > { %v2530_v33 = vor.u32 %v2529_v39, %v2526_v32  ;;  %v2548_v18 = vshrl.u32 %v5845_v24, 16  ;;  %v2551_v45 = vshll.u32 %v5845_v24, 16  ;;  %v2521_v16 = vrot.slane %v2519_v21, 5 }
 0x17c   : > { %v2488_v58 = vsel %vm7708_vm2, %v2483_v51, %v9314_v55  ;;  %v2559_v32 = vrot.slane %v2557_v3, 5  ;;  %v2563_v39 = vrot.slane %v2561_v30, 4  ;;  %v2574_v36 = vrot.slane %v2572_v46, 4  ;;  %v5851_v51 = vld [vmem:[%s7636_s7 + $0xc0] sm:$0xf] }
 0x17d   : > { %v2531_v5 = vrot.slane %v2530_v33, 4  ;;  %v2550_v15 = vrot.slane %v2548_v18, 4  ;;  %v2553_v57 = vrot.slane %v2551_v45, 5  ;;  %v2596_v24 = vshrl.u32 %v5851_v51, 16  ;;  %v7516_v33 = vld [vmem:[%s7636_s7 + $0xc4] sm:$0xf] }
 0x17e   : > { %v2605_v48 = vshll.u32 %v7516_v33, 16 }
 0x17f   : > { %v2536_v2 = vsel %vm7708_vm2, %v2531_v5, %v9333_v29  ;;  %v2554_v20 = vor.u32 %v2553_v57, %v2550_v15  ;;  %v2609_v29 = vshrl.u32 %v7516_v33, 16  ;;  %v2598_v34 = vrot.slane %v2596_v24, 4 }
 0x180   : > { %6994 = vmatmul.mubr.bf16.gmra.mrb[12].mxu0 %v6181_v53  ;;  %v2498_v53 = vsel %vm7708_vm2, %v2493_v62, %v2497_v23  ;;  %v2587_v23 = vrot.slane %v2585_v59, 4  ;;  %v2512_v62 = vsel %vm7708_vm2, %v2507_v7, %v9331_v56  ;;  %v7515_v56 = vld [vmem:[%s7636_s7 + $0xb0] sm:$0x1]  ;;  %v5882_v9 = vcombine.low %v2536_v2, %v2546_v47  ;;  %v7518_v59 = vld [vmem:[%s7636_s7 + $0xc8] sm:$0x1] }
 0x181   : > { %6770 = vmatmul.mubr.bf16.gmra.mrb[28].mxu1 %v7448_v12  ;;  %6997 = vmatprep.mubr.bf16.mxu0 %v6182_v50  ;;  %v2517_v50 = vrot.slane %v2516_v41, 4  ;;  %v5880_v55 = vcombine.low %v2488_v58, %v2498_v53  ;;  %v2577_v12 = vrot.slane %v2575_v14, 5  ;;  %v2567_v21 = vshll.u32 %v7515_v56, 16 }
 0x182   : > { %6805 = vmatprep.mubr.bf16.mxu1 %v5878_v60  ;;  %v2583_v60 = vrot.slane %v2581_v44, 5  ;;  %v2599_v41 = vshll.u32 %v5851_v51, 16  ;;  %v2555_v37 = vrot.slane %v2554_v20, 4  ;;  %v2607_v30 = vrot.slane %v2605_v48, 5 }
 0x183   : > { %v2522_v27 = vsel %vm7708_vm2, %v2517_v50, %v2521_v16  ;;  %v2578_v25 = vor.u32 %v2577_v12, %v2574_v36  ;;  %v2569_v45 = vrot.slane %v2567_v21, 5  ;;  %v2611_v58 = vrot.slane %v2609_v29, 4 }
 0x184   : > { %v2588_v54 = vor.u32 %v2587_v23, %v2583_v60  ;;  %v5881_v18 = vcombine.low %v2512_v62, %v2522_v27  ;;  %v2601_v3 = vrot.slane %v2599_v41, 5  ;;  %v2560_v46 = vsel %vm7708_vm2, %v2555_v37, %v2559_v32 }
 0x185   : > { %v2579_v53 = vrot.slane %v2578_v25, 4  ;;  %v2612_v44 = vor.u32 %v2611_v58, %v2607_v30  ;;  %v2615_v50 = vshll.u32 %v7518_v59, 16 }
 0x186   : > { %v2589_v7 = vrot.slane %v2588_v54, 4  ;;  %v2602_v35 = vor.u32 %v2601_v3, %v2598_v34 }
 0x187   : > { %v2584_v19 = vsel %vm7708_vm2, %v2579_v53, %v2583_v60  ;;  %v2617_v5 = vrot.slane %v2615_v50, 5 }
 0x188   : > { %6998 = vmatmul.mubr.bf16.gmra.mrb[16].mxu0 %v6183_v13  ;;  %v2564_v13 = vor.u32 %v2563_v39, %v2559_v32  ;;  %v2603_v40 = vrot.slane %v2602_v35, 4 }
 0x189   : > { %6806 = vmatmul.mubr.bf16.vlgmr.msra.gmra.mrb[16].mxu1 %v9156_v1  ;;  %7001 = vmatprep.mubr.bf16.mxu0 %v6184_v10  ;;  %v7517_v1 = vld [vmem:[%s7636_s7 + $0xbc] sm:$0x1]  ;;  %s6198_s7 = sshll.u32 %s7541_s15, 8 }
 0x18a   : > { %6809 = vmatprep.mubr.bf16.mxu1 %v5880_v55  ;;  %v2591_v38 = vshll.u32 %v7517_v1, 16  ;;  %v2565_v10 = vrot.slane %v2564_v13, 4  ;;  %v2608_v28 = vsel %vm7708_vm2, %v2603_v40, %v2607_v30  ;;  %s9415_s26 = scalar_lea.vmem [#allocation6], %s6198_s7 }
 0x18c   : > { %v2593_v16 = vrot.slane %v2591_v38, 5  ;;  %v2570_v14 = vsel %vm7708_vm2, %v2565_v10, %v2569_v45 }
 0x18e   : > { %v2594_v8 = vsel %vm7708_vm2, %v2589_v7, %v2593_v16 }
 0x18f   : > { %v5884_v22 = vcombine.low %v2584_v19, %v2594_v8 }
 0x190   : > { %7002 = vmatmul.mubr.bf16.gmra.mrb[20].mxu0 %v6185_v4  ;;  %v5883_v4 = vcombine.low %v2560_v46, %v2570_v14 }
 0x191   : > { %6810 = vmatmul.mubr.bf16.gmra.mrb[20].mxu1 %v5881_v18  ;;  %7005 = vmatprep.mubr.bf16.mxu0 %v6186_v31  ;;  %v2613_v31 = vrot.slane %v2612_v44, 4 }
 0x192   : > { %6813 = vmatprep.mubr.bf16.mxu1 %v5882_v9 }
 0x193   : > { %v2618_v11 = vsel %vm7708_vm2, %v2613_v31, %v2617_v5 }
 0x194   : > { %v5885_v15 = vcombine.low %v2608_v28, %v2618_v11 }
 0x198   : > { %7006 = vmatmul.mubr.bf16.gmra.mrb[24].mxu0 %v6187_v17 }
 0x199   : > { %6814 = vmatmul.mubr.bf16.gmra.mrb[24].mxu1 %v5883_v4  ;;  %7009 = vmatprep.mubr.bf16.mxu0 %v6188_v43 }
 0x19a   : > { %6817 = vmatprep.mubr.bf16.mxu1 %v5884_v22 }
 0x1a0   : > { %7010 = vmatmul.mubr.bf16.gmra.mrb[28].mxu0 %v6189_v63 }
 0x1a1   : > { %6818 = vmatmul.mubr.bf16.gmra.mrb[28].mxu1 %v5885_v15 }
 0x21c   : > { %v6743_v42 = vpop.f32.mrb[0].mxu1 }
 0x21d   : > { %v2028_v61 = vpop.f32.mrb[1].mxu1 }
 0x21e   : > { %v6744_v17 = vpop.f32.mrb[2].mxu1 }
 0x21f   : > { %v2031_v57 = vpop.f32.mrb[3].mxu1 }
 0x224   : > { %v6747_v6 = vpop.f32.mrb[4].mxu1 }
 0x225   : > { %v2044_v0 = vpop.f32.mrb[5].mxu1 }
 0x226   : > { %v6748_v43 = vpop.f32.mrb[6].mxu1 }
 0x227   : > { %v2047_v32 = vpop.f32.mrb[7].mxu1 }
 0x22c   : > { %v6751_v39 = vpop.f32.mrb[8].mxu1 }
 0x22d   : > { %v2060_v55 = vpop.f32.mrb[9].mxu1 }
 0x22e   : > { %v6752_v36 = vpop.f32.mrb[10].mxu1 }
 0x22f   : > { %v9404_v52 = vpop.f32.mrb[11].mxu1 }
 0x234   : > { %v9406_v12 = vpop.f32.mrb[12].mxu1 }
 0x235   : > { %v9408_v60 = vpop.f32.mrb[13].mxu1 }
 0x236   : > { %v9410_v49 = vpop.f32.mrb[14].mxu1 }
 0x237   : > { %v9412_v26 = vpop.f32.mrb[15].mxu1 }
 0x23b   : > { %v6983_v63 = vpop.f32.mrb[0].mxu0 }
 0x23c   : > { %v7029_v23 = vadd.f32 %v6983_v63, %v6743_v42  ;;  %v4919_v51 = vpop.f32.mrb[1].mxu0 }
 0x23d   : > { %v7030_v62 = vadd.f32 %v4919_v51, %v2028_v61  ;;  %v6984_v27 = vpop.f32.mrb[2].mxu0 }
 0x23e   : > { %5194 = vst [vmem:[%s9415_s26 + $0x10] sm:$0xff] %v7029_v23  ;;  %v7031_v2 = vadd.f32 %v6984_v27, %v6744_v17  ;;  %v4922_v47 = vpop.f32.mrb[3].mxu0  ;;  %v5121_v24 = vmul.f32 %v7029_v23, %v7029_v23 }
 0x23f   : > { %5192 = vst [vmem:[%s9415_s26] sm:$0xff] %v7030_v62  ;;  %v7032_v20 = vadd.f32 %v4922_v47, %v2031_v57  ;;  %v5119_v13 = vmul.f32 %v7030_v62, %v7030_v62 }
 0x240   : > { %5195 = vst [vmem:[%s9415_s26 + $0x18] sm:$0xff] %v7031_v2  ;;  %v5122_v54 = vmul.f32 %v7031_v2, %v7031_v2 }
 0x241   : > { %v5079_v56 = vadd.f32 %v7032_v20, %v7030_v62  ;;  %v5120_v21 = vmul.f32 %v7032_v20, %v7032_v20  ;;  %5193 = vst [vmem:[%s9415_s26 + $0x8] sm:$0xff] %v7032_v20 }
 0x243   : > { %v5080_v41 = vadd.f32 %v7029_v23, %v5079_v56  ;;  %v5151_v33 = vadd.f32 %v5120_v21, %v5119_v13  ;;  %v6987_v48 = vpop.f32.mrb[4].mxu0 }
 0x244   : > { %v7033_v29 = vadd.f32 %v6987_v48, %v6747_v6  ;;  %v4935_v25 = vpop.f32.mrb[5].mxu0 }
 0x245   : > { %v5152_v1 = vadd.f32 %v5151_v33, %v5121_v24  ;;  %v7034_v38 = vadd.f32 %v4935_v25, %v2044_v0  ;;  %v5081_v18 = vadd.f32 %v7031_v2, %v5080_v41  ;;  %v6988_v9 = vpop.f32.mrb[6].mxu0 }
 0x246   : > { %5198 = vst [vmem:[%s9415_s26 + $0x30] sm:$0xff] %v7033_v29  ;;  %v7035_v37 = vadd.f32 %v6988_v9, %v6748_v43  ;;  %v4938_v10 = vpop.f32.mrb[7].mxu0  ;;  %v5125_v16 = vmul.f32 %v7033_v29, %v7033_v29 }
 0x247   : > { %v5082_v45 = vadd.f32 %v7034_v38, %v5081_v18  ;;  %v5123_v34 = vmul.f32 %v7034_v38, %v7034_v38  ;;  %v5153_v3 = vadd.f32 %v5152_v1, %v5122_v54  ;;  %5196 = vst [vmem:[%s9415_s26 + $0x20] sm:$0xff] %v7034_v38  ;;  %v7036_v30 = vadd.f32 %v4938_v10, %v2047_v32 }
 0x248   : > { %5199 = vst [vmem:[%s9415_s26 + $0x38] sm:$0xff] %v7035_v37  ;;  %v5126_v50 = vmul.f32 %v7035_v37, %v7035_v37 }
 0x249   : > { %v5154_v58 = vadd.f32 %v5153_v3, %v5123_v34  ;;  %v5083_v53 = vadd.f32 %v7036_v30, %v5082_v45  ;;  %v5124_v7 = vmul.f32 %v7036_v30, %v7036_v30  ;;  %5197 = vst [vmem:[%s9415_s26 + $0x28] sm:$0xff] %v7036_v30 }
 0x24b   : > { %v5084_v46 = vadd.f32 %v7033_v29, %v5083_v53  ;;  %v5155_v14 = vadd.f32 %v5154_v58, %v5124_v7  ;;  %v6991_v35 = vpop.f32.mrb[8].mxu0 }
 0x24c   : > { %v7037_v44 = vadd.f32 %v6991_v35, %v6751_v39  ;;  %v4951_v59 = vpop.f32.mrb[9].mxu0 }
 0x24d   : > { %v5156_v19 = vadd.f32 %v5155_v14, %v5125_v16  ;;  %v7038_v8 = vadd.f32 %v4951_v59, %v2060_v55  ;;  %v5085_v4 = vadd.f32 %v7035_v37, %v5084_v46  ;;  %v6992_v22 = vpop.f32.mrb[10].mxu0 }
 0x24e   : > { %5202 = vst [vmem:[%s9415_s26 + $0x50] sm:$0xff] %v7037_v44  ;;  %v7039_v40 = vadd.f32 %v6992_v22, %v6752_v36  ;;  %v4954_v31 = vpop.f32.mrb[11].mxu0  ;;  %v5129_v57 = vmul.f32 %v7037_v44, %v7037_v44 }
 0x24f   : > { %v5086_v5 = vadd.f32 %v7038_v8, %v5085_v4  ;;  %v5127_v28 = vmul.f32 %v7038_v8, %v7038_v8  ;;  %v5157_v11 = vadd.f32 %v5156_v19, %v5126_v50  ;;  %5200 = vst [vmem:[%s9415_s26 + $0x40] sm:$0xff] %v7038_v8  ;;  %v7040_v15 = vadd.f32 %v4954_v31, %v9404_v52 }
 0x250   : > { %5203 = vst [vmem:[%s9415_s26 + $0x58] sm:$0xff] %v7039_v40  ;;  %v5130_v55 = vmul.f32 %v7039_v40, %v7039_v40 }
 0x251   : > { %v5158_v42 = vadd.f32 %v5157_v11, %v5127_v28  ;;  %v5087_v61 = vadd.f32 %v7040_v15, %v5086_v5  ;;  %v5128_v17 = vmul.f32 %v7040_v15, %v7040_v15  ;;  %5201 = vst [vmem:[%s9415_s26 + $0x48] sm:$0xff] %v7040_v15 }
 0x253   : > { %v5088_v6 = vadd.f32 %v7037_v44, %v5087_v61  ;;  %v5159_v0 = vadd.f32 %v5158_v42, %v5128_v17  ;;  %v6995_v43 = vpop.f32.mrb[12].mxu0 }
 0x254   : > { %v7041_v32 = vadd.f32 %v6995_v43, %v9406_v12  ;;  %v4967_v39 = vpop.f32.mrb[13].mxu0 }
 0x255   : > { %v5160_v36 = vadd.f32 %v5159_v0, %v5129_v57  ;;  %v7042_v52 = vadd.f32 %v4967_v39, %v9408_v60  ;;  %v5089_v63 = vadd.f32 %v7039_v40, %v5088_v6  ;;  %v6996_v23 = vpop.f32.mrb[14].mxu0 }
 0x256   : > { %5206 = vst [vmem:[%s9415_s26 + $0x70] sm:$0xff] %v7041_v32  ;;  %v7043_v51 = vadd.f32 %v6996_v23, %v9410_v49  ;;  %v4970_v62 = vpop.f32.mrb[15].mxu0  ;;  %v5133_v21 = vmul.f32 %v7041_v32, %v7041_v32 }
 0x257   : > { %v5090_v27 = vadd.f32 %v7042_v52, %v5089_v63  ;;  %v5131_v2 = vmul.f32 %v7042_v52, %v7042_v52  ;;  %v5161_v47 = vadd.f32 %v5160_v36, %v5130_v55  ;;  %5204 = vst [vmem:[%s9415_s26 + $0x60] sm:$0xff] %v7042_v52  ;;  %v7044_v20 = vadd.f32 %v4970_v62, %v9412_v26 }
 0x258   : > { %5207 = vst [vmem:[%s9415_s26 + $0x78] sm:$0xff] %v7043_v51  ;;  %v5134_v49 = vmul.f32 %v7043_v51, %v7043_v51 }
 0x259   : > { %v5162_v12 = vadd.f32 %v5161_v47, %v5131_v2  ;;  %v5091_v13 = vadd.f32 %v7044_v20, %v5090_v27  ;;  %v5132_v56 = vmul.f32 %v7044_v20, %v7044_v20  ;;  %5205 = vst [vmem:[%s9415_s26 + $0x68] sm:$0xff] %v7044_v20 }
 0x25b   : > { %v5092_v60 = vadd.f32 %v7041_v32, %v5091_v13  ;;  %v5163_v24 = vadd.f32 %v5162_v12, %v5132_v56  ;;  %v6999_v41 = vpop.f32.mrb[16].mxu0 }
 0x25c   : > { %v6807_v33 = vpop.f32.mrb[16].mxu1  ;;  %v4983_v48 = vpop.f32.mrb[17].mxu0 }
 0x25d   : > { %v5164_v29 = vadd.f32 %v5163_v24, %v5133_v21  ;;  %v7045_v25 = vadd.f32 %v6999_v41, %v6807_v33  ;;  %v2846_v54 = vpop.f32.mrb[17].mxu1  ;;  %v5093_v1 = vadd.f32 %v7043_v51, %v5092_v60  ;;  %v7000_v26 = vpop.f32.mrb[18].mxu0 }
 0x25e   : > { %v7046_v38 = vadd.f32 %v4983_v48, %v2846_v54  ;;  %v6808_v18 = vpop.f32.mrb[18].mxu1  ;;  %v4986_v9 = vpop.f32.mrb[19].mxu0 }
 0x25f   : > { %5210 = vst [vmem:[%s9415_s26 + $0x90] sm:$0xff] %v7045_v25  ;;  %v5165_v37 = vadd.f32 %v5164_v29, %v5134_v49  ;;  %v7047_v10 = vadd.f32 %v7000_v26, %v6808_v18  ;;  %v2849_v45 = vpop.f32.mrb[19].mxu1  ;;  %v5137_v46 = vmul.f32 %v7045_v25, %v7045_v25 }
 0x260   : > { %v5094_v34 = vadd.f32 %v7046_v38, %v5093_v1  ;;  %v5135_v3 = vmul.f32 %v7046_v38, %v7046_v38  ;;  %5208 = vst [vmem:[%s9415_s26 + $0x80] sm:$0xff] %v7046_v38  ;;  %v7048_v30 = vadd.f32 %v4986_v9, %v2849_v45 }
 0x261   : > { %5211 = vst [vmem:[%s9415_s26 + $0x98] sm:$0xff] %v7047_v10  ;;  %v5138_v4 = vmul.f32 %v7047_v10, %v7047_v10 }
 0x262   : > { %v5166_v58 = vadd.f32 %v5165_v37, %v5135_v3  ;;  %v5095_v53 = vadd.f32 %v7048_v30, %v5094_v34  ;;  %v5136_v7 = vmul.f32 %v7048_v30, %v7048_v30  ;;  %5209 = vst [vmem:[%s9415_s26 + $0x88] sm:$0xff] %v7048_v30 }
 0x263   : > { %v7003_v16 = vpop.f32.mrb[20].mxu0 }
 0x264   : > { %v5096_v14 = vadd.f32 %v7045_v25, %v5095_v53  ;;  %v5167_v35 = vadd.f32 %v5166_v58, %v5136_v7  ;;  %v6811_v44 = vpop.f32.mrb[20].mxu1  ;;  %v4999_v59 = vpop.f32.mrb[21].mxu0 }
 0x265   : > { %v7049_v50 = vadd.f32 %v7003_v16, %v6811_v44  ;;  %v2862_v19 = vpop.f32.mrb[21].mxu1  ;;  %v7004_v8 = vpop.f32.mrb[22].mxu0 }
 0x266   : > { %v5168_v22 = vadd.f32 %v5167_v35, %v5137_v46  ;;  %v7050_v40 = vadd.f32 %v4999_v59, %v2862_v19  ;;  %v5097_v31 = vadd.f32 %v7047_v10, %v5096_v14  ;;  %v6812_v5 = vpop.f32.mrb[22].mxu1  ;;  %v5002_v28 = vpop.f32.mrb[23].mxu0 }
 0x267   : > { %5214 = vst [vmem:[%s9415_s26 + $0xb0] sm:$0xff] %v7049_v50  ;;  %v7051_v11 = vadd.f32 %v7004_v8, %v6812_v5  ;;  %v2865_v15 = vpop.f32.mrb[23].mxu1  ;;  %v5141_v39 = vmul.f32 %v7049_v50, %v7049_v50 }
 0x268   : > { %v5098_v42 = vadd.f32 %v7050_v40, %v5097_v31  ;;  %v5139_v61 = vmul.f32 %v7050_v40, %v7050_v40  ;;  %v5169_v17 = vadd.f32 %v5168_v22, %v5138_v4  ;;  %5212 = vst [vmem:[%s9415_s26 + $0xa0] sm:$0xff] %v7050_v40  ;;  %v7052_v57 = vadd.f32 %v5002_v28, %v2865_v15 }
 0x269   : > { %5215 = vst [vmem:[%s9415_s26 + $0xb8] sm:$0xff] %v7051_v11  ;;  %v5142_v27 = vmul.f32 %v7051_v11, %v7051_v11 }
 0x26a   : > { %v5170_v6 = vadd.f32 %v5169_v17, %v5139_v61  ;;  %v5099_v0 = vadd.f32 %v7052_v57, %v5098_v42  ;;  %v5140_v43 = vmul.f32 %v7052_v57, %v7052_v57  ;;  %5213 = vst [vmem:[%s9415_s26 + $0xa8] sm:$0xff] %v7052_v57 }
 0x26b   : > { %v7007_v32 = vpop.f32.mrb[24].mxu0 }
 0x26c   : > { %v5100_v55 = vadd.f32 %v7049_v50, %v5099_v0  ;;  %v5171_v36 = vadd.f32 %v5170_v6, %v5140_v43  ;;  %v6815_v52 = vpop.f32.mrb[24].mxu1  ;;  %v5015_v63 = vpop.f32.mrb[25].mxu0 }
 0x26d   : > { %v7053_v23 = vadd.f32 %v7007_v32, %v6815_v52  ;;  %v2878_v51 = vpop.f32.mrb[25].mxu1  ;;  %v7008_v62 = vpop.f32.mrb[26].mxu0  ;;  %v5078_v32 = vld [vmem:[#allocation2] sm:$0x1] }
 0x26e   : > { %v5172_v2 = vadd.f32 %v5171_v36, %v5141_v39  ;;  %v7054_v47 = vadd.f32 %v5015_v63, %v2878_v51  ;;  %v5101_v20 = vadd.f32 %v7051_v11, %v5100_v55  ;;  %v6816_v12 = vpop.f32.mrb[26].mxu1  ;;  %v5018_v13 = vpop.f32.mrb[27].mxu0  ;;  %v5118_v36 = vld [vmem:[#allocation3] sm:$0x1] }
 0x26f   : > { %5218 = vst [vmem:[%s9415_s26 + $0xd0] sm:$0xff] %v7053_v23  ;;  %v7055_v56 = vadd.f32 %v7008_v62, %v6816_v12  ;;  %v2881_v21 = vpop.f32.mrb[27].mxu1  ;;  %v5145_v54 = vmul.f32 %v7053_v23, %v7053_v23 }
 0x270   : > { %v5102_v60 = vadd.f32 %v7054_v47, %v5101_v20  ;;  %v5143_v24 = vmul.f32 %v7054_v47, %v7054_v47  ;;  %v5173_v41 = vadd.f32 %v5172_v2, %v5142_v27  ;;  %5216 = vst [vmem:[%s9415_s26 + $0xc0] sm:$0xff] %v7054_v47  ;;  %v7056_v33 = vadd.f32 %v5018_v13, %v2881_v21 }
 0x271   : > { %5219 = vst [vmem:[%s9415_s26 + $0xd8] sm:$0xff] %v7055_v56  ;;  %v5146_v45 = vmul.f32 %v7055_v56, %v7055_v56 }
 0x272   : > { %v5174_v48 = vadd.f32 %v5173_v41, %v5143_v24  ;;  %v5103_v49 = vadd.f32 %v7056_v33, %v5102_v60  ;;  %v5144_v29 = vmul.f32 %v7056_v33, %v7056_v33  ;;  %5217 = vst [vmem:[%s9415_s26 + $0xc8] sm:$0xff] %v7056_v33 }
 0x273   : > { %v7011_v25 = vpop.f32.mrb[28].mxu0 }
 0x274   : > { %v5104_v1 = vadd.f32 %v7053_v23, %v5103_v49  ;;  %v5175_v26 = vadd.f32 %v5174_v48, %v5144_v29  ;;  %v6819_v38 = vpop.f32.mrb[28].mxu1  ;;  %v5031_v18 = vpop.f32.mrb[29].mxu0 }
 0x275   : > { %v7057_v9 = vadd.f32 %v7011_v25, %v6819_v38  ;;  %v2894_v37 = vpop.f32.mrb[29].mxu1  ;;  %v7012_v10 = vpop.f32.mrb[30].mxu0 }
 0x276   : > { %v5176_v34 = vadd.f32 %v5175_v26, %v5145_v54  ;;  %v7058_v3 = vadd.f32 %v5031_v18, %v2894_v37  ;;  %v5105_v30 = vadd.f32 %v7055_v56, %v5104_v1  ;;  %v6820_v58 = vpop.f32.mrb[30].mxu1  ;;  %v5034_v53 = vpop.f32.mrb[31].mxu0 }
 0x277   : > { %5222 = vst [vmem:[%s9415_s26 + $0xf0] sm:$0xff] %v7057_v9  ;;  %v7059_v7 = vadd.f32 %v7012_v10, %v6820_v58  ;;  %v2897_v16 = vpop.f32.mrb[31].mxu1  ;;  %v5149_v8 = vmul.f32 %v7057_v9, %v7057_v9 }
 0x278   : > { %v5106_v46 = vadd.f32 %v7058_v3, %v5105_v30  ;;  %v5147_v14 = vmul.f32 %v7058_v3, %v7058_v3  ;;  %v5177_v35 = vadd.f32 %v5176_v34, %v5146_v45  ;;  %5220 = vst [vmem:[%s9415_s26 + $0xe0] sm:$0xff] %v7058_v3  ;;  %v7060_v44 = vadd.f32 %v5034_v53, %v2897_v16 }
 0x279   : > { %5223 = vst [vmem:[%s9415_s26 + $0xf8] sm:$0xff] %v7059_v7  ;;  %v5150_v40 = vmul.f32 %v7059_v7, %v7059_v7 }
 0x27a   : > { %v5178_v59 = vadd.f32 %v5177_v35, %v5147_v14  ;;  %v5107_v50 = vadd.f32 %v7060_v44, %v5106_v46  ;;  %v5148_v19 = vmul.f32 %v7060_v44, %v7060_v44  ;;  %5221 = vst [vmem:[%s9415_s26 + $0xe8] sm:$0xff] %v7060_v44 }
 0x27c   : > { %v5108_v4 = vadd.f32 %v7057_v9, %v5107_v50  ;;  %v5179_v22 = vadd.f32 %v5178_v59, %v5148_v19 }
 0x27e   : > { %v5109_v31 = vadd.f32 %v7059_v7, %v5108_v4  ;;  %v5180_v5 = vadd.f32 %v5179_v22, %v5149_v8 }
 0x280   : > { %v5110_v28 = vrot.slane %v5109_v31, 4  ;;  %v5181_v11 = vadd.f32 %v5180_v5, %v5150_v40 }
 0x282   : > { %v5111_v15 = vadd.f32 %v5110_v28, %v5109_v31  ;;  %v5182_v42 = vrot.slane %v5181_v11, 4 }
 0x284   : > { %v5112_v61 = vrot.slane %v5111_v15, 2  ;;  %v5183_v17 = vadd.f32 %v5182_v42, %v5181_v11 }
 0x286   : > { %v5113_v57 = vadd.f32 %v5112_v61, %v5111_v15  ;;  %v5184_v6 = vrot.slane %v5183_v17, 2 }
 0x288   : > { %v5114_v0 = vrot.slane %v5113_v57, 1  ;;  %v5185_v43 = vadd.f32 %v5184_v6, %v5183_v17 }
 0x28a   : > { %v5115_v39 = vadd.f32 %v5114_v0, %v5113_v57  ;;  %v5186_v55 = vrot.slane %v5185_v43, 1 }
 0x28c   : > { %v5116_v52 = vadd.f32 %v5115_v39, %v5078_v32  ;;  %v5187_v63 = vadd.f32 %v5186_v55, %v5185_v43 }
 0x28e   : > { %5117 = vst [vmem:[#allocation2] sm:$0x1] %v5116_v52  ;;  %v5188_v23 = vadd.f32 %v5187_v63, %v5118_v36 }
 0x290   : > { %5189 = vst [vmem:[#allocation3] sm:$0x1] %v5188_v23 }
 0x291 PF: > { %p6199_p13 = scmp.ne.s32.totalorder %s7545_s16, 1 }
 0x292   : > { %s6200_s27 = sshll.u32 (!%p6199_p13), %s7541_s15, 8  ;;  %v9456_v51 = vld [vmem:[#allocation4] ss:$0 sm:$0xff] (!%p6199_p13)  ;;  %v9458_v62 = vld [vmem:[#allocation5] ss:$0 sm:$0xff] (!%p6199_p13) }
 0x293   : > { %5226 = sbr.rel (%p6199_p13) target bundleno = 695 (0x2b7), region = 52  ;;  %s9460_s28 = scalar_lea.vmem (!%p6199_p13), [#allocation6], %s6200_s27 }
 0x294   : > { %v5229_v27 = vld [vmem:[%s9460_s28] sm:$0xff] (!%p6199_p13)  ;;  %v5230_v2 = vld [vmem:[%s9460_s28 + $0x8] sm:$0xff] (!%p6199_p13)  ;;  %v5231_v47 = vld [vmem:[%s9460_s28 + $0x10] sm:$0xff] (!%p6199_p13) }
 0x295   : > { %v5268_v20 = vmul.f32 (!%p6199_p13), %v9456_v51, %v5229_v27  ;;  %v5269_v12 = vmul.f32 (!%p6199_p13), %v9456_v51, %v5230_v2  ;;  %v5232_v13 = vld [vmem:[%s9460_s28 + $0x18] sm:$0xff] (!%p6199_p13)  ;;  %v5270_v56 = vmul.f32 (!%p6199_p13), %v9456_v51, %v5231_v47  ;;  %v5233_v21 = vld [vmem:[%s9460_s28 + $0x20] sm:$0xff] (!%p6199_p13)  ;;  %v5234_v60 = vld [vmem:[%s9460_s28 + $0x28] sm:$0xff] (!%p6199_p13) }
 0x296   : > { %v5271_v24 = vmul.f32 (!%p6199_p13), %v9456_v51, %v5232_v13  ;;  %v5272_v41 = vmul.f32 (!%p6199_p13), %v9456_v51, %v5233_v21  ;;  %v5273_v33 = vmul.f32 (!%p6199_p13), %v9456_v51, %v5234_v60  ;;  %v5235_v48 = vld [vmem:[%s9460_s28 + $0x30] sm:$0xff] (!%p6199_p13)  ;;  %v5236_v49 = vld [vmem:[%s9460_s28 + $0x38] sm:$0xff] (!%p6199_p13)  ;;  %v5237_v37 = vld [vmem:[%s9460_s28 + $0x40] sm:$0xff] (!%p6199_p13) }
 0x297   : > { %v5307_v29 = vadd.f32 (!%p6199_p13), %v9458_v62, %v5268_v20  ;;  %v5308_v25 = vadd.f32 (!%p6199_p13), %v9458_v62, %v5269_v12  ;;  %v5309_v54 = vadd.f32 (!%p6199_p13), %v9458_v62, %v5270_v56  ;;  %v5274_v1 = vmul.f32 (!%p6199_p13), %v9456_v51, %v5235_v48  ;;  %v5238_v10 = vld [vmem:[%s9460_s28 + $0x48] sm:$0xff] (!%p6199_p13)  ;;  %v5239_v58 = vld [vmem:[%s9460_s28 + $0x50] sm:$0xff] (!%p6199_p13)  ;;  %v5240_v14 = vld [vmem:[%s9460_s28 + $0x58] sm:$0xff] (!%p6199_p13) }
 0x298   : > { %v5310_v26 = vadd.f32 (!%p6199_p13), %v9458_v62, %v5271_v24  ;;  %v5311_v38 = vadd.f32 (!%p6199_p13), %v9458_v62, %v5272_v41  ;;  %v5312_v18 = vadd.f32 (!%p6199_p13), %v9458_v62, %v5273_v33  ;;  %v5275_v9 = vmul.f32 (!%p6199_p13), %v9456_v51, %v5236_v49  ;;  %v5241_v35 = vld [vmem:[%s9460_s28 + $0x60] sm:$0xff] (!%p6199_p13)  ;;  %v5242_v8 = vld [vmem:[%s9460_s28 + $0x68] sm:$0xff] (!%p6199_p13)  ;;  %v5243_v4 = vld [vmem:[%s9460_s28 + $0x70] sm:$0xff] (!%p6199_p13) }
 0x299   : > { %v5339_v45 = vmax.f32 (!%p6199_p13), %v5307_v29, 0.0  ;;  %v5340_v34 = vmax.f32 (!%p6199_p13), %v5308_v25, 0.0  ;;  %v5341_v3 = vmax.f32 (!%p6199_p13), %v5309_v54, 0.0  ;;  %v5313_v30 = vadd.f32 (!%p6199_p13), %v9458_v62, %v5274_v1  ;;  %v5244_v61 = vld [vmem:[%s9460_s28 + $0x78] sm:$0xff] (!%p6199_p13)  ;;  %v5245_v43 = vld [vmem:[%s9460_s28 + $0x80] sm:$0xff] (!%p6199_p13)  ;;  %v5246_v52 = vld [vmem:[%s9460_s28 + $0x88] sm:$0xff] (!%p6199_p13) }
 0x29a   : > { %v5342_v53 = vmax.f32 %v5310_v26, 0.0  ;;  %v5343_v7 = vmax.f32 %v5311_v38, 0.0  ;;  %v5344_v16 = vmax.f32 %v5312_v18, 0.0  ;;  %v5314_v46 = vadd.f32 %v9458_v62, %v5275_v9  ;;  %v5247_v47 = vld [vmem:[%s9460_s28 + $0x90] sm:$0xff]  ;;  %v5248_v20 = vld [vmem:[%s9460_s28 + $0x98] sm:$0xff]  ;;  %v5249_v60 = vld [vmem:[%s9460_s28 + $0xa0] sm:$0xff] }
 0x29b   : > { %v6273_v44 = vpack.c.bf16 %v5340_v34, %v5339_v45  ;;  %v5345_v59 = vmax.f32 %v5313_v30, 0.0  ;;  %v5276_v50 = vmul.f32 %v9456_v51, %v5237_v37  ;;  %v5277_v19 = vmul.f32 %v9456_v51, %v5238_v10  ;;  %v5250_v49 = vld [vmem:[%s9460_s28 + $0xa8] sm:$0xff]  ;;  %v5251_v26 = vld [vmem:[%s9460_s28 + $0xb0] sm:$0xff]  ;;  %v5252_v10 = vld [vmem:[%s9460_s28 + $0xb8] sm:$0xff] }
 0x29c   : > { %v6278_v22 = vpack.c.bf16 %v5342_v53, %v5341_v3  ;;  %v6283_v40 = vpack.c.bf16 %v5344_v16, %v5343_v7  ;;  %v5346_v31 = vmax.f32 %v5314_v46, 0.0  ;;  %v5278_v5 = vmul.f32 %v9456_v51, %v5239_v58  ;;  %v5253_v58 = vld [vmem:[%s9460_s28 + $0xc0] sm:$0xff] }
 0x29d   : > { %6274 = vst [vmem:[%s7631_s30] sm:$0xff] %v6273_v44   ;;  %v5315_v28 = vadd.f32 %v9458_v62, %v5276_v50  ;;  %v5316_v11 = vadd.f32 %v9458_v62, %v5277_v19  ;;  %v5279_v15 = vmul.f32 %v9456_v51, %v5240_v14  ;;  %v5280_v42 = vmul.f32 %v9456_v51, %v5241_v35  ;;  %v5254_v14 = vld [vmem:[%s9460_s28 + $0xc8] sm:$0xff]  ;;  %v5255_v19 = vld [vmem:[%s9460_s28 + $0xd0] sm:$0xff] }
 0x29e   : > { %6350 = vst [vmem:[%s7631_s30 + $0x8] sm:$0xff] %v6278_v22   ;;  %6351 = vst [vmem:[%s7631_s30 + $0x10] sm:$0xff] %v6283_v40   ;;  %v6288_v17 = vpack.c.bf16 %v5346_v31, %v5345_v59  ;;  %v5317_v57 = vadd.f32 %v9458_v62, %v5278_v5  ;;  %v5281_v6 = vmul.f32 %v9456_v51, %v5242_v8  ;;  %v5256_v8 = vld [vmem:[%s9460_s28 + $0xd8] sm:$0xff]  ;;  %v5257_v5 = vld [vmem:[%s9460_s28 + $0xe0] sm:$0xff] }
 0x29f   : > { %v5282_v0 = vmul.f32 %v9456_v51, %v5243_v4  ;;  %v5347_v32 = vmax.f32 %v5315_v28, 0.0  ;;  %v5348_v39 = vmax.f32 %v5316_v11, 0.0  ;;  %v5318_v55 = vadd.f32 %v9458_v62, %v5279_v15 }
 0x2a0   : > { %v5319_v36 = vadd.f32 %v9458_v62, %v5280_v42  ;;  %6352 = vst [vmem:[%s7631_s30 + $0x18] sm:$0xff] %v6288_v17   ;;  %v5349_v63 = vmax.f32 %v5317_v57, 0.0  ;;  %v5320_v23 = vadd.f32 %v9458_v62, %v5281_v6  ;;  %v5283_v27 = vmul.f32 %v9456_v51, %v5244_v61  ;;  %v5258_v61 = vld [vmem:[%s9460_s28 + $0xe8] sm:$0xff] }
 0x2a1   : > { %v5321_v2 = vadd.f32 %v9458_v62, %v5282_v0  ;;  %v6293_v12 = vpack.c.bf16 %v5348_v39, %v5347_v32  ;;  %v5350_v13 = vmax.f32 %v5318_v55, 0.0  ;;  %v5284_v21 = vmul.f32 %v9456_v51, %v5245_v43  ;;  %v5259_v43 = vld [vmem:[%s9460_s28 + $0xf0] sm:$0xff] }
 0x2a2   : > { %v5351_v56 = vmax.f32 %v5319_v36, 0.0  ;;  %v5352_v24 = vmax.f32 %v5320_v23, 0.0  ;;  %v5322_v41 = vadd.f32 %v9458_v62, %v5283_v27  ;;  %v5285_v48 = vmul.f32 %v9456_v51, %v5246_v52  ;;  %v5260_v52 = vld [vmem:[%s9460_s28 + $0xf8] sm:$0xff] }
 0x2a3   : > { %v5353_v33 = vmax.f32 %v5321_v2, 0.0  ;;  %6353 = vst [vmem:[%s7631_s30 + $0x20] sm:$0xff] %v6293_v12   ;;  %v6298_v29 = vpack.c.bf16 %v5350_v13, %v5349_v63  ;;  %v5323_v25 = vadd.f32 %v9458_v62, %v5284_v21  ;;  %v5286_v54 = vmul.f32 %v9456_v51, %v5247_v47 }
 0x2a4   : > { %v5287_v1 = vmul.f32 %v9456_v51, %v5248_v20  ;;  %v6303_v38 = vpack.c.bf16 %v5352_v24, %v5351_v56  ;;  %v5354_v18 = vmax.f32 %v5322_v41, 0.0  ;;  %v5324_v9 = vadd.f32 %v9458_v62, %v5285_v48 }
 0x2a5   : > { %v5288_v37 = vmul.f32 %v9456_v51, %v5249_v60  ;;  %6354 = vst [vmem:[%s7631_s30 + $0x28] sm:$0xff] %v6298_v29   ;;  %v5355_v45 = vmax.f32 %v5323_v25, 0.0  ;;  %v5325_v34 = vadd.f32 %v9458_v62, %v5286_v54  ;;  %v5289_v30 = vmul.f32 %v9456_v51, %v5250_v49 }
 0x2a6   : > { %v5326_v3 = vadd.f32 %v9458_v62, %v5287_v1  ;;  %6355 = vst [vmem:[%s7631_s30 + $0x30] sm:$0xff] %v6303_v38   ;;  %v6308_v53 = vpack.c.bf16 %v5354_v18, %v5353_v33  ;;  %v5356_v7 = vmax.f32 %v5324_v9, 0.0  ;;  %v5290_v46 = vmul.f32 %v9456_v51, %v5251_v26 }
 0x2a7   : > { %v5327_v16 = vadd.f32 %v9458_v62, %v5288_v37  ;;  %v5357_v35 = vmax.f32 %v5325_v34, 0.0  ;;  %v5328_v59 = vadd.f32 %v9458_v62, %v5289_v30  ;;  %v5291_v50 = vmul.f32 %v9456_v51, %v5252_v10 }
 0x2a8   : > { %v5358_v44 = vmax.f32 %v5326_v3, 0.0  ;;  %6356 = vst [vmem:[%s7631_s30 + $0x38] sm:$0xff] %v6308_v53   ;;  %v6313_v4 = vpack.c.bf16 %v5356_v7, %v5355_v45  ;;  %v5329_v40 = vadd.f32 %v9458_v62, %v5290_v46  ;;  %v5292_v31 = vmul.f32 %v9456_v51, %v5253_v58 }
 0x2a9   : > { %v5359_v22 = vmax.f32 %v5327_v16, 0.0  ;;  %v5360_v11 = vmax.f32 %v5328_v59, 0.0  ;;  %v5330_v15 = vadd.f32 %v9458_v62, %v5291_v50  ;;  %v5293_v42 = vmul.f32 %v9456_v51, %v5254_v14 }
 0x2aa   : > { %v6318_v28 = vpack.c.bf16 %v5358_v44, %v5357_v35  ;;  %6357 = vst [vmem:[%s7631_s30 + $0x40] sm:$0xff] %v6313_v4   ;;  %v5361_v17 = vmax.f32 %v5329_v40, 0.0  ;;  %v5331_v57 = vadd.f32 %v9458_v62, %v5292_v31  ;;  %v5294_v6 = vmul.f32 %v9456_v51, %v5255_v19 }
 0x2ab   : > { %v5295_v0 = vmul.f32 %v9456_v51, %v5256_v8  ;;  %v6323_v32 = vpack.c.bf16 %v5360_v11, %v5359_v22  ;;  %v5362_v39 = vmax.f32 %v5330_v15, 0.0  ;;  %v5332_v55 = vadd.f32 %v9458_v62, %v5293_v42 }
 0x2ac   : > { %6358 = vst [vmem:[%s7631_s30 + $0x48] sm:$0xff] %v6318_v28   ;;  %v5296_v36 = vmul.f32 %v9456_v51, %v5257_v5  ;;  %v5363_v63 = vmax.f32 %v5331_v57, 0.0  ;;  %v5333_v23 = vadd.f32 %v9458_v62, %v5294_v6  ;;  %v5297_v2 = vmul.f32 %v9456_v51, %v5258_v61 }
 0x2ad   : > { %v5334_v27 = vadd.f32 %v9458_v62, %v5295_v0  ;;  %6359 = vst [vmem:[%s7631_s30 + $0x50] sm:$0xff] %v6323_v32   ;;  %v6328_v47 = vpack.c.bf16 %v5362_v39, %v5361_v17  ;;  %v5364_v20 = vmax.f32 %v5332_v55, 0.0  ;;  %v5298_v13 = vmul.f32 %v9456_v51, %v5259_v43 }
 0x2ae   : > { %v5335_v12 = vadd.f32 %v9458_v62, %v5296_v36  ;;  %v5365_v56 = vmax.f32 %v5333_v23, 0.0  ;;  %v5336_v60 = vadd.f32 %v9458_v62, %v5297_v2  ;;  %v5299_v24 = vmul.f32 %v9456_v51, %v5260_v52 }
 0x2af   : > { %v5366_v21 = vmax.f32 %v5334_v27, 0.0  ;;  %6360 = vst [vmem:[%s7631_s30 + $0x58] sm:$0xff] %v6328_v47   ;;  %v6333_v41 = vpack.c.bf16 %v5364_v20, %v5363_v63  ;;  %v5337_v48 = vadd.f32 %v9458_v62, %v5298_v13 }
 0x2b0   : > { %v5367_v33 = vmax.f32 %v5335_v12, 0.0  ;;  %v5368_v29 = vmax.f32 %v5336_v60, 0.0  ;;  %v5338_v25 = vadd.f32 %v9458_v62, %v5299_v24 }
 0x2b1   : > { %v6338_v49 = vpack.c.bf16 %v5366_v21, %v5365_v56  ;;  %6361 = vst [vmem:[%s7631_s30 + $0x60] sm:$0xff] %v6333_v41   ;;  %v5369_v54 = vmax.f32 %v5337_v48, 0.0 }
 0x2b2   : > { %v6343_v1 = vpack.c.bf16 %v5368_v29, %v5367_v33  ;;  %v5370_v26 = vmax.f32 %v5338_v25, 0.0 }
 0x2b3   : > { %6362 = vst [vmem:[%s7631_s30 + $0x68] sm:$0xff] %v6338_v49  }
 0x2b4   : > { %6363 = vst [vmem:[%s7631_s30 + $0x70] sm:$0xff] %v6343_v1   ;;  %v6348_v38 = vpack.c.bf16 %v5370_v26, %v5369_v54 }
 0x2b6   : > { %6364 = vst [vmem:[%s7631_s30 + $0x78] sm:$0xff] %v6348_v38  }
 0x2b7 PF: > { %s14_s19 = sadd.s32 1, %s7557_s19   ;;  %s9660_s15 = smov %s7549_s17 }
 0x2b8   : > { %p11_p0 = scmp.ge.s32.totalorder %s14_s19, 6   ;;  %s9661_s16 = smov %s7553_s18 }
 0x2b9   : > { %s9662_s17 = smov %s9665_s20  ;;  %s9663_s18 = smov %s9669_s21 }
 0x2ba   :  { %13 = sbr.rel (!%p11_p0) target bundleno = 3 (0x3), region = 94 }

</bundles_post_ra>
